<compile_context>
chip_gen: v5e
topology: v5e:2x2
jax: 0.10.0
libtpu: 0.0.40
codegen_flags: <defaults>
</compile_context>

<pallas_src>
import functools

import jax
import jax.numpy as jnp
from jax.experimental import pallas as pl
from jax.experimental.pallas import tpu as pltpu

BN_EPS = 1e-5


# ----------------------------------------------------------------------------
# Pallas kernels
# ----------------------------------------------------------------------------
def _conv_bn_act_kernel(x_ref, w_ref, b_ref, g_ref, be_ref, *rest,
                        activation, eps, inv_count, group_reduce, has_residual):
    """Fused: (M,K)@(K,Cw) + bias -> BatchNorm(batch stats) -> act (+ residual).

    When `group_reduce` (sub-pixel ConvTranspose), Cw = group*C and q_ref is a
    (Cw, Cw) same-channel indicator matrix: s @ q sums the per-channel statistics
    over the parity groups and broadcasts them back to the Cw layout in one dot.
    """
    idx = 0
    q_ref = None
    res_ref = None
    if group_reduce:
        q_ref = rest[idx]; idx += 1
    if has_residual:
        res_ref = rest[idx]; idx += 1
    o_ref = rest[idx]

    # MXU: bf16 x bf16 -> f32 accumulate.
    acc = jnp.dot(x_ref[...], w_ref[...], preferred_element_type=jnp.float32)
    acc = acc + b_ref[...]                                   # (M, Cw) + (1, Cw)

    # Batch statistics (biased variance) over all rows (and parity groups).
    s = jnp.sum(acc, axis=0, keepdims=True)                  # (1, Cw)
    ssq = jnp.sum(acc * acc, axis=0, keepdims=True)          # (1, Cw)
    if group_reduce:
        q = q_ref[...]
        s = jnp.dot(s, q, preferred_element_type=jnp.float32)
        ssq = jnp.dot(ssq, q, preferred_element_type=jnp.float32)
    mean = s * inv_count
    var = jnp.maximum(ssq * inv_count - mean * mean, 0.0)    # clamp: no NaN from rsqrt

    # Folded affine: y = acc * scale + shift.
    scale = g_ref[...] * jax.lax.rsqrt(var + eps)
    shift = be_ref[...] - mean * scale
    y = acc * scale + shift

    if activation == "elu":       # alpha = 1; safe exp range
        y = jnp.where(y > 0.0, y, jnp.exp(jnp.minimum(y, 0.0)) - 1.0)
    elif activation == "relu":
        y = jnp.maximum(y, 0.0)
    if has_residual:
        y = y + res_ref[...]
    o_ref[...] = y.astype(o_ref.dtype)


def _matmul_bias_act_kernel(x_ref, w_ref, b_ref, o_ref, *, activation):
    """One M-tile of (M,K)@(K,C) + bias, optionally fused tanh (decoder head)."""
    acc = jnp.dot(x_ref[...], w_ref[...], preferred_element_type=jnp.float32)
    acc = acc + b_ref[...]
    if activation == "tanh":
        acc = jnp.tanh(acc)
    o_ref[...] = acc.astype(o_ref.dtype)


# ----------------------------------------------------------------------------
# Pallas wrappers
# ----------------------------------------------------------------------------
def fused_matmul_bn_act(x, w, b, gamma, beta, *, activation, residual=None, group=1):
    """x: (M,K), w: (K,Cw), b/gamma/beta: (Cw,).  One fused pallas_call."""
    m, k = x.shape
    cw = w.shape[1]

    args = [x.astype(jnp.bfloat16), w.astype(jnp.bfloat16),
            b.reshape(1, cw).astype(jnp.float32),
            gamma.reshape(1, cw).astype(jnp.float32),
            beta.reshape(1, cw).astype(jnp.float32)]
    in_specs = [
        pl.BlockSpec((m, k), lambda i: (0, 0)),
        pl.BlockSpec((k, cw), lambda i: (0, 0)),
        pl.BlockSpec((1, cw), lambda i: (0, 0)),
        pl.BlockSpec((1, cw), lambda i: (0, 0)),
        pl.BlockSpec((1, cw), lambda i: (0, 0)),
    ]
    if group > 1:
        c = cw // group
        q = jnp.tile(jnp.eye(c, dtype=jnp.float32), (group, group))   # same-channel mask
        args.append(q)
        in_specs.append(pl.BlockSpec((cw, cw), lambda i: (0, 0)))
    if residual is not None:
        args.append(residual.astype(jnp.float32))
        in_specs.append(pl.BlockSpec((m, cw), lambda i: (0, 0)))

    kernel = functools.partial(
        _conv_bn_act_kernel, activation=activation, eps=BN_EPS,
        inv_count=1.0 / float(m * group), group_reduce=group > 1,
        has_residual=residual is not None)

    return pl.pallas_call(
        kernel,
        out_shape=jax.ShapeDtypeStruct((m, cw), jnp.float32),
        grid=(1,),
        in_specs=in_specs,
        out_specs=pl.BlockSpec((m, cw), lambda i: (0, 0)),
        compiler_params=pltpu.CompilerParams(dimension_semantics=("arbitrary",)),
    )(*args)


def _pick_tile(m):
    for t in (512, 256, 128):
        if m % t == 0:
            return t
    return m


def matmul_bias_act(x, w, b, activation="none"):
    """(M,K)@(K,C)+bias (+tanh), tiled over M with a parallel grid (no BN)."""
    m, k = x.shape
    c = w.shape[1]
    tm = _pick_tile(m)
    return pl.pallas_call(
        functools.partial(_matmul_bias_act_kernel, activation=activation),
        out_shape=jax.ShapeDtypeStruct((m, c), jnp.float32),
        grid=(m // tm,),
        in_specs=[pl.BlockSpec((tm, k), lambda i: (i, 0)),
                  pl.BlockSpec((k, c), lambda i: (0, 0)),
                  pl.BlockSpec((1, c), lambda i: (0, 0))],
        out_specs=pl.BlockSpec((tm, c), lambda i: (i, 0)),
        compiler_params=pltpu.CompilerParams(dimension_semantics=("parallel",)),
    )(x.astype(jnp.bfloat16), w.astype(jnp.bfloat16),
      b.reshape(1, c).astype(jnp.float32))


# ----------------------------------------------------------------------------
# Conv glue (reflection pad / im2col / pixel shuffle) in plain JAX
# ----------------------------------------------------------------------------
def reflection_pad(x_nhwc, p):
    return jnp.pad(x_nhwc, ((0, 0), (p, p), (p, p), (0, 0)), mode="reflect")


def _im2col(x_nhwc, k):
    n, hp, wp, c = x_nhwc.shape
    ho, wo = hp - k + 1, wp - k + 1
    cols = []
    for i in range(k):
        for j in range(k):
            cols.append(x_nhwc[:, i:i + ho, j:j + wo, :])
    patches = jnp.stack(cols, axis=3)               # (N, Ho, Wo, k*k, C)
    return patches.reshape(n * ho * wo, k * k * c), (n, ho, wo)


def conv2d_bn_act(x_nhwc, w_oihw, b, gamma, beta, activation, residual=None):
    """Valid conv (pad already applied) + BN + act (+ residual), one fused call."""
    co, ci, k, _ = w_oihw.shape
    patches, (n, ho, wo) = _im2col(x_nhwc, k)
    w_mat = jnp.transpose(w_oihw, (2, 3, 1, 0)).reshape(k * k * ci, co)  # (kh,kw,ci)->co
    res2d = None if residual is None else residual.reshape(-1, co)
    out = fused_matmul_bn_act(patches, w_mat, b, gamma, beta,
                              activation=activation, residual=res2d, group=1)
    return out.reshape(n, ho, wo, co)


def conv2d_bias_act(x_nhwc, w_oihw, b, activation="none"):
    """Valid conv + bias (+ tanh) — decoder head (no BN)."""
    co, ci, k, _ = w_oihw.shape
    patches, (n, ho, wo) = _im2col(x_nhwc, k)
    w_mat = jnp.transpose(w_oihw, (2, 3, 1, 0)).reshape(k * k * ci, co)
    out = matmul_bias_act(patches, w_mat, b, activation=activation)
    return out.reshape(n, ho, wo, co)


def conv_transpose_bn_relu(x_nhwc, w_iohw, b, gamma, beta):
    """ConvTranspose2d(k=3, s=2, p=1, op=1) + BN + ReLU via sub-pixel decomposition.

    Output pixel (2i+a, 2j+b) only sees inputs {x[i,j], x[i,j+1], x[i+1,j], x[i+1,j+1]}
    through a parity-dependent subset of the (flipped) kernel taps, so the whole layer
    is one (M, 4*Cin) @ (4*Cin, 4*Cout) matmul + fused BN/ReLU + pixel shuffle.
    """
    n, h, w, cin = x_nhwc.shape
    cout = w_iohw.shape[1]

    # 2x2 "forward" patches, zero-padded bottom/right (matches transposed-conv padding).
    xp = jnp.pad(x_nhwc, ((0, 0), (0, 1), (0, 1), (0, 0)))
    cols = [xp[:, di:di + h, dj:dj + w, :] for di in (0, 1) for dj in (0, 1)]
    patches = jnp.concatenate(cols, axis=-1).reshape(n * h * w, 4 * cin)

    # Block weight (4*Cin, 4*Cout): row-block = tap t in {(0,0),(0,1),(1,0),(1,1)},
    # col-block = output parity p = 2a+b.  tap(dh,dw) is the flipped/transposed kernel.
    def tap(dh, dw):
        return w_iohw[:, :, 2 - dh, 2 - dw].astype(jnp.float32)   # (Cin, Cout)
    zeros = jnp.zeros((cin, cout), jnp.float32)
    wb = jnp.block([
        [tap(1, 1), tap(1, 0), tap(0, 1), tap(0, 0)],   # uses x[i,   j  ]
        [zeros,     tap(1, 2), zeros,     tap(0, 2)],   # uses x[i,   j+1]
        [zeros,     zeros,     tap(2, 1), tap(2, 0)],   # uses x[i+1, j  ]
        [zeros,     zeros,     zeros,     tap(2, 2)],   # uses x[i+1, j+1]
    ])                                                   # (4*Cin, 4*Cout)

    out = fused_matmul_bn_act(patches, wb, jnp.tile(b, 4),
                              jnp.tile(gamma, 4), jnp.tile(beta, 4),
                              activation="relu", group=4)          # (M, 4*Cout)

    # Pixel shuffle: column p*Cout + co with p = 2a + b  ->  (n, 2h, 2w, Cout).
    y = out.reshape(n, h, w, 2, 2, cout)
    y = jnp.transpose(y, (0, 1, 3, 2, 4, 5)).reshape(n, 2 * h, 2 * w, cout)
    return y


# ----------------------------------------------------------------------------
# Parameters (mirrors weights_init: Conv ~ N(0, 0.02), BN weight ~ N(1, 0.02), bias 0)
# ----------------------------------------------------------------------------
def init_params(key, in_channels=32, out_channels=3):
    c = in_channels
    mid = in_channels // 4
    keys = iter(jax.random.split(key, 64))

    def conv_w(k_, co, ci, ks):
        return 0.02 * jax.random.normal(k_, (co, ci, ks, ks), jnp.float32)

    def conv_b(k_, co, fan_in):
        bound = 1.0 / (fan_in ** 0.5)   # PyTorch default conv bias init
        return jax.random.uniform(k_, (co,), jnp.float32, -bound, bound)

    def bn_p(k_, ch):
        return {"gamma": 1.0 + 0.02 * jax.random.normal(k_, (ch,), jnp.float32),
                "beta": jnp.zeros((ch,), jnp.float32)}

    hard = []
    for _ in range(6):
        hard.append({
            "w1": conv_w(next(keys), c, c, 3), "b1": conv_b(next(keys), c, c * 9),
            "bn1": bn_p(next(keys), c),
            "w2": conv_w(next(keys), c, c, 3), "b2": conv_b(next(keys), c, c * 9),
            "bn2": bn_p(next(keys), c),
        })

    soft = []
    cin = c
    for _ in range(2):
        cout = cin // 2
        soft.append({
            # ConvTranspose2d weight layout: (C_in, C_out, kH, kW)
            "w": 0.02 * jax.random.normal(next(keys), (cin, cout, 3, 3), jnp.float32),
            "b": conv_b(next(keys), cout, cin * 9),
            "bn": bn_p(next(keys), cout),
        })
        cin = cout

    dec = {
        "w": 0.02 * jax.random.normal(next(keys), (out_channels, mid, 7, 7), jnp.float32),
        "b": conv_b(next(keys), out_channels, mid * 49),
    }
    return {"hard": hard, "soft": soft, "dec": dec}


# ----------------------------------------------------------------------------
# Full Generator forward
# ----------------------------------------------------------------------------
def generator_forward(x_nchw, params):
    x = jnp.transpose(x_nchw, (0, 2, 3, 1)).astype(jnp.float32)   # NCHW -> NHWC

    # HardShare: 6 residual blocks (pad->conv->BN->ELU->pad->conv->BN, + input).
    for rb in params["hard"]:
        h = reflection_pad(x, 1)
        h = conv2d_bn_act(h, rb["w1"], rb["b1"],
                          rb["bn1"]["gamma"], rb["bn1"]["beta"], activation="elu")
        h = reflection_pad(h, 1)
        x = conv2d_bn_act(h, rb["w2"], rb["b2"],
                          rb["bn2"]["gamma"], rb["bn2"]["beta"],
                          activation="none", residual=x)

    # SoftShare: 2x (ConvTranspose2d stride 2 -> BN -> ReLU), channels /2, spatial x2.
    for layer in params["soft"]:
        x = conv_transpose_bn_relu(x, layer["w"], layer["b"],
                                   layer["bn"]["gamma"], layer["bn"]["beta"])

    # Decoder_Generator: ReflectionPad2d(3) -> Conv2d(k=7) -> Tanh (tanh fused in matmul).
    x = reflection_pad(x, 3)
    x = conv2d_bias_act(x, params["dec"]["w"], params["dec"]["b"], activation="tanh")

    return jnp.transpose(x, (0, 3, 1, 2))   # back to NCHW


if __name__ == "__main__":
    key = jax.random.PRNGKey(0)
    pkey, xkey = jax.random.split(key)

    IN_CH, OUT_CH, N, H, W = 32, 3, 2, 8, 8   # small shapes consistent with Generator
    params = init_params(pkey, in_channels=IN_CH, out_channels=OUT_CH)
    x = jax.random.normal(xkey, (N, IN_CH, H, W), jnp.float32)

    fwd = jax.jit(generator_forward)
    out = jax.block_until_ready(fwd(x, params))

    assert out.shape == (N, OUT_CH, 4 * H, 4 * W), out.shape
    assert bool(jnp.all(jnp.isfinite(out)))
    assert bool(jnp.all(jnp.abs(out) <= 1.0 + 1e-6))   # tanh output range
    print("KERNEL_OK")
</pallas_src>

<mosaic_0001>
module attributes {stable_mosaic.version = 11 : i64} {
  func.func @_conv_bn_act_kernel(%arg0: i32, %arg1: memref<128x288xbf16, #tpu.memory_space<vmem>>, %arg2: memref<288x32xbf16, #tpu.memory_space<vmem>>, %arg3: memref<1x32xf32, #tpu.memory_space<vmem>>, %arg4: memref<1x32xf32, #tpu.memory_space<vmem>>, %arg5: memref<1x32xf32, #tpu.memory_space<vmem>>, %arg6: memref<128x32xf32, #tpu.memory_space<vmem>>) attributes {dimension_semantics = [#tpu.dimension_semantics<arbitrary>], iteration_bounds = array<i64: 1>, scalar_prefetch = 0 : i64, scratch_operands = 0 : i64, tpu.core_type = #tpu.core_type<tc>, window_params = [{pipeline_mode = #tpu.pipeline_mode<synchronous>, transform_indices = @transform_0, window_bounds = array<i64: 128, 288>}, {pipeline_mode = #tpu.pipeline_mode<synchronous>, transform_indices = @transform_1, window_bounds = array<i64: 288, 32>}, {pipeline_mode = #tpu.pipeline_mode<synchronous>, transform_indices = @transform_2, window_bounds = array<i64: 1, 32>}, {pipeline_mode = #tpu.pipeline_mode<synchronous>, transform_indices = @transform_3, window_bounds = array<i64: 1, 32>}, {pipeline_mode = #tpu.pipeline_mode<synchronous>, transform_indices = @transform_4, window_bounds = array<i64: 1, 32>}, {pipeline_mode = #tpu.pipeline_mode<synchronous>, transform_indices = @transform_5, window_bounds = array<i64: 128, 32>}]} {
    %c0 = arith.constant 0 : index
    %c0_0 = arith.constant 0 : index
    %0 = vector.load %arg1[%c0, %c0_0] : memref<128x288xbf16, #tpu.memory_space<vmem>>, vector<128x288xbf16>
    %c0_1 = arith.constant 0 : index
    %c0_2 = arith.constant 0 : index
    %1 = vector.load %arg2[%c0_1, %c0_2] : memref<288x32xbf16, #tpu.memory_space<vmem>>, vector<288x32xbf16>
    %cst = arith.constant dense<0.000000e+00> : vector<128x32xf32>
    %2 = tpu.matmul %0, %1, %cst {dimension_numbers = #tpu.dot_dimension_numbers<[1], [0], [0], [1], [0, 0, 1, 1], [], []>} : vector<128x288xbf16>, vector<288x32xbf16>, vector<128x32xf32> -> vector<128x32xf32>
    %c0_3 = arith.constant 0 : index
    %c0_4 = arith.constant 0 : index
    %3 = vector.load %arg3[%c0_3, %c0_4] : memref<1x32xf32, #tpu.memory_space<vmem>>, vector<1x32xf32>
    %4 = vector.broadcast %3 : vector<1x32xf32> to vector<128x32xf32>
    %5 = arith.addf %2, %4 : vector<128x32xf32>
    %cst_5 = arith.constant dense<0.000000e+00> : vector<32xf32>
    %6 = vector.multi_reduction <add>, %5, %cst_5 [0] : vector<128x32xf32> to vector<32xf32>
    %7 = vector.shape_cast %6 : vector<32xf32> to vector<1x32xf32>
    %8 = arith.mulf %5, %5 : vector<128x32xf32>
    %cst_6 = arith.constant dense<0.000000e+00> : vector<32xf32>
    %9 = vector.multi_reduction <add>, %8, %cst_6 [0] : vector<128x32xf32> to vector<32xf32>
    %10 = vector.shape_cast %9 : vector<32xf32> to vector<1x32xf32>
    %cst_7 = arith.constant 7.812500e-03 : f32
    %11 = vector.broadcast %cst_7 : f32 to vector<1x32xf32>
    %12 = arith.mulf %7, %11 : vector<1x32xf32>
    %cst_8 = arith.constant 7.812500e-03 : f32
    %13 = vector.broadcast %cst_8 : f32 to vector<1x32xf32>
    %14 = arith.mulf %10, %13 : vector<1x32xf32>
    %15 = arith.mulf %12, %12 : vector<1x32xf32>
    %16 = arith.subf %14, %15 : vector<1x32xf32>
    %cst_9 = arith.constant 0.000000e+00 : f32
    %17 = vector.broadcast %cst_9 : f32 to vector<1x32xf32>
    %18 = arith.maximumf %16, %17 : vector<1x32xf32>
    %c0_10 = arith.constant 0 : index
    %c0_11 = arith.constant 0 : index
    %19 = vector.load %arg4[%c0_10, %c0_11] : memref<1x32xf32, #tpu.memory_space<vmem>>, vector<1x32xf32>
    %cst_12 = arith.constant 9.99999974E-6 : f32
    %20 = vector.broadcast %cst_12 : f32 to vector<1x32xf32>
    %21 = arith.addf %18, %20 : vector<1x32xf32>
    %22 = math.rsqrt %21 : vector<1x32xf32>
    %23 = arith.mulf %19, %22 : vector<1x32xf32>
    %c0_13 = arith.constant 0 : index
    %c0_14 = arith.constant 0 : index
    %24 = vector.load %arg5[%c0_13, %c0_14] : memref<1x32xf32, #tpu.memory_space<vmem>>, vector<1x32xf32>
    %25 = arith.mulf %12, %23 : vector<1x32xf32>
    %26 = arith.subf %24, %25 : vector<1x32xf32>
    %27 = vector.broadcast %23 : vector<1x32xf32> to vector<128x32xf32>
    %28 = arith.mulf %5, %27 : vector<128x32xf32>
    %29 = vector.broadcast %26 : vector<1x32xf32> to vector<128x32xf32>
    %30 = arith.addf %28, %29 : vector<128x32xf32>
    %cst_15 = arith.constant 0.000000e+00 : f32
    %31 = vector.broadcast %cst_15 : f32 to vector<128x32xf32>
    %32 = arith.cmpf ogt, %30, %31 : vector<128x32xf32>
    %cst_16 = arith.constant 0.000000e+00 : f32
    %33 = vector.broadcast %cst_16 : f32 to vector<128x32xf32>
    %34 = arith.minimumf %30, %33 : vector<128x32xf32>
    %35 = math.exp %34 : vector<128x32xf32>
    %cst_17 = arith.constant 1.000000e+00 : f32
    %36 = vector.broadcast %cst_17 : f32 to vector<128x32xf32>
    %37 = arith.subf %35, %36 : vector<128x32xf32>
    %38 = arith.select %32, %30, %37 : vector<128x32xi1>, vector<128x32xf32>
    %c0_18 = arith.constant 0 : index
    %c0_19 = arith.constant 0 : index
    %39 = vector.load %arg6[%c0_18, %c0_19] : memref<128x32xf32, #tpu.memory_space<vmem>>, vector<128x32xf32>
    tpu.vector_store %arg6[%c0_18, %c0_19], %38 {strides = array<i32>} : memref<128x32xf32, #tpu.memory_space<vmem>>, vector<128x32xf32>,
    return
  }
  func.func @transform_0(%arg0: i32) -> (i32, i32) {
    %c0_i32 = arith.constant 0 : i32
    %c0_i32_0 = arith.constant 0 : i32
    %c0_i32_1 = arith.constant 0 : i32
    return %c0_i32, %c0_i32_0 : i32, i32
  }
  func.func @transform_1(%arg0: i32) -> (i32, i32) {
    %c0_i32 = arith.constant 0 : i32
    %c0_i32_0 = arith.constant 0 : i32
    %c0_i32_1 = arith.constant 0 : i32
    return %c0_i32, %c0_i32_0 : i32, i32
  }
  func.func @transform_2(%arg0: i32) -> (i32, i32) {
    %c0_i32 = arith.constant 0 : i32
    %c0_i32_0 = arith.constant 0 : i32
    %c0_i32_1 = arith.constant 0 : i32
    return %c0_i32, %c0_i32_0 : i32, i32
  }
  func.func @transform_3(%arg0: i32) -> (i32, i32) {
    %c0_i32 = arith.constant 0 : i32
    %c0_i32_0 = arith.constant 0 : i32
    %c0_i32_1 = arith.constant 0 : i32
    return %c0_i32, %c0_i32_0 : i32, i32
  }
  func.func @transform_4(%arg0: i32) -> (i32, i32) {
    %c0_i32 = arith.constant 0 : i32
    %c0_i32_0 = arith.constant 0 : i32
    %c0_i32_1 = arith.constant 0 : i32
    return %c0_i32, %c0_i32_0 : i32, i32
  }
  func.func @transform_5(%arg0: i32) -> (i32, i32) {
    %c0_i32 = arith.constant 0 : i32
    %c0_i32_0 = arith.constant 0 : i32
    %c0_i32_1 = arith.constant 0 : i32
    return %c0_i32, %c0_i32_0 : i32, i32
  }
}

module attributes {stable_mosaic.version = 11 : i64} {
  func.func @_conv_bn_act_kernel(%arg0: i32, %arg1: memref<128x288xbf16, #tpu.memory_space<vmem>>, %arg2: memref<288x32xbf16, #tpu.memory_space<vmem>>, %arg3: memref<1x32xf32, #tpu.memory_space<vmem>>, %arg4: memref<1x32xf32, #tpu.memory_space<vmem>>, %arg5: memref<1x32xf32, #tpu.memory_space<vmem>>, %arg6: memref<128x32xf32, #tpu.memory_space<vmem>>, %arg7: memref<128x32xf32, #tpu.memory_space<vmem>>) attributes {dimension_semantics = [#tpu.dimension_semantics<arbitrary>], iteration_bounds = array<i64: 1>, scalar_prefetch = 0 : i64, scratch_operands = 0 : i64, tpu.core_type = #tpu.core_type<tc>, window_params = [{pipeline_mode = #tpu.pipeline_mode<synchronous>, transform_indices = @transform_0, window_bounds = array<i64: 128, 288>}, {pipeline_mode = #tpu.pipeline_mode<synchronous>, transform_indices = @transform_1, window_bounds = array<i64: 288, 32>}, {pipeline_mode = #tpu.pipeline_mode<synchronous>, transform_indices = @transform_2, window_bounds = array<i64: 1, 32>}, {pipeline_mode = #tpu.pipeline_mode<synchronous>, transform_indices = @transform_3, window_bounds = array<i64: 1, 32>}, {pipeline_mode = #tpu.pipeline_mode<synchronous>, transform_indices = @transform_4, window_bounds = array<i64: 1, 32>}, {pipeline_mode = #tpu.pipeline_mode<synchronous>, transform_indices = @transform_5, window_bounds = array<i64: 128, 32>}, {pipeline_mode = #tpu.pipeline_mode<synchronous>, transform_indices = @transform_6, window_bounds = array<i64: 128, 32>}]} {
    %c0 = arith.constant 0 : index
    %c0_0 = arith.constant 0 : index
    %0 = vector.load %arg1[%c0, %c0_0] : memref<128x288xbf16, #tpu.memory_space<vmem>>, vector<128x288xbf16>
    %c0_1 = arith.constant 0 : index
    %c0_2 = arith.constant 0 : index
    %1 = vector.load %arg2[%c0_1, %c0_2] : memref<288x32xbf16, #tpu.memory_space<vmem>>, vector<288x32xbf16>
    %cst = arith.constant dense<0.000000e+00> : vector<128x32xf32>
    %2 = tpu.matmul %0, %1, %cst {dimension_numbers = #tpu.dot_dimension_numbers<[1], [0], [0], [1], [0, 0, 1, 1], [], []>} : vector<128x288xbf16>, vector<288x32xbf16>, vector<128x32xf32> -> vector<128x32xf32>
    %c0_3 = arith.constant 0 : index
    %c0_4 = arith.constant 0 : index
    %3 = vector.load %arg3[%c0_3, %c0_4] : memref<1x32xf32, #tpu.memory_space<vmem>>, vector<1x32xf32>
    %4 = vector.broadcast %3 : vector<1x32xf32> to vector<128x32xf32>
    %5 = arith.addf %2, %4 : vector<128x32xf32>
    %cst_5 = arith.constant dense<0.000000e+00> : vector<32xf32>
    %6 = vector.multi_reduction <add>, %5, %cst_5 [0] : vector<128x32xf32> to vector<32xf32>
    %7 = vector.shape_cast %6 : vector<32xf32> to vector<1x32xf32>
    %8 = arith.mulf %5, %5 : vector<128x32xf32>
    %cst_6 = arith.constant dense<0.000000e+00> : vector<32xf32>
    %9 = vector.multi_reduction <add>, %8, %cst_6 [0] : vector<128x32xf32> to vector<32xf32>
    %10 = vector.shape_cast %9 : vector<32xf32> to vector<1x32xf32>
    %cst_7 = arith.constant 7.812500e-03 : f32
    %11 = vector.broadcast %cst_7 : f32 to vector<1x32xf32>
    %12 = arith.mulf %7, %11 : vector<1x32xf32>
    %cst_8 = arith.constant 7.812500e-03 : f32
    %13 = vector.broadcast %cst_8 : f32 to vector<1x32xf32>
    %14 = arith.mulf %10, %13 : vector<1x32xf32>
    %15 = arith.mulf %12, %12 : vector<1x32xf32>
    %16 = arith.subf %14, %15 : vector<1x32xf32>
    %cst_9 = arith.constant 0.000000e+00 : f32
    %17 = vector.broadcast %cst_9 : f32 to vector<1x32xf32>
    %18 = arith.maximumf %16, %17 : vector<1x32xf32>
    %c0_10 = arith.constant 0 : index
    %c0_11 = arith.constant 0 : index
    %19 = vector.load %arg4[%c0_10, %c0_11] : memref<1x32xf32, #tpu.memory_space<vmem>>, vector<1x32xf32>
    %cst_12 = arith.constant 9.99999974E-6 : f32
    %20 = vector.broadcast %cst_12 : f32 to vector<1x32xf32>
    %21 = arith.addf %18, %20 : vector<1x32xf32>
    %22 = math.rsqrt %21 : vector<1x32xf32>
    %23 = arith.mulf %19, %22 : vector<1x32xf32>
    %c0_13 = arith.constant 0 : index
    %c0_14 = arith.constant 0 : index
    %24 = vector.load %arg5[%c0_13, %c0_14] : memref<1x32xf32, #tpu.memory_space<vmem>>, vector<1x32xf32>
    %25 = arith.mulf %12, %23 : vector<1x32xf32>
    %26 = arith.subf %24, %25 : vector<1x32xf32>
    %27 = vector.broadcast %23 : vector<1x32xf32> to vector<128x32xf32>
    %28 = arith.mulf %5, %27 : vector<128x32xf32>
    %29 = vector.broadcast %26 : vector<1x32xf32> to vector<128x32xf32>
    %30 = arith.addf %28, %29 : vector<128x32xf32>
    %c0_15 = arith.constant 0 : index
    %c0_16 = arith.constant 0 : index
    %31 = vector.load %arg6[%c0_15, %c0_16] : memref<128x32xf32, #tpu.memory_space<vmem>>, vector<128x32xf32>
    %32 = arith.addf %30, %31 : vector<128x32xf32>
    %c0_17 = arith.constant 0 : index
    %c0_18 = arith.constant 0 : index
    %33 = vector.load %arg7[%c0_17, %c0_18] : memref<128x32xf32, #tpu.memory_space<vmem>>, vector<128x32xf32>
    tpu.vector_store %arg7[%c0_17, %c0_18], %32 {strides = array<i32>} : memref<128x32xf32, #tpu.memory_space<vmem>>, vector<128x32xf32>,
    return
  }
  func.func @transform_0(%arg0: i32) -> (i32, i32) {
    %c0_i32 = arith.constant 0 : i32
    %c0_i32_0 = arith.constant 0 : i32
    %c0_i32_1 = arith.constant 0 : i32
    return %c0_i32, %c0_i32_0 : i32, i32
  }
  func.func @transform_1(%arg0: i32) -> (i32, i32) {
    %c0_i32 = arith.constant 0 : i32
    %c0_i32_0 = arith.constant 0 : i32
    %c0_i32_1 = arith.constant 0 : i32
    return %c0_i32, %c0_i32_0 : i32, i32
  }
  func.func @transform_2(%arg0: i32) -> (i32, i32) {
    %c0_i32 = arith.constant 0 : i32
    %c0_i32_0 = arith.constant 0 : i32
    %c0_i32_1 = arith.constant 0 : i32
    return %c0_i32, %c0_i32_0 : i32, i32
  }
  func.func @transform_3(%arg0: i32) -> (i32, i32) {
    %c0_i32 = arith.constant 0 : i32
    %c0_i32_0 = arith.constant 0 : i32
    %c0_i32_1 = arith.constant 0 : i32
    return %c0_i32, %c0_i32_0 : i32, i32
  }
  func.func @transform_4(%arg0: i32) -> (i32, i32) {
    %c0_i32 = arith.constant 0 : i32
    %c0_i32_0 = arith.constant 0 : i32
    %c0_i32_1 = arith.constant 0 : i32
    return %c0_i32, %c0_i32_0 : i32, i32
  }
  func.func @transform_5(%arg0: i32) -> (i32, i32) {
    %c0_i32 = arith.constant 0 : i32
    %c0_i32_0 = arith.constant 0 : i32
    %c0_i32_1 = arith.constant 0 : i32
    return %c0_i32, %c0_i32_0 : i32, i32
  }
  func.func @transform_6(%arg0: i32) -> (i32, i32) {
    %c0_i32 = arith.constant 0 : i32
    %c0_i32_0 = arith.constant 0 : i32
    %c0_i32_1 = arith.constant 0 : i32
    return %c0_i32, %c0_i32_0 : i32, i32
  }
}

module attributes {stable_mosaic.version = 11 : i64} {
  func.func @_conv_bn_act_kernel(%arg0: i32, %arg1: memref<128x288xbf16, #tpu.memory_space<vmem>>, %arg2: memref<288x32xbf16, #tpu.memory_space<vmem>>, %arg3: memref<1x32xf32, #tpu.memory_space<vmem>>, %arg4: memref<1x32xf32, #tpu.memory_space<vmem>>, %arg5: memref<1x32xf32, #tpu.memory_space<vmem>>, %arg6: memref<128x32xf32, #tpu.memory_space<vmem>>, %arg7: memref<128x32xf32, #tpu.memory_space<vmem>>) attributes {dimension_semantics = [#tpu.dimension_semantics<arbitrary>], iteration_bounds = array<i64: 1>, scalar_prefetch = 0 : i64, scratch_operands = 0 : i64, tpu.core_type = #tpu.core_type<tc>, window_params = [{pipeline_mode = #tpu.pipeline_mode<synchronous>, transform_indices = @transform_0, window_bounds = array<i64: 128, 288>}, {pipeline_mode = #tpu.pipeline_mode<synchronous>, transform_indices = @transform_1, window_bounds = array<i64: 288, 32>}, {pipeline_mode = #tpu.pipeline_mode<synchronous>, transform_indices = @transform_2, window_bounds = array<i64: 1, 32>}, {pipeline_mode = #tpu.pipeline_mode<synchronous>, transform_indices = @transform_3, window_bounds = array<i64: 1, 32>}, {pipeline_mode = #tpu.pipeline_mode<synchronous>, transform_indices = @transform_4, window_bounds = array<i64: 1, 32>}, {pipeline_mode = #tpu.pipeline_mode<synchronous>, transform_indices = @transform_5, window_bounds = array<i64: 128, 32>}, {pipeline_mode = #tpu.pipeline_mode<synchronous>, transform_indices = @transform_6, window_bounds = array<i64: 128, 32>}]} {
    %c0 = arith.constant 0 : index
    %c0_0 = arith.constant 0 : index
    %0 = vector.load %arg1[%c0, %c0_0] : memref<128x288xbf16, #tpu.memory_space<vmem>>, vector<128x288xbf16>
    %c0_1 = arith.constant 0 : index
    %c0_2 = arith.constant 0 : index
    %1 = vector.load %arg2[%c0_1, %c0_2] : memref<288x32xbf16, #tpu.memory_space<vmem>>, vector<288x32xbf16>
    %cst = arith.constant dense<0.000000e+00> : vector<128x32xf32>
    %2 = tpu.matmul %0, %1, %cst {dimension_numbers = #tpu.dot_dimension_numbers<[1], [0], [0], [1], [0, 0, 1, 1], [], []>} : vector<128x288xbf16>, vector<288x32xbf16>, vector<128x32xf32> -> vector<128x32xf32>
    %c0_3 = arith.constant 0 : index
    %c0_4 = arith.constant 0 : index
    %3 = vector.load %arg3[%c0_3, %c0_4] : memref<1x32xf32, #tpu.memory_space<vmem>>, vector<1x32xf32>
    %4 = vector.broadcast %3 : vector<1x32xf32> to vector<128x32xf32>
    %5 = arith.addf %2, %4 : vector<128x32xf32>
    %cst_5 = arith.constant dense<0.000000e+00> : vector<32xf32>
    %6 = vector.multi_reduction <add>, %5, %cst_5 [0] : vector<128x32xf32> to vector<32xf32>
    %7 = vector.shape_cast %6 : vector<32xf32> to vector<1x32xf32>
    %8 = arith.mulf %5, %5 : vector<128x32xf32>
    %cst_6 = arith.constant dense<0.000000e+00> : vector<32xf32>
    %9 = vector.multi_reduction <add>, %8, %cst_6 [0] : vector<128x32xf32> to vector<32xf32>
    %10 = vector.shape_cast %9 : vector<32xf32> to vector<1x32xf32>
    %cst_7 = arith.constant 7.812500e-03 : f32
    %11 = vector.broadcast %cst_7 : f32 to vector<1x32xf32>
    %12 = arith.mulf %7, %11 : vector<1x32xf32>
    %cst_8 = arith.constant 7.812500e-03 : f32
    %13 = vector.broadcast %cst_8 : f32 to vector<1x32xf32>
    %14 = arith.mulf %10, %13 : vector<1x32xf32>
    %15 = arith.mulf %12, %12 : vector<1x32xf32>
    %16 = arith.subf %14, %15 : vector<1x32xf32>
    %cst_9 = arith.constant 0.000000e+00 : f32
    %17 = vector.broadcast %cst_9 : f32 to vector<1x32xf32>
    %18 = arith.maximumf %16, %17 : vector<1x32xf32>
    %c0_10 = arith.constant 0 : index
    %c0_11 = arith.constant 0 : index
    %19 = vector.load %arg4[%c0_10, %c0_11] : memref<1x32xf32, #tpu.memory_space<vmem>>, vector<1x32xf32>
    %cst_12 = arith.constant 9.99999974E-6 : f32
    %20 = vector.broadcast %cst_12 : f32 to vector<1x32xf32>
    %21 = arith.addf %18, %20 : vector<1x32xf32>
    %22 = math.rsqrt %21 : vector<1x32xf32>
    %23 = arith.mulf %19, %22 : vector<1x32xf32>
    %c0_13 = arith.constant 0 : index
    %c0_14 = arith.constant 0 : index
    %24 = vector.load %arg5[%c0_13, %c0_14] : memref<1x32xf32, #tpu.memory_space<vmem>>, vector<1x32xf32>
    %25 = arith.mulf %12, %23 : vector<1x32xf32>
    %26 = arith.subf %24, %25 : vector<1x32xf32>
    %27 = vector.broadcast %23 : vector<1x32xf32> to vector<128x32xf32>
    %28 = arith.mulf %5, %27 : vector<128x32xf32>
    %29 = vector.broadcast %26 : vector<1x32xf32> to vector<128x32xf32>
    %30 = arith.addf %28, %29 : vector<128x32xf32>
    %c0_15 = arith.constant 0 : index
    %c0_16 = arith.constant 0 : index
    %31 = vector.load %arg6[%c0_15, %c0_16] : memref<128x32xf32, #tpu.memory_space<vmem>>, vector<128x32xf32>
    %32 = arith.addf %30, %31 : vector<128x32xf32>
    %c0_17 = arith.constant 0 : index
    %c0_18 = arith.constant 0 : index
    %33 = vector.load %arg7[%c0_17, %c0_18] : memref<128x32xf32, #tpu.memory_space<vmem>>, vector<128x32xf32>
    tpu.vector_store %arg7[%c0_17, %c0_18], %32 {strides = array<i32>} : memref<128x32xf32, #tpu.memory_space<vmem>>, vector<128x32xf32>,
    return
  }
  func.func @transform_0(%arg0: i32) -> (i32, i32) {
    %c0_i32 = arith.constant 0 : i32
    %c0_i32_0 = arith.constant 0 : i32
    %c0_i32_1 = arith.constant 0 : i32
    return %c0_i32, %c0_i32_0 : i32, i32
  }
  func.func @transform_1(%arg0: i32) -> (i32, i32) {
    %c0_i32 = arith.constant 0 : i32
    %c0_i32_0 = arith.constant 0 : i32
    %c0_i32_1 = arith.constant 0 : i32
    return %c0_i32, %c0_i32_0 : i32, i32
  }
  func.func @transform_2(%arg0: i32) -> (i32, i32) {
    %c0_i32 = arith.constant 0 : i32
    %c0_i32_0 = arith.constant 0 : i32
    %c0_i32_1 = arith.constant 0 : i32
    return %c0_i32, %c0_i32_0 : i32, i32
  }
  func.func @transform_3(%arg0: i32) -> (i32, i32) {
    %c0_i32 = arith.constant 0 : i32
    %c0_i32_0 = arith.constant 0 : i32
    %c0_i32_1 = arith.constant 0 : i32
    return %c0_i32, %c0_i32_0 : i32, i32
  }
  func.func @transform_4(%arg0: i32) -> (i32, i32) {
    %c0_i32 = arith.constant 0 : i32
    %c0_i32_0 = arith.constant 0 : i32
    %c0_i32_1 = arith.constant 0 : i32
    return %c0_i32, %c0_i32_0 : i32, i32
  }
  func.func @transform_5(%arg0: i32) -> (i32, i32) {
    %c0_i32 = arith.constant 0 : i32
    %c0_i32_0 = arith.constant 0 : i32
    %c0_i32_1 = arith.constant 0 : i32
    return %c0_i32, %c0_i32_0 : i32, i32
  }
  func.func @transform_6(%arg0: i32) -> (i32, i32) {
    %c0_i32 = arith.constant 0 : i32
    %c0_i32_0 = arith.constant 0 : i32
    %c0_i32_1 = arith.constant 0 : i32
    return %c0_i32, %c0_i32_0 : i32, i32
  }
}

module attributes {stable_mosaic.version = 11 : i64} {
  func.func @_conv_bn_act_kernel(%arg0: i32, %arg1: memref<128x288xbf16, #tpu.memory_space<vmem>>, %arg2: memref<288x32xbf16, #tpu.memory_space<vmem>>, %arg3: memref<1x32xf32, #tpu.memory_space<vmem>>, %arg4: memref<1x32xf32, #tpu.memory_space<vmem>>, %arg5: memref<1x32xf32, #tpu.memory_space<vmem>>, %arg6: memref<128x32xf32, #tpu.memory_space<vmem>>) attributes {dimension_semantics = [#tpu.dimension_semantics<arbitrary>], iteration_bounds = array<i64: 1>, scalar_prefetch = 0 : i64, scratch_operands = 0 : i64, tpu.core_type = #tpu.core_type<tc>, window_params = [{pipeline_mode = #tpu.pipeline_mode<synchronous>, transform_indices = @transform_0, window_bounds = array<i64: 128, 288>}, {pipeline_mode = #tpu.pipeline_mode<synchronous>, transform_indices = @transform_1, window_bounds = array<i64: 288, 32>}, {pipeline_mode = #tpu.pipeline_mode<synchronous>, transform_indices = @transform_2, window_bounds = array<i64: 1, 32>}, {pipeline_mode = #tpu.pipeline_mode<synchronous>, transform_indices = @transform_3, window_bounds = array<i64: 1, 32>}, {pipeline_mode = #tpu.pipeline_mode<synchronous>, transform_indices = @transform_4, window_bounds = array<i64: 1, 32>}, {pipeline_mode = #tpu.pipeline_mode<synchronous>, transform_indices = @transform_5, window_bounds = array<i64: 128, 32>}]} {
    %c0 = arith.constant 0 : index
    %c0_0 = arith.constant 0 : index
    %0 = vector.load %arg1[%c0, %c0_0] : memref<128x288xbf16, #tpu.memory_space<vmem>>, vector<128x288xbf16>
    %c0_1 = arith.constant 0 : index
    %c0_2 = arith.constant 0 : index
    %1 = vector.load %arg2[%c0_1, %c0_2] : memref<288x32xbf16, #tpu.memory_space<vmem>>, vector<288x32xbf16>
    %cst = arith.constant dense<0.000000e+00> : vector<128x32xf32>
    %2 = tpu.matmul %0, %1, %cst {dimension_numbers = #tpu.dot_dimension_numbers<[1], [0], [0], [1], [0, 0, 1, 1], [], []>} : vector<128x288xbf16>, vector<288x32xbf16>, vector<128x32xf32> -> vector<128x32xf32>
    %c0_3 = arith.constant 0 : index
    %c0_4 = arith.constant 0 : index
    %3 = vector.load %arg3[%c0_3, %c0_4] : memref<1x32xf32, #tpu.memory_space<vmem>>, vector<1x32xf32>
    %4 = vector.broadcast %3 : vector<1x32xf32> to vector<128x32xf32>
    %5 = arith.addf %2, %4 : vector<128x32xf32>
    %cst_5 = arith.constant dense<0.000000e+00> : vector<32xf32>
    %6 = vector.multi_reduction <add>, %5, %cst_5 [0] : vector<128x32xf32> to vector<32xf32>
    %7 = vector.shape_cast %6 : vector<32xf32> to vector<1x32xf32>
    %8 = arith.mulf %5, %5 : vector<128x32xf32>
    %cst_6 = arith.constant dense<0.000000e+00> : vector<32xf32>
    %9 = vector.multi_reduction <add>, %8, %cst_6 [0] : vector<128x32xf32> to vector<32xf32>
    %10 = vector.shape_cast %9 : vector<32xf32> to vector<1x32xf32>
    %cst_7 = arith.constant 7.812500e-03 : f32
    %11 = vector.broadcast %cst_7 : f32 to vector<1x32xf32>
    %12 = arith.mulf %7, %11 : vector<1x32xf32>
    %cst_8 = arith.constant 7.812500e-03 : f32
    %13 = vector.broadcast %cst_8 : f32 to vector<1x32xf32>
    %14 = arith.mulf %10, %13 : vector<1x32xf32>
    %15 = arith.mulf %12, %12 : vector<1x32xf32>
    %16 = arith.subf %14, %15 : vector<1x32xf32>
    %cst_9 = arith.constant 0.000000e+00 : f32
    %17 = vector.broadcast %cst_9 : f32 to vector<1x32xf32>
    %18 = arith.maximumf %16, %17 : vector<1x32xf32>
    %c0_10 = arith.constant 0 : index
    %c0_11 = arith.constant 0 : index
    %19 = vector.load %arg4[%c0_10, %c0_11] : memref<1x32xf32, #tpu.memory_space<vmem>>, vector<1x32xf32>
    %cst_12 = arith.constant 9.99999974E-6 : f32
    %20 = vector.broadcast %cst_12 : f32 to vector<1x32xf32>
    %21 = arith.addf %18, %20 : vector<1x32xf32>
    %22 = math.rsqrt %21 : vector<1x32xf32>
    %23 = arith.mulf %19, %22 : vector<1x32xf32>
    %c0_13 = arith.constant 0 : index
    %c0_14 = arith.constant 0 : index
    %24 = vector.load %arg5[%c0_13, %c0_14] : memref<1x32xf32, #tpu.memory_space<vmem>>, vector<1x32xf32>
    %25 = arith.mulf %12, %23 : vector<1x32xf32>
    %26 = arith.subf %24, %25 : vector<1x32xf32>
    %27 = vector.broadcast %23 : vector<1x32xf32> to vector<128x32xf32>
    %28 = arith.mulf %5, %27 : vector<128x32xf32>
    %29 = vector.broadcast %26 : vector<1x32xf32> to vector<128x32xf32>
    %30 = arith.addf %28, %29 : vector<128x32xf32>
    %cst_15 = arith.constant 0.000000e+00 : f32
    %31 = vector.broadcast %cst_15 : f32 to vector<128x32xf32>
    %32 = arith.cmpf ogt, %30, %31 : vector<128x32xf32>
    %cst_16 = arith.constant 0.000000e+00 : f32
    %33 = vector.broadcast %cst_16 : f32 to vector<128x32xf32>
    %34 = arith.minimumf %30, %33 : vector<128x32xf32>
    %35 = math.exp %34 : vector<128x32xf32>
    %cst_17 = arith.constant 1.000000e+00 : f32
    %36 = vector.broadcast %cst_17 : f32 to vector<128x32xf32>
    %37 = arith.subf %35, %36 : vector<128x32xf32>
    %38 = arith.select %32, %30, %37 : vector<128x32xi1>, vector<128x32xf32>
    %c0_18 = arith.constant 0 : index
    %c0_19 = arith.constant 0 : index
    %39 = vector.load %arg6[%c0_18, %c0_19] : memref<128x32xf32, #tpu.memory_space<vmem>>, vector<128x32xf32>
    tpu.vector_store %arg6[%c0_18, %c0_19], %38 {strides = array<i32>} : memref<128x32xf32, #tpu.memory_space<vmem>>, vector<128x32xf32>,
    return
  }
  func.func @transform_0(%arg0: i32) -> (i32, i32) {
    %c0_i32 = arith.constant 0 : i32
    %c0_i32_0 = arith.constant 0 : i32
    %c0_i32_1 = arith.constant 0 : i32
    return %c0_i32, %c0_i32_0 : i32, i32
  }
  func.func @transform_1(%arg0: i32) -> (i32, i32) {
    %c0_i32 = arith.constant 0 : i32
    %c0_i32_0 = arith.constant 0 : i32
    %c0_i32_1 = arith.constant 0 : i32
    return %c0_i32, %c0_i32_0 : i32, i32
  }
  func.func @transform_2(%arg0: i32) -> (i32, i32) {
    %c0_i32 = arith.constant 0 : i32
    %c0_i32_0 = arith.constant 0 : i32
    %c0_i32_1 = arith.constant 0 : i32
    return %c0_i32, %c0_i32_0 : i32, i32
  }
  func.func @transform_3(%arg0: i32) -> (i32, i32) {
    %c0_i32 = arith.constant 0 : i32
    %c0_i32_0 = arith.constant 0 : i32
    %c0_i32_1 = arith.constant 0 : i32
    return %c0_i32, %c0_i32_0 : i32, i32
  }
  func.func @transform_4(%arg0: i32) -> (i32, i32) {
    %c0_i32 = arith.constant 0 : i32
    %c0_i32_0 = arith.constant 0 : i32
    %c0_i32_1 = arith.constant 0 : i32
    return %c0_i32, %c0_i32_0 : i32, i32
  }
  func.func @transform_5(%arg0: i32) -> (i32, i32) {
    %c0_i32 = arith.constant 0 : i32
    %c0_i32_0 = arith.constant 0 : i32
    %c0_i32_1 = arith.constant 0 : i32
    return %c0_i32, %c0_i32_0 : i32, i32
  }
}

module attributes {stable_mosaic.version = 11 : i64} {
  func.func @_conv_bn_act_kernel(%arg0: i32, %arg1: memref<128x288xbf16, #tpu.memory_space<vmem>>, %arg2: memref<288x32xbf16, #tpu.memory_space<vmem>>, %arg3: memref<1x32xf32, #tpu.memory_space<vmem>>, %arg4: memref<1x32xf32, #tpu.memory_space<vmem>>, %arg5: memref<1x32xf32, #tpu.memory_space<vmem>>, %arg6: memref<128x32xf32, #tpu.memory_space<vmem>>, %arg7: memref<128x32xf32, #tpu.memory_space<vmem>>) attributes {dimension_semantics = [#tpu.dimension_semantics<arbitrary>], iteration_bounds = array<i64: 1>, scalar_prefetch = 0 : i64, scratch_operands = 0 : i64, tpu.core_type = #tpu.core_type<tc>, window_params = [{pipeline_mode = #tpu.pipeline_mode<synchronous>, transform_indices = @transform_0, window_bounds = array<i64: 128, 288>}, {pipeline_mode = #tpu.pipeline_mode<synchronous>, transform_indices = @transform_1, window_bounds = array<i64: 288, 32>}, {pipeline_mode = #tpu.pipeline_mode<synchronous>, transform_indices = @transform_2, window_bounds = array<i64: 1, 32>}, {pipeline_mode = #tpu.pipeline_mode<synchronous>, transform_indices = @transform_3, window_bounds = array<i64: 1, 32>}, {pipeline_mode = #tpu.pipeline_mode<synchronous>, transform_indices = @transform_4, window_bounds = array<i64: 1, 32>}, {pipeline_mode = #tpu.pipeline_mode<synchronous>, transform_indices = @transform_5, window_bounds = array<i64: 128, 32>}, {pipeline_mode = #tpu.pipeline_mode<synchronous>, transform_indices = @transform_6, window_bounds = array<i64: 128, 32>}]} {
    %c0 = arith.constant 0 : index
    %c0_0 = arith.constant 0 : index
    %0 = vector.load %arg1[%c0, %c0_0] : memref<128x288xbf16, #tpu.memory_space<vmem>>, vector<128x288xbf16>
    %c0_1 = arith.constant 0 : index
    %c0_2 = arith.constant 0 : index
    %1 = vector.load %arg2[%c0_1, %c0_2] : memref<288x32xbf16, #tpu.memory_space<vmem>>, vector<288x32xbf16>
    %cst = arith.constant dense<0.000000e+00> : vector<128x32xf32>
    %2 = tpu.matmul %0, %1, %cst {dimension_numbers = #tpu.dot_dimension_numbers<[1], [0], [0], [1], [0, 0, 1, 1], [], []>} : vector<128x288xbf16>, vector<288x32xbf16>, vector<128x32xf32> -> vector<128x32xf32>
    %c0_3 = arith.constant 0 : index
    %c0_4 = arith.constant 0 : index
    %3 = vector.load %arg3[%c0_3, %c0_4] : memref<1x32xf32, #tpu.memory_space<vmem>>, vector<1x32xf32>
    %4 = vector.broadcast %3 : vector<1x32xf32> to vector<128x32xf32>
    %5 = arith.addf %2, %4 : vector<128x32xf32>
    %cst_5 = arith.constant dense<0.000000e+00> : vector<32xf32>
    %6 = vector.multi_reduction <add>, %5, %cst_5 [0] : vector<128x32xf32> to vector<32xf32>
    %7 = vector.shape_cast %6 : vector<32xf32> to vector<1x32xf32>
    %8 = arith.mulf %5, %5 : vector<128x32xf32>
    %cst_6 = arith.constant dense<0.000000e+00> : vector<32xf32>
    %9 = vector.multi_reduction <add>, %8, %cst_6 [0] : vector<128x32xf32> to vector<32xf32>
    %10 = vector.shape_cast %9 : vector<32xf32> to vector<1x32xf32>
    %cst_7 = arith.constant 7.812500e-03 : f32
    %11 = vector.broadcast %cst_7 : f32 to vector<1x32xf32>
    %12 = arith.mulf %7, %11 : vector<1x32xf32>
    %cst_8 = arith.constant 7.812500e-03 : f32
    %13 = vector.broadcast %cst_8 : f32 to vector<1x32xf32>
    %14 = arith.mulf %10, %13 : vector<1x32xf32>
    %15 = arith.mulf %12, %12 : vector<1x32xf32>
    %16 = arith.subf %14, %15 : vector<1x32xf32>
    %cst_9 = arith.constant 0.000000e+00 : f32
    %17 = vector.broadcast %cst_9 : f32 to vector<1x32xf32>
    %18 = arith.maximumf %16, %17 : vector<1x32xf32>
    %c0_10 = arith.constant 0 : index
    %c0_11 = arith.constant 0 : index
    %19 = vector.load %arg4[%c0_10, %c0_11] : memref<1x32xf32, #tpu.memory_space<vmem>>, vector<1x32xf32>
    %cst_12 = arith.constant 9.99999974E-6 : f32
    %20 = vector.broadcast %cst_12 : f32 to vector<1x32xf32>
    %21 = arith.addf %18, %20 : vector<1x32xf32>
    %22 = math.rsqrt %21 : vector<1x32xf32>
    %23 = arith.mulf %19, %22 : vector<1x32xf32>
    %c0_13 = arith.constant 0 : index
    %c0_14 = arith.constant 0 : index
    %24 = vector.load %arg5[%c0_13, %c0_14] : memref<1x32xf32, #tpu.memory_space<vmem>>, vector<1x32xf32>
    %25 = arith.mulf %12, %23 : vector<1x32xf32>
    %26 = arith.subf %24, %25 : vector<1x32xf32>
    %27 = vector.broadcast %23 : vector<1x32xf32> to vector<128x32xf32>
    %28 = arith.mulf %5, %27 : vector<128x32xf32>
    %29 = vector.broadcast %26 : vector<1x32xf32> to vector<128x32xf32>
    %30 = arith.addf %28, %29 : vector<128x32xf32>
    %c0_15 = arith.constant 0 : index
    %c0_16 = arith.constant 0 : index
    %31 = vector.load %arg6[%c0_15, %c0_16] : memref<128x32xf32, #tpu.memory_space<vmem>>, vector<128x32xf32>
    %32 = arith.addf %30, %31 : vector<128x32xf32>
    %c0_17 = arith.constant 0 : index
    %c0_18 = arith.constant 0 : index
    %33 = vector.load %arg7[%c0_17, %c0_18] : memref<128x32xf32, #tpu.memory_space<vmem>>, vector<128x32xf32>
    tpu.vector_store %arg7[%c0_17, %c0_18], %32 {strides = array<i32>} : memref<128x32xf32, #tpu.memory_space<vmem>>, vector<128x32xf32>,
    return
  }
  func.func @transform_0(%arg0: i32) -> (i32, i32) {
    %c0_i32 = arith.constant 0 : i32
    %c0_i32_0 = arith.constant 0 : i32
    %c0_i32_1 = arith.constant 0 : i32
    return %c0_i32, %c0_i32_0 : i32, i32
  }
  func.func @transform_1(%arg0: i32) -> (i32, i32) {
    %c0_i32 = arith.constant 0 : i32
    %c0_i32_0 = arith.constant 0 : i32
    %c0_i32_1 = arith.constant 0 : i32
    return %c0_i32, %c0_i32_0 : i32, i32
  }
  func.func @transform_2(%arg0: i32) -> (i32, i32) {
    %c0_i32 = arith.constant 0 : i32
    %c0_i32_0 = arith.constant 0 : i32
    %c0_i32_1 = arith.constant 0 : i32
    return %c0_i32, %c0_i32_0 : i32, i32
  }
  func.func @transform_3(%arg0: i32) -> (i32, i32) {
    %c0_i32 = arith.constant 0 : i32
    %c0_i32_0 = arith.constant 0 : i32
    %c0_i32_1 = arith.constant 0 : i32
    return %c0_i32, %c0_i32_0 : i32, i32
  }
  func.func @transform_4(%arg0: i32) -> (i32, i32) {
    %c0_i32 = arith.constant 0 : i32
    %c0_i32_0 = arith.constant 0 : i32
    %c0_i32_1 = arith.constant 0 : i32
    return %c0_i32, %c0_i32_0 : i32, i32
  }
  func.func @transform_5(%arg0: i32) -> (i32, i32) {
    %c0_i32 = arith.constant 0 : i32
    %c0_i32_0 = arith.constant 0 : i32
    %c0_i32_1 = arith.constant 0 : i32
    return %c0_i32, %c0_i32_0 : i32, i32
  }
  func.func @transform_6(%arg0: i32) -> (i32, i32) {
    %c0_i32 = arith.constant 0 : i32
    %c0_i32_0 = arith.constant 0 : i32
    %c0_i32_1 = arith.constant 0 : i32
    return %c0_i32, %c0_i32_0 : i32, i32
  }
}

module attributes {stable_mosaic.version = 11 : i64} {
  func.func @_conv_bn_act_kernel(%arg0: i32, %arg1: memref<128x128xbf16, #tpu.memory_space<vmem>>, %arg2: memref<128x64xbf16, #tpu.memory_space<vmem>>, %arg3: memref<1x64xf32, #tpu.memory_space<vmem>>, %arg4: memref<1x64xf32, #tpu.memory_space<vmem>>, %arg5: memref<1x64xf32, #tpu.memory_space<vmem>>, %arg6: memref<64x64xf32, #tpu.memory_space<vmem>>, %arg7: memref<128x64xf32, #tpu.memory_space<vmem>>) attributes {dimension_semantics = [#tpu.dimension_semantics<arbitrary>], iteration_bounds = array<i64: 1>, scalar_prefetch = 0 : i64, scratch_operands = 0 : i64, tpu.core_type = #tpu.core_type<tc>, window_params = [{pipeline_mode = #tpu.pipeline_mode<synchronous>, transform_indices = @transform_0, window_bounds = array<i64: 128, 128>}, {pipeline_mode = #tpu.pipeline_mode<synchronous>, transform_indices = @transform_1, window_bounds = array<i64: 128, 64>}, {pipeline_mode = #tpu.pipeline_mode<synchronous>, transform_indices = @transform_2, window_bounds = array<i64: 1, 64>}, {pipeline_mode = #tpu.pipeline_mode<synchronous>, transform_indices = @transform_3, window_bounds = array<i64: 1, 64>}, {pipeline_mode = #tpu.pipeline_mode<synchronous>, transform_indices = @transform_4, window_bounds = array<i64: 1, 64>}, {pipeline_mode = #tpu.pipeline_mode<synchronous>, transform_indices = @transform_5, window_bounds = array<i64: 64, 64>}, {pipeline_mode = #tpu.pipeline_mode<synchronous>, transform_indices = @transform_6, window_bounds = array<i64: 128, 64>}]} {
    %c0 = arith.constant 0 : index
    %c0_0 = arith.constant 0 : index
    %0 = vector.load %arg1[%c0, %c0_0] : memref<128x128xbf16, #tpu.memory_space<vmem>>, vector<128x128xbf16>
    %c0_1 = arith.constant 0 : index
    %c0_2 = arith.constant 0 : index
    %1 = vector.load %arg2[%c0_1, %c0_2] : memref<128x64xbf16, #tpu.memory_space<vmem>>, vector<128x64xbf16>
    %cst = arith.constant dense<0.000000e+00> : vector<128x64xf32>
    %2 = tpu.matmul %0, %1, %cst {dimension_numbers = #tpu.dot_dimension_numbers<[1], [0], [0], [1], [0, 0, 1, 1], [], []>} : vector<128x128xbf16>, vector<128x64xbf16>, vector<128x64xf32> -> vector<128x64xf32>
    %c0_3 = arith.constant 0 : index
    %c0_4 = arith.constant 0 : index
    %3 = vector.load %arg3[%c0_3, %c0_4] : memref<1x64xf32, #tpu.memory_space<vmem>>, vector<1x64xf32>
    %4 = vector.broadcast %3 : vector<1x64xf32> to vector<128x64xf32>
    %5 = arith.addf %2, %4 : vector<128x64xf32>
    %cst_5 = arith.constant dense<0.000000e+00> : vector<64xf32>
    %6 = vector.multi_reduction <add>, %5, %cst_5 [0] : vector<128x64xf32> to vector<64xf32>
    %7 = vector.shape_cast %6 : vector<64xf32> to vector<1x64xf32>
    %8 = arith.mulf %5, %5 : vector<128x64xf32>
    %cst_6 = arith.constant dense<0.000000e+00> : vector<64xf32>
    %9 = vector.multi_reduction <add>, %8, %cst_6 [0] : vector<128x64xf32> to vector<64xf32>
    %10 = vector.shape_cast %9 : vector<64xf32> to vector<1x64xf32>
    %c0_7 = arith.constant 0 : index
    %c0_8 = arith.constant 0 : index
    %11 = vector.load %arg6[%c0_7, %c0_8] : memref<64x64xf32, #tpu.memory_space<vmem>>, vector<64x64xf32>
    %cst_9 = arith.constant dense<0.000000e+00> : vector<1x64xf32>
    %12 = tpu.matmul %7, %11, %cst_9 {dimension_numbers = #tpu.dot_dimension_numbers<[1], [0], [0], [1], [0, 0, 1, 1], [], []>} : vector<1x64xf32>, vector<64x64xf32>, vector<1x64xf32> -> vector<1x64xf32>
    %cst_10 = arith.constant dense<0.000000e+00> : vector<1x64xf32>
    %13 = tpu.matmul %10, %11, %cst_10 {dimension_numbers = #tpu.dot_dimension_numbers<[1], [0], [0], [1], [0, 0, 1, 1], [], []>} : vector<1x64xf32>, vector<64x64xf32>, vector<1x64xf32> -> vector<1x64xf32>
    %cst_11 = arith.constant 0.001953125 : f32
    %14 = vector.broadcast %cst_11 : f32 to vector<1x64xf32>
    %15 = arith.mulf %12, %14 : vector<1x64xf32>
    %cst_12 = arith.constant 0.001953125 : f32
    %16 = vector.broadcast %cst_12 : f32 to vector<1x64xf32>
    %17 = arith.mulf %13, %16 : vector<1x64xf32>
    %18 = arith.mulf %15, %15 : vector<1x64xf32>
    %19 = arith.subf %17, %18 : vector<1x64xf32>
    %cst_13 = arith.constant 0.000000e+00 : f32
    %20 = vector.broadcast %cst_13 : f32 to vector<1x64xf32>
    %21 = arith.maximumf %19, %20 : vector<1x64xf32>
    %c0_14 = arith.constant 0 : index
    %c0_15 = arith.constant 0 : index
    %22 = vector.load %arg4[%c0_14, %c0_15] : memref<1x64xf32, #tpu.memory_space<vmem>>, vector<1x64xf32>
    %cst_16 = arith.constant 9.99999974E-6 : f32
    %23 = vector.broadcast %cst_16 : f32 to vector<1x64xf32>
    %24 = arith.addf %21, %23 : vector<1x64xf32>
    %25 = math.rsqrt %24 : vector<1x64xf32>
    %26 = arith.mulf %22, %25 : vector<1x64xf32>
    %c0_17 = arith.constant 0 : index
    %c0_18 = arith.constant 0 : index
    %27 = vector.load %arg5[%c0_17, %c0_18] : memref<1x64xf32, #tpu.memory_space<vmem>>, vector<1x64xf32>
    %28 = arith.mulf %15, %26 : vector<1x64xf32>
    %29 = arith.subf %27, %28 : vector<1x64xf32>
    %30 = vector.broadcast %26 : vector<1x64xf32> to vector<128x64xf32>
    %31 = arith.mulf %5, %30 : vector<128x64xf32>
    %32 = vector.broadcast %29 : vector<1x64xf32> to vector<128x64xf32>
    %33 = arith.addf %31, %32 : vector<128x64xf32>
    %cst_19 = arith.constant 0.000000e+00 : f32
    %34 = vector.broadcast %cst_19 : f32 to vector<128x64xf32>
    %35 = arith.maximumf %33, %34 : vector<128x64xf32>
    %c0_20 = arith.constant 0 : index
    %c0_21 = arith.constant 0 : index
    %36 = vector.load %arg7[%c0_20, %c0_21] : memref<128x64xf32, #tpu.memory_space<vmem>>, vector<128x64xf32>
    tpu.vector_store %arg7[%c0_20, %c0_21], %35 {strides = array<i32>} : memref<128x64xf32, #tpu.memory_space<vmem>>, vector<128x64xf32>,
    return
  }
  func.func @transform_0(%arg0: i32) -> (i32, i32) {
    %c0_i32 = arith.constant 0 : i32
    %c0_i32_0 = arith.constant 0 : i32
    %c0_i32_1 = arith.constant 0 : i32
    return %c0_i32, %c0_i32_0 : i32, i32
  }
  func.func @transform_1(%arg0: i32) -> (i32, i32) {
    %c0_i32 = arith.constant 0 : i32
    %c0_i32_0 = arith.constant 0 : i32
    %c0_i32_1 = arith.constant 0 : i32
    return %c0_i32, %c0_i32_0 : i32, i32
  }
  func.func @transform_2(%arg0: i32) -> (i32, i32) {
    %c0_i32 = arith.constant 0 : i32
    %c0_i32_0 = arith.constant 0 : i32
    %c0_i32_1 = arith.constant 0 : i32
    return %c0_i32, %c0_i32_0 : i32, i32
  }
  func.func @transform_3(%arg0: i32) -> (i32, i32) {
    %c0_i32 = arith.constant 0 : i32
    %c0_i32_0 = arith.constant 0 : i32
    %c0_i32_1 = arith.constant 0 : i32
    return %c0_i32, %c0_i32_0 : i32, i32
  }
  func.func @transform_4(%arg0: i32) -> (i32, i32) {
    %c0_i32 = arith.constant 0 : i32
    %c0_i32_0 = arith.constant 0 : i32
    %c0_i32_1 = arith.constant 0 : i32
    return %c0_i32, %c0_i32_0 : i32, i32
  }
  func.func @transform_5(%arg0: i32) -> (i32, i32) {
    %c0_i32 = arith.constant 0 : i32
    %c0_i32_0 = arith.constant 0 : i32
    %c0_i32_1 = arith.constant 0 : i32
    return %c0_i32, %c0_i32_0 : i32, i32
  }
  func.func @transform_6(%arg0: i32) -> (i32, i32) {
    %c0_i32 = arith.constant 0 : i32
    %c0_i32_0 = arith.constant 0 : i32
    %c0_i32_1 = arith.constant 0 : i32
    return %c0_i32, %c0_i32_0 : i32, i32
  }
}

module attributes {stable_mosaic.version = 11 : i64} {
  func.func @_conv_bn_act_kernel(%arg0: i32, %arg1: memref<512x64xbf16, #tpu.memory_space<vmem>>, %arg2: memref<64x32xbf16, #tpu.memory_space<vmem>>, %arg3: memref<1x32xf32, #tpu.memory_space<vmem>>, %arg4: memref<1x32xf32, #tpu.memory_space<vmem>>, %arg5: memref<1x32xf32, #tpu.memory_space<vmem>>, %arg6: memref<32x32xf32, #tpu.memory_space<vmem>>, %arg7: memref<512x32xf32, #tpu.memory_space<vmem>>) attributes {dimension_semantics = [#tpu.dimension_semantics<arbitrary>], iteration_bounds = array<i64: 1>, scalar_prefetch = 0 : i64, scratch_operands = 0 : i64, tpu.core_type = #tpu.core_type<tc>, window_params = [{pipeline_mode = #tpu.pipeline_mode<synchronous>, transform_indices = @transform_0, window_bounds = array<i64: 512, 64>}, {pipeline_mode = #tpu.pipeline_mode<synchronous>, transform_indices = @transform_1, window_bounds = array<i64: 64, 32>}, {pipeline_mode = #tpu.pipeline_mode<synchronous>, transform_indices = @transform_2, window_bounds = array<i64: 1, 32>}, {pipeline_mode = #tpu.pipeline_mode<synchronous>, transform_indices = @transform_3, window_bounds = array<i64: 1, 32>}, {pipeline_mode = #tpu.pipeline_mode<synchronous>, transform_indices = @transform_4, window_bounds = array<i64: 1, 32>}, {pipeline_mode = #tpu.pipeline_mode<synchronous>, transform_indices = @transform_5, window_bounds = array<i64: 32, 32>}, {pipeline_mode = #tpu.pipeline_mode<synchronous>, transform_indices = @transform_6, window_bounds = array<i64: 512, 32>}]} {
    %c0 = arith.constant 0 : index
    %c0_0 = arith.constant 0 : index
    %0 = vector.load %arg1[%c0, %c0_0] : memref<512x64xbf16, #tpu.memory_space<vmem>>, vector<512x64xbf16>
    %c0_1 = arith.constant 0 : index
    %c0_2 = arith.constant 0 : index
    %1 = vector.load %arg2[%c0_1, %c0_2] : memref<64x32xbf16, #tpu.memory_space<vmem>>, vector<64x32xbf16>
    %cst = arith.constant dense<0.000000e+00> : vector<512x32xf32>
    %2 = tpu.matmul %0, %1, %cst {dimension_numbers = #tpu.dot_dimension_numbers<[1], [0], [0], [1], [0, 0, 1, 1], [], []>} : vector<512x64xbf16>, vector<64x32xbf16>, vector<512x32xf32> -> vector<512x32xf32>
    %c0_3 = arith.constant 0 : index
    %c0_4 = arith.constant 0 : index
    %3 = vector.load %arg3[%c0_3, %c0_4] : memref<1x32xf32, #tpu.memory_space<vmem>>, vector<1x32xf32>
    %4 = vector.broadcast %3 : vector<1x32xf32> to vector<512x32xf32>
    %5 = arith.addf %2, %4 : vector<512x32xf32>
    %cst_5 = arith.constant dense<0.000000e+00> : vector<32xf32>
    %6 = vector.multi_reduction <add>, %5, %cst_5 [0] : vector<512x32xf32> to vector<32xf32>
    %7 = vector.shape_cast %6 : vector<32xf32> to vector<1x32xf32>
    %8 = arith.mulf %5, %5 : vector<512x32xf32>
    %cst_6 = arith.constant dense<0.000000e+00> : vector<32xf32>
    %9 = vector.multi_reduction <add>, %8, %cst_6 [0] : vector<512x32xf32> to vector<32xf32>
    %10 = vector.shape_cast %9 : vector<32xf32> to vector<1x32xf32>
    %c0_7 = arith.constant 0 : index
    %c0_8 = arith.constant 0 : index
    %11 = vector.load %arg6[%c0_7, %c0_8] : memref<32x32xf32, #tpu.memory_space<vmem>>, vector<32x32xf32>
    %cst_9 = arith.constant dense<0.000000e+00> : vector<1x32xf32>
    %12 = tpu.matmul %7, %11, %cst_9 {dimension_numbers = #tpu.dot_dimension_numbers<[1], [0], [0], [1], [0, 0, 1, 1], [], []>} : vector<1x32xf32>, vector<32x32xf32>, vector<1x32xf32> -> vector<1x32xf32>
    %cst_10 = arith.constant dense<0.000000e+00> : vector<1x32xf32>
    %13 = tpu.matmul %10, %11, %cst_10 {dimension_numbers = #tpu.dot_dimension_numbers<[1], [0], [0], [1], [0, 0, 1, 1], [], []>} : vector<1x32xf32>, vector<32x32xf32>, vector<1x32xf32> -> vector<1x32xf32>
    %cst_11 = arith.constant 4.8828125E-4 : f32
    %14 = vector.broadcast %cst_11 : f32 to vector<1x32xf32>
    %15 = arith.mulf %12, %14 : vector<1x32xf32>
    %cst_12 = arith.constant 4.8828125E-4 : f32
    %16 = vector.broadcast %cst_12 : f32 to vector<1x32xf32>
    %17 = arith.mulf %13, %16 : vector<1x32xf32>
    %18 = arith.mulf %15, %15 : vector<1x32xf32>
    %19 = arith.subf %17, %18 : vector<1x32xf32>
    %cst_13 = arith.constant 0.000000e+00 : f32
    %20 = vector.broadcast %cst_13 : f32 to vector<1x32xf32>
    %21 = arith.maximumf %19, %20 : vector<1x32xf32>
    %c0_14 = arith.constant 0 : index
    %c0_15 = arith.constant 0 : index
    %22 = vector.load %arg4[%c0_14, %c0_15] : memref<1x32xf32, #tpu.memory_space<vmem>>, vector<1x32xf32>
    %cst_16 = arith.constant 9.99999974E-6 : f32
    %23 = vector.broadcast %cst_16 : f32 to vector<1x32xf32>
    %24 = arith.addf %21, %23 : vector<1x32xf32>
    %25 = math.rsqrt %24 : vector<1x32xf32>
    %26 = arith.mulf %22, %25 : vector<1x32xf32>
    %c0_17 = arith.constant 0 : index
    %c0_18 = arith.constant 0 : index
    %27 = vector.load %arg5[%c0_17, %c0_18] : memref<1x32xf32, #tpu.memory_space<vmem>>, vector<1x32xf32>
    %28 = arith.mulf %15, %26 : vector<1x32xf32>
    %29 = arith.subf %27, %28 : vector<1x32xf32>
    %30 = vector.broadcast %26 : vector<1x32xf32> to vector<512x32xf32>
    %31 = arith.mulf %5, %30 : vector<512x32xf32>
    %32 = vector.broadcast %29 : vector<1x32xf32> to vector<512x32xf32>
    %33 = arith.addf %31, %32 : vector<512x32xf32>
    %cst_19 = arith.constant 0.000000e+00 : f32
    %34 = vector.broadcast %cst_19 : f32 to vector<512x32xf32>
    %35 = arith.maximumf %33, %34 : vector<512x32xf32>
    %c0_20 = arith.constant 0 : index
    %c0_21 = arith.constant 0 : index
    %36 = vector.load %arg7[%c0_20, %c0_21] : memref<512x32xf32, #tpu.memory_space<vmem>>, vector<512x32xf32>
    tpu.vector_store %arg7[%c0_20, %c0_21], %35 {strides = array<i32>} : memref<512x32xf32, #tpu.memory_space<vmem>>, vector<512x32xf32>,
    return
  }
  func.func @transform_0(%arg0: i32) -> (i32, i32) {
    %c0_i32 = arith.constant 0 : i32
    %c0_i32_0 = arith.constant 0 : i32
    %c0_i32_1 = arith.constant 0 : i32
    return %c0_i32, %c0_i32_0 : i32, i32
  }
  func.func @transform_1(%arg0: i32) -> (i32, i32) {
    %c0_i32 = arith.constant 0 : i32
    %c0_i32_0 = arith.constant 0 : i32
    %c0_i32_1 = arith.constant 0 : i32
    return %c0_i32, %c0_i32_0 : i32, i32
  }
  func.func @transform_2(%arg0: i32) -> (i32, i32) {
    %c0_i32 = arith.constant 0 : i32
    %c0_i32_0 = arith.constant 0 : i32
    %c0_i32_1 = arith.constant 0 : i32
    return %c0_i32, %c0_i32_0 : i32, i32
  }
  func.func @transform_3(%arg0: i32) -> (i32, i32) {
    %c0_i32 = arith.constant 0 : i32
    %c0_i32_0 = arith.constant 0 : i32
    %c0_i32_1 = arith.constant 0 : i32
    return %c0_i32, %c0_i32_0 : i32, i32
  }
  func.func @transform_4(%arg0: i32) -> (i32, i32) {
    %c0_i32 = arith.constant 0 : i32
    %c0_i32_0 = arith.constant 0 : i32
    %c0_i32_1 = arith.constant 0 : i32
    return %c0_i32, %c0_i32_0 : i32, i32
  }
  func.func @transform_5(%arg0: i32) -> (i32, i32) {
    %c0_i32 = arith.constant 0 : i32
    %c0_i32_0 = arith.constant 0 : i32
    %c0_i32_1 = arith.constant 0 : i32
    return %c0_i32, %c0_i32_0 : i32, i32
  }
  func.func @transform_6(%arg0: i32) -> (i32, i32) {
    %c0_i32 = arith.constant 0 : i32
    %c0_i32_0 = arith.constant 0 : i32
    %c0_i32_1 = arith.constant 0 : i32
    return %c0_i32, %c0_i32_0 : i32, i32
  }
}

module attributes {stable_mosaic.version = 11 : i64} {
  func.func @_matmul_bias_act_kernel(%arg0: i32, %arg1: memref<512x392xbf16, #tpu.memory_space<vmem>>, %arg2: memref<392x3xbf16, #tpu.memory_space<vmem>>, %arg3: memref<1x3xf32, #tpu.memory_space<vmem>>, %arg4: memref<512x3xf32, #tpu.memory_space<vmem>>) attributes {dimension_semantics = [#tpu.dimension_semantics<parallel>], iteration_bounds = array<i64: 4>, scalar_prefetch = 0 : i64, scratch_operands = 0 : i64, tpu.core_type = #tpu.core_type<tc>, window_params = [{transform_indices = @transform_0, window_bounds = array<i64: 512, 392>}, {pipeline_mode = #tpu.pipeline_mode<synchronous>, transform_indices = @transform_1, window_bounds = array<i64: 392, 3>}, {pipeline_mode = #tpu.pipeline_mode<synchronous>, transform_indices = @transform_2, window_bounds = array<i64: 1, 3>}, {transform_indices = @transform_3, window_bounds = array<i64: 512, 3>}]} {
    %c0 = arith.constant 0 : index
    %c0_0 = arith.constant 0 : index
    %0 = vector.load %arg1[%c0, %c0_0] : memref<512x392xbf16, #tpu.memory_space<vmem>>, vector<512x392xbf16>
    %c0_1 = arith.constant 0 : index
    %c0_2 = arith.constant 0 : index
    %1 = vector.load %arg2[%c0_1, %c0_2] : memref<392x3xbf16, #tpu.memory_space<vmem>>, vector<392x3xbf16>
    %cst = arith.constant dense<0.000000e+00> : vector<512x3xf32>
    %2 = tpu.matmul %0, %1, %cst {dimension_numbers = #tpu.dot_dimension_numbers<[1], [0], [0], [1], [0, 0, 1, 1], [], []>} : vector<512x392xbf16>, vector<392x3xbf16>, vector<512x3xf32> -> vector<512x3xf32>
    %c0_3 = arith.constant 0 : index
    %c0_4 = arith.constant 0 : index
    %3 = vector.load %arg3[%c0_3, %c0_4] : memref<1x3xf32, #tpu.memory_space<vmem>>, vector<1x3xf32>
    %4 = vector.broadcast %3 : vector<1x3xf32> to vector<512x3xf32>
    %5 = arith.addf %2, %4 : vector<512x3xf32>
    %6 = math.tanh %5 : vector<512x3xf32>
    %c0_5 = arith.constant 0 : index
    %c0_6 = arith.constant 0 : index
    %7 = vector.load %arg4[%c0_5, %c0_6] : memref<512x3xf32, #tpu.memory_space<vmem>>, vector<512x3xf32>
    tpu.vector_store %arg4[%c0_5, %c0_6], %6 {strides = array<i32>} : memref<512x3xf32, #tpu.memory_space<vmem>>, vector<512x3xf32>,
    return
  }
  func.func @transform_0(%arg0: i32) -> (i32, i32) {
    %c0_i32 = arith.constant 0 : i32
    %c0_i32_0 = arith.constant 0 : i32
    return %arg0, %c0_i32 : i32, i32
  }
  func.func @transform_1(%arg0: i32) -> (i32, i32) {
    %c0_i32 = arith.constant 0 : i32
    %c0_i32_0 = arith.constant 0 : i32
    %c0_i32_1 = arith.constant 0 : i32
    return %c0_i32, %c0_i32_0 : i32, i32
  }
  func.func @transform_2(%arg0: i32) -> (i32, i32) {
    %c0_i32 = arith.constant 0 : i32
    %c0_i32_0 = arith.constant 0 : i32
    %c0_i32_1 = arith.constant 0 : i32
    return %c0_i32, %c0_i32_0 : i32, i32
  }
  func.func @transform_3(%arg0: i32) -> (i32, i32) {
    %c0_i32 = arith.constant 0 : i32
    %c0_i32_0 = arith.constant 0 : i32
    return %arg0, %c0_i32 : i32, i32
  }
}

</mosaic_0001>

<bundles_post_ra>
// kernel: generator_forward.15
= control target key start
LH: loop header
LB: loop body
LE: loop exit
PB: predicated region body
PF: predicated region fallthrough
CT: control target
= control target key end

     0   :  { %10 = vsyncpa [#allocation3], 0  ;;  %s1738_s0 = inlined_call_operand.vmem [shape: bf16[128,288], index: 0, kind: input, shape index: {}]   ;;  %s1739_s1 = inlined_call_operand.vmem [shape: bf16[288,32], index: 1, kind: input, shape index: {}]   ;;  %s1740_s2 = inlined_call_operand.hbm [shape: f32[1,32], index: 2, kind: input, shape index: {}]   ;;  %s1741_s3 = inlined_call_operand.hbm [shape: f32[1,32], index: 3, kind: input, shape index: {}]   ;;  %s1742_s4 = inlined_call_operand.hbm [shape: f32[1,32], index: 4, kind: input, shape index: {}]   ;;  %s1743_s5 = inlined_call_operand.vmem [shape: f32[128,32], index: 5, kind: output, shape index: {}]  }
   0x1   :  { %11 = vsyncpa [#allocation5], 0  ;;  %s32_s20 = sshll.u32 %s1741_s3, 4  ;;  %s1165_s21 = smov [#allocation4]   ;;  %s33_s20 = int_to_ptr.hbm [resolvable:$true] %s32_s20 }
   0x2   :  { %s34_s22 = sshll.u32 %s1165_s21, 4  ;;  %s21_s25 = sshll.u32 %s1740_s2, 4  ;;  %s35_s22 = int_to_ptr.vmem [resolvable:$true] %s34_s22  ;;  %s22_s25 = int_to_ptr.hbm [resolvable:$true] %s21_s25 }
   0x3   :  { %37 = dma.hbm_to_vmem [thread:$0]  %s33_s20, 16, %s35_s22, [#allocation5]  }
   0x4   :  { %s1166_s26 = smov [#allocation2]   ;;  %s43_s30 = sshll.u32 %s1742_s4, 4  ;;  %s44_s30 = int_to_ptr.hbm [resolvable:$true] %s43_s30 }
   0x5   :  { %s23_s27 = sshll.u32 %s1166_s26, 4  ;;  %s1167_s3 = smov [#allocation6]   ;;  %s24_s27 = int_to_ptr.vmem [resolvable:$true] %s23_s27 }
   0x6   :  { %26 = dma.hbm_to_vmem [thread:$0]  %s22_s25, 16, %s24_s27, [#allocation3]  }
   0x7   :  { %s45_s6 = sshll.u32 %s1167_s3, 4  ;;  %s46_s6 = int_to_ptr.vmem [resolvable:$true] %s45_s6 }
   0x8   :  { %48 = dma.hbm_to_vmem [thread:$0]  %s44_s30, 16, %s46_s6, [#allocation5]  }
   0x9   :  { %1161 = dma.done.wait [#allocation3], 16  }
   0xa   :  { %1162 = vsyncadd [#allocation3], 4294967280 }
   0xb   :  { %1163 = dma.done.wait [#allocation5], 32  }
   0xc   :  { %1164 = vsyncadd [#allocation5], 4294967264  ;;  %v1024_v0 = vld [vmem:[%s1739_s1 + $0x38] sm:$0xff]  ;;  %v1034_v2 = vld [vmem:[%s1739_s1 + $0x88] sm:$0xff]  ;;  %vm362_vm0 = vcmask 261120  }
   0xd   :  { %v1032_v1 = vld [vmem:[%s1739_s1 + $0x78] sm:$0xff]  ;;  %387 = vmatpush.bf16.msra.mxu0 %v1024_v0  ;;  %1035 = vmatpush.bf16.msra.mxu3 %v1024_v0  ;;  %v1023_v3 = vld [vmem:[%s1739_s1 + $0x30] sm:$0xff]  ;;  %v1033_v5 = vld [vmem:[%s1739_s1 + $0x80] sm:$0xff] }
   0xe   :  { %v1031_v4 = vld [vmem:[%s1739_s1 + $0x70] sm:$0xff]  ;;  %436 = vmatpush.bf16.msra.mxu1 %v1032_v1  ;;  %491 = vmatpush.bf16.msra.mxu2 %v1034_v2  ;;  %v811_v6 = vld [vmem:[%s1738_s0 + $0x8] sm:$0xf]  ;;  %v1021_v11 = vld [vmem:[%s1739_s1 + $0x20] sm:$0xff] }
   0xf   :  { %v995_v7 = vld [vmem:[%s1738_s0 + $0x10] sm:$0xf0]  ;;  %v1022_v9 = vld [vmem:[%s1739_s1 + $0x28] sm:$0xff]  ;;  %v1029_v12 = vld [vmem:[%s1739_s1 + $0x60] sm:$0xff] }
  0x10   :  { %v812_v8 = vor.u32 %v995_v7, %v811_v6  ;;  %v1030_v10 = vld [vmem:[%s1739_s1 + $0x68] sm:$0xff]  ;;  %v1020_v13 = vld [vmem:[%s1739_s1 + $0x18] sm:$0xff]  ;;  %v1019_v15 = vld [vmem:[%s1739_s1 + $0x10] sm:$0xff] }
  0x11   :  { %388 = vmatpush.bf16.msra.mxu0 %v1023_v3  ;;  %1036 = vmatpush.bf16.msra.mxu3 %v1023_v3  ;;  %v1028_v14 = vld [vmem:[%s1739_s1 + $0x58] sm:$0xff]  ;;  %v1027_v16 = vld [vmem:[%s1739_s1 + $0x50] sm:$0xff]  ;;  %v823_v17 = vld [vmem:[%s1738_s0 + $0x20] sm:$0xf] }
  0x12   :  { %437 = vmatpush.bf16.msra.mxu1 %v1031_v4  ;;  %492 = vmatpush.bf16.msra.mxu2 %v1033_v5  ;;  %v998_v18 = vld [vmem:[%s1738_s0 + $0x28] sm:$0xf0]  ;;  %v1017_v22 = vld [vmem:[%s1739_s1] sm:$0xff]  ;;  %v875_v26 = vld [vmem:[%s1738_s0 + $0x90] sm:$0xf] }
  0x13   :  { %v824_v19 = vor.u32 %v998_v18, %v823_v17  ;;  %v1018_v20 = vld [vmem:[%s1739_s1 + $0x8] sm:$0xff]  ;;  %v1025_v23 = vld [vmem:[%s1739_s1 + $0x40] sm:$0xff]  ;;  %v1012_v27 = vld [vmem:[%s1738_s0 + $0x98] sm:$0xf0] }
  0x14   :  { %v1026_v21 = vld [vmem:[%s1739_s1 + $0x48] sm:$0xff]  ;;  %v803_v24 = vld [vmem:[%s1738_s0] sm:$0xf]  ;;  %v993_v28 = vld [vmem:[%s1738_s0 + $0x4] sm:$0xf]  ;;  %v876_v31 = vor.u32 %v1012_v27, %v875_v26 }
  0x15   :  { %969 = vmatmul.msk.bf16.vlgmr.msra.gmra.mxu2 %vm362_vm0, %v812_v8  ;;  %389 = vmatpush.bf16.msra.mxu0 %v1022_v9  ;;  %v994_v25 = vld [vmem:[%s1738_s0 + $0x8] sm:$0xf0]  ;;  %v805_v29 = vld [vmem:[%s1738_s0 + $0xc] sm:$0xf0]  ;;  %v835_v33 = vld [vmem:[%s1738_s0 + $0x38] sm:$0xf] }
  0x16   :  { %1037 = vmatpush.bf16.msra.mxu3 %v1022_v9  ;;  %438 = vmatpush.bf16.msra.mxu1 %v1030_v10  ;;  %v804_v30 = vor.u32 %v994_v25, %v803_v24  ;;  %v808_v32 = vor.u32 %v993_v28, %v805_v29  ;;  %v1001_v34 = vld [vmem:[%s1738_s0 + $0x40] sm:$0xf0]  ;;  %v815_v36 = vld [vmem:[%s1738_s0 + $0x18] sm:$0xf]  ;;  %v887_v38 = vld [vmem:[%s1738_s0 + $0xa8] sm:$0xf] }
  0x17   :  { %v836_v35 = vor.u32 %v1001_v34, %v835_v33  ;;  %v997_v37 = vld [vmem:[%s1738_s0 + $0x20] sm:$0xf0]  ;;  %v1015_v39 = vld [vmem:[%s1738_s0 + $0xb0] sm:$0xf0]  ;;  %v996_v40 = vld [vmem:[%s1738_s0 + $0x1c] sm:$0xf] }
  0x18   :  { %v817_v41 = vld [vmem:[%s1738_s0 + $0x24] sm:$0xf0]  ;;  %v816_v42 = vor.u32 %v997_v37, %v815_v36  ;;  %v888_v43 = vor.u32 %v1015_v39, %v887_v38  ;;  %v847_v45 = vld [vmem:[%s1738_s0 + $0x50] sm:$0xf]  ;;  %v1004_v46 = vld [vmem:[%s1738_s0 + $0x58] sm:$0xf0] }
  0x19   :  { %390 = vmatpush.bf16.msra.mxu0 %v1021_v11  ;;  %v820_v44 = vor.u32 %v996_v40, %v817_v41  ;;  %v848_v47 = vor.u32 %v1004_v46, %v847_v45  ;;  %v827_v48 = vld [vmem:[%s1738_s0 + $0x30] sm:$0xf]  ;;  %v1000_v49 = vld [vmem:[%s1738_s0 + $0x38] sm:$0xf0]  ;;  %v999_v50 = vld [vmem:[%s1738_s0 + $0x34] sm:$0xf] }
  0x1a   :  { %1038 = vmatpush.bf16.msra.mxu3 %v1021_v11  ;;  %439 = vmatpush.bf16.msra.mxu1 %v1029_v12  ;;  %v829_v51 = vld [vmem:[%s1738_s0 + $0x3c] sm:$0xf0]  ;;  %v1011_v52 = vld [vmem:[%s1738_s0 + $0x94] sm:$0xf]  ;;  %v828_v54 = vor.u32 %v1000_v49, %v827_v48  ;;  %v859_v57 = vld [vmem:[%s1738_s0 + $0x68] sm:$0xf] }
  0x1b   :  { %v877_v53 = vld [vmem:[%s1738_s0 + $0x9c] sm:$0xf0]  ;;  %v832_v55 = vor.u32 %v999_v50, %v829_v51  ;;  %v1007_v58 = vld [vmem:[%s1738_s0 + $0x70] sm:$0xf0]  ;;  %v839_v60 = vld [vmem:[%s1738_s0 + $0x48] sm:$0xf] }
  0x1c   :  { %v880_v56 = vor.u32 %v1011_v52, %v877_v53  ;;  %v860_v59 = vor.u32 %v1007_v58, %v859_v57  ;;  %v1003_v61 = vld [vmem:[%s1738_s0 + $0x50] sm:$0xf0]  ;;  %v1002_v62 = vld [vmem:[%s1738_s0 + $0x4c] sm:$0xf]  ;;  %v841_v63 = vld [vmem:[%s1738_s0 + $0x54] sm:$0xf0] }
  0x1d   :  { %391 = vmatpush.bf16.msra.mxu0 %v1020_v13  ;;  %v1014_v0 = vld [vmem:[%s1738_s0 + $0xac] sm:$0xf]  ;;  %v840_v2 = vor.u32 %v1003_v61, %v839_v60  ;;  %v844_v3 = vor.u32 %v1002_v62, %v841_v63  ;;  %v871_v5 = vld [vmem:[%s1738_s0 + $0x80] sm:$0xf]  ;;  %v853_v11 = vld [vmem:[%s1738_s0 + $0x6c] sm:$0xf0] }
  0x1e   :  { %1039 = vmatpush.bf16.msra.mxu3 %v1020_v13  ;;  %440 = vmatpush.bf16.msra.mxu1 %v1028_v14  ;;  %v1010_v6 = vld [vmem:[%s1738_s0 + $0x88] sm:$0xf0]  ;;  %v851_v8 = vld [vmem:[%s1738_s0 + $0x60] sm:$0xf]  ;;  %v863_v17 = vld [vmem:[%s1738_s0 + $0x78] sm:$0xf] }
  0x1f   :  { %v872_v7 = vor.u32 %v1010_v6, %v871_v5  ;;  %v1006_v9 = vld [vmem:[%s1738_s0 + $0x68] sm:$0xf0]  ;;  %v1009_v18 = vld [vmem:[%s1738_s0 + $0x80] sm:$0xf0]  ;;  %v1016_v24 = vld [vmem:[%s1738_s0 + $0xb8] sm:$0xf0] }
  0x20   :  { %v1413_v28 = vld [vmem:[#allocation2] ss:$0 sm:$0xff] }
  0x21   :  { %392 = vmatpush.bf16.msra.mxu0 %v1019_v15 }
  0x22   :  { %1040 = vmatpush.bf16.msra.mxu3 %v1019_v15  ;;  %441 = vmatpush.bf16.msra.mxu1 %v1027_v16  ;;  %v1013_v15 = vld [vmem:[%s1738_s0 + $0xa0] sm:$0xf0] }
  0x25   :  { %970 = vmatmul.msk.bf16.gmra.mxu2 %vm362_vm0, %v824_v19  ;;  %393 = vmatpush.bf16.msra.mxu0 %v1018_v20  ;;  %v1008_v19 = vld [vmem:[%s1738_s0 + $0x7c] sm:$0xf] }
  0x26   :  { %1041 = vmatpush.bf16.msra.mxu3 %v1018_v20  ;;  %442 = vmatpush.bf16.msra.mxu1 %v1026_v21  ;;  %v865_v20 = vld [vmem:[%s1738_s0 + $0x84] sm:$0xf0] }
  0x29   :  { %394 = vmatpush.bf16.msra.mxu0 %v1017_v22 }
  0x2a   :  { %1042 = vmatpush.bf16.msra.mxu3 %v1017_v22  ;;  %443 = vmatpush.bf16.msra.mxu1 %v1025_v23  ;;  %v868_v22 = vor.u32 %v1008_v19, %v865_v20 }
  0x2c   :  { %395 = vmatmul.bf16.vlgmr.msra.gmra.mxu0 %v804_v30 }
  0x2d   :  { %425 = vmatmul.bf16.vlgmr.msra.gmra.mxu3 %v876_v31  ;;  %444 = vmatmul.bf16.vlgmr.msra.gmra.mxu1 %v808_v32 }
  0x2e   :  { %1043 = vmatpush.bf16.msrb.mxu3 %v1032_v1  ;;  %v889_v1 = vld [vmem:[%s1738_s0 + $0xb4] sm:$0xf0] }
  0x32   :  { %1044 = vmatpush.bf16.msrb.mxu3 %v1031_v4  ;;  %v892_v4 = vor.u32 %v1014_v0, %v889_v1 }
  0x35   :  { %971 = vmatmul.msk.bf16.gmra.mxu2 %vm362_vm0, %v836_v35 }
  0x36   :  { %1045 = vmatpush.bf16.msrb.mxu3 %v1030_v10  ;;  %v1005_v10 = vld [vmem:[%s1738_s0 + $0x64] sm:$0xf] }
  0x37   :  { %v856_v13 = vor.u32 %v1005_v10, %v853_v11 }
  0x3a   :  { %1046 = vmatpush.bf16.msrb.mxu3 %v1029_v12  ;;  %v852_v12 = vor.u32 %v1006_v9, %v851_v8 }
  0x3c   :  { %400 = vmatmul.bf16.gmra.mxu0 %v816_v42 }
  0x3d   :  { %430 = vmatmul.bf16.gmra.mxu3 %v888_v43  ;;  %449 = vmatmul.bf16.gmra.mxu1 %v820_v44 }
  0x3e   :  { %1047 = vmatpush.bf16.msrb.mxu3 %v1028_v14  ;;  %v883_v14 = vld [vmem:[%s1738_s0 + $0x98] sm:$0xf] }
  0x42   :  { %1048 = vmatpush.bf16.msrb.mxu3 %v1027_v16  ;;  %v884_v16 = vor.u32 %v1013_v15, %v883_v14 }
  0x45   :  { %972 = vmatmul.msk.bf16.gmra.mxu2 %vm362_vm0, %v848_v47 }
  0x46   :  { %1049 = vmatpush.bf16.msrb.mxu3 %v1026_v21  ;;  %v864_v21 = vor.u32 %v1009_v18, %v863_v17 }
  0x4a   :  { %1050 = vmatpush.bf16.msrb.mxu3 %v1025_v23  ;;  %v895_v23 = vld [vmem:[%s1738_s0 + $0xb0] sm:$0xf] }
  0x4b   :  { %v896_v25 = vor.u32 %v1016_v24, %v895_v23 }
  0x4c   :  { %405 = vmatmul.bf16.gmra.mxu0 %v828_v54 }
  0x4d   :  { %454 = vmatmul.bf16.gmra.mxu1 %v832_v55  ;;  %474 = vmatmul.bf16.vlgmr.msrb.gmra.mxu3 %v880_v56 }
  0x55   :  { %973 = vmatmul.msk.bf16.gmra.mxu2 %vm362_vm0, %v860_v59 }
  0x5c   :  { %410 = vmatmul.bf16.gmra.mxu0 %v840_v2 }
  0x5d   :  { %459 = vmatmul.bf16.gmra.mxu1 %v844_v3  ;;  %479 = vmatmul.bf16.gmra.mxu3 %v892_v4 }
  0x65   :  { %974 = vmatmul.msk.bf16.gmra.mxu2 %vm362_vm0, %v872_v7 }
  0x6c   :  { %415 = vmatmul.bf16.gmra.mxu0 %v852_v12 }
  0x6d   :  { %464 = vmatmul.bf16.gmra.mxu1 %v856_v13 }
  0x75   :  { %975 = vmatmul.msk.bf16.gmra.mxu2 %vm362_vm0, %v884_v16 }
  0x7c   :  { %420 = vmatmul.bf16.gmra.mxu0 %v864_v21 }
  0x7d   :  { %469 = vmatmul.bf16.gmra.mxu1 %v868_v22 }
  0x85   :  { %976 = vmatmul.msk.bf16.gmra.mxu2 %vm362_vm0, %v896_v25 }
  0x98   :  { %v494_v26 = vpop.f32.mrf.mxu2 }
  0xa0   :  { %v496_v27 = vpop.f32.mrf.mxu2 }
  0xa8   :  { %v499_v29 = vpop.f32.mrf.mxu2 }
  0xa9   :  { %v396_v30 = vpop.f32.mrf.mxu0 }
  0xaa   :  { %v397_v31 = vadd.f32 %v1413_v28, %v396_v30  ;;  %v445_v32 = vpop.f32.mrf.mxu1 }
  0xac   :  { %v446_v33 = vadd.f32 %v445_v32, %v397_v31 }
  0xae   :  { %v1416_v34 = vadd.f32 %v494_v26, %v446_v33 }
  0xb0   :  { %v501_v35 = vpop.f32.mrf.mxu2  ;;  %v1418_v44 = vpop.f32.mrf.mxu3  ;;  %v571_v17 = vmul.f32 %v1416_v34, %v1416_v34  ;;  %v534_v25 = vsel %vm362_vm0, %v1416_v34, 0.0 }
  0xb1   :  { %v398_v36 = vpop.f32.mrf.mxu0 }
  0xb2   :  { %v447_v37 = vpop.f32.mrf.mxu1  ;;  %v399_v59 = vadd.f32 %v1413_v28, %v398_v36  ;;  %v587_v33 = vsel %vm362_vm0, %v571_v17, 0.0 }
  0xb4   :  { %v448_v62 = vadd.f32 %v447_v37, %v399_v59 }
  0xb6   :  { %v1436_v5 = vadd.f32 %v496_v27, %v448_v62 }
  0xb8   :  { %v504_v38 = vpop.f32.mrf.mxu2  ;;  %v1420_v48 = vpop.f32.mrf.mxu3  ;;  %v572_v12 = vmul.f32 %v1436_v5, %v1436_v5  ;;  %v535_v20 = vsel %vm362_vm0, %v1436_v5, 0.0 }
  0xb9   :  { %v401_v39 = vpop.f32.mrf.mxu0 }
  0xba   :  { %v450_v40 = vpop.f32.mrf.mxu1  ;;  %v402_v61 = vadd.f32 %v1413_v28, %v401_v39  ;;  %v588_v26 = vsel %vm362_vm0, %v572_v12, 0.0 }
  0xbc   :  { %v451_v3 = vadd.f32 %v450_v40, %v402_v61 }
  0xbe   :  { %v1439_v9 = vadd.f32 %v499_v29, %v451_v3 }
  0xc0   :  { %v506_v41 = vpop.f32.mrf.mxu2  ;;  %v1424_v54 = vpop.f32.mrf.mxu3  ;;  %v573_v21 = vmul.f32 %v1439_v9, %v1439_v9  ;;  %v537_v29 = vsel %vm362_vm0, %v1439_v9, 0.0 }
  0xc1   :  { %v403_v42 = vpop.f32.mrf.mxu0 }
  0xc2   :  { %v452_v43 = vpop.f32.mrf.mxu1  ;;  %v404_v63 = vadd.f32 %v1413_v28, %v403_v42  ;;  %v590_v37 = vsel %vm362_vm0, %v573_v21, 0.0 }
  0xc4   :  { %v453_v7 = vadd.f32 %v452_v43, %v404_v63 }
  0xc6   :  { %v1446_v14 = vadd.f32 %v501_v35, %v453_v7  ;;  %v536_v35 = vadd.f32 %v535_v20, %v534_v25  ;;  %v429_v25 = vadd.f32 %v1413_v28, %v1420_v48 }
  0xc8   :  { %v509_v45 = vpop.f32.mrf.mxu2  ;;  %v1429_v60 = vpop.f32.mrf.mxu3  ;;  %v574_v30 = vmul.f32 %v1446_v14, %v1446_v14  ;;  %v538_v42 = vadd.f32 %v537_v29, %v536_v35 }
  0xc9   :  { %v406_v46 = vpop.f32.mrf.mxu0 }
  0xca   :  { %v455_v47 = vpop.f32.mrf.mxu1  ;;  %v407_v1 = vadd.f32 %v1413_v28, %v406_v46  ;;  %v592_v46 = vsel %vm362_vm0, %v574_v30, 0.0 }
  0xcc   :  { %v456_v8 = vadd.f32 %v455_v47, %v407_v1 }
  0xce   :  { %v1453_v18 = vadd.f32 %v504_v38, %v456_v8  ;;  %v539_v38 = vsel %vm362_vm0, %v1446_v14, 0.0 }
  0xd0   :  { %v511_v49 = vpop.f32.mrf.mxu2  ;;  %v1441_v10 = vpop.f32.mrf.mxu3  ;;  %v575_v36 = vmul.f32 %v1453_v18, %v1453_v18  ;;  %v541_v47 = vsel %vm362_vm0, %v1453_v18, 0.0 }
  0xd1   :  { %v408_v50 = vpop.f32.mrf.mxu0 }
  0xd2   :  { %v457_v51 = vpop.f32.mrf.mxu1  ;;  %v409_v6 = vadd.f32 %v1413_v28, %v408_v50 }
  0xd4   :  { %v458_v13 = vadd.f32 %v457_v51, %v409_v6 }
  0xd6   :  { %v1463_v27 = vadd.f32 %v506_v41, %v458_v13  ;;  %v589_v41 = vadd.f32 %v588_v26, %v587_v33 }
  0xd8   :  { %v1422_v52 = vpop.f32.mrf.mxu2  ;;  %v576_v43 = vmul.f32 %v1463_v27, %v1463_v27  ;;  %v477_v50 = vpop.f32.mrf.mxu3  ;;  %v543_v61 = vsel %vm362_vm0, %v1463_v27, 0.0 }
  0xd9   :  { %v411_v53 = vpop.f32.mrf.mxu0 }
  0xda   :  { %v460_v55 = vpop.f32.mrf.mxu1  ;;  %v412_v11 = vadd.f32 %v1413_v28, %v411_v53 }
  0xdc   :  { %v461_v22 = vadd.f32 %v460_v55, %v412_v11 }
  0xde   :  { %v1476_v39 = vadd.f32 %v509_v45, %v461_v22  ;;  %v594_v45 = vsel %vm362_vm0, %v575_v36, 0.0 }
  0xe0   :  { %v1426_v56 = vpop.f32.mrf.mxu2  ;;  %v577_v62 = vmul.f32 %v1476_v39, %v1476_v39  ;;  %v545_v6 = vsel %vm362_vm0, %v1476_v39, 0.0 }
  0xe1   :  { %v413_v57 = vpop.f32.mrf.mxu0 }
  0xe2   :  { %v462_v58 = vpop.f32.mrf.mxu1  ;;  %v414_v15 = vadd.f32 %v1413_v28, %v413_v57  ;;  %v591_v57 = vadd.f32 %v590_v37, %v589_v41 }
  0xe4   :  { %v463_v31 = vadd.f32 %v462_v58, %v414_v15  ;;  %v540_v58 = vadd.f32 %v539_v38, %v538_v42  ;;  %v598_v15 = vsel %vm362_vm0, %v577_v62, 0.0 }
  0xe6   :  { %v1483_v51 = vadd.f32 %v511_v49, %v463_v31  ;;  %v542_v3 = vadd.f32 %v541_v47, %v540_v58  ;;  %v480_v31 = vpop.f32.mrf.mxu3 }
  0xe8   :  { %v1433_v0 = vpop.f32.mrf.mxu2  ;;  %v578_v7 = vmul.f32 %v1483_v51, %v1483_v51  ;;  %v544_v13 = vadd.f32 %v543_v61, %v542_v3  ;;  %v547_v17 = vsel %vm362_vm0, %v1483_v51, 0.0 }
  0xe9   :  { %v416_v2 = vpop.f32.mrf.mxu0 }
  0xea   :  { %v465_v4 = vpop.f32.mrf.mxu1  ;;  %v417_v23 = vadd.f32 %v1413_v28, %v416_v2  ;;  %v593_v2 = vadd.f32 %v592_v46, %v591_v57  ;;  %v600_v22 = vsel %vm362_vm0, %v578_v7, 0.0  ;;  %v478_v46 = vadd.f32 %v477_v50, %v429_v25 }
  0xec   :  { %v466_v40 = vadd.f32 %v465_v4, %v417_v23  ;;  %v596_v4 = vsel %vm362_vm0, %v576_v43, 0.0  ;;  %v595_v12 = vadd.f32 %v594_v45, %v593_v2  ;;  %v432_v43 = vadd.f32 %v1413_v28, %v1424_v54 }
  0xee   :  { %v1491_v63 = vadd.f32 %v1422_v52, %v466_v40  ;;  %v427_v52 = vadd.f32 %v1413_v28, %v1418_v44  ;;  %v597_v21 = vadd.f32 %v596_v4, %v595_v12  ;;  %v482_v12 = vpop.f32.mrf.mxu3 }
  0xf0   :  { %v1449_v16 = vpop.f32.mrf.mxu2  ;;  %v549_v44 = vsel %vm362_vm0, %v1491_v63, 0.0  ;;  %v476_v26 = vadd.f32 %v1441_v10, %v427_v52  ;;  %v599_v29 = vadd.f32 %v598_v15, %v597_v21 }
  0xf1   :  { %v418_v19 = vpop.f32.mrf.mxu0 }
  0xf2   :  { %v467_v24 = vpop.f32.mrf.mxu1  ;;  %v419_v32 = vadd.f32 %v1413_v28, %v418_v19  ;;  %v579_v19 = vmul.f32 %v1491_v63, %v1491_v63  ;;  %v601_v37 = vadd.f32 %v600_v22, %v599_v29 }
  0xf4   :  { %v468_v53 = vadd.f32 %v467_v24, %v419_v32  ;;  %v602_v32 = vsel %vm362_vm0, %v579_v19, 0.0 }
  0xf5   :  { %v603_v47 = vadd.f32 %v602_v32, %v601_v37 }
  0xf6   :  { %v1500_v8 = vadd.f32 %v1426_v56, %v468_v53  ;;  %v546_v56 = vadd.f32 %v545_v6, %v544_v13 }
  0xf8   :  { %v524_v55 = vpop.f32.mrf.mxu2  ;;  %v580_v23 = vmul.f32 %v1500_v8, %v1500_v8  ;;  %v548_v30 = vadd.f32 %v547_v17, %v546_v56  ;;  %v551_v33 = vsel %vm362_vm0, %v1500_v8, 0.0 }
  0xf9   :  { %v421_v59 = vpop.f32.mrf.mxu0  ;;  %v1527_v10 = vadd.f32 %v524_v55, %v476_v26 }
  0xfa   :  { %v422_v1 = vadd.f32 %v1413_v28, %v421_v59  ;;  %v470_v49 = vpop.f32.mrf.mxu1  ;;  %v550_v38 = vadd.f32 %v549_v44, %v548_v30  ;;  %v604_v48 = vsel %vm362_vm0, %v580_v23, 0.0 }
  0xfb   :  { %v605_v45 = vadd.f32 %v604_v48, %v603_v47  ;;  %v583_v55 = vmul.f32 %v1527_v10, %v1527_v10  ;;  %v557_v3 = vsel %vm362_vm0, %v1527_v10, 0.0 }
  0xfc   :  { %v471_v11 = vadd.f32 %v470_v49, %v422_v1  ;;  %v552_v53 = vadd.f32 %v551_v33, %v550_v38  ;;  %v481_v1 = vadd.f32 %v480_v31, %v432_v43 }
  0xfd   :  { %v610_v13 = vsel %vm362_vm0, %v583_v55, 0.0 }
  0xfe   :  { %v1510_v20 = vadd.f32 %v1433_v0, %v471_v11 }
 0x100   :  { %v526_v24 = vpop.f32.mrf.mxu2  ;;  %v581_v35 = vmul.f32 %v1510_v20, %v1510_v20  ;;  %v553_v41 = vsel %vm362_vm0, %v1510_v20, 0.0 }
 0x101   :  { %v423_v0 = vpop.f32.mrf.mxu0  ;;  %v554_v59 = vadd.f32 %v553_v41, %v552_v53  ;;  %v1537_v61 = vadd.f32 %v526_v24, %v478_v46 }
 0x102   :  { %v424_v36 = vadd.f32 %v1413_v28, %v423_v0  ;;  %v472_v40 = vpop.f32.mrf.mxu1  ;;  %v606_v57 = vsel %vm362_vm0, %v581_v35, 0.0 }
 0x103   :  { %v607_v49 = vadd.f32 %v606_v57, %v605_v45  ;;  %v584_v6 = vmul.f32 %v1537_v61, %v1537_v61  ;;  %v559_v15 = vsel %vm362_vm0, %v1537_v61, 0.0 }
 0x104   :  { %v473_v42 = vadd.f32 %v472_v40, %v424_v36 }
 0x105   :  { %v612_v19 = vsel %vm362_vm0, %v584_v6, 0.0 }
 0x106   :  { %v1535_v58 = vadd.f32 %v1449_v16, %v473_v42  ;;  %v434_v16 = vadd.f32 %v1413_v28, %v1429_v60 }
 0x108   :  { %v555_v62 = vsel %vm362_vm0, %v1535_v58, 0.0  ;;  %v582_v54 = vmul.f32 %v1535_v58, %v1535_v58  ;;  %v529_v50 = vpop.f32.mrf.mxu2  ;;  %v483_v60 = vadd.f32 %v482_v12, %v434_v16  ;;  %v629_v16 = vld [vmem:[#allocation4] sm:$0x1] }
 0x109   :  { %v556_v2 = vadd.f32 %v555_v62, %v554_v59  ;;  %v1552_v11 = vadd.f32 %v529_v50, %v481_v1 }
 0x10a   :  { %v608_v4 = vsel %vm362_vm0, %v582_v54, 0.0 }
 0x10b   :  { %v609_v7 = vadd.f32 %v608_v4, %v607_v49  ;;  %v558_v52 = vadd.f32 %v557_v3, %v556_v2  ;;  %v585_v21 = vmul.f32 %v1552_v11, %v1552_v11  ;;  %v561_v44 = vsel %vm362_vm0, %v1552_v11, 0.0 }
 0x10d   :  { %v611_v17 = vadd.f32 %v610_v13, %v609_v7  ;;  %v560_v28 = vadd.f32 %v559_v15, %v558_v52  ;;  %v614_v25 = vsel %vm362_vm0, %v585_v21, 0.0  ;;  %v642_v52 = vld [vmem:[#allocation6] sm:$0x1] }
 0x10f   :  { %v613_v56 = vadd.f32 %v612_v19, %v611_v17  ;;  %v562_v24 = vadd.f32 %v561_v44, %v560_v28 }
 0x110   :  { %v531_v22 = vpop.f32.mrf.mxu2 }
 0x111   :  { %v1562_v23 = vadd.f32 %v531_v22, %v483_v60  ;;  %v615_v30 = vadd.f32 %v614_v25, %v613_v56 }
 0x113   :  { %v563_v26 = vsel %vm362_vm0, %v1562_v23, 0.0  ;;  %v586_v29 = vmul.f32 %v1562_v23, %v1562_v23 }
 0x114   :  { %v564_v0 = vadd.f32 %v563_v26, %v562_v24 }
 0x115   :  { %v616_v31 = vsel %vm362_vm0, %v586_v29, 0.0 }
 0x116   :  { %v565_v32 = vrot.slane %v564_v0, 4  ;;  %v617_v33 = vadd.f32 %v616_v31, %v615_v30 }
 0x118   :  { %v566_v35 = vadd.f32 %v565_v32, %v564_v0  ;;  %v618_v36 = vrot.slane %v617_v33, 4 }
 0x11a   :  { %v567_v37 = vrot.slane %v566_v35, 2  ;;  %v619_v38 = vadd.f32 %v618_v36, %v617_v33 }
 0x11c   :  { %v568_v40 = vadd.f32 %v567_v37, %v566_v35  ;;  %v620_v48 = vrot.slane %v619_v38, 2 }
 0x11e   :  { %v569_v41 = vrot.slane %v568_v40, 1  ;;  %v621_v42 = vadd.f32 %v620_v48, %v619_v38 }
 0x120   :  { %v570_v43 = vadd.f32 %v569_v41, %v568_v40  ;;  %v622_v46 = vrot.slane %v621_v42, 1 }
 0x122   :  { %v623_v47 = vadd.f32 %v622_v46, %v621_v42  ;;  %v624_v53 = vmul.f32 0.0078125, %v570_v43 }
 0x124   :  { %v625_v57 = vmul.f32 0.0078125, %v623_v47  ;;  %v626_v45 = vmul.f32 %v624_v53, %v624_v53 }
 0x126   :  { %v627_v59 = vsub.f32 %v625_v57, %v626_v45 }
 0x128   :  { %v628_v55 = vmax.f32 %v627_v59, 0.0 }
 0x12a   :  { %v630_v62 = vadd.f32 1e-05, %v628_v55 }
 0x12c   :  { %1055 = vrsqrt.f32 %v630_v62  ;;  %vm637_vm2 = vweird.f32 %v630_v62 }
 0x132   :  { %v1056_v54 = vpop.eup %1055 }
 0x133   :  { %v632_v50 = vmul.f32 %v1056_v54, %v630_v62  ;;  %vm638_vm1 = vweird.f32 %v1056_v54 }
 0x134   :  { %vm639_vm3 = vmor %vm637_vm2, %vm638_vm1 }
 0x135   :  { %v633_v1 = vmul.f32 %v1056_v54, %v632_v50 }
 0x137   :  { %v634_v49 = vmul.f32 0.5, %v633_v1 }
 0x139   :  { %v635_v2 = vsub.f32 1.5, %v634_v49 }
 0x13b   :  { %v636_v3 = vmul.f32 %v1056_v54, %v635_v2 }
 0x13d   :  { %v640_v4 = vsel %vm639_vm3, %v1056_v54, %v636_v3 }
 0x13e   :  { %v641_v6 = vmul.f32 %v640_v4, %v629_v16 }
 0x140   :  { %v643_v7 = vmul.f32 %v641_v6, %v624_v53  ;;  %v646_v13 = vperm.slane %v641_v6, 0 }
 0x142   :  { %v644_v12 = vsub.f32 %v642_v52, %v643_v7  ;;  %v648_v17 = vmul.f32 %v646_v13, %v1416_v34  ;;  %v649_v28 = vmul.f32 %v646_v13, %v1436_v5  ;;  %v650_v60 = vmul.f32 %v646_v13, %v1439_v9 }
 0x143   :  { %v651_v19 = vmul.f32 %v646_v13, %v1446_v14  ;;  %v652_v21 = vmul.f32 %v646_v13, %v1453_v18  ;;  %v653_v24 = vmul.f32 %v646_v13, %v1463_v27  ;;  %v654_v25 = vmul.f32 %v646_v13, %v1476_v39 }
 0x144   :  { %v665_v15 = vperm.slane %v644_v12, 0  ;;  %v655_v5 = vmul.f32 %v646_v13, %v1483_v51  ;;  %v656_v9 = vmul.f32 %v646_v13, %v1491_v63  ;;  %v657_v29 = vmul.f32 %v646_v13, %v1500_v8 }
 0x145   :  { %v658_v0 = vmul.f32 %v646_v13, %v1510_v20  ;;  %v659_v31 = vmul.f32 %v646_v13, %v1535_v58  ;;  %v660_v63 = vmul.f32 %v646_v13, %v1527_v10  ;;  %v661_v33 = vmul.f32 %v646_v13, %v1537_v61 }
 0x146   :  { %v1575_v56 = vadd.f32 %v665_v15, %v648_v17  ;;  %v1577_v22 = vadd.f32 %v665_v15, %v649_v28  ;;  %v1579_v44 = vadd.f32 %v665_v15, %v650_v60  ;;  %v1583_v26 = vadd.f32 %v665_v15, %v651_v19 }
 0x147   :  { %v1585_v34 = vadd.f32 %v665_v15, %v652_v21  ;;  %v1589_v14 = vadd.f32 %v665_v15, %v653_v24  ;;  %v1591_v18 = vadd.f32 %v665_v15, %v654_v25  ;;  %v1599_v32 = vadd.f32 %v665_v15, %v655_v5 }
 0x148   :  { %v699_v30 = vmin.f32 %v1575_v56, 0.0  ;;  %v700_v27 = vmin.f32 %v1577_v22, 0.0  ;;  %v701_v39 = vmin.f32 %v1579_v44, 0.0  ;;  %v702_v51 = vmin.f32 %v1583_v26, 0.0 }
 0x149   :  { %v1604_v35 = vadd.f32 %v665_v15, %v656_v9  ;;  %v703_v8 = vmin.f32 %v1585_v34, 0.0  ;;  %v662_v36 = vmul.f32 %v646_v13, %v1552_v11  ;;  %v1608_v37 = vadd.f32 %v665_v15, %v657_v29 }
 0x14a   :  { %v704_v20 = vmin.f32 %v1589_v14, 0.0  ;;  %v705_v58 = vmin.f32 %v1591_v18, 0.0  ;;  %v1612_v38 = vadd.f32 %v665_v15, %v658_v0  ;;  %v715_v40 = vmul.f32 1.442695, %v699_v30 }
 0x14b   :  { %v717_v48 = vmul.f32 1.442695, %v700_v27  ;;  %v719_v41 = vmul.f32 1.442695, %v701_v39  ;;  %v663_v10 = vmul.f32 %v646_v13, %v1562_v23  ;;  %v1615_v61 = vadd.f32 %v665_v15, %v659_v31 }
 0x14c   :  { %v706_v42 = vmin.f32 %v1599_v32, 0.0  ;;  %v721_v43 = vmul.f32 1.442695, %v702_v51  ;;  %v1618_v46 = vadd.f32 %v665_v15, %v660_v63  ;;  %v707_v11 = vmin.f32 %v1604_v35, 0.0 }
 0x14d   :  { %1057 = vpow2.f32 %v715_v40  ;;  %v723_v47 = vmul.f32 1.442695, %v703_v8  ;;  %v1621_v53 = vadd.f32 %v665_v15, %v661_v33  ;;  %v708_v57 = vmin.f32 %v1608_v37, 0.0 }
 0x14e   :  { %1059 = vpow2.f32 %v717_v48  ;;  %v725_v45 = vmul.f32 1.442695, %v704_v20  ;;  %v1624_v59 = vadd.f32 %v665_v15, %v662_v36  ;;  %v709_v23 = vmin.f32 %v1612_v38, 0.0 }
 0x14f   :  { %1061 = vpow2.f32 %v719_v41  ;;  %v727_v55 = vmul.f32 1.442695, %v705_v58  ;;  %v1627_v62 = vadd.f32 %v665_v15, %v663_v10  ;;  %v710_v54 = vmin.f32 %v1615_v61, 0.0 }
 0x150   :  { %1063 = vpow2.f32 %v721_v43  ;;  %v729_v50 = vmul.f32 1.442695, %v706_v42  ;;  %vm683_vm4 = vcmp.gt.f32.partialorder %v1575_v56, 0.0  ;;  %v711_v1 = vmin.f32 %v1618_v46, 0.0 }
 0x151   :  { %1065 = vpow2.f32 %v723_v47  ;;  %v731_v49 = vmul.f32 1.442695, %v707_v11  ;;  %vm684_vm5 = vcmp.gt.f32.partialorder %v1577_v22, 0.0  ;;  %v712_v2 = vmin.f32 %v1621_v53, 0.0 }
 0x152   :  { %1067 = vpow2.f32 %v725_v45  ;;  %v733_v16 = vmul.f32 1.442695, %v708_v57  ;;  %vm685_vm6 = vcmp.gt.f32.partialorder %v1579_v44, 0.0  ;;  %v713_v4 = vmin.f32 %v1624_v59, 0.0 }
 0x153   :  { %v1058_v3 = vpop.eup %1057  ;;  %1069 = vpow2.f32 %v727_v55  ;;  %v735_v6 = vmul.f32 1.442695, %v709_v23  ;;  %v714_v52 = vmin.f32 %v1627_v62, 0.0  ;;  %v737_v12 = vmul.f32 1.442695, %v710_v54 }
 0x154   :  { %v1060_v7 = vpop.eup %1059  ;;  %1071 = vpow2.f32 %v729_v50  ;;  %v977_v13 = vadd.f32 -1.0, %v1058_v3  ;;  %vm686_vm7 = vcmp.gt.f32.partialorder %v1583_v26, 0.0  ;;  %v739_v17 = vmul.f32 1.442695, %v711_v1 }
 0x155   :  { %v1062_v15 = vpop.eup %1061  ;;  %1073 = vpow2.f32 %v731_v49  ;;  %v978_v28 = vadd.f32 -1.0, %v1060_v7  ;;  %v741_v19 = vmul.f32 1.442695, %v712_v2  ;;  %v743_v5 = vmul.f32 1.442695, %v713_v4 }
 0x156   :  { %v1064_v60 = vpop.eup %1063  ;;  %1075 = vpow2.f32 %v733_v16  ;;  %v979_v21 = vadd.f32 -1.0, %v1062_v15  ;;  %v763_v24 = vsel %vm683_vm4, %v1575_v56, %v977_v13  ;;  %v745_v27 = vmul.f32 1.442695, %v714_v52 }
 0x157   :  { %v1066_v25 = vpop.eup %1065  ;;  %1077 = vpow2.f32 %v735_v6  ;;  %v980_v9 = vadd.f32 -1.0, %v1064_v60  ;;  %v764_v29 = vsel %vm684_vm5, %v1577_v22, %v978_v28  ;;  %779 = vst.msk [vmem:[%s1743_s5] sm:$0xff] %vm362_vm0, %v763_v24  ;;  %vm687_vm8 = vcmp.gt.f32.partialorder %v1585_v34, 0.0 }
 0x158   :  { %v1068_v30 = vpop.eup %1067  ;;  %1079 = vpow2.f32 %v737_v12  ;;  %v981_v39 = vadd.f32 -1.0, %v1066_v25  ;;  %v765_v56 = vsel %vm685_vm6, %v1579_v44, %v979_v21  ;;  %780 = vst.msk [vmem:[%s1743_s5 + $0x8] sm:$0xff] %vm362_vm0, %v764_v29  ;;  %vm688_vm9 = vcmp.gt.f32.partialorder %v1589_v14, 0.0 }
 0x159   :  { %v1070_v0 = vpop.eup %1069  ;;  %1081 = vpow2.f32 %v739_v17  ;;  %v982_v22 = vadd.f32 -1.0, %v1068_v30  ;;  %v766_v31 = vsel %vm686_vm7, %v1583_v26, %v980_v9  ;;  %781 = vst.msk [vmem:[%s1743_s5 + $0x10] sm:$0xff] %vm362_vm0, %v765_v56  ;;  %vm689_vm10 = vcmp.gt.f32.partialorder %v1591_v18, 0.0 }
 0x15a   :  { %v1072_v44 = vpop.eup %1071  ;;  %1083 = vpow2.f32 %v741_v19  ;;  %v983_v51 = vadd.f32 -1.0, %v1070_v0  ;;  %v767_v63 = vsel %vm687_vm8, %v1585_v34, %v981_v39  ;;  %782 = vst.msk [vmem:[%s1743_s5 + $0x18] sm:$0xff] %vm362_vm0, %v766_v31  ;;  %vm690_vm11 = vcmp.gt.f32.partialorder %v1599_v32, 0.0 }
 0x15b   :  { %v1074_v33 = vpop.eup %1073  ;;  %1085 = vpow2.f32 %v743_v5  ;;  %v984_v26 = vadd.f32 -1.0, %v1072_v44  ;;  %v768_v8 = vsel %vm688_vm9, %v1589_v14, %v982_v22  ;;  %783 = vst.msk [vmem:[%s1743_s5 + $0x20] sm:$0xff] %vm362_vm0, %v767_v63  ;;  %vm691_vm12 = vcmp.gt.f32.partialorder %v1604_v35, 0.0 }
 0x15c   :  { %v1076_v36 = vpop.eup %1075  ;;  %1087 = vpow2.f32 %v745_v27  ;;  %v985_v34 = vadd.f32 -1.0, %v1074_v33  ;;  %v769_v20 = vsel %vm689_vm10, %v1591_v18, %v983_v51  ;;  %784 = vst.msk [vmem:[%s1743_s5 + $0x28] sm:$0xff] %vm362_vm0, %v768_v8  ;;  %vm692_vm13 = vcmp.gt.f32.partialorder %v1608_v37, 0.0 }
 0x15d   :  { %v1078_v58 = vpop.eup %1077  ;;  %v986_v14 = vadd.f32 -1.0, %v1076_v36  ;;  %v770_v40 = vsel %vm690_vm11, %v1599_v32, %v984_v26  ;;  %785 = vst.msk [vmem:[%s1743_s5 + $0x30] sm:$0xff] %vm362_vm0, %v769_v20  ;;  %vm693_vm14 = vcmp.gt.f32.partialorder %v1612_v38, 0.0  ;;  %vm694_vm15 = vcmp.gt.f32.partialorder %v1615_v61, 0.0 }
 0x15e   :  { %v1080_v48 = vpop.eup %1079  ;;  %v987_v18 = vadd.f32 -1.0, %v1078_v58  ;;  %v771_v41 = vsel %vm691_vm12, %v1604_v35, %v985_v34  ;;  %786 = vst.msk [vmem:[%s1743_s5 + $0x38] sm:$0xff] %vm362_vm0, %v770_v40  ;;  %vm695_vm1 = vcmp.gt.f32.partialorder %v1618_v46, 0.0  ;;  %vm696_vm2 = vcmp.gt.f32.partialorder %v1621_v53, 0.0 }
 0x15f   :  { %v1082_v10 = vpop.eup %1081  ;;  %v988_v32 = vadd.f32 -1.0, %v1080_v48  ;;  %v772_v42 = vsel %vm692_vm13, %v1608_v37, %v986_v14  ;;  %787 = vst.msk [vmem:[%s1743_s5 + $0x40] sm:$0xff] %vm362_vm0, %v771_v41  ;;  %vm697_vm3 = vcmp.gt.f32.partialorder %v1624_v59, 0.0  ;;  %vm698_vm4 = vcmp.gt.f32.partialorder %v1627_v62, 0.0 }
 0x160   :  { %v1084_v43 = vpop.eup %1083  ;;  %v989_v35 = vadd.f32 -1.0, %v1082_v10  ;;  %v773_v11 = vsel %vm693_vm14, %v1612_v38, %v987_v18  ;;  %788 = vst.msk [vmem:[%s1743_s5 + $0x48] sm:$0xff] %vm362_vm0, %v772_v42 }
 0x161   :  { %v1086_v47 = vpop.eup %1085  ;;  %v990_v37 = vadd.f32 -1.0, %v1084_v43  ;;  %v774_v57 = vsel %vm694_vm15, %v1615_v61, %v988_v32  ;;  %789 = vst.msk [vmem:[%s1743_s5 + $0x50] sm:$0xff] %vm362_vm0, %v773_v11 }
 0x162   :  { %v1088_v45 = vpop.eup %1087  ;;  %v991_v38 = vadd.f32 -1.0, %v1086_v47  ;;  %v775_v23 = vsel %vm695_vm1, %v1618_v46, %v989_v35  ;;  %790 = vst.msk [vmem:[%s1743_s5 + $0x58] sm:$0xff] %vm362_vm0, %v774_v57 }
 0x163   :  { %v992_v55 = vadd.f32 -1.0, %v1088_v45  ;;  %v776_v61 = vsel %vm696_vm2, %v1621_v53, %v990_v37  ;;  %791 = vst.msk [vmem:[%s1743_s5 + $0x60] sm:$0xff] %vm362_vm0, %v775_v23 }
 0x164   :  { %v777_v54 = vsel %vm697_vm3, %v1624_v59, %v991_v38  ;;  %792 = vst.msk [vmem:[%s1743_s5 + $0x68] sm:$0xff] %vm362_vm0, %v776_v61 }
 0x165   :  { %v778_v46 = vsel %vm698_vm4, %v1627_v62, %v992_v55  ;;  %793 = vst.msk [vmem:[%s1743_s5 + $0x70] sm:$0xff] %vm362_vm0, %v777_v54 }
 0x166   :  { %794 = vst.msk [vmem:[%s1743_s5 + $0x78] sm:$0xff] %vm362_vm0, %v778_v46 }
 0x167   :  { %799 = vsyncpa [#allocation3], 1 }
 0x168   :  { %800 = vsyncpa [#allocation5], 1 }

// kernel: generator_forward.16
= control target key start
LH: loop header
LB: loop body
LE: loop exit
PB: predicated region body
PF: predicated region fallthrough
CT: control target
= control target key end

     0   :  { %11 = vsyncpa [#allocation3], 0  ;;  %s1598_s0 = inlined_call_operand.vmem [shape: bf16[128,288], index: 0, kind: input, shape index: {}]   ;;  %s1599_s1 = inlined_call_operand.vmem [shape: bf16[288,32], index: 1, kind: input, shape index: {}]   ;;  %s1600_s2 = inlined_call_operand.hbm [shape: f32[1,32], index: 2, kind: input, shape index: {}]   ;;  %s1601_s3 = inlined_call_operand.hbm [shape: f32[1,32], index: 3, kind: input, shape index: {}]   ;;  %s1602_s4 = inlined_call_operand.hbm [shape: f32[1,32], index: 4, kind: input, shape index: {}]   ;;  %s1603_s5 = inlined_call_operand.hbm [shape: f32[128,32], index: 5, kind: input, shape index: {}]   ;;  %s1604_s6 = inlined_call_operand.vmem [shape: f32[128,32], index: 6, kind: output, shape index: {}]  }
   0x1   :  { %12 = vsyncpa [#allocation5], 0  ;;  %s34_s23 = sshll.u32 %s1601_s3, 4  ;;  %s35_s23 = int_to_ptr.hbm [resolvable:$true] %s34_s23 }
   0x2   :  { %13 = vsyncpa [#allocation8], 0  ;;  %s1102_s24 = smov [#allocation4]   ;;  %s23_s28 = sshll.u32 %s1600_s2, 4  ;;  %s24_s28 = int_to_ptr.hbm [resolvable:$true] %s23_s28 }
   0x3   :  { %s36_s25 = sshll.u32 %s1102_s24, 4  ;;  %s1103_s29 = smov [#allocation2]   ;;  %s37_s25 = int_to_ptr.vmem [resolvable:$true] %s36_s25 }
   0x4   :  { %39 = dma.hbm_to_vmem [thread:$0]  %s35_s23, 16, %s37_s25, [#allocation5]  }
   0x5   :  { %s25_s30 = sshll.u32 %s1103_s29, 4  ;;  %s45_s9 = sshll.u32 %s1602_s4, 4  ;;  %s26_s30 = int_to_ptr.vmem [resolvable:$true] %s25_s30  ;;  %s46_s9 = int_to_ptr.hbm [resolvable:$true] %s45_s9 }
   0x6   :  { %28 = dma.hbm_to_vmem [thread:$0]  %s24_s28, 16, %s26_s30, [#allocation3]  }
   0x7   :  { %s55_s11 = sshll.u32 %s1603_s5, 4  ;;  %s1104_s12 = smov [#allocation6]   ;;  %s56_s11 = int_to_ptr.hbm [resolvable:$true] %s55_s11 }
   0x8   :  { %s47_s13 = sshll.u32 %s1104_s12, 4  ;;  %s1105_s2 = smov [#allocation7]   ;;  %s48_s13 = int_to_ptr.vmem [resolvable:$true] %s47_s13 }
   0x9   :  { %50 = dma.hbm_to_vmem [thread:$0]  %s46_s9, 16, %s48_s13, [#allocation5]  }
   0xa   :  { %s57_s14 = sshll.u32 %s1105_s2, 4  ;;  %s1106_s15 = smov 128   ;;  %s58_s14 = int_to_ptr.vmem [resolvable:$true] %s57_s14 }
   0xb   :  { %s1107_s16 = smov 8  }
   0xc   :  { %63 = dma.hbm_to_vmem [thread:$0]  %s56_s11, 2048, %s58_s14, [#allocation8], %s1106_s15, %s1106_s15, %s1107_s16  }
   0xd   :  { %1096 = dma.done.wait [#allocation3], 16  }
   0xe   :  { %1097 = vsyncadd [#allocation3], 4294967280 }
   0xf   :  { %1098 = dma.done.wait [#allocation5], 32  }
  0x10   :  { %1099 = vsyncadd [#allocation5], 4294967264 }
  0x11   :  { %1100 = dma.done.wait [#allocation8], 2048  }
  0x12   :  { %1101 = vsyncadd [#allocation8], 4294965248  ;;  %v964_v0 = vld [vmem:[%s1599_s1 + $0x38] sm:$0xff]  ;;  %v974_v2 = vld [vmem:[%s1599_s1 + $0x88] sm:$0xff]  ;;  %vm381_vm0 = vcmask 261120  }
  0x13   :  { %v972_v1 = vld [vmem:[%s1599_s1 + $0x78] sm:$0xff]  ;;  %406 = vmatpush.bf16.msra.mxu0 %v964_v0  ;;  %975 = vmatpush.bf16.msra.mxu3 %v964_v0  ;;  %v963_v3 = vld [vmem:[%s1599_s1 + $0x30] sm:$0xff]  ;;  %v973_v5 = vld [vmem:[%s1599_s1 + $0x80] sm:$0xff] }
  0x14   :  { %v971_v4 = vld [vmem:[%s1599_s1 + $0x70] sm:$0xff]  ;;  %455 = vmatpush.bf16.msra.mxu1 %v972_v1  ;;  %510 = vmatpush.bf16.msra.mxu2 %v974_v2  ;;  %v767_v6 = vld [vmem:[%s1598_s0 + $0x8] sm:$0xf]  ;;  %v961_v11 = vld [vmem:[%s1599_s1 + $0x20] sm:$0xff] }
  0x15   :  { %v935_v7 = vld [vmem:[%s1598_s0 + $0x10] sm:$0xf0]  ;;  %v962_v9 = vld [vmem:[%s1599_s1 + $0x28] sm:$0xff]  ;;  %v969_v12 = vld [vmem:[%s1599_s1 + $0x60] sm:$0xff] }
  0x16   :  { %v768_v8 = vor.u32 %v935_v7, %v767_v6  ;;  %v970_v10 = vld [vmem:[%s1599_s1 + $0x68] sm:$0xff]  ;;  %v960_v13 = vld [vmem:[%s1599_s1 + $0x18] sm:$0xff]  ;;  %v959_v15 = vld [vmem:[%s1599_s1 + $0x10] sm:$0xff] }
  0x17   :  { %407 = vmatpush.bf16.msra.mxu0 %v963_v3  ;;  %976 = vmatpush.bf16.msra.mxu3 %v963_v3  ;;  %v968_v14 = vld [vmem:[%s1599_s1 + $0x58] sm:$0xff]  ;;  %v967_v16 = vld [vmem:[%s1599_s1 + $0x50] sm:$0xff]  ;;  %v779_v17 = vld [vmem:[%s1598_s0 + $0x20] sm:$0xf] }
  0x18   :  { %456 = vmatpush.bf16.msra.mxu1 %v971_v4  ;;  %511 = vmatpush.bf16.msra.mxu2 %v973_v5  ;;  %v938_v18 = vld [vmem:[%s1598_s0 + $0x28] sm:$0xf0]  ;;  %v957_v22 = vld [vmem:[%s1599_s1] sm:$0xff]  ;;  %v831_v26 = vld [vmem:[%s1598_s0 + $0x90] sm:$0xf] }
  0x19   :  { %v780_v19 = vor.u32 %v938_v18, %v779_v17  ;;  %v958_v20 = vld [vmem:[%s1599_s1 + $0x8] sm:$0xff]  ;;  %v965_v23 = vld [vmem:[%s1599_s1 + $0x40] sm:$0xff]  ;;  %v952_v27 = vld [vmem:[%s1598_s0 + $0x98] sm:$0xf0] }
  0x1a   :  { %v966_v21 = vld [vmem:[%s1599_s1 + $0x48] sm:$0xff]  ;;  %v759_v24 = vld [vmem:[%s1598_s0] sm:$0xf]  ;;  %v933_v28 = vld [vmem:[%s1598_s0 + $0x4] sm:$0xf]  ;;  %v832_v31 = vor.u32 %v952_v27, %v831_v26 }
  0x1b   :  { %925 = vmatmul.msk.bf16.vlgmr.msra.gmra.mxu2 %vm381_vm0, %v768_v8  ;;  %408 = vmatpush.bf16.msra.mxu0 %v962_v9  ;;  %v934_v25 = vld [vmem:[%s1598_s0 + $0x8] sm:$0xf0]  ;;  %v761_v29 = vld [vmem:[%s1598_s0 + $0xc] sm:$0xf0]  ;;  %v791_v33 = vld [vmem:[%s1598_s0 + $0x38] sm:$0xf] }
  0x1c   :  { %977 = vmatpush.bf16.msra.mxu3 %v962_v9  ;;  %457 = vmatpush.bf16.msra.mxu1 %v970_v10  ;;  %v760_v30 = vor.u32 %v934_v25, %v759_v24  ;;  %v764_v32 = vor.u32 %v933_v28, %v761_v29  ;;  %v941_v34 = vld [vmem:[%s1598_s0 + $0x40] sm:$0xf0]  ;;  %v771_v36 = vld [vmem:[%s1598_s0 + $0x18] sm:$0xf]  ;;  %v843_v38 = vld [vmem:[%s1598_s0 + $0xa8] sm:$0xf] }
  0x1d   :  { %v792_v35 = vor.u32 %v941_v34, %v791_v33  ;;  %v937_v37 = vld [vmem:[%s1598_s0 + $0x20] sm:$0xf0]  ;;  %v955_v39 = vld [vmem:[%s1598_s0 + $0xb0] sm:$0xf0]  ;;  %v936_v40 = vld [vmem:[%s1598_s0 + $0x1c] sm:$0xf] }
  0x1e   :  { %v773_v41 = vld [vmem:[%s1598_s0 + $0x24] sm:$0xf0]  ;;  %v772_v42 = vor.u32 %v937_v37, %v771_v36  ;;  %v844_v43 = vor.u32 %v955_v39, %v843_v38  ;;  %v803_v45 = vld [vmem:[%s1598_s0 + $0x50] sm:$0xf]  ;;  %v944_v46 = vld [vmem:[%s1598_s0 + $0x58] sm:$0xf0] }
  0x1f   :  { %409 = vmatpush.bf16.msra.mxu0 %v961_v11  ;;  %v776_v44 = vor.u32 %v936_v40, %v773_v41  ;;  %v804_v47 = vor.u32 %v944_v46, %v803_v45  ;;  %v783_v48 = vld [vmem:[%s1598_s0 + $0x30] sm:$0xf]  ;;  %v940_v49 = vld [vmem:[%s1598_s0 + $0x38] sm:$0xf0]  ;;  %v939_v50 = vld [vmem:[%s1598_s0 + $0x34] sm:$0xf] }
  0x20   :  { %978 = vmatpush.bf16.msra.mxu3 %v961_v11  ;;  %458 = vmatpush.bf16.msra.mxu1 %v969_v12  ;;  %v785_v51 = vld [vmem:[%s1598_s0 + $0x3c] sm:$0xf0]  ;;  %v951_v52 = vld [vmem:[%s1598_s0 + $0x94] sm:$0xf]  ;;  %v784_v54 = vor.u32 %v940_v49, %v783_v48  ;;  %v815_v57 = vld [vmem:[%s1598_s0 + $0x68] sm:$0xf] }
  0x21   :  { %v833_v53 = vld [vmem:[%s1598_s0 + $0x9c] sm:$0xf0]  ;;  %v788_v55 = vor.u32 %v939_v50, %v785_v51  ;;  %v947_v58 = vld [vmem:[%s1598_s0 + $0x70] sm:$0xf0]  ;;  %v795_v60 = vld [vmem:[%s1598_s0 + $0x48] sm:$0xf] }
  0x22   :  { %v836_v56 = vor.u32 %v951_v52, %v833_v53  ;;  %v816_v59 = vor.u32 %v947_v58, %v815_v57  ;;  %v943_v61 = vld [vmem:[%s1598_s0 + $0x50] sm:$0xf0]  ;;  %v942_v62 = vld [vmem:[%s1598_s0 + $0x4c] sm:$0xf]  ;;  %v797_v63 = vld [vmem:[%s1598_s0 + $0x54] sm:$0xf0] }
  0x23   :  { %410 = vmatpush.bf16.msra.mxu0 %v960_v13  ;;  %v954_v0 = vld [vmem:[%s1598_s0 + $0xac] sm:$0xf]  ;;  %v796_v2 = vor.u32 %v943_v61, %v795_v60  ;;  %v800_v3 = vor.u32 %v942_v62, %v797_v63  ;;  %v827_v5 = vld [vmem:[%s1598_s0 + $0x80] sm:$0xf]  ;;  %v809_v11 = vld [vmem:[%s1598_s0 + $0x6c] sm:$0xf0] }
  0x24   :  { %979 = vmatpush.bf16.msra.mxu3 %v960_v13  ;;  %459 = vmatpush.bf16.msra.mxu1 %v968_v14  ;;  %v950_v6 = vld [vmem:[%s1598_s0 + $0x88] sm:$0xf0]  ;;  %v807_v8 = vld [vmem:[%s1598_s0 + $0x60] sm:$0xf]  ;;  %v819_v17 = vld [vmem:[%s1598_s0 + $0x78] sm:$0xf] }
  0x25   :  { %v828_v7 = vor.u32 %v950_v6, %v827_v5  ;;  %v946_v9 = vld [vmem:[%s1598_s0 + $0x68] sm:$0xf0]  ;;  %v949_v18 = vld [vmem:[%s1598_s0 + $0x80] sm:$0xf0]  ;;  %v956_v24 = vld [vmem:[%s1598_s0 + $0xb8] sm:$0xf0] }
  0x26   :  { %v1361_v28 = vld [vmem:[#allocation2] ss:$0 sm:$0xff] }
  0x27   :  { %411 = vmatpush.bf16.msra.mxu0 %v959_v15 }
  0x28   :  { %980 = vmatpush.bf16.msra.mxu3 %v959_v15  ;;  %460 = vmatpush.bf16.msra.mxu1 %v967_v16  ;;  %v953_v15 = vld [vmem:[%s1598_s0 + $0xa0] sm:$0xf0] }
  0x2b   :  { %926 = vmatmul.msk.bf16.gmra.mxu2 %vm381_vm0, %v780_v19  ;;  %412 = vmatpush.bf16.msra.mxu0 %v958_v20  ;;  %v948_v19 = vld [vmem:[%s1598_s0 + $0x7c] sm:$0xf] }
  0x2c   :  { %981 = vmatpush.bf16.msra.mxu3 %v958_v20  ;;  %461 = vmatpush.bf16.msra.mxu1 %v966_v21  ;;  %v821_v20 = vld [vmem:[%s1598_s0 + $0x84] sm:$0xf0] }
  0x2f   :  { %413 = vmatpush.bf16.msra.mxu0 %v957_v22 }
  0x30   :  { %982 = vmatpush.bf16.msra.mxu3 %v957_v22  ;;  %462 = vmatpush.bf16.msra.mxu1 %v965_v23  ;;  %v824_v22 = vor.u32 %v948_v19, %v821_v20 }
  0x32   :  { %414 = vmatmul.bf16.vlgmr.msra.gmra.mxu0 %v760_v30 }
  0x33   :  { %444 = vmatmul.bf16.vlgmr.msra.gmra.mxu3 %v832_v31  ;;  %463 = vmatmul.bf16.vlgmr.msra.gmra.mxu1 %v764_v32 }
  0x34   :  { %983 = vmatpush.bf16.msrb.mxu3 %v972_v1  ;;  %v845_v1 = vld [vmem:[%s1598_s0 + $0xb4] sm:$0xf0] }
  0x38   :  { %984 = vmatpush.bf16.msrb.mxu3 %v971_v4  ;;  %v848_v4 = vor.u32 %v954_v0, %v845_v1 }
  0x3b   :  { %927 = vmatmul.msk.bf16.gmra.mxu2 %vm381_vm0, %v792_v35 }
  0x3c   :  { %985 = vmatpush.bf16.msrb.mxu3 %v970_v10  ;;  %v945_v10 = vld [vmem:[%s1598_s0 + $0x64] sm:$0xf] }
  0x3d   :  { %v812_v13 = vor.u32 %v945_v10, %v809_v11 }
  0x40   :  { %986 = vmatpush.bf16.msrb.mxu3 %v969_v12  ;;  %v808_v12 = vor.u32 %v946_v9, %v807_v8 }
  0x42   :  { %419 = vmatmul.bf16.gmra.mxu0 %v772_v42 }
  0x43   :  { %449 = vmatmul.bf16.gmra.mxu3 %v844_v43  ;;  %468 = vmatmul.bf16.gmra.mxu1 %v776_v44 }
  0x44   :  { %987 = vmatpush.bf16.msrb.mxu3 %v968_v14  ;;  %v839_v14 = vld [vmem:[%s1598_s0 + $0x98] sm:$0xf] }
  0x48   :  { %988 = vmatpush.bf16.msrb.mxu3 %v967_v16  ;;  %v840_v16 = vor.u32 %v953_v15, %v839_v14 }
  0x4b   :  { %928 = vmatmul.msk.bf16.gmra.mxu2 %vm381_vm0, %v804_v47 }
  0x4c   :  { %989 = vmatpush.bf16.msrb.mxu3 %v966_v21  ;;  %v820_v21 = vor.u32 %v949_v18, %v819_v17 }
  0x50   :  { %990 = vmatpush.bf16.msrb.mxu3 %v965_v23  ;;  %v851_v23 = vld [vmem:[%s1598_s0 + $0xb0] sm:$0xf] }
  0x51   :  { %v852_v25 = vor.u32 %v956_v24, %v851_v23 }
  0x52   :  { %424 = vmatmul.bf16.gmra.mxu0 %v784_v54 }
  0x53   :  { %473 = vmatmul.bf16.gmra.mxu1 %v788_v55  ;;  %493 = vmatmul.bf16.vlgmr.msrb.gmra.mxu3 %v836_v56 }
  0x5b   :  { %929 = vmatmul.msk.bf16.gmra.mxu2 %vm381_vm0, %v816_v59 }
  0x62   :  { %429 = vmatmul.bf16.gmra.mxu0 %v796_v2 }
  0x63   :  { %478 = vmatmul.bf16.gmra.mxu1 %v800_v3  ;;  %498 = vmatmul.bf16.gmra.mxu3 %v848_v4 }
  0x6b   :  { %930 = vmatmul.msk.bf16.gmra.mxu2 %vm381_vm0, %v828_v7 }
  0x72   :  { %434 = vmatmul.bf16.gmra.mxu0 %v808_v12 }
  0x73   :  { %483 = vmatmul.bf16.gmra.mxu1 %v812_v13 }
  0x7b   :  { %931 = vmatmul.msk.bf16.gmra.mxu2 %vm381_vm0, %v840_v16 }
  0x82   :  { %439 = vmatmul.bf16.gmra.mxu0 %v820_v21 }
  0x83   :  { %488 = vmatmul.bf16.gmra.mxu1 %v824_v22 }
  0x8b   :  { %932 = vmatmul.msk.bf16.gmra.mxu2 %vm381_vm0, %v852_v25 }
  0x9e   :  { %v513_v26 = vpop.f32.mrf.mxu2 }
  0xa6   :  { %v515_v27 = vpop.f32.mrf.mxu2 }
  0xae   :  { %v518_v29 = vpop.f32.mrf.mxu2 }
  0xaf   :  { %v415_v30 = vpop.f32.mrf.mxu0 }
  0xb0   :  { %v416_v31 = vadd.f32 %v1361_v28, %v415_v30  ;;  %v464_v32 = vpop.f32.mrf.mxu1 }
  0xb2   :  { %v465_v33 = vadd.f32 %v464_v32, %v416_v31 }
  0xb4   :  { %v1364_v34 = vadd.f32 %v513_v26, %v465_v33 }
  0xb6   :  { %v520_v35 = vpop.f32.mrf.mxu2  ;;  %v1366_v44 = vpop.f32.mrf.mxu3  ;;  %v590_v17 = vmul.f32 %v1364_v34, %v1364_v34  ;;  %v553_v25 = vsel %vm381_vm0, %v1364_v34, 0.0 }
  0xb7   :  { %v417_v36 = vpop.f32.mrf.mxu0 }
  0xb8   :  { %v466_v37 = vpop.f32.mrf.mxu1  ;;  %v418_v59 = vadd.f32 %v1361_v28, %v417_v36  ;;  %v606_v33 = vsel %vm381_vm0, %v590_v17, 0.0 }
  0xba   :  { %v467_v62 = vadd.f32 %v466_v37, %v418_v59 }
  0xbc   :  { %v1384_v5 = vadd.f32 %v515_v27, %v467_v62 }
  0xbe   :  { %v523_v38 = vpop.f32.mrf.mxu2  ;;  %v1368_v48 = vpop.f32.mrf.mxu3  ;;  %v591_v12 = vmul.f32 %v1384_v5, %v1384_v5  ;;  %v554_v20 = vsel %vm381_vm0, %v1384_v5, 0.0 }
  0xbf   :  { %v420_v39 = vpop.f32.mrf.mxu0 }
  0xc0   :  { %v469_v40 = vpop.f32.mrf.mxu1  ;;  %v421_v61 = vadd.f32 %v1361_v28, %v420_v39  ;;  %v607_v26 = vsel %vm381_vm0, %v591_v12, 0.0 }
  0xc2   :  { %v470_v3 = vadd.f32 %v469_v40, %v421_v61 }
  0xc4   :  { %v1387_v9 = vadd.f32 %v518_v29, %v470_v3 }
  0xc6   :  { %v525_v41 = vpop.f32.mrf.mxu2  ;;  %v1372_v54 = vpop.f32.mrf.mxu3  ;;  %v592_v21 = vmul.f32 %v1387_v9, %v1387_v9  ;;  %v556_v29 = vsel %vm381_vm0, %v1387_v9, 0.0 }
  0xc7   :  { %v422_v42 = vpop.f32.mrf.mxu0 }
  0xc8   :  { %v471_v43 = vpop.f32.mrf.mxu1  ;;  %v423_v63 = vadd.f32 %v1361_v28, %v422_v42  ;;  %v609_v37 = vsel %vm381_vm0, %v592_v21, 0.0 }
  0xca   :  { %v472_v7 = vadd.f32 %v471_v43, %v423_v63 }
  0xcc   :  { %v1394_v14 = vadd.f32 %v520_v35, %v472_v7  ;;  %v555_v35 = vadd.f32 %v554_v20, %v553_v25  ;;  %v448_v25 = vadd.f32 %v1361_v28, %v1368_v48 }
  0xce   :  { %v528_v45 = vpop.f32.mrf.mxu2  ;;  %v1377_v60 = vpop.f32.mrf.mxu3  ;;  %v593_v30 = vmul.f32 %v1394_v14, %v1394_v14  ;;  %v557_v42 = vadd.f32 %v556_v29, %v555_v35 }
  0xcf   :  { %v425_v46 = vpop.f32.mrf.mxu0 }
  0xd0   :  { %v474_v47 = vpop.f32.mrf.mxu1  ;;  %v426_v1 = vadd.f32 %v1361_v28, %v425_v46  ;;  %v611_v46 = vsel %vm381_vm0, %v593_v30, 0.0 }
  0xd2   :  { %v475_v8 = vadd.f32 %v474_v47, %v426_v1 }
  0xd4   :  { %v1401_v18 = vadd.f32 %v523_v38, %v475_v8  ;;  %v558_v38 = vsel %vm381_vm0, %v1394_v14, 0.0 }
  0xd6   :  { %v530_v49 = vpop.f32.mrf.mxu2  ;;  %v1389_v10 = vpop.f32.mrf.mxu3  ;;  %v594_v36 = vmul.f32 %v1401_v18, %v1401_v18  ;;  %v560_v47 = vsel %vm381_vm0, %v1401_v18, 0.0 }
  0xd7   :  { %v427_v50 = vpop.f32.mrf.mxu0 }
  0xd8   :  { %v476_v51 = vpop.f32.mrf.mxu1  ;;  %v428_v6 = vadd.f32 %v1361_v28, %v427_v50 }
  0xda   :  { %v477_v13 = vadd.f32 %v476_v51, %v428_v6 }
  0xdc   :  { %v1411_v27 = vadd.f32 %v525_v41, %v477_v13  ;;  %v608_v41 = vadd.f32 %v607_v26, %v606_v33 }
  0xde   :  { %v1370_v52 = vpop.f32.mrf.mxu2  ;;  %v595_v43 = vmul.f32 %v1411_v27, %v1411_v27  ;;  %v496_v50 = vpop.f32.mrf.mxu3  ;;  %v562_v61 = vsel %vm381_vm0, %v1411_v27, 0.0 }
  0xdf   :  { %v430_v53 = vpop.f32.mrf.mxu0 }
  0xe0   :  { %v479_v55 = vpop.f32.mrf.mxu1  ;;  %v431_v11 = vadd.f32 %v1361_v28, %v430_v53 }
  0xe2   :  { %v480_v22 = vadd.f32 %v479_v55, %v431_v11 }
  0xe4   :  { %v1424_v39 = vadd.f32 %v528_v45, %v480_v22  ;;  %v613_v45 = vsel %vm381_vm0, %v594_v36, 0.0 }
  0xe6   :  { %v1374_v56 = vpop.f32.mrf.mxu2  ;;  %v596_v62 = vmul.f32 %v1424_v39, %v1424_v39  ;;  %v564_v6 = vsel %vm381_vm0, %v1424_v39, 0.0 }
  0xe7   :  { %v432_v57 = vpop.f32.mrf.mxu0 }
  0xe8   :  { %v481_v58 = vpop.f32.mrf.mxu1  ;;  %v433_v15 = vadd.f32 %v1361_v28, %v432_v57  ;;  %v610_v57 = vadd.f32 %v609_v37, %v608_v41 }
  0xea   :  { %v482_v31 = vadd.f32 %v481_v58, %v433_v15  ;;  %v559_v58 = vadd.f32 %v558_v38, %v557_v42  ;;  %v617_v15 = vsel %vm381_vm0, %v596_v62, 0.0 }
  0xec   :  { %v1431_v51 = vadd.f32 %v530_v49, %v482_v31  ;;  %v561_v3 = vadd.f32 %v560_v47, %v559_v58  ;;  %v499_v31 = vpop.f32.mrf.mxu3 }
  0xee   :  { %v1381_v0 = vpop.f32.mrf.mxu2  ;;  %v597_v7 = vmul.f32 %v1431_v51, %v1431_v51  ;;  %v563_v13 = vadd.f32 %v562_v61, %v561_v3  ;;  %v566_v17 = vsel %vm381_vm0, %v1431_v51, 0.0 }
  0xef   :  { %v435_v2 = vpop.f32.mrf.mxu0 }
  0xf0   :  { %v484_v4 = vpop.f32.mrf.mxu1  ;;  %v436_v23 = vadd.f32 %v1361_v28, %v435_v2  ;;  %v612_v2 = vadd.f32 %v611_v46, %v610_v57  ;;  %v619_v22 = vsel %vm381_vm0, %v597_v7, 0.0  ;;  %v497_v46 = vadd.f32 %v496_v50, %v448_v25 }
  0xf2   :  { %v485_v40 = vadd.f32 %v484_v4, %v436_v23  ;;  %v615_v4 = vsel %vm381_vm0, %v595_v43, 0.0  ;;  %v614_v12 = vadd.f32 %v613_v45, %v612_v2  ;;  %v451_v43 = vadd.f32 %v1361_v28, %v1372_v54 }
  0xf4   :  { %v1439_v63 = vadd.f32 %v1370_v52, %v485_v40  ;;  %v446_v52 = vadd.f32 %v1361_v28, %v1366_v44  ;;  %v616_v21 = vadd.f32 %v615_v4, %v614_v12  ;;  %v501_v12 = vpop.f32.mrf.mxu3 }
  0xf6   :  { %v1397_v16 = vpop.f32.mrf.mxu2  ;;  %v568_v44 = vsel %vm381_vm0, %v1439_v63, 0.0  ;;  %v495_v26 = vadd.f32 %v1389_v10, %v446_v52  ;;  %v618_v29 = vadd.f32 %v617_v15, %v616_v21 }
  0xf7   :  { %v437_v19 = vpop.f32.mrf.mxu0 }
  0xf8   :  { %v486_v24 = vpop.f32.mrf.mxu1  ;;  %v438_v32 = vadd.f32 %v1361_v28, %v437_v19  ;;  %v598_v19 = vmul.f32 %v1439_v63, %v1439_v63  ;;  %v620_v37 = vadd.f32 %v619_v22, %v618_v29 }
  0xfa   :  { %v487_v53 = vadd.f32 %v486_v24, %v438_v32  ;;  %v621_v32 = vsel %vm381_vm0, %v598_v19, 0.0 }
  0xfb   :  { %v622_v47 = vadd.f32 %v621_v32, %v620_v37 }
  0xfc   :  { %v1448_v8 = vadd.f32 %v1374_v56, %v487_v53  ;;  %v565_v56 = vadd.f32 %v564_v6, %v563_v13 }
  0xfe   :  { %v543_v55 = vpop.f32.mrf.mxu2  ;;  %v599_v23 = vmul.f32 %v1448_v8, %v1448_v8  ;;  %v567_v30 = vadd.f32 %v566_v17, %v565_v56  ;;  %v570_v33 = vsel %vm381_vm0, %v1448_v8, 0.0 }
  0xff   :  { %v440_v59 = vpop.f32.mrf.mxu0  ;;  %v1475_v10 = vadd.f32 %v543_v55, %v495_v26 }
 0x100   :  { %v441_v1 = vadd.f32 %v1361_v28, %v440_v59  ;;  %v489_v49 = vpop.f32.mrf.mxu1  ;;  %v569_v38 = vadd.f32 %v568_v44, %v567_v30  ;;  %v623_v48 = vsel %vm381_vm0, %v599_v23, 0.0 }
 0x101   :  { %v624_v45 = vadd.f32 %v623_v48, %v622_v47  ;;  %v602_v55 = vmul.f32 %v1475_v10, %v1475_v10  ;;  %v576_v3 = vsel %vm381_vm0, %v1475_v10, 0.0 }
 0x102   :  { %v490_v11 = vadd.f32 %v489_v49, %v441_v1  ;;  %v571_v53 = vadd.f32 %v570_v33, %v569_v38  ;;  %v500_v1 = vadd.f32 %v499_v31, %v451_v43 }
 0x103   :  { %v629_v13 = vsel %vm381_vm0, %v602_v55, 0.0 }
 0x104   :  { %v1458_v20 = vadd.f32 %v1381_v0, %v490_v11 }
 0x106   :  { %v545_v24 = vpop.f32.mrf.mxu2  ;;  %v600_v35 = vmul.f32 %v1458_v20, %v1458_v20  ;;  %v572_v41 = vsel %vm381_vm0, %v1458_v20, 0.0 }
 0x107   :  { %v442_v0 = vpop.f32.mrf.mxu0  ;;  %v573_v59 = vadd.f32 %v572_v41, %v571_v53  ;;  %v1485_v61 = vadd.f32 %v545_v24, %v497_v46 }
 0x108   :  { %v443_v36 = vadd.f32 %v1361_v28, %v442_v0  ;;  %v491_v40 = vpop.f32.mrf.mxu1  ;;  %v625_v57 = vsel %vm381_vm0, %v600_v35, 0.0 }
 0x109   :  { %v626_v49 = vadd.f32 %v625_v57, %v624_v45  ;;  %v603_v6 = vmul.f32 %v1485_v61, %v1485_v61  ;;  %v578_v15 = vsel %vm381_vm0, %v1485_v61, 0.0 }
 0x10a   :  { %v492_v42 = vadd.f32 %v491_v40, %v443_v36 }
 0x10b   :  { %v631_v19 = vsel %vm381_vm0, %v603_v6, 0.0 }
 0x10c   :  { %v1483_v58 = vadd.f32 %v1397_v16, %v492_v42  ;;  %v453_v16 = vadd.f32 %v1361_v28, %v1377_v60 }
 0x10e   :  { %v574_v62 = vsel %vm381_vm0, %v1483_v58, 0.0  ;;  %v601_v54 = vmul.f32 %v1483_v58, %v1483_v58  ;;  %v548_v50 = vpop.f32.mrf.mxu2  ;;  %v502_v60 = vadd.f32 %v501_v12, %v453_v16  ;;  %v648_v16 = vld [vmem:[#allocation4] sm:$0x1] }
 0x10f   :  { %v575_v2 = vadd.f32 %v574_v62, %v573_v59  ;;  %v1500_v11 = vadd.f32 %v548_v50, %v500_v1 }
 0x110   :  { %v627_v4 = vsel %vm381_vm0, %v601_v54, 0.0 }
 0x111   :  { %v628_v7 = vadd.f32 %v627_v4, %v626_v49  ;;  %v577_v52 = vadd.f32 %v576_v3, %v575_v2  ;;  %v604_v21 = vmul.f32 %v1500_v11, %v1500_v11  ;;  %v580_v44 = vsel %vm381_vm0, %v1500_v11, 0.0 }
 0x113   :  { %v630_v17 = vadd.f32 %v629_v13, %v628_v7  ;;  %v579_v28 = vadd.f32 %v578_v15, %v577_v52  ;;  %v633_v25 = vsel %vm381_vm0, %v604_v21, 0.0  ;;  %v661_v7 = vld [vmem:[#allocation6] sm:$0x1] }
 0x115   :  { %v632_v56 = vadd.f32 %v631_v19, %v630_v17  ;;  %v581_v24 = vadd.f32 %v580_v44, %v579_v28 }
 0x116   :  { %v550_v22 = vpop.f32.mrf.mxu2 }
 0x117   :  { %v1510_v23 = vadd.f32 %v550_v22, %v502_v60  ;;  %v634_v30 = vadd.f32 %v633_v25, %v632_v56 }
 0x119   :  { %v582_v26 = vsel %vm381_vm0, %v1510_v23, 0.0  ;;  %v605_v29 = vmul.f32 %v1510_v23, %v1510_v23 }
 0x11a   :  { %v583_v0 = vadd.f32 %v582_v26, %v581_v24  ;;  %v702_v26 = vld [vmem:[#allocation7] sm:$0xff] }
 0x11b   :  { %v635_v31 = vsel %vm381_vm0, %v605_v29, 0.0  ;;  %v703_v29 = vld [vmem:[#allocation7 + $0x8] sm:$0xff] }
 0x11c   :  { %v584_v32 = vrot.slane %v583_v0, 4  ;;  %v636_v33 = vadd.f32 %v635_v31, %v634_v30  ;;  %v704_v30 = vld [vmem:[#allocation7 + $0x10] sm:$0xff] }
 0x11e   :  { %v585_v35 = vadd.f32 %v584_v32, %v583_v0  ;;  %v637_v36 = vrot.slane %v636_v33, 4  ;;  %v706_v32 = vld [vmem:[#allocation7 + $0x20] sm:$0xff] }
 0x120   :  { %v586_v37 = vrot.slane %v585_v35, 2  ;;  %v638_v38 = vadd.f32 %v637_v36, %v636_v33  ;;  %v707_v33 = vld [vmem:[#allocation7 + $0x28] sm:$0xff] }
 0x122   :  { %v587_v40 = vadd.f32 %v586_v37, %v585_v35  ;;  %v639_v48 = vrot.slane %v638_v38, 2 }
 0x124   :  { %v588_v41 = vrot.slane %v587_v40, 1  ;;  %v640_v42 = vadd.f32 %v639_v48, %v638_v38 }
 0x126   :  { %v589_v43 = vadd.f32 %v588_v41, %v587_v40  ;;  %v641_v46 = vrot.slane %v640_v42, 1  ;;  %v708_v40 = vld [vmem:[#allocation7 + $0x30] sm:$0xff] }
 0x128   :  { %v642_v47 = vadd.f32 %v641_v46, %v640_v42  ;;  %v643_v53 = vmul.f32 0.0078125, %v589_v43  ;;  %v709_v42 = vld [vmem:[#allocation7 + $0x38] sm:$0xff]  ;;  %v710_v46 = vld [vmem:[#allocation7 + $0x40] sm:$0xff] }
 0x12a   :  { %v644_v57 = vmul.f32 0.0078125, %v642_v47  ;;  %v645_v45 = vmul.f32 %v643_v53, %v643_v53 }
 0x12c   :  { %v646_v59 = vsub.f32 %v644_v57, %v645_v45 }
 0x12e   :  { %v647_v55 = vmax.f32 %v646_v59, 0.0  ;;  %v712_v59 = vld [vmem:[#allocation7 + $0x50] sm:$0xff] }
 0x130   :  { %v649_v62 = vadd.f32 1e-05, %v647_v55 }
 0x132   :  { %998 = vrsqrt.f32 %v649_v62  ;;  %vm656_vm2 = vweird.f32 %v649_v62 }
 0x138   :  { %v999_v54 = vpop.eup %998 }
 0x139   :  { %v651_v50 = vmul.f32 %v999_v54, %v649_v62  ;;  %vm657_vm1 = vweird.f32 %v999_v54 }
 0x13a   :  { %vm658_vm3 = vmor %vm656_vm2, %vm657_vm1 }
 0x13b   :  { %v652_v1 = vmul.f32 %v999_v54, %v651_v50 }
 0x13d   :  { %v653_v49 = vmul.f32 0.5, %v652_v1 }
 0x13f   :  { %v654_v2 = vsub.f32 1.5, %v653_v49  ;;  %v714_v49 = vld [vmem:[#allocation7 + $0x60] sm:$0xff] }
 0x141   :  { %v655_v3 = vmul.f32 %v999_v54, %v654_v2 }
 0x143   :  { %v659_v4 = vsel %vm658_vm3, %v999_v54, %v655_v3  ;;  %v713_v54 = vld [vmem:[#allocation7 + $0x58] sm:$0xff] }
 0x144   :  { %v660_v6 = vmul.f32 %v659_v4, %v648_v16 }
 0x146   :  { %v662_v52 = vmul.f32 %v660_v6, %v643_v53  ;;  %v665_v13 = vperm.slane %v660_v6, 0  ;;  %v711_v53 = vld [vmem:[#allocation7 + $0x48] sm:$0xff]  ;;  %v716_v6 = vld [vmem:[#allocation7 + $0x70] sm:$0xff] }
 0x148   :  { %v663_v12 = vsub.f32 %v661_v7, %v662_v52  ;;  %v667_v15 = vmul.f32 %v665_v13, %v1364_v34  ;;  %v668_v17 = vmul.f32 %v665_v13, %v1384_v5  ;;  %v669_v28 = vmul.f32 %v665_v13, %v1387_v9  ;;  %v705_v5 = vld [vmem:[#allocation7 + $0x18] sm:$0xff] }
 0x149   :  { %v670_v19 = vmul.f32 %v665_v13, %v1394_v14  ;;  %v671_v21 = vmul.f32 %v665_v13, %v1401_v18  ;;  %v672_v24 = vmul.f32 %v665_v13, %v1411_v27  ;;  %v673_v34 = vmul.f32 %v665_v13, %v1424_v39 }
 0x14a   :  { %v684_v60 = vperm.slane %v663_v12, 0  ;;  %v674_v9 = vmul.f32 %v665_v13, %v1431_v51  ;;  %v675_v31 = vmul.f32 %v665_v13, %v1439_v63  ;;  %v676_v27 = vmul.f32 %v665_v13, %v1448_v8 }
 0x14b   :  { %v677_v39 = vmul.f32 %v665_v13, %v1458_v20  ;;  %v678_v51 = vmul.f32 %v665_v13, %v1483_v58  ;;  %v679_v8 = vmul.f32 %v665_v13, %v1475_v10  ;;  %v680_v58 = vmul.f32 %v665_v13, %v1485_v61 }
 0x14c   :  { %v686_v56 = vadd.f32 %v684_v60, %v667_v15  ;;  %v687_v22 = vadd.f32 %v684_v60, %v668_v17  ;;  %v688_v44 = vadd.f32 %v684_v60, %v669_v28  ;;  %v689_v25 = vadd.f32 %v684_v60, %v670_v19 }
 0x14d   :  { %v690_v0 = vadd.f32 %v684_v60, %v671_v21  ;;  %v691_v14 = vadd.f32 %v684_v60, %v672_v24  ;;  %v692_v18 = vadd.f32 %v684_v60, %v673_v34  ;;  %v693_v38 = vadd.f32 %v684_v60, %v674_v9 }
 0x14e   :  { %v718_v35 = vadd.f32 %v702_v26, %v686_v56  ;;  %v719_v36 = vadd.f32 %v703_v29, %v687_v22  ;;  %v720_v37 = vadd.f32 %v704_v30, %v688_v44  ;;  %v721_v48 = vadd.f32 %v705_v5, %v689_v25 }
 0x14f   :  { %v694_v41 = vadd.f32 %v684_v60, %v675_v31  ;;  %v722_v43 = vadd.f32 %v706_v32, %v690_v0  ;;  %v695_v63 = vadd.f32 %v684_v60, %v676_v27  ;;  %v723_v47 = vadd.f32 %v707_v33, %v691_v14 }
 0x150   :  { %734 = vst.msk [vmem:[%s1604_s6] sm:$0xff] %vm381_vm0, %v718_v35  ;;  %v696_v20 = vadd.f32 %v684_v60, %v677_v39  ;;  %v724_v57 = vadd.f32 %v708_v40, %v692_v18  ;;  %v697_v45 = vadd.f32 %v684_v60, %v678_v51  ;;  %v725_v55 = vadd.f32 %v709_v42, %v693_v38 }
 0x151   :  { %735 = vst.msk [vmem:[%s1604_s6 + $0x8] sm:$0xff] %vm381_vm0, %v719_v36  ;;  %v681_v10 = vmul.f32 %v665_v13, %v1500_v11  ;;  %v698_v62 = vadd.f32 %v684_v60, %v679_v8  ;;  %v726_v50 = vadd.f32 %v710_v46, %v694_v41  ;;  %v682_v61 = vmul.f32 %v665_v13, %v1510_v23  ;;  %v715_v11 = vld [vmem:[#allocation7 + $0x68] sm:$0xff]  ;;  %v717_v23 = vld [vmem:[#allocation7 + $0x78] sm:$0xff] }
 0x152   :  { %736 = vst.msk [vmem:[%s1604_s6 + $0x10] sm:$0xff] %vm381_vm0, %v720_v37  ;;  %v699_v1 = vadd.f32 %v684_v60, %v680_v58  ;;  %v727_v2 = vadd.f32 %v711_v53, %v695_v63  ;;  %v728_v3 = vadd.f32 %v712_v59, %v696_v20  ;;  %v729_v7 = vadd.f32 %v713_v54, %v697_v45 }
 0x153   :  { %737 = vst.msk [vmem:[%s1604_s6 + $0x18] sm:$0xff] %vm381_vm0, %v721_v48  ;;  %v700_v16 = vadd.f32 %v684_v60, %v681_v10  ;;  %v701_v4 = vadd.f32 %v684_v60, %v682_v61  ;;  %v730_v52 = vadd.f32 %v714_v49, %v698_v62 }
 0x154   :  { %738 = vst.msk [vmem:[%s1604_s6 + $0x20] sm:$0xff] %vm381_vm0, %v722_v43  ;;  %v731_v12 = vadd.f32 %v715_v11, %v699_v1 }
 0x155   :  { %739 = vst.msk [vmem:[%s1604_s6 + $0x28] sm:$0xff] %vm381_vm0, %v723_v47  ;;  %v732_v13 = vadd.f32 %v716_v6, %v700_v16  ;;  %v733_v15 = vadd.f32 %v717_v23, %v701_v4 }
 0x156   :  { %740 = vst.msk [vmem:[%s1604_s6 + $0x30] sm:$0xff] %vm381_vm0, %v724_v57 }
 0x157   :  { %741 = vst.msk [vmem:[%s1604_s6 + $0x38] sm:$0xff] %vm381_vm0, %v725_v55 }
 0x158   :  { %742 = vst.msk [vmem:[%s1604_s6 + $0x40] sm:$0xff] %vm381_vm0, %v726_v50 }
 0x159   :  { %743 = vst.msk [vmem:[%s1604_s6 + $0x48] sm:$0xff] %vm381_vm0, %v727_v2 }
 0x15a   :  { %744 = vst.msk [vmem:[%s1604_s6 + $0x50] sm:$0xff] %vm381_vm0, %v728_v3 }
 0x15b   :  { %745 = vst.msk [vmem:[%s1604_s6 + $0x58] sm:$0xff] %vm381_vm0, %v729_v7 }
 0x15c   :  { %746 = vst.msk [vmem:[%s1604_s6 + $0x60] sm:$0xff] %vm381_vm0, %v730_v52 }
 0x15d   :  { %747 = vst.msk [vmem:[%s1604_s6 + $0x68] sm:$0xff] %vm381_vm0, %v731_v12 }
 0x15e   :  { %748 = vst.msk [vmem:[%s1604_s6 + $0x70] sm:$0xff] %vm381_vm0, %v732_v13 }
 0x15f   :  { %749 = vst.msk [vmem:[%s1604_s6 + $0x78] sm:$0xff] %vm381_vm0, %v733_v15 }
 0x160   :  { %754 = vsyncpa [#allocation3], 1 }
 0x161   :  { %755 = vsyncpa [#allocation5], 1 }
 0x162   :  { %756 = vsyncpa [#allocation8], 1 }

// kernel: generator_forward.18
= control target key start
LH: loop header
LB: loop body
LE: loop exit
PB: predicated region body
PF: predicated region fallthrough
CT: control target
= control target key end

     0   :  { %11 = vsyncpa [#allocation3], 0  ;;  %s1594_s0 = inlined_call_operand.vmem [shape: bf16[128,288], index: 0, kind: input, shape index: {}]   ;;  %s1595_s1 = inlined_call_operand.vmem [shape: bf16[288,32], index: 1, kind: input, shape index: {}]   ;;  %s1596_s2 = inlined_call_operand.hbm [shape: f32[1,32], index: 2, kind: input, shape index: {}]   ;;  %s1597_s3 = inlined_call_operand.hbm [shape: f32[1,32], index: 3, kind: input, shape index: {}]   ;;  %s1598_s4 = inlined_call_operand.hbm [shape: f32[1,32], index: 4, kind: input, shape index: {}]   ;;  %s1599_s5 = inlined_call_operand.vmem [shape: f32[128,32], index: 5, kind: input, shape index: {}]   ;;  %s1600_s6 = inlined_call_operand.vmem [shape: f32[128,32], index: 6, kind: output, shape index: {}]  }
   0x1   :  { %12 = vsyncpa [#allocation5], 0  ;;  %s33_s23 = sshll.u32 %s1597_s3, 4  ;;  %s1056_s24 = smov [#allocation4]   ;;  %s34_s23 = int_to_ptr.hbm [resolvable:$true] %s33_s23 }
   0x2   :  { %s35_s25 = sshll.u32 %s1056_s24, 4  ;;  %s22_s28 = sshll.u32 %s1596_s2, 4  ;;  %s36_s25 = int_to_ptr.vmem [resolvable:$true] %s35_s25  ;;  %s23_s28 = int_to_ptr.hbm [resolvable:$true] %s22_s28 }
   0x3   :  { %38 = dma.hbm_to_vmem [thread:$0]  %s34_s23, 16, %s36_s25, [#allocation5]  }
   0x4   :  { %s1057_s29 = smov [#allocation2]   ;;  %s44_s9 = sshll.u32 %s1598_s4, 4  ;;  %s45_s9 = int_to_ptr.hbm [resolvable:$true] %s44_s9 }
   0x5   :  { %s24_s30 = sshll.u32 %s1057_s29, 4  ;;  %s1058_s3 = smov [#allocation6]   ;;  %s25_s30 = int_to_ptr.vmem [resolvable:$true] %s24_s30 }
   0x6   :  { %27 = dma.hbm_to_vmem [thread:$0]  %s23_s28, 16, %s25_s30, [#allocation3]  }
   0x7   :  { %s46_s10 = sshll.u32 %s1058_s3, 4  ;;  %s47_s10 = int_to_ptr.vmem [resolvable:$true] %s46_s10 }
   0x8   :  { %49 = dma.hbm_to_vmem [thread:$0]  %s45_s9, 16, %s47_s10, [#allocation5]  }
   0x9   :  { %1052 = dma.done.wait [#allocation3], 16  }
   0xa   :  { %1053 = vsyncadd [#allocation3], 4294967280 }
   0xb   :  { %1054 = dma.done.wait [#allocation5], 32  }
   0xc   :  { %1055 = vsyncadd [#allocation5], 4294967264  ;;  %v947_v0 = vld [vmem:[%s1595_s1 + $0x38] sm:$0xff]  ;;  %v957_v2 = vld [vmem:[%s1595_s1 + $0x88] sm:$0xff]  ;;  %vm365_vm0 = vcmask 261120  }
   0xd   :  { %v955_v1 = vld [vmem:[%s1595_s1 + $0x78] sm:$0xff]  ;;  %390 = vmatpush.bf16.msra.mxu0 %v947_v0  ;;  %958 = vmatpush.bf16.msra.mxu3 %v947_v0  ;;  %v946_v3 = vld [vmem:[%s1595_s1 + $0x30] sm:$0xff]  ;;  %v956_v5 = vld [vmem:[%s1595_s1 + $0x80] sm:$0xff] }
   0xe   :  { %v954_v4 = vld [vmem:[%s1595_s1 + $0x70] sm:$0xff]  ;;  %439 = vmatpush.bf16.msra.mxu1 %v955_v1  ;;  %494 = vmatpush.bf16.msra.mxu2 %v957_v2  ;;  %v750_v6 = vld [vmem:[%s1594_s0 + $0x8] sm:$0xf]  ;;  %v944_v11 = vld [vmem:[%s1595_s1 + $0x20] sm:$0xff] }
   0xf   :  { %v918_v7 = vld [vmem:[%s1594_s0 + $0x10] sm:$0xf0]  ;;  %v945_v9 = vld [vmem:[%s1595_s1 + $0x28] sm:$0xff]  ;;  %v952_v12 = vld [vmem:[%s1595_s1 + $0x60] sm:$0xff] }
  0x10   :  { %v751_v8 = vor.u32 %v918_v7, %v750_v6  ;;  %v953_v10 = vld [vmem:[%s1595_s1 + $0x68] sm:$0xff]  ;;  %v943_v13 = vld [vmem:[%s1595_s1 + $0x18] sm:$0xff]  ;;  %v942_v15 = vld [vmem:[%s1595_s1 + $0x10] sm:$0xff] }
  0x11   :  { %391 = vmatpush.bf16.msra.mxu0 %v946_v3  ;;  %959 = vmatpush.bf16.msra.mxu3 %v946_v3  ;;  %v951_v14 = vld [vmem:[%s1595_s1 + $0x58] sm:$0xff]  ;;  %v950_v16 = vld [vmem:[%s1595_s1 + $0x50] sm:$0xff]  ;;  %v762_v17 = vld [vmem:[%s1594_s0 + $0x20] sm:$0xf] }
  0x12   :  { %440 = vmatpush.bf16.msra.mxu1 %v954_v4  ;;  %495 = vmatpush.bf16.msra.mxu2 %v956_v5  ;;  %v921_v18 = vld [vmem:[%s1594_s0 + $0x28] sm:$0xf0]  ;;  %v940_v22 = vld [vmem:[%s1595_s1] sm:$0xff]  ;;  %v814_v26 = vld [vmem:[%s1594_s0 + $0x90] sm:$0xf] }
  0x13   :  { %v763_v19 = vor.u32 %v921_v18, %v762_v17  ;;  %v941_v20 = vld [vmem:[%s1595_s1 + $0x8] sm:$0xff]  ;;  %v948_v23 = vld [vmem:[%s1595_s1 + $0x40] sm:$0xff]  ;;  %v935_v27 = vld [vmem:[%s1594_s0 + $0x98] sm:$0xf0] }
  0x14   :  { %v949_v21 = vld [vmem:[%s1595_s1 + $0x48] sm:$0xff]  ;;  %v742_v24 = vld [vmem:[%s1594_s0] sm:$0xf]  ;;  %v916_v28 = vld [vmem:[%s1594_s0 + $0x4] sm:$0xf]  ;;  %v815_v31 = vor.u32 %v935_v27, %v814_v26 }
  0x15   :  { %908 = vmatmul.msk.bf16.vlgmr.msra.gmra.mxu2 %vm365_vm0, %v751_v8  ;;  %392 = vmatpush.bf16.msra.mxu0 %v945_v9  ;;  %v917_v25 = vld [vmem:[%s1594_s0 + $0x8] sm:$0xf0]  ;;  %v744_v29 = vld [vmem:[%s1594_s0 + $0xc] sm:$0xf0]  ;;  %v774_v33 = vld [vmem:[%s1594_s0 + $0x38] sm:$0xf] }
  0x16   :  { %960 = vmatpush.bf16.msra.mxu3 %v945_v9  ;;  %441 = vmatpush.bf16.msra.mxu1 %v953_v10  ;;  %v743_v30 = vor.u32 %v917_v25, %v742_v24  ;;  %v747_v32 = vor.u32 %v916_v28, %v744_v29  ;;  %v924_v34 = vld [vmem:[%s1594_s0 + $0x40] sm:$0xf0]  ;;  %v754_v36 = vld [vmem:[%s1594_s0 + $0x18] sm:$0xf]  ;;  %v826_v38 = vld [vmem:[%s1594_s0 + $0xa8] sm:$0xf] }
  0x17   :  { %v775_v35 = vor.u32 %v924_v34, %v774_v33  ;;  %v920_v37 = vld [vmem:[%s1594_s0 + $0x20] sm:$0xf0]  ;;  %v938_v39 = vld [vmem:[%s1594_s0 + $0xb0] sm:$0xf0]  ;;  %v919_v40 = vld [vmem:[%s1594_s0 + $0x1c] sm:$0xf] }
  0x18   :  { %v756_v41 = vld [vmem:[%s1594_s0 + $0x24] sm:$0xf0]  ;;  %v755_v42 = vor.u32 %v920_v37, %v754_v36  ;;  %v827_v43 = vor.u32 %v938_v39, %v826_v38  ;;  %v786_v45 = vld [vmem:[%s1594_s0 + $0x50] sm:$0xf]  ;;  %v927_v46 = vld [vmem:[%s1594_s0 + $0x58] sm:$0xf0] }
  0x19   :  { %393 = vmatpush.bf16.msra.mxu0 %v944_v11  ;;  %v759_v44 = vor.u32 %v919_v40, %v756_v41  ;;  %v787_v47 = vor.u32 %v927_v46, %v786_v45  ;;  %v766_v48 = vld [vmem:[%s1594_s0 + $0x30] sm:$0xf]  ;;  %v923_v49 = vld [vmem:[%s1594_s0 + $0x38] sm:$0xf0]  ;;  %v922_v50 = vld [vmem:[%s1594_s0 + $0x34] sm:$0xf] }
  0x1a   :  { %961 = vmatpush.bf16.msra.mxu3 %v944_v11  ;;  %442 = vmatpush.bf16.msra.mxu1 %v952_v12  ;;  %v768_v51 = vld [vmem:[%s1594_s0 + $0x3c] sm:$0xf0]  ;;  %v934_v52 = vld [vmem:[%s1594_s0 + $0x94] sm:$0xf]  ;;  %v767_v54 = vor.u32 %v923_v49, %v766_v48  ;;  %v798_v57 = vld [vmem:[%s1594_s0 + $0x68] sm:$0xf] }
  0x1b   :  { %v816_v53 = vld [vmem:[%s1594_s0 + $0x9c] sm:$0xf0]  ;;  %v771_v55 = vor.u32 %v922_v50, %v768_v51  ;;  %v930_v58 = vld [vmem:[%s1594_s0 + $0x70] sm:$0xf0]  ;;  %v778_v60 = vld [vmem:[%s1594_s0 + $0x48] sm:$0xf] }
  0x1c   :  { %v819_v56 = vor.u32 %v934_v52, %v816_v53  ;;  %v799_v59 = vor.u32 %v930_v58, %v798_v57  ;;  %v926_v61 = vld [vmem:[%s1594_s0 + $0x50] sm:$0xf0]  ;;  %v925_v62 = vld [vmem:[%s1594_s0 + $0x4c] sm:$0xf]  ;;  %v780_v63 = vld [vmem:[%s1594_s0 + $0x54] sm:$0xf0] }
  0x1d   :  { %394 = vmatpush.bf16.msra.mxu0 %v943_v13  ;;  %v937_v0 = vld [vmem:[%s1594_s0 + $0xac] sm:$0xf]  ;;  %v779_v2 = vor.u32 %v926_v61, %v778_v60  ;;  %v783_v3 = vor.u32 %v925_v62, %v780_v63  ;;  %v810_v5 = vld [vmem:[%s1594_s0 + $0x80] sm:$0xf]  ;;  %v792_v11 = vld [vmem:[%s1594_s0 + $0x6c] sm:$0xf0] }
  0x1e   :  { %962 = vmatpush.bf16.msra.mxu3 %v943_v13  ;;  %443 = vmatpush.bf16.msra.mxu1 %v951_v14  ;;  %v933_v6 = vld [vmem:[%s1594_s0 + $0x88] sm:$0xf0]  ;;  %v790_v8 = vld [vmem:[%s1594_s0 + $0x60] sm:$0xf]  ;;  %v802_v17 = vld [vmem:[%s1594_s0 + $0x78] sm:$0xf] }
  0x1f   :  { %v811_v7 = vor.u32 %v933_v6, %v810_v5  ;;  %v929_v9 = vld [vmem:[%s1594_s0 + $0x68] sm:$0xf0]  ;;  %v932_v18 = vld [vmem:[%s1594_s0 + $0x80] sm:$0xf0]  ;;  %v939_v24 = vld [vmem:[%s1594_s0 + $0xb8] sm:$0xf0] }
  0x20   :  { %v1309_v28 = vld [vmem:[#allocation2] ss:$0 sm:$0xff] }
  0x21   :  { %395 = vmatpush.bf16.msra.mxu0 %v942_v15 }
  0x22   :  { %963 = vmatpush.bf16.msra.mxu3 %v942_v15  ;;  %444 = vmatpush.bf16.msra.mxu1 %v950_v16  ;;  %v936_v15 = vld [vmem:[%s1594_s0 + $0xa0] sm:$0xf0] }
  0x25   :  { %909 = vmatmul.msk.bf16.gmra.mxu2 %vm365_vm0, %v763_v19  ;;  %396 = vmatpush.bf16.msra.mxu0 %v941_v20  ;;  %v931_v19 = vld [vmem:[%s1594_s0 + $0x7c] sm:$0xf] }
  0x26   :  { %964 = vmatpush.bf16.msra.mxu3 %v941_v20  ;;  %445 = vmatpush.bf16.msra.mxu1 %v949_v21  ;;  %v804_v20 = vld [vmem:[%s1594_s0 + $0x84] sm:$0xf0] }
  0x29   :  { %397 = vmatpush.bf16.msra.mxu0 %v940_v22 }
  0x2a   :  { %965 = vmatpush.bf16.msra.mxu3 %v940_v22  ;;  %446 = vmatpush.bf16.msra.mxu1 %v948_v23  ;;  %v807_v22 = vor.u32 %v931_v19, %v804_v20 }
  0x2c   :  { %398 = vmatmul.bf16.vlgmr.msra.gmra.mxu0 %v743_v30 }
  0x2d   :  { %428 = vmatmul.bf16.vlgmr.msra.gmra.mxu3 %v815_v31  ;;  %447 = vmatmul.bf16.vlgmr.msra.gmra.mxu1 %v747_v32 }
  0x2e   :  { %966 = vmatpush.bf16.msrb.mxu3 %v955_v1  ;;  %v828_v1 = vld [vmem:[%s1594_s0 + $0xb4] sm:$0xf0] }
  0x32   :  { %967 = vmatpush.bf16.msrb.mxu3 %v954_v4  ;;  %v831_v4 = vor.u32 %v937_v0, %v828_v1 }
  0x35   :  { %910 = vmatmul.msk.bf16.gmra.mxu2 %vm365_vm0, %v775_v35 }
  0x36   :  { %968 = vmatpush.bf16.msrb.mxu3 %v953_v10  ;;  %v928_v10 = vld [vmem:[%s1594_s0 + $0x64] sm:$0xf] }
  0x37   :  { %v795_v13 = vor.u32 %v928_v10, %v792_v11 }
  0x3a   :  { %969 = vmatpush.bf16.msrb.mxu3 %v952_v12  ;;  %v791_v12 = vor.u32 %v929_v9, %v790_v8 }
  0x3c   :  { %403 = vmatmul.bf16.gmra.mxu0 %v755_v42 }
  0x3d   :  { %433 = vmatmul.bf16.gmra.mxu3 %v827_v43  ;;  %452 = vmatmul.bf16.gmra.mxu1 %v759_v44 }
  0x3e   :  { %970 = vmatpush.bf16.msrb.mxu3 %v951_v14  ;;  %v822_v14 = vld [vmem:[%s1594_s0 + $0x98] sm:$0xf] }
  0x42   :  { %971 = vmatpush.bf16.msrb.mxu3 %v950_v16  ;;  %v823_v16 = vor.u32 %v936_v15, %v822_v14 }
  0x45   :  { %911 = vmatmul.msk.bf16.gmra.mxu2 %vm365_vm0, %v787_v47 }
  0x46   :  { %972 = vmatpush.bf16.msrb.mxu3 %v949_v21  ;;  %v803_v21 = vor.u32 %v932_v18, %v802_v17 }
  0x4a   :  { %973 = vmatpush.bf16.msrb.mxu3 %v948_v23  ;;  %v834_v23 = vld [vmem:[%s1594_s0 + $0xb0] sm:$0xf] }
  0x4b   :  { %v835_v25 = vor.u32 %v939_v24, %v834_v23 }
  0x4c   :  { %408 = vmatmul.bf16.gmra.mxu0 %v767_v54 }
  0x4d   :  { %457 = vmatmul.bf16.gmra.mxu1 %v771_v55  ;;  %477 = vmatmul.bf16.vlgmr.msrb.gmra.mxu3 %v819_v56 }
  0x55   :  { %912 = vmatmul.msk.bf16.gmra.mxu2 %vm365_vm0, %v799_v59 }
  0x5c   :  { %413 = vmatmul.bf16.gmra.mxu0 %v779_v2 }
  0x5d   :  { %462 = vmatmul.bf16.gmra.mxu1 %v783_v3  ;;  %482 = vmatmul.bf16.gmra.mxu3 %v831_v4 }
  0x65   :  { %913 = vmatmul.msk.bf16.gmra.mxu2 %vm365_vm0, %v811_v7 }
  0x6c   :  { %418 = vmatmul.bf16.gmra.mxu0 %v791_v12 }
  0x6d   :  { %467 = vmatmul.bf16.gmra.mxu1 %v795_v13 }
  0x75   :  { %914 = vmatmul.msk.bf16.gmra.mxu2 %vm365_vm0, %v823_v16 }
  0x7c   :  { %423 = vmatmul.bf16.gmra.mxu0 %v803_v21 }
  0x7d   :  { %472 = vmatmul.bf16.gmra.mxu1 %v807_v22 }
  0x85   :  { %915 = vmatmul.msk.bf16.gmra.mxu2 %vm365_vm0, %v835_v25 }
  0x98   :  { %v497_v26 = vpop.f32.mrf.mxu2 }
  0xa0   :  { %v499_v27 = vpop.f32.mrf.mxu2 }
  0xa8   :  { %v502_v29 = vpop.f32.mrf.mxu2 }
  0xa9   :  { %v399_v30 = vpop.f32.mrf.mxu0 }
  0xaa   :  { %v400_v31 = vadd.f32 %v1309_v28, %v399_v30  ;;  %v448_v32 = vpop.f32.mrf.mxu1 }
  0xac   :  { %v449_v33 = vadd.f32 %v448_v32, %v400_v31 }
  0xae   :  { %v1312_v34 = vadd.f32 %v497_v26, %v449_v33 }
  0xb0   :  { %v504_v35 = vpop.f32.mrf.mxu2  ;;  %v1314_v44 = vpop.f32.mrf.mxu3  ;;  %v574_v17 = vmul.f32 %v1312_v34, %v1312_v34  ;;  %v537_v25 = vsel %vm365_vm0, %v1312_v34, 0.0 }
  0xb1   :  { %v401_v36 = vpop.f32.mrf.mxu0 }
  0xb2   :  { %v450_v37 = vpop.f32.mrf.mxu1  ;;  %v402_v59 = vadd.f32 %v1309_v28, %v401_v36  ;;  %v590_v33 = vsel %vm365_vm0, %v574_v17, 0.0 }
  0xb4   :  { %v451_v62 = vadd.f32 %v450_v37, %v402_v59 }
  0xb6   :  { %v1332_v5 = vadd.f32 %v499_v27, %v451_v62 }
  0xb8   :  { %v507_v38 = vpop.f32.mrf.mxu2  ;;  %v1316_v48 = vpop.f32.mrf.mxu3  ;;  %v575_v12 = vmul.f32 %v1332_v5, %v1332_v5  ;;  %v538_v20 = vsel %vm365_vm0, %v1332_v5, 0.0 }
  0xb9   :  { %v404_v39 = vpop.f32.mrf.mxu0 }
  0xba   :  { %v453_v40 = vpop.f32.mrf.mxu1  ;;  %v405_v61 = vadd.f32 %v1309_v28, %v404_v39  ;;  %v591_v26 = vsel %vm365_vm0, %v575_v12, 0.0 }
  0xbc   :  { %v454_v3 = vadd.f32 %v453_v40, %v405_v61 }
  0xbe   :  { %v1335_v9 = vadd.f32 %v502_v29, %v454_v3 }
  0xc0   :  { %v509_v41 = vpop.f32.mrf.mxu2  ;;  %v1320_v54 = vpop.f32.mrf.mxu3  ;;  %v576_v21 = vmul.f32 %v1335_v9, %v1335_v9  ;;  %v540_v29 = vsel %vm365_vm0, %v1335_v9, 0.0 }
  0xc1   :  { %v406_v42 = vpop.f32.mrf.mxu0 }
  0xc2   :  { %v455_v43 = vpop.f32.mrf.mxu1  ;;  %v407_v63 = vadd.f32 %v1309_v28, %v406_v42  ;;  %v593_v37 = vsel %vm365_vm0, %v576_v21, 0.0 }
  0xc4   :  { %v456_v7 = vadd.f32 %v455_v43, %v407_v63 }
  0xc6   :  { %v1342_v14 = vadd.f32 %v504_v35, %v456_v7  ;;  %v539_v35 = vadd.f32 %v538_v20, %v537_v25  ;;  %v432_v25 = vadd.f32 %v1309_v28, %v1316_v48 }
  0xc8   :  { %v512_v45 = vpop.f32.mrf.mxu2  ;;  %v1325_v60 = vpop.f32.mrf.mxu3  ;;  %v577_v30 = vmul.f32 %v1342_v14, %v1342_v14  ;;  %v541_v42 = vadd.f32 %v540_v29, %v539_v35 }
  0xc9   :  { %v409_v46 = vpop.f32.mrf.mxu0 }
  0xca   :  { %v458_v47 = vpop.f32.mrf.mxu1  ;;  %v410_v1 = vadd.f32 %v1309_v28, %v409_v46  ;;  %v595_v46 = vsel %vm365_vm0, %v577_v30, 0.0 }
  0xcc   :  { %v459_v8 = vadd.f32 %v458_v47, %v410_v1 }
  0xce   :  { %v1349_v18 = vadd.f32 %v507_v38, %v459_v8  ;;  %v542_v38 = vsel %vm365_vm0, %v1342_v14, 0.0 }
  0xd0   :  { %v514_v49 = vpop.f32.mrf.mxu2  ;;  %v1337_v10 = vpop.f32.mrf.mxu3  ;;  %v578_v36 = vmul.f32 %v1349_v18, %v1349_v18  ;;  %v544_v47 = vsel %vm365_vm0, %v1349_v18, 0.0 }
  0xd1   :  { %v411_v50 = vpop.f32.mrf.mxu0 }
  0xd2   :  { %v460_v51 = vpop.f32.mrf.mxu1  ;;  %v412_v6 = vadd.f32 %v1309_v28, %v411_v50 }
  0xd4   :  { %v461_v13 = vadd.f32 %v460_v51, %v412_v6 }
  0xd6   :  { %v1359_v27 = vadd.f32 %v509_v41, %v461_v13  ;;  %v592_v41 = vadd.f32 %v591_v26, %v590_v33 }
  0xd8   :  { %v1318_v52 = vpop.f32.mrf.mxu2  ;;  %v579_v43 = vmul.f32 %v1359_v27, %v1359_v27  ;;  %v480_v50 = vpop.f32.mrf.mxu3  ;;  %v546_v61 = vsel %vm365_vm0, %v1359_v27, 0.0 }
  0xd9   :  { %v414_v53 = vpop.f32.mrf.mxu0 }
  0xda   :  { %v463_v55 = vpop.f32.mrf.mxu1  ;;  %v415_v11 = vadd.f32 %v1309_v28, %v414_v53 }
  0xdc   :  { %v464_v22 = vadd.f32 %v463_v55, %v415_v11 }
  0xde   :  { %v1372_v39 = vadd.f32 %v512_v45, %v464_v22  ;;  %v597_v45 = vsel %vm365_vm0, %v578_v36, 0.0 }
  0xe0   :  { %v1322_v56 = vpop.f32.mrf.mxu2  ;;  %v580_v62 = vmul.f32 %v1372_v39, %v1372_v39  ;;  %v548_v6 = vsel %vm365_vm0, %v1372_v39, 0.0 }
  0xe1   :  { %v416_v57 = vpop.f32.mrf.mxu0 }
  0xe2   :  { %v465_v58 = vpop.f32.mrf.mxu1  ;;  %v417_v15 = vadd.f32 %v1309_v28, %v416_v57  ;;  %v594_v57 = vadd.f32 %v593_v37, %v592_v41 }
  0xe4   :  { %v466_v31 = vadd.f32 %v465_v58, %v417_v15  ;;  %v543_v58 = vadd.f32 %v542_v38, %v541_v42  ;;  %v601_v15 = vsel %vm365_vm0, %v580_v62, 0.0 }
  0xe6   :  { %v1379_v51 = vadd.f32 %v514_v49, %v466_v31  ;;  %v545_v3 = vadd.f32 %v544_v47, %v543_v58  ;;  %v483_v31 = vpop.f32.mrf.mxu3 }
  0xe8   :  { %v1329_v0 = vpop.f32.mrf.mxu2  ;;  %v581_v7 = vmul.f32 %v1379_v51, %v1379_v51  ;;  %v547_v13 = vadd.f32 %v546_v61, %v545_v3  ;;  %v550_v17 = vsel %vm365_vm0, %v1379_v51, 0.0 }
  0xe9   :  { %v419_v2 = vpop.f32.mrf.mxu0 }
  0xea   :  { %v468_v4 = vpop.f32.mrf.mxu1  ;;  %v420_v23 = vadd.f32 %v1309_v28, %v419_v2  ;;  %v596_v2 = vadd.f32 %v595_v46, %v594_v57  ;;  %v603_v22 = vsel %vm365_vm0, %v581_v7, 0.0  ;;  %v481_v46 = vadd.f32 %v480_v50, %v432_v25 }
  0xec   :  { %v469_v40 = vadd.f32 %v468_v4, %v420_v23  ;;  %v599_v4 = vsel %vm365_vm0, %v579_v43, 0.0  ;;  %v598_v12 = vadd.f32 %v597_v45, %v596_v2  ;;  %v435_v43 = vadd.f32 %v1309_v28, %v1320_v54 }
  0xee   :  { %v1387_v63 = vadd.f32 %v1318_v52, %v469_v40  ;;  %v430_v52 = vadd.f32 %v1309_v28, %v1314_v44  ;;  %v600_v21 = vadd.f32 %v599_v4, %v598_v12  ;;  %v485_v12 = vpop.f32.mrf.mxu3 }
  0xf0   :  { %v1345_v16 = vpop.f32.mrf.mxu2  ;;  %v552_v44 = vsel %vm365_vm0, %v1387_v63, 0.0  ;;  %v479_v26 = vadd.f32 %v1337_v10, %v430_v52  ;;  %v602_v29 = vadd.f32 %v601_v15, %v600_v21 }
  0xf1   :  { %v421_v19 = vpop.f32.mrf.mxu0 }
  0xf2   :  { %v470_v24 = vpop.f32.mrf.mxu1  ;;  %v422_v32 = vadd.f32 %v1309_v28, %v421_v19  ;;  %v582_v19 = vmul.f32 %v1387_v63, %v1387_v63  ;;  %v604_v37 = vadd.f32 %v603_v22, %v602_v29 }
  0xf4   :  { %v471_v53 = vadd.f32 %v470_v24, %v422_v32  ;;  %v605_v32 = vsel %vm365_vm0, %v582_v19, 0.0 }
  0xf5   :  { %v606_v47 = vadd.f32 %v605_v32, %v604_v37 }
  0xf6   :  { %v1396_v8 = vadd.f32 %v1322_v56, %v471_v53  ;;  %v549_v56 = vadd.f32 %v548_v6, %v547_v13 }
  0xf8   :  { %v527_v55 = vpop.f32.mrf.mxu2  ;;  %v583_v23 = vmul.f32 %v1396_v8, %v1396_v8  ;;  %v551_v30 = vadd.f32 %v550_v17, %v549_v56  ;;  %v554_v33 = vsel %vm365_vm0, %v1396_v8, 0.0 }
  0xf9   :  { %v424_v59 = vpop.f32.mrf.mxu0  ;;  %v1423_v10 = vadd.f32 %v527_v55, %v479_v26 }
  0xfa   :  { %v425_v1 = vadd.f32 %v1309_v28, %v424_v59  ;;  %v473_v49 = vpop.f32.mrf.mxu1  ;;  %v553_v38 = vadd.f32 %v552_v44, %v551_v30  ;;  %v607_v48 = vsel %vm365_vm0, %v583_v23, 0.0 }
  0xfb   :  { %v608_v45 = vadd.f32 %v607_v48, %v606_v47  ;;  %v586_v55 = vmul.f32 %v1423_v10, %v1423_v10  ;;  %v560_v3 = vsel %vm365_vm0, %v1423_v10, 0.0 }
  0xfc   :  { %v474_v11 = vadd.f32 %v473_v49, %v425_v1  ;;  %v555_v53 = vadd.f32 %v554_v33, %v553_v38  ;;  %v484_v1 = vadd.f32 %v483_v31, %v435_v43 }
  0xfd   :  { %v613_v13 = vsel %vm365_vm0, %v586_v55, 0.0 }
  0xfe   :  { %v1406_v20 = vadd.f32 %v1329_v0, %v474_v11 }
 0x100   :  { %v529_v24 = vpop.f32.mrf.mxu2  ;;  %v584_v35 = vmul.f32 %v1406_v20, %v1406_v20  ;;  %v556_v41 = vsel %vm365_vm0, %v1406_v20, 0.0 }
 0x101   :  { %v426_v0 = vpop.f32.mrf.mxu0  ;;  %v557_v59 = vadd.f32 %v556_v41, %v555_v53  ;;  %v1433_v61 = vadd.f32 %v529_v24, %v481_v46 }
 0x102   :  { %v427_v36 = vadd.f32 %v1309_v28, %v426_v0  ;;  %v475_v40 = vpop.f32.mrf.mxu1  ;;  %v609_v57 = vsel %vm365_vm0, %v584_v35, 0.0 }
 0x103   :  { %v610_v49 = vadd.f32 %v609_v57, %v608_v45  ;;  %v587_v6 = vmul.f32 %v1433_v61, %v1433_v61  ;;  %v562_v15 = vsel %vm365_vm0, %v1433_v61, 0.0 }
 0x104   :  { %v476_v42 = vadd.f32 %v475_v40, %v427_v36 }
 0x105   :  { %v615_v19 = vsel %vm365_vm0, %v587_v6, 0.0 }
 0x106   :  { %v1431_v58 = vadd.f32 %v1345_v16, %v476_v42  ;;  %v437_v16 = vadd.f32 %v1309_v28, %v1325_v60 }
 0x108   :  { %v558_v62 = vsel %vm365_vm0, %v1431_v58, 0.0  ;;  %v585_v54 = vmul.f32 %v1431_v58, %v1431_v58  ;;  %v532_v50 = vpop.f32.mrf.mxu2  ;;  %v486_v60 = vadd.f32 %v485_v12, %v437_v16  ;;  %v632_v16 = vld [vmem:[#allocation4] sm:$0x1] }
 0x109   :  { %v559_v2 = vadd.f32 %v558_v62, %v557_v59  ;;  %v1448_v11 = vadd.f32 %v532_v50, %v484_v1 }
 0x10a   :  { %v611_v4 = vsel %vm365_vm0, %v585_v54, 0.0 }
 0x10b   :  { %v612_v7 = vadd.f32 %v611_v4, %v610_v49  ;;  %v561_v52 = vadd.f32 %v560_v3, %v559_v2  ;;  %v588_v21 = vmul.f32 %v1448_v11, %v1448_v11  ;;  %v564_v44 = vsel %vm365_vm0, %v1448_v11, 0.0 }
 0x10d   :  { %v614_v17 = vadd.f32 %v613_v13, %v612_v7  ;;  %v563_v28 = vadd.f32 %v562_v15, %v561_v52  ;;  %v617_v25 = vsel %vm365_vm0, %v588_v21, 0.0  ;;  %v645_v7 = vld [vmem:[#allocation6] sm:$0x1] }
 0x10f   :  { %v616_v56 = vadd.f32 %v615_v19, %v614_v17  ;;  %v565_v24 = vadd.f32 %v564_v44, %v563_v28 }
 0x110   :  { %v534_v22 = vpop.f32.mrf.mxu2 }
 0x111   :  { %v1458_v23 = vadd.f32 %v534_v22, %v486_v60  ;;  %v618_v30 = vadd.f32 %v617_v25, %v616_v56 }
 0x113   :  { %v566_v26 = vsel %vm365_vm0, %v1458_v23, 0.0  ;;  %v589_v29 = vmul.f32 %v1458_v23, %v1458_v23 }
 0x114   :  { %v567_v0 = vadd.f32 %v566_v26, %v565_v24  ;;  %v686_v26 = vld [vmem:[%s1599_s5] sm:$0xff] }
 0x115   :  { %v619_v31 = vsel %vm365_vm0, %v589_v29, 0.0 }
 0x116   :  { %v568_v32 = vrot.slane %v567_v0, 4  ;;  %v620_v33 = vadd.f32 %v619_v31, %v618_v30 }
 0x118   :  { %v569_v35 = vadd.f32 %v568_v32, %v567_v0  ;;  %v621_v36 = vrot.slane %v620_v33, 4  ;;  %v690_v0 = vld [vmem:[%s1599_s5 + $0x20] sm:$0xff]  ;;  %v691_v32 = vld [vmem:[%s1599_s5 + $0x28] sm:$0xff] }
 0x11a   :  { %v570_v37 = vrot.slane %v569_v35, 2  ;;  %v622_v38 = vadd.f32 %v621_v36, %v620_v33 }
 0x11c   :  { %v571_v40 = vadd.f32 %v570_v37, %v569_v35  ;;  %v623_v48 = vrot.slane %v622_v38, 2 }
 0x11e   :  { %v572_v41 = vrot.slane %v571_v40, 1  ;;  %v624_v42 = vadd.f32 %v623_v48, %v622_v38  ;;  %v693_v48 = vld [vmem:[%s1599_s5 + $0x38] sm:$0xff] }
 0x120   :  { %v573_v43 = vadd.f32 %v572_v41, %v571_v40  ;;  %v625_v46 = vrot.slane %v624_v42, 1 }
 0x122   :  { %v626_v47 = vadd.f32 %v625_v46, %v624_v42  ;;  %v627_v53 = vmul.f32 0.0078125, %v573_v43  ;;  %v694_v43 = vld [vmem:[%s1599_s5 + $0x40] sm:$0xff] }
 0x124   :  { %v628_v57 = vmul.f32 0.0078125, %v626_v47  ;;  %v629_v45 = vmul.f32 %v627_v53, %v627_v53 }
 0x126   :  { %v630_v59 = vsub.f32 %v628_v57, %v629_v45 }
 0x128   :  { %v631_v55 = vmax.f32 %v630_v59, 0.0  ;;  %v696_v59 = vld [vmem:[%s1599_s5 + $0x50] sm:$0xff] }
 0x12a   :  { %v633_v62 = vadd.f32 1e-05, %v631_v55 }
 0x12c   :  { %978 = vrsqrt.f32 %v633_v62  ;;  %vm640_vm2 = vweird.f32 %v633_v62 }
 0x132   :  { %v979_v54 = vpop.eup %978 }
 0x133   :  { %v635_v50 = vmul.f32 %v979_v54, %v633_v62  ;;  %vm641_vm1 = vweird.f32 %v979_v54 }
 0x134   :  { %vm642_vm3 = vmor %vm640_vm2, %vm641_vm1 }
 0x135   :  { %v636_v1 = vmul.f32 %v979_v54, %v635_v50 }
 0x137   :  { %v637_v49 = vmul.f32 0.5, %v636_v1 }
 0x139   :  { %v638_v2 = vsub.f32 1.5, %v637_v49  ;;  %v698_v49 = vld [vmem:[%s1599_s5 + $0x60] sm:$0xff] }
 0x13b   :  { %v639_v3 = vmul.f32 %v979_v54, %v638_v2 }
 0x13d   :  { %v643_v4 = vsel %vm642_vm3, %v979_v54, %v639_v3  ;;  %v697_v54 = vld [vmem:[%s1599_s5 + $0x58] sm:$0xff] }
 0x13e   :  { %v644_v6 = vmul.f32 %v643_v4, %v632_v16  ;;  %v699_v16 = vld [vmem:[%s1599_s5 + $0x68] sm:$0xff]  ;;  %v700_v4 = vld [vmem:[%s1599_s5 + $0x70] sm:$0xff] }
 0x140   :  { %v646_v52 = vmul.f32 %v644_v6, %v627_v53  ;;  %v649_v13 = vperm.slane %v644_v6, 0  ;;  %v695_v53 = vld [vmem:[%s1599_s5 + $0x48] sm:$0xff] }
 0x142   :  { %v647_v12 = vsub.f32 %v645_v7, %v646_v52  ;;  %v651_v15 = vmul.f32 %v649_v13, %v1312_v34  ;;  %v652_v17 = vmul.f32 %v649_v13, %v1332_v5  ;;  %v653_v28 = vmul.f32 %v649_v13, %v1335_v9  ;;  %v687_v34 = vld [vmem:[%s1599_s5 + $0x8] sm:$0xff]  ;;  %v688_v5 = vld [vmem:[%s1599_s5 + $0x10] sm:$0xff]  ;;  %v701_v7 = vld [vmem:[%s1599_s5 + $0x78] sm:$0xff] }
 0x143   :  { %v654_v19 = vmul.f32 %v649_v13, %v1342_v14  ;;  %v655_v21 = vmul.f32 %v649_v13, %v1349_v18  ;;  %v656_v24 = vmul.f32 %v649_v13, %v1359_v27  ;;  %v657_v9 = vmul.f32 %v649_v13, %v1372_v39  ;;  %v689_v18 = vld [vmem:[%s1599_s5 + $0x18] sm:$0xff] }
 0x144   :  { %v668_v60 = vperm.slane %v647_v12, 0  ;;  %v658_v27 = vmul.f32 %v649_v13, %v1379_v51  ;;  %v659_v29 = vmul.f32 %v649_v13, %v1387_v63  ;;  %v660_v36 = vmul.f32 %v649_v13, %v1396_v8  ;;  %v692_v51 = vld [vmem:[%s1599_s5 + $0x30] sm:$0xff] }
 0x145   :  { %v661_v38 = vmul.f32 %v649_v13, %v1406_v20  ;;  %v662_v8 = vmul.f32 %v649_v13, %v1431_v58  ;;  %v663_v20 = vmul.f32 %v649_v13, %v1423_v10  ;;  %v664_v58 = vmul.f32 %v649_v13, %v1433_v61 }
 0x146   :  { %v670_v56 = vadd.f32 %v668_v60, %v651_v15  ;;  %v671_v22 = vadd.f32 %v668_v60, %v652_v17  ;;  %v672_v44 = vadd.f32 %v668_v60, %v653_v28  ;;  %v673_v25 = vadd.f32 %v668_v60, %v654_v19 }
 0x147   :  { %v674_v14 = vadd.f32 %v668_v60, %v655_v21  ;;  %v675_v30 = vadd.f32 %v668_v60, %v656_v24  ;;  %v676_v31 = vadd.f32 %v668_v60, %v657_v9  ;;  %v677_v37 = vadd.f32 %v668_v60, %v658_v27 }
 0x148   :  { %v702_v39 = vadd.f32 %v686_v26, %v670_v56  ;;  %v703_v33 = vadd.f32 %v687_v34, %v671_v22  ;;  %v704_v35 = vadd.f32 %v688_v5, %v672_v44  ;;  %v705_v63 = vadd.f32 %v689_v18, %v673_v25 }
 0x149   :  { %v678_v40 = vadd.f32 %v668_v60, %v659_v29  ;;  %v706_v41 = vadd.f32 %v690_v0, %v674_v14  ;;  %v679_v42 = vadd.f32 %v668_v60, %v660_v36  ;;  %v707_v46 = vadd.f32 %v691_v32, %v675_v30 }
 0x14a   :  { %718 = vst.msk [vmem:[%s1600_s6] sm:$0xff] %vm365_vm0, %v702_v39  ;;  %v680_v47 = vadd.f32 %v668_v60, %v661_v38  ;;  %v708_v57 = vadd.f32 %v692_v51, %v676_v31  ;;  %v681_v45 = vadd.f32 %v668_v60, %v662_v8  ;;  %v709_v55 = vadd.f32 %v693_v48, %v677_v37 }
 0x14b   :  { %719 = vst.msk [vmem:[%s1600_s6 + $0x8] sm:$0xff] %vm365_vm0, %v703_v33  ;;  %v665_v10 = vmul.f32 %v649_v13, %v1448_v11  ;;  %v682_v62 = vadd.f32 %v668_v60, %v663_v20  ;;  %v710_v50 = vadd.f32 %v694_v43, %v678_v40  ;;  %v666_v61 = vmul.f32 %v649_v13, %v1458_v23 }
 0x14c   :  { %720 = vst.msk [vmem:[%s1600_s6 + $0x10] sm:$0xff] %vm365_vm0, %v704_v35  ;;  %v683_v1 = vadd.f32 %v668_v60, %v664_v58  ;;  %v711_v2 = vadd.f32 %v695_v53, %v679_v42  ;;  %v712_v3 = vadd.f32 %v696_v59, %v680_v47  ;;  %v713_v6 = vadd.f32 %v697_v54, %v681_v45 }
 0x14d   :  { %721 = vst.msk [vmem:[%s1600_s6 + $0x18] sm:$0xff] %vm365_vm0, %v705_v63  ;;  %v684_v11 = vadd.f32 %v668_v60, %v665_v10  ;;  %v685_v23 = vadd.f32 %v668_v60, %v666_v61  ;;  %v714_v52 = vadd.f32 %v698_v49, %v682_v62 }
 0x14e   :  { %722 = vst.msk [vmem:[%s1600_s6 + $0x20] sm:$0xff] %vm365_vm0, %v706_v41  ;;  %v715_v12 = vadd.f32 %v699_v16, %v683_v1 }
 0x14f   :  { %723 = vst.msk [vmem:[%s1600_s6 + $0x28] sm:$0xff] %vm365_vm0, %v707_v46  ;;  %v716_v13 = vadd.f32 %v700_v4, %v684_v11  ;;  %v717_v15 = vadd.f32 %v701_v7, %v685_v23 }
 0x150   :  { %724 = vst.msk [vmem:[%s1600_s6 + $0x30] sm:$0xff] %vm365_vm0, %v708_v57 }
 0x151   :  { %725 = vst.msk [vmem:[%s1600_s6 + $0x38] sm:$0xff] %vm365_vm0, %v709_v55 }
 0x152   :  { %726 = vst.msk [vmem:[%s1600_s6 + $0x40] sm:$0xff] %vm365_vm0, %v710_v50 }
 0x153   :  { %727 = vst.msk [vmem:[%s1600_s6 + $0x48] sm:$0xff] %vm365_vm0, %v711_v2 }
 0x154   :  { %728 = vst.msk [vmem:[%s1600_s6 + $0x50] sm:$0xff] %vm365_vm0, %v712_v3 }
 0x155   :  { %729 = vst.msk [vmem:[%s1600_s6 + $0x58] sm:$0xff] %vm365_vm0, %v713_v6 }
 0x156   :  { %730 = vst.msk [vmem:[%s1600_s6 + $0x60] sm:$0xff] %vm365_vm0, %v714_v52 }
 0x157   :  { %731 = vst.msk [vmem:[%s1600_s6 + $0x68] sm:$0xff] %vm365_vm0, %v715_v12 }
 0x158   :  { %732 = vst.msk [vmem:[%s1600_s6 + $0x70] sm:$0xff] %vm365_vm0, %v716_v13 }
 0x159   :  { %733 = vst.msk [vmem:[%s1600_s6 + $0x78] sm:$0xff] %vm365_vm0, %v717_v15 }
 0x15a   :  { %738 = vsyncpa [#allocation3], 1 }
 0x15b   :  { %739 = vsyncpa [#allocation5], 1 }

// kernel: generator_forward.23
= control target key start
LH: loop header
LB: loop body
LE: loop exit
PB: predicated region body
PF: predicated region fallthrough
CT: control target
= control target key end

     0   :  { %vm321_vm0 = vcmask 261120   ;;  %s1613_s1 = inlined_call_operand.vmem [shape: bf16[288,32], index: 1, kind: input, shape index: {}]   ;;  %s1614_s0 = inlined_call_operand.vmem [shape: bf16[128,288], index: 0, kind: input, shape index: {}]   ;;  %s1615_s2 = inlined_call_operand.vmem [shape: f32[1,32], index: 2, kind: input, shape index: {}]   ;;  %s1616_s3 = inlined_call_operand.vmem [shape: f32[1,32], index: 3, kind: input, shape index: {}]   ;;  %s1617_s4 = inlined_call_operand.vmem [shape: f32[1,32], index: 4, kind: input, shape index: {}]   ;;  %s1618_s5 = inlined_call_operand.vmem [shape: f32[128,32], index: 5, kind: output, shape index: {}]  }
   0x1   :  { %v981_v0 = vld [vmem:[%s1613_s1 + $0x38] sm:$0xff]  ;;  %v991_v2 = vld [vmem:[%s1613_s1 + $0x88] sm:$0xff]  ;;  %v980_v3 = vld [vmem:[%s1613_s1 + $0x30] sm:$0xff] }
   0x2   :  { %v989_v1 = vld [vmem:[%s1613_s1 + $0x78] sm:$0xff]  ;;  %346 = vmatpush.bf16.msra.mxu0 %v981_v0  ;;  %992 = vmatpush.bf16.msra.mxu3 %v981_v0  ;;  %v988_v4 = vld [vmem:[%s1613_s1 + $0x70] sm:$0xff]  ;;  %v990_v5 = vld [vmem:[%s1613_s1 + $0x80] sm:$0xff] }
   0x3   :  { %395 = vmatpush.bf16.msra.mxu1 %v989_v1  ;;  %450 = vmatpush.bf16.msra.mxu2 %v991_v2  ;;  %v768_v6 = vld [vmem:[%s1614_s0 + $0x8] sm:$0xf]  ;;  %v952_v7 = vld [vmem:[%s1614_s0 + $0x10] sm:$0xf0]  ;;  %v978_v11 = vld [vmem:[%s1613_s1 + $0x20] sm:$0xff] }
   0x4   :  { %v769_v8 = vor.u32 %v952_v7, %v768_v6  ;;  %v979_v9 = vld [vmem:[%s1613_s1 + $0x28] sm:$0xff]  ;;  %v986_v12 = vld [vmem:[%s1613_s1 + $0x60] sm:$0xff]  ;;  %v977_v13 = vld [vmem:[%s1613_s1 + $0x18] sm:$0xff] }
   0x5   :  { %v987_v10 = vld [vmem:[%s1613_s1 + $0x68] sm:$0xff]  ;;  %v985_v14 = vld [vmem:[%s1613_s1 + $0x58] sm:$0xff]  ;;  %v976_v15 = vld [vmem:[%s1613_s1 + $0x10] sm:$0xff] }
   0x6   :  { %347 = vmatpush.bf16.msra.mxu0 %v980_v3  ;;  %993 = vmatpush.bf16.msra.mxu3 %v980_v3  ;;  %v984_v16 = vld [vmem:[%s1613_s1 + $0x50] sm:$0xff]  ;;  %v780_v17 = vld [vmem:[%s1614_s0 + $0x20] sm:$0xf]  ;;  %v955_v18 = vld [vmem:[%s1614_s0 + $0x28] sm:$0xf0] }
   0x7   :  { %396 = vmatpush.bf16.msra.mxu1 %v988_v4  ;;  %451 = vmatpush.bf16.msra.mxu2 %v990_v5  ;;  %v781_v19 = vor.u32 %v955_v18, %v780_v17  ;;  %v975_v20 = vld [vmem:[%s1613_s1 + $0x8] sm:$0xff]  ;;  %v974_v22 = vld [vmem:[%s1613_s1] sm:$0xff]  ;;  %v832_v26 = vld [vmem:[%s1614_s0 + $0x90] sm:$0xf] }
   0x8   :  { %v983_v21 = vld [vmem:[%s1613_s1 + $0x48] sm:$0xff]  ;;  %v982_v23 = vld [vmem:[%s1613_s1 + $0x40] sm:$0xff]  ;;  %v969_v27 = vld [vmem:[%s1614_s0 + $0x98] sm:$0xf0] }
   0x9   :  { %v760_v24 = vld [vmem:[%s1614_s0] sm:$0xf]  ;;  %v951_v25 = vld [vmem:[%s1614_s0 + $0x8] sm:$0xf0]  ;;  %v950_v28 = vld [vmem:[%s1614_s0 + $0x4] sm:$0xf]  ;;  %v833_v31 = vor.u32 %v969_v27, %v832_v26 }
   0xa   :  { %926 = vmatmul.msk.bf16.vlgmr.msra.gmra.mxu2 %vm321_vm0, %v769_v8  ;;  %348 = vmatpush.bf16.msra.mxu0 %v979_v9  ;;  %v762_v29 = vld [vmem:[%s1614_s0 + $0xc] sm:$0xf0]  ;;  %v761_v30 = vor.u32 %v951_v25, %v760_v24  ;;  %v792_v33 = vld [vmem:[%s1614_s0 + $0x38] sm:$0xf]  ;;  %v958_v34 = vld [vmem:[%s1614_s0 + $0x40] sm:$0xf0] }
   0xb   :  { %994 = vmatpush.bf16.msra.mxu3 %v979_v9  ;;  %397 = vmatpush.bf16.msra.mxu1 %v987_v10  ;;  %v765_v32 = vor.u32 %v950_v28, %v762_v29  ;;  %v793_v35 = vor.u32 %v958_v34, %v792_v33  ;;  %v772_v36 = vld [vmem:[%s1614_s0 + $0x18] sm:$0xf]  ;;  %v954_v37 = vld [vmem:[%s1614_s0 + $0x20] sm:$0xf0]  ;;  %v844_v38 = vld [vmem:[%s1614_s0 + $0xa8] sm:$0xf] }
   0xc   :  { %v972_v39 = vld [vmem:[%s1614_s0 + $0xb0] sm:$0xf0]  ;;  %v953_v40 = vld [vmem:[%s1614_s0 + $0x1c] sm:$0xf]  ;;  %v774_v41 = vld [vmem:[%s1614_s0 + $0x24] sm:$0xf0]  ;;  %v773_v42 = vor.u32 %v954_v37, %v772_v36 }
   0xd   :  { %v845_v43 = vor.u32 %v972_v39, %v844_v38  ;;  %v777_v44 = vor.u32 %v953_v40, %v774_v41  ;;  %v804_v45 = vld [vmem:[%s1614_s0 + $0x50] sm:$0xf]  ;;  %v961_v46 = vld [vmem:[%s1614_s0 + $0x58] sm:$0xf0]  ;;  %v956_v50 = vld [vmem:[%s1614_s0 + $0x34] sm:$0xf] }
   0xe   :  { %349 = vmatpush.bf16.msra.mxu0 %v978_v11  ;;  %v805_v47 = vor.u32 %v961_v46, %v804_v45  ;;  %v784_v48 = vld [vmem:[%s1614_s0 + $0x30] sm:$0xf]  ;;  %v957_v49 = vld [vmem:[%s1614_s0 + $0x38] sm:$0xf0]  ;;  %v786_v51 = vld [vmem:[%s1614_s0 + $0x3c] sm:$0xf0] }
   0xf   :  { %995 = vmatpush.bf16.msra.mxu3 %v978_v11  ;;  %398 = vmatpush.bf16.msra.mxu1 %v986_v12  ;;  %v968_v52 = vld [vmem:[%s1614_s0 + $0x94] sm:$0xf]  ;;  %v834_v53 = vld [vmem:[%s1614_s0 + $0x9c] sm:$0xf0]  ;;  %v785_v54 = vor.u32 %v957_v49, %v784_v48  ;;  %v789_v55 = vor.u32 %v956_v50, %v786_v51  ;;  %v816_v57 = vld [vmem:[%s1614_s0 + $0x68] sm:$0xf] }
  0x10   :  { %v837_v56 = vor.u32 %v968_v52, %v834_v53  ;;  %v964_v58 = vld [vmem:[%s1614_s0 + $0x70] sm:$0xf0]  ;;  %v796_v60 = vld [vmem:[%s1614_s0 + $0x48] sm:$0xf]  ;;  %v959_v62 = vld [vmem:[%s1614_s0 + $0x4c] sm:$0xf] }
  0x11   :  { %v817_v59 = vor.u32 %v964_v58, %v816_v57  ;;  %v960_v61 = vld [vmem:[%s1614_s0 + $0x50] sm:$0xf0]  ;;  %v798_v63 = vld [vmem:[%s1614_s0 + $0x54] sm:$0xf0]  ;;  %v971_v0 = vld [vmem:[%s1614_s0 + $0xac] sm:$0xf] }
  0x12   :  { %350 = vmatpush.bf16.msra.mxu0 %v977_v13  ;;  %v797_v2 = vor.u32 %v960_v61, %v796_v60  ;;  %v801_v3 = vor.u32 %v959_v62, %v798_v63  ;;  %v828_v5 = vld [vmem:[%s1614_s0 + $0x80] sm:$0xf]  ;;  %v967_v6 = vld [vmem:[%s1614_s0 + $0x88] sm:$0xf0]  ;;  %v810_v11 = vld [vmem:[%s1614_s0 + $0x6c] sm:$0xf0] }
  0x13   :  { %996 = vmatpush.bf16.msra.mxu3 %v977_v13  ;;  %399 = vmatpush.bf16.msra.mxu1 %v985_v14  ;;  %v829_v7 = vor.u32 %v967_v6, %v828_v5  ;;  %v808_v8 = vld [vmem:[%s1614_s0 + $0x60] sm:$0xf]  ;;  %v963_v9 = vld [vmem:[%s1614_s0 + $0x68] sm:$0xf0]  ;;  %v820_v17 = vld [vmem:[%s1614_s0 + $0x78] sm:$0xf] }
  0x14   :  { %v966_v18 = vld [vmem:[%s1614_s0 + $0x80] sm:$0xf0]  ;;  %v973_v24 = vld [vmem:[%s1614_s0 + $0xb8] sm:$0xf0]  ;;  %v1282_v28 = vld [vmem:[%s1615_s2] ss:$0 sm:$0xff] }
  0x16   :  { %351 = vmatpush.bf16.msra.mxu0 %v976_v15 }
  0x17   :  { %997 = vmatpush.bf16.msra.mxu3 %v976_v15  ;;  %400 = vmatpush.bf16.msra.mxu1 %v984_v16  ;;  %v970_v15 = vld [vmem:[%s1614_s0 + $0xa0] sm:$0xf0] }
  0x1a   :  { %927 = vmatmul.msk.bf16.gmra.mxu2 %vm321_vm0, %v781_v19  ;;  %352 = vmatpush.bf16.msra.mxu0 %v975_v20  ;;  %v965_v19 = vld [vmem:[%s1614_s0 + $0x7c] sm:$0xf] }
  0x1b   :  { %998 = vmatpush.bf16.msra.mxu3 %v975_v20  ;;  %401 = vmatpush.bf16.msra.mxu1 %v983_v21  ;;  %v822_v20 = vld [vmem:[%s1614_s0 + $0x84] sm:$0xf0] }
  0x1e   :  { %353 = vmatpush.bf16.msra.mxu0 %v974_v22 }
  0x1f   :  { %999 = vmatpush.bf16.msra.mxu3 %v974_v22  ;;  %402 = vmatpush.bf16.msra.mxu1 %v982_v23  ;;  %v825_v22 = vor.u32 %v965_v19, %v822_v20 }
  0x21   :  { %354 = vmatmul.bf16.vlgmr.msra.gmra.mxu0 %v761_v30 }
  0x22   :  { %384 = vmatmul.bf16.vlgmr.msra.gmra.mxu3 %v833_v31  ;;  %403 = vmatmul.bf16.vlgmr.msra.gmra.mxu1 %v765_v32 }
  0x23   :  { %1000 = vmatpush.bf16.msrb.mxu3 %v989_v1  ;;  %v846_v1 = vld [vmem:[%s1614_s0 + $0xb4] sm:$0xf0] }
  0x27   :  { %1001 = vmatpush.bf16.msrb.mxu3 %v988_v4  ;;  %v849_v4 = vor.u32 %v971_v0, %v846_v1 }
  0x2a   :  { %928 = vmatmul.msk.bf16.gmra.mxu2 %vm321_vm0, %v793_v35 }
  0x2b   :  { %1002 = vmatpush.bf16.msrb.mxu3 %v987_v10  ;;  %v962_v10 = vld [vmem:[%s1614_s0 + $0x64] sm:$0xf] }
  0x2c   :  { %v813_v13 = vor.u32 %v962_v10, %v810_v11 }
  0x2f   :  { %1003 = vmatpush.bf16.msrb.mxu3 %v986_v12  ;;  %v809_v12 = vor.u32 %v963_v9, %v808_v8 }
  0x31   :  { %359 = vmatmul.bf16.gmra.mxu0 %v773_v42 }
  0x32   :  { %389 = vmatmul.bf16.gmra.mxu3 %v845_v43  ;;  %408 = vmatmul.bf16.gmra.mxu1 %v777_v44 }
  0x33   :  { %1004 = vmatpush.bf16.msrb.mxu3 %v985_v14  ;;  %v840_v14 = vld [vmem:[%s1614_s0 + $0x98] sm:$0xf] }
  0x37   :  { %1005 = vmatpush.bf16.msrb.mxu3 %v984_v16  ;;  %v841_v16 = vor.u32 %v970_v15, %v840_v14 }
  0x3a   :  { %929 = vmatmul.msk.bf16.gmra.mxu2 %vm321_vm0, %v805_v47 }
  0x3b   :  { %1006 = vmatpush.bf16.msrb.mxu3 %v983_v21  ;;  %v821_v21 = vor.u32 %v966_v18, %v820_v17 }
  0x3f   :  { %1007 = vmatpush.bf16.msrb.mxu3 %v982_v23  ;;  %v852_v23 = vld [vmem:[%s1614_s0 + $0xb0] sm:$0xf] }
  0x40   :  { %v853_v25 = vor.u32 %v973_v24, %v852_v23 }
  0x41   :  { %364 = vmatmul.bf16.gmra.mxu0 %v785_v54 }
  0x42   :  { %413 = vmatmul.bf16.gmra.mxu1 %v789_v55  ;;  %433 = vmatmul.bf16.vlgmr.msrb.gmra.mxu3 %v837_v56 }
  0x4a   :  { %930 = vmatmul.msk.bf16.gmra.mxu2 %vm321_vm0, %v817_v59 }
  0x51   :  { %369 = vmatmul.bf16.gmra.mxu0 %v797_v2 }
  0x52   :  { %418 = vmatmul.bf16.gmra.mxu1 %v801_v3  ;;  %438 = vmatmul.bf16.gmra.mxu3 %v849_v4 }
  0x5a   :  { %931 = vmatmul.msk.bf16.gmra.mxu2 %vm321_vm0, %v829_v7 }
  0x61   :  { %374 = vmatmul.bf16.gmra.mxu0 %v809_v12 }
  0x62   :  { %423 = vmatmul.bf16.gmra.mxu1 %v813_v13 }
  0x6a   :  { %932 = vmatmul.msk.bf16.gmra.mxu2 %vm321_vm0, %v841_v16 }
  0x71   :  { %379 = vmatmul.bf16.gmra.mxu0 %v821_v21 }
  0x72   :  { %428 = vmatmul.bf16.gmra.mxu1 %v825_v22 }
  0x7a   :  { %933 = vmatmul.msk.bf16.gmra.mxu2 %vm321_vm0, %v853_v25 }
  0x8d   :  { %v453_v26 = vpop.f32.mrf.mxu2 }
  0x95   :  { %v455_v27 = vpop.f32.mrf.mxu2 }
  0x9d   :  { %v458_v29 = vpop.f32.mrf.mxu2 }
  0x9e   :  { %v355_v30 = vpop.f32.mrf.mxu0 }
  0x9f   :  { %v356_v31 = vadd.f32 %v1282_v28, %v355_v30  ;;  %v404_v32 = vpop.f32.mrf.mxu1 }
  0xa1   :  { %v405_v33 = vadd.f32 %v404_v32, %v356_v31 }
  0xa3   :  { %v1285_v34 = vadd.f32 %v453_v26, %v405_v33 }
  0xa5   :  { %v460_v35 = vpop.f32.mrf.mxu2  ;;  %v1287_v44 = vpop.f32.mrf.mxu3  ;;  %v530_v17 = vmul.f32 %v1285_v34, %v1285_v34  ;;  %v493_v25 = vsel %vm321_vm0, %v1285_v34, 0.0 }
  0xa6   :  { %v357_v36 = vpop.f32.mrf.mxu0 }
  0xa7   :  { %v406_v37 = vpop.f32.mrf.mxu1  ;;  %v358_v59 = vadd.f32 %v1282_v28, %v357_v36  ;;  %v546_v33 = vsel %vm321_vm0, %v530_v17, 0.0 }
  0xa9   :  { %v407_v62 = vadd.f32 %v406_v37, %v358_v59 }
  0xab   :  { %v1305_v5 = vadd.f32 %v455_v27, %v407_v62 }
  0xad   :  { %v463_v38 = vpop.f32.mrf.mxu2  ;;  %v1289_v48 = vpop.f32.mrf.mxu3  ;;  %v531_v12 = vmul.f32 %v1305_v5, %v1305_v5  ;;  %v494_v20 = vsel %vm321_vm0, %v1305_v5, 0.0 }
  0xae   :  { %v360_v39 = vpop.f32.mrf.mxu0 }
  0xaf   :  { %v409_v40 = vpop.f32.mrf.mxu1  ;;  %v361_v61 = vadd.f32 %v1282_v28, %v360_v39  ;;  %v547_v26 = vsel %vm321_vm0, %v531_v12, 0.0 }
  0xb1   :  { %v410_v3 = vadd.f32 %v409_v40, %v361_v61 }
  0xb3   :  { %v1308_v9 = vadd.f32 %v458_v29, %v410_v3 }
  0xb5   :  { %v465_v41 = vpop.f32.mrf.mxu2  ;;  %v1293_v54 = vpop.f32.mrf.mxu3  ;;  %v532_v21 = vmul.f32 %v1308_v9, %v1308_v9  ;;  %v496_v29 = vsel %vm321_vm0, %v1308_v9, 0.0 }
  0xb6   :  { %v362_v42 = vpop.f32.mrf.mxu0 }
  0xb7   :  { %v411_v43 = vpop.f32.mrf.mxu1  ;;  %v363_v63 = vadd.f32 %v1282_v28, %v362_v42  ;;  %v549_v37 = vsel %vm321_vm0, %v532_v21, 0.0 }
  0xb9   :  { %v412_v7 = vadd.f32 %v411_v43, %v363_v63 }
  0xbb   :  { %v1315_v14 = vadd.f32 %v460_v35, %v412_v7  ;;  %v495_v35 = vadd.f32 %v494_v20, %v493_v25  ;;  %v388_v25 = vadd.f32 %v1282_v28, %v1289_v48 }
  0xbd   :  { %v468_v45 = vpop.f32.mrf.mxu2  ;;  %v1298_v60 = vpop.f32.mrf.mxu3  ;;  %v533_v30 = vmul.f32 %v1315_v14, %v1315_v14  ;;  %v497_v42 = vadd.f32 %v496_v29, %v495_v35 }
  0xbe   :  { %v365_v46 = vpop.f32.mrf.mxu0 }
  0xbf   :  { %v414_v47 = vpop.f32.mrf.mxu1  ;;  %v366_v1 = vadd.f32 %v1282_v28, %v365_v46  ;;  %v551_v46 = vsel %vm321_vm0, %v533_v30, 0.0 }
  0xc1   :  { %v415_v8 = vadd.f32 %v414_v47, %v366_v1 }
  0xc3   :  { %v1322_v18 = vadd.f32 %v463_v38, %v415_v8  ;;  %v498_v38 = vsel %vm321_vm0, %v1315_v14, 0.0 }
  0xc5   :  { %v470_v49 = vpop.f32.mrf.mxu2  ;;  %v1310_v10 = vpop.f32.mrf.mxu3  ;;  %v534_v36 = vmul.f32 %v1322_v18, %v1322_v18  ;;  %v500_v47 = vsel %vm321_vm0, %v1322_v18, 0.0 }
  0xc6   :  { %v367_v50 = vpop.f32.mrf.mxu0 }
  0xc7   :  { %v416_v51 = vpop.f32.mrf.mxu1  ;;  %v368_v6 = vadd.f32 %v1282_v28, %v367_v50 }
  0xc9   :  { %v417_v13 = vadd.f32 %v416_v51, %v368_v6 }
  0xcb   :  { %v1332_v27 = vadd.f32 %v465_v41, %v417_v13  ;;  %v548_v41 = vadd.f32 %v547_v26, %v546_v33 }
  0xcd   :  { %v1291_v52 = vpop.f32.mrf.mxu2  ;;  %v535_v43 = vmul.f32 %v1332_v27, %v1332_v27  ;;  %v436_v50 = vpop.f32.mrf.mxu3  ;;  %v502_v61 = vsel %vm321_vm0, %v1332_v27, 0.0 }
  0xce   :  { %v370_v53 = vpop.f32.mrf.mxu0 }
  0xcf   :  { %v419_v55 = vpop.f32.mrf.mxu1  ;;  %v371_v11 = vadd.f32 %v1282_v28, %v370_v53 }
  0xd1   :  { %v420_v22 = vadd.f32 %v419_v55, %v371_v11 }
  0xd3   :  { %v1345_v39 = vadd.f32 %v468_v45, %v420_v22  ;;  %v553_v45 = vsel %vm321_vm0, %v534_v36, 0.0 }
  0xd5   :  { %v1295_v56 = vpop.f32.mrf.mxu2  ;;  %v536_v62 = vmul.f32 %v1345_v39, %v1345_v39  ;;  %v504_v6 = vsel %vm321_vm0, %v1345_v39, 0.0 }
  0xd6   :  { %v372_v57 = vpop.f32.mrf.mxu0 }
  0xd7   :  { %v421_v58 = vpop.f32.mrf.mxu1  ;;  %v373_v15 = vadd.f32 %v1282_v28, %v372_v57  ;;  %v550_v57 = vadd.f32 %v549_v37, %v548_v41 }
  0xd9   :  { %v422_v31 = vadd.f32 %v421_v58, %v373_v15  ;;  %v499_v58 = vadd.f32 %v498_v38, %v497_v42  ;;  %v557_v15 = vsel %vm321_vm0, %v536_v62, 0.0 }
  0xdb   :  { %v1352_v51 = vadd.f32 %v470_v49, %v422_v31  ;;  %v501_v3 = vadd.f32 %v500_v47, %v499_v58  ;;  %v439_v31 = vpop.f32.mrf.mxu3 }
  0xdd   :  { %v1302_v0 = vpop.f32.mrf.mxu2  ;;  %v537_v7 = vmul.f32 %v1352_v51, %v1352_v51  ;;  %v503_v13 = vadd.f32 %v502_v61, %v501_v3  ;;  %v506_v17 = vsel %vm321_vm0, %v1352_v51, 0.0 }
  0xde   :  { %v375_v2 = vpop.f32.mrf.mxu0 }
  0xdf   :  { %v424_v4 = vpop.f32.mrf.mxu1  ;;  %v376_v23 = vadd.f32 %v1282_v28, %v375_v2  ;;  %v552_v2 = vadd.f32 %v551_v46, %v550_v57  ;;  %v559_v22 = vsel %vm321_vm0, %v537_v7, 0.0  ;;  %v437_v46 = vadd.f32 %v436_v50, %v388_v25 }
  0xe1   :  { %v425_v40 = vadd.f32 %v424_v4, %v376_v23  ;;  %v555_v4 = vsel %vm321_vm0, %v535_v43, 0.0  ;;  %v554_v12 = vadd.f32 %v553_v45, %v552_v2  ;;  %v391_v43 = vadd.f32 %v1282_v28, %v1293_v54 }
  0xe3   :  { %v1360_v63 = vadd.f32 %v1291_v52, %v425_v40  ;;  %v386_v52 = vadd.f32 %v1282_v28, %v1287_v44  ;;  %v556_v21 = vadd.f32 %v555_v4, %v554_v12  ;;  %v441_v12 = vpop.f32.mrf.mxu3 }
  0xe5   :  { %v1318_v16 = vpop.f32.mrf.mxu2  ;;  %v508_v44 = vsel %vm321_vm0, %v1360_v63, 0.0  ;;  %v435_v26 = vadd.f32 %v1310_v10, %v386_v52  ;;  %v558_v29 = vadd.f32 %v557_v15, %v556_v21 }
  0xe6   :  { %v377_v19 = vpop.f32.mrf.mxu0 }
  0xe7   :  { %v426_v24 = vpop.f32.mrf.mxu1  ;;  %v378_v32 = vadd.f32 %v1282_v28, %v377_v19  ;;  %v538_v19 = vmul.f32 %v1360_v63, %v1360_v63  ;;  %v560_v37 = vadd.f32 %v559_v22, %v558_v29 }
  0xe9   :  { %v427_v53 = vadd.f32 %v426_v24, %v378_v32  ;;  %v561_v32 = vsel %vm321_vm0, %v538_v19, 0.0 }
  0xea   :  { %v562_v47 = vadd.f32 %v561_v32, %v560_v37 }
  0xeb   :  { %v1369_v8 = vadd.f32 %v1295_v56, %v427_v53  ;;  %v505_v56 = vadd.f32 %v504_v6, %v503_v13 }
  0xed   :  { %v483_v55 = vpop.f32.mrf.mxu2  ;;  %v539_v23 = vmul.f32 %v1369_v8, %v1369_v8  ;;  %v507_v30 = vadd.f32 %v506_v17, %v505_v56  ;;  %v510_v33 = vsel %vm321_vm0, %v1369_v8, 0.0 }
  0xee   :  { %v380_v59 = vpop.f32.mrf.mxu0  ;;  %v1396_v10 = vadd.f32 %v483_v55, %v435_v26 }
  0xef   :  { %v381_v1 = vadd.f32 %v1282_v28, %v380_v59  ;;  %v429_v49 = vpop.f32.mrf.mxu1  ;;  %v509_v38 = vadd.f32 %v508_v44, %v507_v30  ;;  %v563_v48 = vsel %vm321_vm0, %v539_v23, 0.0 }
  0xf0   :  { %v564_v45 = vadd.f32 %v563_v48, %v562_v47  ;;  %v542_v55 = vmul.f32 %v1396_v10, %v1396_v10  ;;  %v516_v3 = vsel %vm321_vm0, %v1396_v10, 0.0 }
  0xf1   :  { %v430_v11 = vadd.f32 %v429_v49, %v381_v1  ;;  %v511_v53 = vadd.f32 %v510_v33, %v509_v38  ;;  %v440_v1 = vadd.f32 %v439_v31, %v391_v43 }
  0xf2   :  { %v569_v13 = vsel %vm321_vm0, %v542_v55, 0.0 }
  0xf3   :  { %v1379_v20 = vadd.f32 %v1302_v0, %v430_v11 }
  0xf5   :  { %v485_v24 = vpop.f32.mrf.mxu2  ;;  %v540_v35 = vmul.f32 %v1379_v20, %v1379_v20  ;;  %v512_v41 = vsel %vm321_vm0, %v1379_v20, 0.0 }
  0xf6   :  { %v382_v0 = vpop.f32.mrf.mxu0  ;;  %v513_v59 = vadd.f32 %v512_v41, %v511_v53  ;;  %v1406_v61 = vadd.f32 %v485_v24, %v437_v46 }
  0xf7   :  { %v383_v36 = vadd.f32 %v1282_v28, %v382_v0  ;;  %v431_v40 = vpop.f32.mrf.mxu1  ;;  %v565_v57 = vsel %vm321_vm0, %v540_v35, 0.0 }
  0xf8   :  { %v566_v49 = vadd.f32 %v565_v57, %v564_v45  ;;  %v543_v6 = vmul.f32 %v1406_v61, %v1406_v61  ;;  %v518_v15 = vsel %vm321_vm0, %v1406_v61, 0.0 }
  0xf9   :  { %v432_v42 = vadd.f32 %v431_v40, %v383_v36 }
  0xfa   :  { %v571_v19 = vsel %vm321_vm0, %v543_v6, 0.0 }
  0xfb   :  { %v1404_v58 = vadd.f32 %v1318_v16, %v432_v42  ;;  %v393_v16 = vadd.f32 %v1282_v28, %v1298_v60 }
  0xfd   :  { %v514_v62 = vsel %vm321_vm0, %v1404_v58, 0.0  ;;  %v541_v54 = vmul.f32 %v1404_v58, %v1404_v58  ;;  %v488_v50 = vpop.f32.mrf.mxu2  ;;  %v442_v60 = vadd.f32 %v441_v12, %v393_v16  ;;  %v588_v16 = vld [vmem:[%s1616_s3] sm:$0x1] }
  0xfe   :  { %v515_v2 = vadd.f32 %v514_v62, %v513_v59  ;;  %v1421_v11 = vadd.f32 %v488_v50, %v440_v1 }
  0xff   :  { %v567_v4 = vsel %vm321_vm0, %v541_v54, 0.0 }
 0x100   :  { %v568_v7 = vadd.f32 %v567_v4, %v566_v49  ;;  %v517_v52 = vadd.f32 %v516_v3, %v515_v2  ;;  %v544_v21 = vmul.f32 %v1421_v11, %v1421_v11  ;;  %v520_v44 = vsel %vm321_vm0, %v1421_v11, 0.0 }
 0x102   :  { %v570_v17 = vadd.f32 %v569_v13, %v568_v7  ;;  %v519_v28 = vadd.f32 %v518_v15, %v517_v52  ;;  %v573_v25 = vsel %vm321_vm0, %v544_v21, 0.0  ;;  %v601_v52 = vld [vmem:[%s1617_s4] sm:$0x1] }
 0x104   :  { %v572_v56 = vadd.f32 %v571_v19, %v570_v17  ;;  %v521_v24 = vadd.f32 %v520_v44, %v519_v28 }
 0x105   :  { %v490_v22 = vpop.f32.mrf.mxu2 }
 0x106   :  { %v1431_v23 = vadd.f32 %v490_v22, %v442_v60  ;;  %v574_v30 = vadd.f32 %v573_v25, %v572_v56 }
 0x108   :  { %v522_v26 = vsel %vm321_vm0, %v1431_v23, 0.0  ;;  %v545_v29 = vmul.f32 %v1431_v23, %v1431_v23 }
 0x109   :  { %v523_v0 = vadd.f32 %v522_v26, %v521_v24 }
 0x10a   :  { %v575_v31 = vsel %vm321_vm0, %v545_v29, 0.0 }
 0x10b   :  { %v524_v32 = vrot.slane %v523_v0, 4  ;;  %v576_v33 = vadd.f32 %v575_v31, %v574_v30 }
 0x10d   :  { %v525_v35 = vadd.f32 %v524_v32, %v523_v0  ;;  %v577_v36 = vrot.slane %v576_v33, 4 }
 0x10f   :  { %v526_v37 = vrot.slane %v525_v35, 2  ;;  %v578_v38 = vadd.f32 %v577_v36, %v576_v33 }
 0x111   :  { %v527_v40 = vadd.f32 %v526_v37, %v525_v35  ;;  %v579_v48 = vrot.slane %v578_v38, 2 }
 0x113   :  { %v528_v41 = vrot.slane %v527_v40, 1  ;;  %v580_v42 = vadd.f32 %v579_v48, %v578_v38 }
 0x115   :  { %v529_v43 = vadd.f32 %v528_v41, %v527_v40  ;;  %v581_v46 = vrot.slane %v580_v42, 1 }
 0x117   :  { %v582_v47 = vadd.f32 %v581_v46, %v580_v42  ;;  %v583_v53 = vmul.f32 0.0078125, %v529_v43 }
 0x119   :  { %v584_v57 = vmul.f32 0.0078125, %v582_v47  ;;  %v585_v45 = vmul.f32 %v583_v53, %v583_v53 }
 0x11b   :  { %v586_v59 = vsub.f32 %v584_v57, %v585_v45 }
 0x11d   :  { %v587_v55 = vmax.f32 %v586_v59, 0.0 }
 0x11f   :  { %v589_v62 = vadd.f32 1e-05, %v587_v55 }
 0x121   :  { %1009 = vrsqrt.f32 %v589_v62  ;;  %vm596_vm2 = vweird.f32 %v589_v62 }
 0x127   :  { %v1010_v54 = vpop.eup %1009 }
 0x128   :  { %v591_v50 = vmul.f32 %v1010_v54, %v589_v62  ;;  %vm597_vm1 = vweird.f32 %v1010_v54 }
 0x129   :  { %vm598_vm3 = vmor %vm596_vm2, %vm597_vm1 }
 0x12a   :  { %v592_v1 = vmul.f32 %v1010_v54, %v591_v50 }
 0x12c   :  { %v593_v49 = vmul.f32 0.5, %v592_v1 }
 0x12e   :  { %v594_v2 = vsub.f32 1.5, %v593_v49 }
 0x130   :  { %v595_v3 = vmul.f32 %v1010_v54, %v594_v2 }
 0x132   :  { %v599_v4 = vsel %vm598_vm3, %v1010_v54, %v595_v3 }
 0x133   :  { %v600_v6 = vmul.f32 %v599_v4, %v588_v16 }
 0x135   :  { %v602_v7 = vmul.f32 %v600_v6, %v583_v53  ;;  %v605_v13 = vperm.slane %v600_v6, 0 }
 0x137   :  { %v603_v12 = vsub.f32 %v601_v52, %v602_v7  ;;  %v607_v17 = vmul.f32 %v605_v13, %v1285_v34  ;;  %v608_v28 = vmul.f32 %v605_v13, %v1305_v5  ;;  %v609_v60 = vmul.f32 %v605_v13, %v1308_v9 }
 0x138   :  { %v610_v19 = vmul.f32 %v605_v13, %v1315_v14  ;;  %v611_v21 = vmul.f32 %v605_v13, %v1322_v18  ;;  %v612_v24 = vmul.f32 %v605_v13, %v1332_v27  ;;  %v613_v25 = vmul.f32 %v605_v13, %v1345_v39 }
 0x139   :  { %v624_v15 = vperm.slane %v603_v12, 0  ;;  %v614_v5 = vmul.f32 %v605_v13, %v1352_v51  ;;  %v615_v9 = vmul.f32 %v605_v13, %v1360_v63  ;;  %v616_v29 = vmul.f32 %v605_v13, %v1369_v8 }
 0x13a   :  { %v617_v0 = vmul.f32 %v605_v13, %v1379_v20  ;;  %v618_v31 = vmul.f32 %v605_v13, %v1404_v58  ;;  %v619_v63 = vmul.f32 %v605_v13, %v1396_v10  ;;  %v620_v33 = vmul.f32 %v605_v13, %v1406_v61 }
 0x13b   :  { %v1450_v56 = vadd.f32 %v624_v15, %v607_v17  ;;  %v1452_v22 = vadd.f32 %v624_v15, %v608_v28  ;;  %v1454_v44 = vadd.f32 %v624_v15, %v609_v60  ;;  %v1458_v26 = vadd.f32 %v624_v15, %v610_v19 }
 0x13c   :  { %v1460_v34 = vadd.f32 %v624_v15, %v611_v21  ;;  %v1464_v14 = vadd.f32 %v624_v15, %v612_v24  ;;  %v1466_v18 = vadd.f32 %v624_v15, %v613_v25  ;;  %v1474_v32 = vadd.f32 %v624_v15, %v614_v5 }
 0x13d   :  { %v658_v30 = vmin.f32 %v1450_v56, 0.0  ;;  %v659_v27 = vmin.f32 %v1452_v22, 0.0  ;;  %v660_v39 = vmin.f32 %v1454_v44, 0.0  ;;  %v661_v51 = vmin.f32 %v1458_v26, 0.0 }
 0x13e   :  { %v1479_v35 = vadd.f32 %v624_v15, %v615_v9  ;;  %v662_v8 = vmin.f32 %v1460_v34, 0.0  ;;  %v621_v36 = vmul.f32 %v605_v13, %v1421_v11  ;;  %v1483_v37 = vadd.f32 %v624_v15, %v616_v29 }
 0x13f   :  { %v663_v20 = vmin.f32 %v1464_v14, 0.0  ;;  %v664_v58 = vmin.f32 %v1466_v18, 0.0  ;;  %v1487_v38 = vadd.f32 %v624_v15, %v617_v0  ;;  %v674_v40 = vmul.f32 1.442695, %v658_v30 }
 0x140   :  { %v676_v48 = vmul.f32 1.442695, %v659_v27  ;;  %v678_v41 = vmul.f32 1.442695, %v660_v39  ;;  %v622_v10 = vmul.f32 %v605_v13, %v1431_v23  ;;  %v1490_v61 = vadd.f32 %v624_v15, %v618_v31 }
 0x141   :  { %v665_v42 = vmin.f32 %v1474_v32, 0.0  ;;  %v680_v43 = vmul.f32 1.442695, %v661_v51  ;;  %v1493_v46 = vadd.f32 %v624_v15, %v619_v63  ;;  %v666_v11 = vmin.f32 %v1479_v35, 0.0 }
 0x142   :  { %1011 = vpow2.f32 %v674_v40  ;;  %v682_v47 = vmul.f32 1.442695, %v662_v8  ;;  %v1496_v53 = vadd.f32 %v624_v15, %v620_v33  ;;  %v667_v57 = vmin.f32 %v1483_v37, 0.0 }
 0x143   :  { %1013 = vpow2.f32 %v676_v48  ;;  %v684_v45 = vmul.f32 1.442695, %v663_v20  ;;  %v1499_v59 = vadd.f32 %v624_v15, %v621_v36  ;;  %v668_v23 = vmin.f32 %v1487_v38, 0.0 }
 0x144   :  { %1015 = vpow2.f32 %v678_v41  ;;  %v686_v55 = vmul.f32 1.442695, %v664_v58  ;;  %v1502_v62 = vadd.f32 %v624_v15, %v622_v10  ;;  %v669_v54 = vmin.f32 %v1490_v61, 0.0 }
 0x145   :  { %1017 = vpow2.f32 %v680_v43  ;;  %v688_v50 = vmul.f32 1.442695, %v665_v42  ;;  %vm642_vm4 = vcmp.gt.f32.partialorder %v1450_v56, 0.0  ;;  %v670_v1 = vmin.f32 %v1493_v46, 0.0 }
 0x146   :  { %1019 = vpow2.f32 %v682_v47  ;;  %v690_v49 = vmul.f32 1.442695, %v666_v11  ;;  %vm643_vm5 = vcmp.gt.f32.partialorder %v1452_v22, 0.0  ;;  %v671_v2 = vmin.f32 %v1496_v53, 0.0 }
 0x147   :  { %1021 = vpow2.f32 %v684_v45  ;;  %v692_v16 = vmul.f32 1.442695, %v667_v57  ;;  %vm644_vm6 = vcmp.gt.f32.partialorder %v1454_v44, 0.0  ;;  %v672_v4 = vmin.f32 %v1499_v59, 0.0 }
 0x148   :  { %v1012_v3 = vpop.eup %1011  ;;  %1023 = vpow2.f32 %v686_v55  ;;  %v694_v6 = vmul.f32 1.442695, %v668_v23  ;;  %v673_v52 = vmin.f32 %v1502_v62, 0.0  ;;  %v696_v12 = vmul.f32 1.442695, %v669_v54 }
 0x149   :  { %v1014_v7 = vpop.eup %1013  ;;  %1025 = vpow2.f32 %v688_v50  ;;  %v934_v13 = vadd.f32 -1.0, %v1012_v3  ;;  %vm645_vm7 = vcmp.gt.f32.partialorder %v1458_v26, 0.0  ;;  %v698_v17 = vmul.f32 1.442695, %v670_v1 }
 0x14a   :  { %v1016_v15 = vpop.eup %1015  ;;  %1027 = vpow2.f32 %v690_v49  ;;  %v935_v28 = vadd.f32 -1.0, %v1014_v7  ;;  %v700_v19 = vmul.f32 1.442695, %v671_v2  ;;  %v702_v5 = vmul.f32 1.442695, %v672_v4 }
 0x14b   :  { %v1018_v60 = vpop.eup %1017  ;;  %1029 = vpow2.f32 %v692_v16  ;;  %v936_v21 = vadd.f32 -1.0, %v1016_v15  ;;  %v722_v24 = vsel %vm642_vm4, %v1450_v56, %v934_v13  ;;  %v704_v27 = vmul.f32 1.442695, %v673_v52 }
 0x14c   :  { %v1020_v25 = vpop.eup %1019  ;;  %1031 = vpow2.f32 %v694_v6  ;;  %v937_v9 = vadd.f32 -1.0, %v1018_v60  ;;  %v723_v29 = vsel %vm643_vm5, %v1452_v22, %v935_v28  ;;  %738 = vst.msk [vmem:[%s1618_s5] sm:$0xff] %vm321_vm0, %v722_v24  ;;  %vm646_vm8 = vcmp.gt.f32.partialorder %v1460_v34, 0.0 }
 0x14d   :  { %v1022_v30 = vpop.eup %1021  ;;  %1033 = vpow2.f32 %v696_v12  ;;  %v938_v39 = vadd.f32 -1.0, %v1020_v25  ;;  %v724_v56 = vsel %vm644_vm6, %v1454_v44, %v936_v21  ;;  %739 = vst.msk [vmem:[%s1618_s5 + $0x8] sm:$0xff] %vm321_vm0, %v723_v29  ;;  %vm647_vm9 = vcmp.gt.f32.partialorder %v1464_v14, 0.0 }
 0x14e   :  { %v1024_v0 = vpop.eup %1023  ;;  %1035 = vpow2.f32 %v698_v17  ;;  %v939_v22 = vadd.f32 -1.0, %v1022_v30  ;;  %v725_v31 = vsel %vm645_vm7, %v1458_v26, %v937_v9  ;;  %740 = vst.msk [vmem:[%s1618_s5 + $0x10] sm:$0xff] %vm321_vm0, %v724_v56  ;;  %vm648_vm10 = vcmp.gt.f32.partialorder %v1466_v18, 0.0 }
 0x14f   :  { %v1026_v44 = vpop.eup %1025  ;;  %1037 = vpow2.f32 %v700_v19  ;;  %v940_v51 = vadd.f32 -1.0, %v1024_v0  ;;  %v726_v63 = vsel %vm646_vm8, %v1460_v34, %v938_v39  ;;  %741 = vst.msk [vmem:[%s1618_s5 + $0x18] sm:$0xff] %vm321_vm0, %v725_v31  ;;  %vm649_vm11 = vcmp.gt.f32.partialorder %v1474_v32, 0.0 }
 0x150   :  { %v1028_v33 = vpop.eup %1027  ;;  %1039 = vpow2.f32 %v702_v5  ;;  %v941_v26 = vadd.f32 -1.0, %v1026_v44  ;;  %v727_v8 = vsel %vm647_vm9, %v1464_v14, %v939_v22  ;;  %742 = vst.msk [vmem:[%s1618_s5 + $0x20] sm:$0xff] %vm321_vm0, %v726_v63  ;;  %vm650_vm12 = vcmp.gt.f32.partialorder %v1479_v35, 0.0 }
 0x151   :  { %v1030_v36 = vpop.eup %1029  ;;  %1041 = vpow2.f32 %v704_v27  ;;  %v942_v34 = vadd.f32 -1.0, %v1028_v33  ;;  %v728_v20 = vsel %vm648_vm10, %v1466_v18, %v940_v51  ;;  %743 = vst.msk [vmem:[%s1618_s5 + $0x28] sm:$0xff] %vm321_vm0, %v727_v8  ;;  %vm651_vm13 = vcmp.gt.f32.partialorder %v1483_v37, 0.0 }
 0x152   :  { %v1032_v58 = vpop.eup %1031  ;;  %v943_v14 = vadd.f32 -1.0, %v1030_v36  ;;  %v729_v40 = vsel %vm649_vm11, %v1474_v32, %v941_v26  ;;  %744 = vst.msk [vmem:[%s1618_s5 + $0x30] sm:$0xff] %vm321_vm0, %v728_v20  ;;  %vm652_vm14 = vcmp.gt.f32.partialorder %v1487_v38, 0.0  ;;  %vm653_vm15 = vcmp.gt.f32.partialorder %v1490_v61, 0.0 }
 0x153   :  { %v1034_v48 = vpop.eup %1033  ;;  %v944_v18 = vadd.f32 -1.0, %v1032_v58  ;;  %v730_v41 = vsel %vm650_vm12, %v1479_v35, %v942_v34  ;;  %745 = vst.msk [vmem:[%s1618_s5 + $0x38] sm:$0xff] %vm321_vm0, %v729_v40  ;;  %vm654_vm1 = vcmp.gt.f32.partialorder %v1493_v46, 0.0  ;;  %vm655_vm2 = vcmp.gt.f32.partialorder %v1496_v53, 0.0 }
 0x154   :  { %v1036_v10 = vpop.eup %1035  ;;  %v945_v32 = vadd.f32 -1.0, %v1034_v48  ;;  %v731_v42 = vsel %vm651_vm13, %v1483_v37, %v943_v14  ;;  %746 = vst.msk [vmem:[%s1618_s5 + $0x40] sm:$0xff] %vm321_vm0, %v730_v41  ;;  %vm656_vm3 = vcmp.gt.f32.partialorder %v1499_v59, 0.0  ;;  %vm657_vm4 = vcmp.gt.f32.partialorder %v1502_v62, 0.0 }
 0x155   :  { %v1038_v43 = vpop.eup %1037  ;;  %v946_v35 = vadd.f32 -1.0, %v1036_v10  ;;  %v732_v11 = vsel %vm652_vm14, %v1487_v38, %v944_v18  ;;  %747 = vst.msk [vmem:[%s1618_s5 + $0x48] sm:$0xff] %vm321_vm0, %v731_v42 }
 0x156   :  { %v1040_v47 = vpop.eup %1039  ;;  %v947_v37 = vadd.f32 -1.0, %v1038_v43  ;;  %v733_v57 = vsel %vm653_vm15, %v1490_v61, %v945_v32  ;;  %748 = vst.msk [vmem:[%s1618_s5 + $0x50] sm:$0xff] %vm321_vm0, %v732_v11 }
 0x157   :  { %v1042_v45 = vpop.eup %1041  ;;  %v948_v38 = vadd.f32 -1.0, %v1040_v47  ;;  %v734_v23 = vsel %vm654_vm1, %v1493_v46, %v946_v35  ;;  %749 = vst.msk [vmem:[%s1618_s5 + $0x58] sm:$0xff] %vm321_vm0, %v733_v57 }
 0x158   :  { %v949_v55 = vadd.f32 -1.0, %v1042_v45  ;;  %v735_v61 = vsel %vm655_vm2, %v1496_v53, %v947_v37  ;;  %750 = vst.msk [vmem:[%s1618_s5 + $0x60] sm:$0xff] %vm321_vm0, %v734_v23 }
 0x159   :  { %v736_v54 = vsel %vm656_vm3, %v1499_v59, %v948_v38  ;;  %751 = vst.msk [vmem:[%s1618_s5 + $0x68] sm:$0xff] %vm321_vm0, %v735_v61 }
 0x15a   :  { %v737_v46 = vsel %vm657_vm4, %v1502_v62, %v949_v55  ;;  %752 = vst.msk [vmem:[%s1618_s5 + $0x70] sm:$0xff] %vm321_vm0, %v736_v54 }
 0x15b   :  { %753 = vst.msk [vmem:[%s1618_s5 + $0x78] sm:$0xff] %vm321_vm0, %v737_v46 }

// kernel: tile.58
= control target key start
LH: loop header
LB: loop body
LE: loop exit
PB: predicated region body
PF: predicated region fallthrough
CT: control target
= control target key end

     0   :  { %s504_s0 = inlined_call_operand.vmem [shape: f32[16,16], index: 0, kind: input, shape index: {}]   ;;  %s505_s1 = inlined_call_operand.vmem [shape: f32[4,16,4,16], index: 1, kind: output, shape index: {}]  }
   0x1   :  { %v4_v0 = vld [vmem:[%s504_s0] ss:$0 sm:$0xff]  ;;  %v179_v1 = vld [vmem:[%s504_s0 + $0x1] ss:$0 sm:$0xff]  ;;  %v184_v2 = vld [vmem:[%s504_s0 + $0x2] ss:$0 sm:$0xff] }
   0x2   :  { %5 = vst [vmem:[%s505_s1] sm:$0xf] %v4_v0  ;;  %v189_v3 = vld [vmem:[%s504_s0 + $0x3] ss:$0 sm:$0xff]  ;;  %v194_v4 = vld [vmem:[%s504_s0 + $0x4] ss:$0 sm:$0xff] }
   0x3   :  { %176 = vst [vmem:[%s505_s1 + $0x40] sm:$0xf] %v4_v0  ;;  %v199_v5 = vld [vmem:[%s504_s0 + $0x5] ss:$0 sm:$0xff]  ;;  %v204_v6 = vld [vmem:[%s504_s0 + $0x6] ss:$0 sm:$0xff] }
   0x4   :  { %177 = vst [vmem:[%s505_s1 + $0x80] sm:$0xf] %v4_v0  ;;  %v209_v7 = vld [vmem:[%s504_s0 + $0x7] ss:$0 sm:$0xff]  ;;  %v214_v8 = vld [vmem:[%s504_s0 + $0x8] ss:$0 sm:$0xff] }
   0x5   :  { %178 = vst [vmem:[%s505_s1 + $0xc0] sm:$0xf] %v4_v0  ;;  %v219_v9 = vld [vmem:[%s504_s0 + $0x9] ss:$0 sm:$0xff]  ;;  %v224_v10 = vld [vmem:[%s504_s0 + $0xa] ss:$0 sm:$0xff] }
   0x6   :  { %180 = vst [vmem:[%s505_s1 + $0x4] sm:$0xf] %v179_v1  ;;  %v229_v11 = vld [vmem:[%s504_s0 + $0xb] ss:$0 sm:$0xff]  ;;  %v234_v12 = vld [vmem:[%s504_s0 + $0xc] ss:$0 sm:$0xff] }
   0x7   :  { %181 = vst [vmem:[%s505_s1 + $0x44] sm:$0xf] %v179_v1  ;;  %v239_v13 = vld [vmem:[%s504_s0 + $0xd] ss:$0 sm:$0xff]  ;;  %v244_v14 = vld [vmem:[%s504_s0 + $0xe] ss:$0 sm:$0xff] }
   0x8   :  { %182 = vst [vmem:[%s505_s1 + $0x84] sm:$0xf] %v179_v1  ;;  %v249_v15 = vld [vmem:[%s504_s0 + $0xf] ss:$0 sm:$0xff] }
   0x9   :  { %183 = vst [vmem:[%s505_s1 + $0xc4] sm:$0xf] %v179_v1 }
   0xa   :  { %185 = vst [vmem:[%s505_s1 + $0x8] sm:$0xf] %v184_v2 }
   0xb   :  { %186 = vst [vmem:[%s505_s1 + $0x48] sm:$0xf] %v184_v2 }
   0xc   :  { %187 = vst [vmem:[%s505_s1 + $0x88] sm:$0xf] %v184_v2 }
   0xd   :  { %188 = vst [vmem:[%s505_s1 + $0xc8] sm:$0xf] %v184_v2 }
   0xe   :  { %190 = vst [vmem:[%s505_s1 + $0xc] sm:$0xf] %v189_v3 }
   0xf   :  { %191 = vst [vmem:[%s505_s1 + $0x4c] sm:$0xf] %v189_v3 }
  0x10   :  { %192 = vst [vmem:[%s505_s1 + $0x8c] sm:$0xf] %v189_v3 }
  0x11   :  { %193 = vst [vmem:[%s505_s1 + $0xcc] sm:$0xf] %v189_v3 }
  0x12   :  { %195 = vst [vmem:[%s505_s1 + $0x10] sm:$0xf] %v194_v4 }
  0x13   :  { %196 = vst [vmem:[%s505_s1 + $0x50] sm:$0xf] %v194_v4 }
  0x14   :  { %197 = vst [vmem:[%s505_s1 + $0x90] sm:$0xf] %v194_v4 }
  0x15   :  { %198 = vst [vmem:[%s505_s1 + $0xd0] sm:$0xf] %v194_v4 }
  0x16   :  { %200 = vst [vmem:[%s505_s1 + $0x14] sm:$0xf] %v199_v5 }
  0x17   :  { %201 = vst [vmem:[%s505_s1 + $0x54] sm:$0xf] %v199_v5 }
  0x18   :  { %202 = vst [vmem:[%s505_s1 + $0x94] sm:$0xf] %v199_v5 }
  0x19   :  { %203 = vst [vmem:[%s505_s1 + $0xd4] sm:$0xf] %v199_v5 }
  0x1a   :  { %205 = vst [vmem:[%s505_s1 + $0x18] sm:$0xf] %v204_v6 }
  0x1b   :  { %206 = vst [vmem:[%s505_s1 + $0x58] sm:$0xf] %v204_v6 }
  0x1c   :  { %207 = vst [vmem:[%s505_s1 + $0x98] sm:$0xf] %v204_v6 }
  0x1d   :  { %208 = vst [vmem:[%s505_s1 + $0xd8] sm:$0xf] %v204_v6 }
  0x1e   :  { %210 = vst [vmem:[%s505_s1 + $0x1c] sm:$0xf] %v209_v7 }
  0x1f   :  { %211 = vst [vmem:[%s505_s1 + $0x5c] sm:$0xf] %v209_v7 }
  0x20   :  { %212 = vst [vmem:[%s505_s1 + $0x9c] sm:$0xf] %v209_v7 }
  0x21   :  { %213 = vst [vmem:[%s505_s1 + $0xdc] sm:$0xf] %v209_v7 }
  0x22   :  { %215 = vst [vmem:[%s505_s1 + $0x20] sm:$0xf] %v214_v8 }
  0x23   :  { %216 = vst [vmem:[%s505_s1 + $0x60] sm:$0xf] %v214_v8 }
  0x24   :  { %217 = vst [vmem:[%s505_s1 + $0xa0] sm:$0xf] %v214_v8 }
  0x25   :  { %218 = vst [vmem:[%s505_s1 + $0xe0] sm:$0xf] %v214_v8 }
  0x26   :  { %220 = vst [vmem:[%s505_s1 + $0x24] sm:$0xf] %v219_v9 }
  0x27   :  { %221 = vst [vmem:[%s505_s1 + $0x64] sm:$0xf] %v219_v9 }
  0x28   :  { %222 = vst [vmem:[%s505_s1 + $0xa4] sm:$0xf] %v219_v9 }
  0x29   :  { %223 = vst [vmem:[%s505_s1 + $0xe4] sm:$0xf] %v219_v9 }
  0x2a   :  { %225 = vst [vmem:[%s505_s1 + $0x28] sm:$0xf] %v224_v10 }
  0x2b   :  { %226 = vst [vmem:[%s505_s1 + $0x68] sm:$0xf] %v224_v10 }
  0x2c   :  { %227 = vst [vmem:[%s505_s1 + $0xa8] sm:$0xf] %v224_v10 }
  0x2d   :  { %228 = vst [vmem:[%s505_s1 + $0xe8] sm:$0xf] %v224_v10 }
  0x2e   :  { %230 = vst [vmem:[%s505_s1 + $0x2c] sm:$0xf] %v229_v11 }
  0x2f   :  { %231 = vst [vmem:[%s505_s1 + $0x6c] sm:$0xf] %v229_v11 }
  0x30   :  { %232 = vst [vmem:[%s505_s1 + $0xac] sm:$0xf] %v229_v11 }
  0x31   :  { %233 = vst [vmem:[%s505_s1 + $0xec] sm:$0xf] %v229_v11 }
  0x32   :  { %235 = vst [vmem:[%s505_s1 + $0x30] sm:$0xf] %v234_v12 }
  0x33   :  { %236 = vst [vmem:[%s505_s1 + $0x70] sm:$0xf] %v234_v12 }
  0x34   :  { %237 = vst [vmem:[%s505_s1 + $0xb0] sm:$0xf] %v234_v12 }
  0x35   :  { %238 = vst [vmem:[%s505_s1 + $0xf0] sm:$0xf] %v234_v12 }
  0x36   :  { %240 = vst [vmem:[%s505_s1 + $0x34] sm:$0xf] %v239_v13 }
  0x37   :  { %241 = vst [vmem:[%s505_s1 + $0x74] sm:$0xf] %v239_v13 }
  0x38   :  { %242 = vst [vmem:[%s505_s1 + $0xb4] sm:$0xf] %v239_v13 }
  0x39   :  { %243 = vst [vmem:[%s505_s1 + $0xf4] sm:$0xf] %v239_v13 }
  0x3a   :  { %245 = vst [vmem:[%s505_s1 + $0x38] sm:$0xf] %v244_v14 }
  0x3b   :  { %246 = vst [vmem:[%s505_s1 + $0x78] sm:$0xf] %v244_v14 }
  0x3c   :  { %247 = vst [vmem:[%s505_s1 + $0xb8] sm:$0xf] %v244_v14 }
  0x3d   :  { %248 = vst [vmem:[%s505_s1 + $0xf8] sm:$0xf] %v244_v14 }
  0x3e   :  { %250 = vst [vmem:[%s505_s1 + $0x3c] sm:$0xf] %v249_v15 }
  0x3f   :  { %251 = vst [vmem:[%s505_s1 + $0x7c] sm:$0xf] %v249_v15 }
  0x40   :  { %252 = vst [vmem:[%s505_s1 + $0xbc] sm:$0xf] %v249_v15 }
  0x41   :  { %253 = vst [vmem:[%s505_s1 + $0xfc] sm:$0xf] %v249_v15 }

// kernel: tile.59
= control target key start
LH: loop header
LB: loop body
LE: loop exit
PB: predicated region body
PF: predicated region fallthrough
CT: control target
= control target key end

     0   :  { %vm260_vm0 = vcmask 1047556   ;;  %s682_s15 = smov 48   ;;  %s683_s9 = smov 32   ;;  %vm262_vm1 = vcmask 130048   ;;  %vm335_vm2 = vcmask 523648   ;;  %vm422_vm3 = vcmask 392448   ;;  %s1071_s0 = inlined_call_operand.vmem [shape: f32[4,16,4,16], index: 0, kind: input, shape index: {}]   ;;  %s1072_s1 = inlined_call_operand.vmem [shape: f32[64,64], index: 1, kind: output, shape index: {}]  }
   0x1   :  { %v644_v0 = vld [vmem:[%s1071_s0 + $0x1c] sm:$0xf]  ;;  %v645_v1 = vld [vmem:[%s1071_s0 + $0x18] sm:$0xf]  ;;  %v646_v2 = vld [vmem:[%s1071_s0 + $0x14] sm:$0xf] }
   0x2   :  { %231 = vst [vmem:[#allocation0 + $0x38] sm:$0xf] %v644_v0  ;;  %v647_v3 = vld [vmem:[%s1071_s0 + $0x10] sm:$0xf]  ;;  %v648_v4 = vld [vmem:[%s1071_s0 + $0xc] sm:$0xf] }
   0x3   :  { %235 = vst [vmem:[#allocation0 + $0x30] sm:$0xf] %v645_v1  ;;  %v649_v5 = vld [vmem:[%s1071_s0 + $0x8] sm:$0xf]  ;;  %v650_v6 = vld [vmem:[%s1071_s0 + $0x4] sm:$0xf] }
   0x4   :  { %239 = vst [vmem:[#allocation0 + $0x28] sm:$0xf] %v646_v2  ;;  %v256_v7 = vld [vmem:[%s1071_s0] sm:$0xf]  ;;  %v636_v8 = vld [vmem:[%s1071_s0 + $0x3c] sm:$0xf] }
   0x5   :  { %243 = vst [vmem:[#allocation0 + $0x20] sm:$0xf] %v647_v3  ;;  %v637_v9 = vld [vmem:[%s1071_s0 + $0x38] sm:$0xf]  ;;  %v638_v10 = vld [vmem:[%s1071_s0 + $0x34] sm:$0xf] }
   0x6   :  { %247 = vst [vmem:[#allocation0 + $0x18] sm:$0xf] %v648_v4  ;;  %v639_v11 = vld [vmem:[%s1071_s0 + $0x30] sm:$0xf]  ;;  %v640_v12 = vld [vmem:[%s1071_s0 + $0x2c] sm:$0xf] }
   0x7   :  { %251 = vst [vmem:[#allocation0 + $0x10] sm:$0xf] %v649_v5  ;;  %v641_v13 = vld [vmem:[%s1071_s0 + $0x28] sm:$0xf]  ;;  %v642_v14 = vld [vmem:[%s1071_s0 + $0x24] sm:$0xf] }
   0x8   :  { %255 = vst [vmem:[#allocation0 + $0x8] sm:$0xf] %v650_v6  ;;  %v643_v15 = vld [vmem:[%s1071_s0 + $0x20] sm:$0xf]  ;;  %v612_v17 = vld [vmem:[%s1071_s0 + $0x9c] sm:$0xf] }
   0x9   :  { %257 = vst [vmem:[#allocation0] sm:$0xf] %v256_v7  ;;  %v613_v18 = vld [vmem:[%s1071_s0 + $0x98] sm:$0xf]  ;;  %v614_v21 = vld [vmem:[%s1071_s0 + $0x94] sm:$0xf] }
   0xa   :  { %199 = vst [vmem:[#allocation0 + $0x78] sm:$0xf] %v636_v8  ;;  %v615_v22 = vld [vmem:[%s1071_s0 + $0x90] sm:$0xf]  ;;  %v616_v23 = vld [vmem:[%s1071_s0 + $0x8c] sm:$0xf] }
   0xb   :  { %203 = vst [vmem:[#allocation0 + $0x70] sm:$0xf] %v637_v9  ;;  %v617_v24 = vld [vmem:[%s1071_s0 + $0x88] sm:$0xf]  ;;  %v618_v25 = vld [vmem:[%s1071_s0 + $0x84] sm:$0xf] }
   0xc   :  { %207 = vst [vmem:[#allocation0 + $0x68] sm:$0xf] %v638_v10  ;;  %v330_v16 = vld [vmem:[#allocation0 + $0x3] ss:$8 sm:$0xf0]   ;;  %vm509_vm4 = vcmask 261248  }
   0xd   :  { %211 = vst [vmem:[#allocation0 + $0x60] sm:$0xf] %v639_v11  ;;  %v619_v26 = vld [vmem:[%s1071_s0 + $0x80] sm:$0xf]  ;;  %v604_v28 = vld [vmem:[%s1071_s0 + $0xbc] sm:$0xf] }
   0xe   :  { %215 = vst [vmem:[#allocation0 + $0x58] sm:$0xf] %v640_v12  ;;  %v605_v29 = vld [vmem:[%s1071_s0 + $0xb8] sm:$0xf]  ;;  %v606_v32 = vld [vmem:[%s1071_s0 + $0xb4] sm:$0xf] }
   0xf   :  { %219 = vst [vmem:[#allocation0 + $0x50] sm:$0xf] %v641_v13  ;;  %v607_v33 = vld [vmem:[%s1071_s0 + $0xb0] sm:$0xf]  ;;  %v608_v34 = vld [vmem:[%s1071_s0 + $0xac] sm:$0xf] }
  0x10   :  { %v328_v19 = vld [vmem:[#allocation0 + $0x3] ss:$8 sm:$0xf]   ;;  %223 = vst [vmem:[#allocation0 + $0x48] sm:$0xf] %v642_v14 }
  0x11   :  { %v332_v20 = vsel %vm260_vm0, %v330_v16, %v328_v19  ;;  %227 = vst [vmem:[#allocation0 + $0x40] sm:$0xf] %v643_v15  ;;  %v609_v35 = vld [vmem:[%s1071_s0 + $0xa8] sm:$0xf]  ;;  %v610_v36 = vld [vmem:[%s1071_s0 + $0xa4] sm:$0xf] }
  0x12   :  { %333 = vrot.lane.b32.xlu0 %v332_v20, %s682_s15  ;;  %103 = vst [vmem:[#allocation0 + $0x138] sm:$0xf] %v612_v17  ;;  %v611_v37 = vld [vmem:[%s1071_s0 + $0xa0] sm:$0xf]  ;;  %v620_v39 = vld [vmem:[%s1071_s0 + $0x7c] sm:$0xf] }
  0x13   :  { %107 = vst [vmem:[#allocation0 + $0x130] sm:$0xf] %v613_v18  ;;  %v621_v40 = vld [vmem:[%s1071_s0 + $0x78] sm:$0xf]  ;;  %v622_v43 = vld [vmem:[%s1071_s0 + $0x74] sm:$0xf] }
  0x14   :  { %111 = vst [vmem:[#allocation0 + $0x128] sm:$0xf] %v614_v21  ;;  %v351_v27 = vld [vmem:[#allocation0 + $0x43] ss:$8 sm:$0xf0]  }
  0x15   :  { %115 = vst [vmem:[#allocation0 + $0x120] sm:$0xf] %v615_v22  ;;  %v623_v44 = vld [vmem:[%s1071_s0 + $0x70] sm:$0xf]  ;;  %v624_v45 = vld [vmem:[%s1071_s0 + $0x6c] sm:$0xf] }
  0x16   :  { %119 = vst [vmem:[#allocation0 + $0x118] sm:$0xf] %v616_v23  ;;  %v625_v46 = vld [vmem:[%s1071_s0 + $0x68] sm:$0xf]  ;;  %v626_v47 = vld [vmem:[%s1071_s0 + $0x64] sm:$0xf] }
  0x17   :  { %123 = vst [vmem:[#allocation0 + $0x110] sm:$0xf] %v617_v24  ;;  %v627_v48 = vld [vmem:[%s1071_s0 + $0x60] sm:$0xf]  ;;  %v588_v50 = vld [vmem:[%s1071_s0 + $0xfc] sm:$0xf] }
  0x18   :  { %v349_v30 = vld [vmem:[#allocation0 + $0x43] ss:$8 sm:$0xf]   ;;  %127 = vst [vmem:[#allocation0 + $0x108] sm:$0xf] %v618_v25 }
  0x19   :  { %v353_v31 = vsel %vm260_vm0, %v351_v27, %v349_v30  ;;  %131 = vst [vmem:[#allocation0 + $0x100] sm:$0xf] %v619_v26  ;;  %v589_v51 = vld [vmem:[%s1071_s0 + $0xf8] sm:$0xf]  ;;  %v590_v54 = vld [vmem:[%s1071_s0 + $0xf4] sm:$0xf] }
  0x1a   :  { %354 = vrot.lane.b32.xlu1 %v353_v31, %s682_s15  ;;  %71 = vst [vmem:[#allocation0 + $0x178] sm:$0xf] %v604_v28  ;;  %v591_v55 = vld [vmem:[%s1071_s0 + $0xf0] sm:$0xf]  ;;  %v592_v56 = vld [vmem:[%s1071_s0 + $0xec] sm:$0xf] }
  0x1b   :  { %75 = vst [vmem:[#allocation0 + $0x170] sm:$0xf] %v605_v29  ;;  %v593_v57 = vld [vmem:[%s1071_s0 + $0xe8] sm:$0xf]  ;;  %v594_v58 = vld [vmem:[%s1071_s0 + $0xe4] sm:$0xf] }
  0x1c   :  { %79 = vst [vmem:[#allocation0 + $0x168] sm:$0xf] %v606_v32  ;;  %v340_v38 = vld [vmem:[#allocation0 + $0x103] ss:$8 sm:$0xf0]  }
  0x1d   :  { %83 = vst [vmem:[#allocation0 + $0x160] sm:$0xf] %v607_v33  ;;  %v595_v59 = vld [vmem:[%s1071_s0 + $0xe0] sm:$0xf]  ;;  %v628_v61 = vld [vmem:[%s1071_s0 + $0x5c] sm:$0xf] }
  0x1e   :  { %87 = vst [vmem:[#allocation0 + $0x158] sm:$0xf] %v608_v34  ;;  %v629_v62 = vld [vmem:[%s1071_s0 + $0x58] sm:$0xf]  ;;  %v630_v1 = vld [vmem:[%s1071_s0 + $0x54] sm:$0xf] }
  0x1f   :  { %91 = vst [vmem:[#allocation0 + $0x150] sm:$0xf] %v609_v35  ;;  %v631_v2 = vld [vmem:[%s1071_s0 + $0x50] sm:$0xf]  ;;  %v632_v3 = vld [vmem:[%s1071_s0 + $0x4c] sm:$0xf] }
  0x20   :  { %v338_v41 = vld [vmem:[#allocation0 + $0x103] ss:$8 sm:$0xf]   ;;  %95 = vst [vmem:[#allocation0 + $0x148] sm:$0xf] %v610_v36 }
  0x21   :  { %v342_v42 = vsel %vm260_vm0, %v340_v38, %v338_v41  ;;  %99 = vst [vmem:[#allocation0 + $0x140] sm:$0xf] %v611_v37  ;;  %v633_v4 = vld [vmem:[%s1071_s0 + $0x48] sm:$0xf]  ;;  %v634_v7 = vld [vmem:[%s1071_s0 + $0x44] sm:$0xf] }
  0x22   :  { %343 = vrot.lane.b32.xlu0 %v342_v42, %s682_s15  ;;  %135 = vst [vmem:[#allocation0 + $0xf8] sm:$0xf] %v620_v39  ;;  %v425_v5 = vld [vmem:[#allocation0 + $0x102] ss:$8 sm:$0xf]  }
  0x23   :  { %139 = vst [vmem:[#allocation0 + $0xf0] sm:$0xf] %v621_v40  ;;  %v427_v6 = vld [vmem:[#allocation0 + $0x102] ss:$8 sm:$0xf0]  }
  0x24   :  { %143 = vst [vmem:[#allocation0 + $0xe8] sm:$0xf] %v622_v43  ;;  %v362_v49 = vld [vmem:[#allocation0 + $0x143] ss:$8 sm:$0xf0]   ;;  %v429_v10 = vsel %vm260_vm0, %v427_v6, %v425_v5 }
  0x25   :  { %147 = vst [vmem:[#allocation0 + $0xe0] sm:$0xf] %v623_v44  ;;  %v635_v8 = vld [vmem:[%s1071_s0 + $0x40] sm:$0xf]  ;;  %v596_v11 = vld [vmem:[%s1071_s0 + $0xdc] sm:$0xf] }
  0x26   :  { %151 = vst [vmem:[#allocation0 + $0xd8] sm:$0xf] %v624_v45  ;;  %v597_v12 = vld [vmem:[%s1071_s0 + $0xd8] sm:$0xf]  ;;  %v598_v17 = vld [vmem:[%s1071_s0 + $0xd4] sm:$0xf] }
  0x27   :  { %155 = vst [vmem:[#allocation0 + $0xd0] sm:$0xf] %v625_v46  ;;  %v436_v15 = vld [vmem:[#allocation0 + $0x42] ss:$8 sm:$0xf]  }
  0x28   :  { %v360_v52 = vld [vmem:[#allocation0 + $0x143] ss:$8 sm:$0xf]   ;;  %159 = vst [vmem:[#allocation0 + $0xc8] sm:$0xf] %v626_v47 }
  0x29   :  { %v364_v53 = vsel %vm260_vm0, %v362_v49, %v360_v52  ;;  %163 = vst [vmem:[#allocation0 + $0xc0] sm:$0xf] %v627_v48  ;;  %v438_v16 = vld [vmem:[#allocation0 + $0x42] ss:$8 sm:$0xf0]  }
  0x2a   :  { %365 = vrot.lane.b32.xlu1 %v364_v53, %s682_s15  ;;  %7 = vst [vmem:[#allocation0 + $0x1f8] sm:$0xf] %v588_v50  ;;  %v599_v18 = vld [vmem:[%s1071_s0 + $0xd0] sm:$0xf]  ;;  %v600_v19 = vld [vmem:[%s1071_s0 + $0xcc] sm:$0xf]  ;;  %v440_v23 = vsel %vm260_vm0, %v438_v16, %v436_v15 }
  0x2b   :  { %11 = vst [vmem:[#allocation0 + $0x1f0] sm:$0xf] %v589_v51  ;;  %v601_v20 = vld [vmem:[%s1071_s0 + $0xc8] sm:$0xf]  ;;  %v602_v24 = vld [vmem:[%s1071_s0 + $0xc4] sm:$0xf] }
  0x2c   :  { %15 = vst [vmem:[#allocation0 + $0x1e8] sm:$0xf] %v590_v54  ;;  %v395_v60 = vld [vmem:[#allocation0 + $0xc3] ss:$8 sm:$0xf0]  }
  0x2d   :  { %19 = vst [vmem:[#allocation0 + $0x1e0] sm:$0xf] %v591_v55  ;;  %v603_v25 = vld [vmem:[%s1071_s0 + $0xc0] sm:$0xf]  ;;  %s684_s0 = smov 16  }
  0x2e   :  { %23 = vst [vmem:[#allocation0 + $0x1d8] sm:$0xf] %v592_v56  ;;  %v415_v39 = vld [vmem:[#allocation0 + $0x2] ss:$8 sm:$0xf]  }
  0x2f   :  { %27 = vst [vmem:[#allocation0 + $0x1d0] sm:$0xf] %v593_v57  ;;  %v417_v40 = vld [vmem:[#allocation0 + $0x2] ss:$8 sm:$0xf0]  }
  0x30   :  { %v393_v63 = vld [vmem:[#allocation0 + $0xc3] ss:$8 sm:$0xf]   ;;  %31 = vst [vmem:[#allocation0 + $0x1c8] sm:$0xf] %v594_v58  ;;  %v419_v46 = vsel %vm260_vm0, %v417_v40, %v415_v39 }
  0x31   :  { %v397_v0 = vsel %vm260_vm0, %v395_v60, %v393_v63  ;;  %35 = vst [vmem:[#allocation0 + $0x1c0] sm:$0xf] %v595_v59  ;;  %v523_v41 = vld [vmem:[#allocation0 + $0x41] ss:$8 sm:$0xf]  }
  0x32   :  { %398 = vrot.lane.b32.xlu0 %v397_v0, %s682_s15  ;;  %167 = vst [vmem:[#allocation0 + $0xb8] sm:$0xf] %v628_v61  ;;  %v525_v42 = vld [vmem:[#allocation0 + $0x41] ss:$8 sm:$0xf0]  }
  0x33   :  { %171 = vst [vmem:[#allocation0 + $0xb0] sm:$0xf] %v629_v62  ;;  %v502_v43 = vld [vmem:[#allocation0 + $0x1] ss:$8 sm:$0xf]   ;;  %v527_v45 = vsel %vm260_vm0, %v525_v42, %v523_v41 }
  0x34   :  { %175 = vst [vmem:[#allocation0 + $0xa8] sm:$0xf] %v630_v1  ;;  %v406_v9 = vld [vmem:[#allocation0 + $0x1c3] ss:$8 sm:$0xf0]  }
  0x35   :  { %179 = vst [vmem:[#allocation0 + $0xa0] sm:$0xf] %v631_v2  ;;  %v493_v31 = vld [vmem:[#allocation0 + $0x1c2] ss:$8 sm:$0xf0]  }
  0x36   :  { %183 = vst [vmem:[#allocation0 + $0x98] sm:$0xf] %v632_v3  ;;  %v504_v44 = vld [vmem:[#allocation0 + $0x1] ss:$8 sm:$0xf0]  }
  0x37   :  { %187 = vst [vmem:[#allocation0 + $0x90] sm:$0xf] %v633_v4  ;;  %v506_v47 = vsel %vm260_vm0, %v504_v44, %v502_v43  ;;  %v447_v48 = vld [vmem:[#allocation0 + $0x142] ss:$8 sm:$0xf]  }
  0x38   :  { %v404_v13 = vld [vmem:[#allocation0 + $0x1c3] ss:$8 sm:$0xf]   ;;  %191 = vst [vmem:[#allocation0 + $0x88] sm:$0xf] %v634_v7 }
  0x39   :  { %v408_v14 = vsel %vm260_vm0, %v406_v9, %v404_v13  ;;  %195 = vst [vmem:[#allocation0 + $0x80] sm:$0xf] %v635_v8  ;;  %v491_v30 = vld [vmem:[#allocation0 + $0x1c2] ss:$8 sm:$0xf]  }
  0x3a   :  { %409 = vrot.lane.b32.xlu1 %v408_v14, %s682_s15  ;;  %430 = vrot.lane.b32.xlu0 %v429_v10, %s683_s9  ;;  %39 = vst [vmem:[#allocation0 + $0x1b8] sm:$0xf] %v596_v11  ;;  %v495_v34 = vsel %vm260_vm0, %v493_v31, %v491_v30  ;;  %v449_v49 = vld [vmem:[#allocation0 + $0x142] ss:$8 sm:$0xf0]  }
  0x3b   :  { %43 = vst [vmem:[#allocation0 + $0x1b0] sm:$0xf] %v597_v12  ;;  %v534_v52 = vld [vmem:[#allocation0 + $0x141] ss:$8 sm:$0xf]   ;;  %v451_v55 = vsel %vm260_vm0, %v449_v49, %v447_v48 }
  0x3c   :  { %v373_v21 = vld [vmem:[#allocation0 + $0x83] ss:$8 sm:$0xf0]   ;;  %47 = vst [vmem:[#allocation0 + $0x1a8] sm:$0xf] %v598_v17 }
  0x3d   :  { %v460_v22 = vld [vmem:[#allocation0 + $0x82] ss:$8 sm:$0xf0]   ;;  %51 = vst [vmem:[#allocation0 + $0x1a0] sm:$0xf] %v599_v18 }
  0x3e   :  { %55 = vst [vmem:[#allocation0 + $0x198] sm:$0xf] %v600_v19  ;;  %v536_v53 = vld [vmem:[#allocation0 + $0x141] ss:$8 sm:$0xf0]  }
  0x3f   :  { %59 = vst [vmem:[#allocation0 + $0x190] sm:$0xf] %v601_v20  ;;  %v538_v56 = vsel %vm260_vm0, %v536_v53, %v534_v52  ;;  %v480_v57 = vld [vmem:[#allocation0 + $0xc2] ss:$8 sm:$0xf]  }
  0x40   :  { %v371_v26 = vld [vmem:[#allocation0 + $0x83] ss:$8 sm:$0xf]   ;;  %v458_v27 = vld [vmem:[#allocation0 + $0x82] ss:$8 sm:$0xf]  }
  0x41   :  { %v375_v28 = vsel %vm260_vm0, %v373_v21, %v371_v26  ;;  %v462_v29 = vsel %vm260_vm0, %v460_v22, %v458_v27  ;;  %63 = vst [vmem:[#allocation0 + $0x188] sm:$0xf] %v602_v24  ;;  %v482_v58 = vld [vmem:[#allocation0 + $0xc2] ss:$8 sm:$0xf0]  }
  0x42   :  { %376 = vrot.lane.b32.xlu2 %v375_v28, %s682_s15  ;;  %441 = vrot.lane.b32.xlu1 %v440_v23, %s683_s9  ;;  %67 = vst [vmem:[#allocation0 + $0x180] sm:$0xf] %v603_v25  ;;  %v567_v59 = vld [vmem:[#allocation0 + $0xc1] ss:$8 sm:$0xf]   ;;  %v484_v61 = vsel %vm260_vm0, %v482_v58, %v480_v57 }
  0x43   :  { %463 = vrot.lane.b32.xlu0 %v462_v29, %s683_s9  ;;  %v569_v60 = vld [vmem:[#allocation0 + $0xc1] ss:$8 sm:$0xf0]   ;;  %v258_v63 = vld [vmem:[#allocation0] ss:$8 sm:$0xf]  }
  0x44   :  { %v384_v32 = vld [vmem:[#allocation0 + $0x183] ss:$8 sm:$0xf0]   ;;  %v471_v33 = vld [vmem:[#allocation0 + $0x182] ss:$8 sm:$0xf0]   ;;  %v571_v62 = vsel %vm260_vm0, %v569_v60, %v567_v59 }
  0x45   :  { %v558_v51 = vld [vmem:[#allocation0 + $0x181] ss:$8 sm:$0xf0]   ;;  %v259_v0 = vld [vmem:[#allocation0] ss:$8 sm:$0xf0]  }
  0x46   :  { %v512_v1 = vld [vmem:[#allocation0 + $0x101] ss:$8 sm:$0xf]   ;;  %v261_v2 = vsel %vm260_vm0, %v259_v0, %v258_v63  ;;  %v265_v5 = vld [vmem:[#allocation0 + $0x40] ss:$8 sm:$0xf]  }
  0x47   :  { %v514_v3 = vld [vmem:[#allocation0 + $0x101] ss:$8 sm:$0xf0]   ;;  %263 = vst.msk [vmem:[%s1072_s1] sm:$0xff] %vm262_vm1, %v261_v2  }
  0x48   :  { %v516_v4 = vsel %vm260_vm0, %v514_v3, %v512_v1  ;;  %v267_v6 = vld [vmem:[#allocation0 + $0x40] ss:$8 sm:$0xf0]   ;;  %v545_v7 = vld [vmem:[#allocation0 + $0x81] ss:$8 sm:$0xf]  }
  0x49   :  { %v382_v35 = vld [vmem:[#allocation0 + $0x183] ss:$8 sm:$0xf]   ;;  %v469_v36 = vld [vmem:[#allocation0 + $0x182] ss:$8 sm:$0xf]   ;;  %v269_v8 = vsel %vm260_vm0, %v267_v6, %v265_v5 }
  0x4a   :  { %v386_v37 = vsel %vm260_vm0, %v384_v32, %v382_v35  ;;  %v473_v38 = vsel %vm260_vm0, %v471_v33, %v469_v36  ;;  %v556_v50 = vld [vmem:[#allocation0 + $0x181] ss:$8 sm:$0xf]   ;;  %651 = vst.msk [vmem:[%s1072_s1 + $0x8] sm:$0xff] %vm262_vm1, %v269_v8  }
  0x4b   :  { %496 = vrot.lane.b32.xlu0 %v495_v34, %s683_s9  ;;  %387 = vrot.lane.b32.xlu2 %v386_v37, %s682_s15  ;;  %v560_v54 = vsel %vm260_vm0, %v558_v51, %v556_v50  ;;  %v547_v9 = vld [vmem:[#allocation0 + $0x81] ss:$8 sm:$0xf0]   ;;  %v274_v14 = vld [vmem:[#allocation0 + $0x80] ss:$8 sm:$0xf]  }
  0x4c   :  { %474 = vrot.lane.b32.xlu1 %v473_v38, %s683_s9  ;;  %v549_v10 = vsel %vm260_vm0, %v547_v9, %v545_v7  ;;  %v578_v11 = vld [vmem:[#allocation0 + $0x1c1] ss:$8 sm:$0xf]   ;;  %v276_v15 = vld [vmem:[#allocation0 + $0x80] ss:$8 sm:$0xf0]  }
  0x4d   :  { %v580_v12 = vld [vmem:[#allocation0 + $0x1c1] ss:$8 sm:$0xf0]   ;;  %v278_v16 = vsel %vm260_vm0, %v276_v15, %v274_v14  ;;  %v292_v17 = vld [vmem:[#allocation0 + $0x100] ss:$8 sm:$0xf]  }
  0x4e   :  { %v582_v13 = vsel %vm260_vm0, %v580_v12, %v578_v11  ;;  %v294_v18 = vld [vmem:[#allocation0 + $0x100] ss:$8 sm:$0xf0]   ;;  %652 = vst.msk [vmem:[%s1072_s1 + $0x10] sm:$0xff] %vm262_vm1, %v278_v16  }
  0x4f   :  { %v296_v19 = vsel %vm260_vm0, %v294_v18, %v292_v17  ;;  %v301_v20 = vld [vmem:[#allocation0 + $0x140] ss:$8 sm:$0xf]  }
  0x50   :  { %654 = vst.msk [vmem:[%s1072_s1 + $0x20] sm:$0xff] %vm262_vm1, %v296_v19   ;;  %v303_v21 = vld [vmem:[#allocation0 + $0x140] ss:$8 sm:$0xf0]  }
  0x51   :  { %v305_v22 = vsel %vm260_vm0, %v303_v21, %v301_v20  ;;  %v310_v23 = vld [vmem:[#allocation0 + $0x180] ss:$8 sm:$0xf]  }
  0x52   :  { %655 = vst.msk [vmem:[%s1072_s1 + $0x28] sm:$0xff] %vm262_vm1, %v305_v22   ;;  %v312_v25 = vld [vmem:[#allocation0 + $0x180] ss:$8 sm:$0xf0]  }
  0x53   :  { %528 = vrot.lane.b32.xlu0 %v527_v45, %s684_s0  ;;  %420 = vrot.lane.b32.xlu2 %v419_v46, %s683_s9  ;;  %v314_v26 = vsel %vm260_vm0, %v312_v25, %v310_v23  ;;  %v283_v27 = vld [vmem:[#allocation0 + $0xc0] ss:$8 sm:$0xf]  }
  0x54   :  { %507 = vrot.lane.b32.xlu1 %v506_v47, %s684_s0  ;;  %656 = vst.msk [vmem:[%s1072_s1 + $0x30] sm:$0xff] %vm262_vm1, %v314_v26   ;;  %v285_v28 = vld [vmem:[#allocation0 + $0xc0] ss:$8 sm:$0xf0]  }
  0x55   :  { %v287_v29 = vsel %vm260_vm0, %v285_v28, %v283_v27  ;;  %v319_v31 = vld [vmem:[#allocation0 + $0x1c0] ss:$8 sm:$0xf]  }
  0x56   :  { %653 = vst.msk [vmem:[%s1072_s1 + $0x18] sm:$0xff] %vm262_vm1, %v287_v29   ;;  %v321_v32 = vld [vmem:[#allocation0 + $0x1c0] ss:$8 sm:$0xf0]  }
  0x57   :  { %v323_v33 = vsel %vm260_vm0, %v321_v32, %v319_v31 }
  0x58   :  { %657 = vst.msk [vmem:[%s1072_s1 + $0x38] sm:$0xff] %vm262_vm1, %v323_v33  }
  0x5b   :  { %561 = vrot.lane.b32.xlu0 %v560_v54, %s684_s0  ;;  %452 = vrot.lane.b32.xlu2 %v451_v55, %s683_s9 }
  0x5c   :  { %539 = vrot.lane.b32.xlu1 %v538_v56, %s684_s0 }
  0x63   :  { %485 = vrot.lane.b32.xlu2 %v484_v61, %s683_s9 }
  0x64   :  { %572 = vrot.lane.b32.xlu1 %v571_v62, %s684_s0 }
  0x6b   :  { %517 = vrot.lane.b32.xlu2 %v516_v4, %s684_s0 }
  0x73   :  { %550 = vrot.lane.b32.xlu2 %v549_v10, %s684_s0 }
  0x7b   :  { %583 = vrot.lane.b32.xlu2 %v582_v13, %s684_s0 }
  0x84   :  { %v334_v24 = vpop.permute.xlu0 %333  }
  0x85   :  { %336 = vst.msk [vmem:[%s1072_s1] sm:$0xff] %vm335_vm2, %v334_v24  }
  0x8c   :  { %v355_v30 = vpop.permute.xlu1 %354  }
  0x8d   :  { %659 = vst.msk [vmem:[%s1072_s1 + $0x8] sm:$0xff] %vm335_vm2, %v355_v30  }
  0x94   :  { %v344_v34 = vpop.permute.xlu0 %343  }
  0x95   :  { %658 = vst.msk [vmem:[%s1072_s1 + $0x20] sm:$0xff] %vm335_vm2, %v344_v34  }
  0x9c   :  { %v377_v35 = vpop.permute.xlu2 %376   ;;  %v366_v36 = vpop.permute.xlu1 %365  }
  0x9d   :  { %661 = vst.msk [vmem:[%s1072_s1 + $0x10] sm:$0xff] %vm335_vm2, %v377_v35  }
  0x9e   :  { %660 = vst.msk [vmem:[%s1072_s1 + $0x28] sm:$0xff] %vm335_vm2, %v366_v36  }
  0xa4   :  { %v399_v37 = vpop.permute.xlu0 %398  }
  0xa5   :  { %663 = vst.msk [vmem:[%s1072_s1 + $0x18] sm:$0xff] %vm335_vm2, %v399_v37   ;;  %v388_v38 = vpop.permute.xlu2 %387  }
  0xa6   :  { %662 = vst.msk [vmem:[%s1072_s1 + $0x30] sm:$0xff] %vm335_vm2, %v388_v38  }
  0xac   :  { %v410_v39 = vpop.permute.xlu1 %409   ;;  %v431_v40 = vpop.permute.xlu0 %430  }
  0xad   :  { %664 = vst.msk [vmem:[%s1072_s1 + $0x38] sm:$0xff] %vm335_vm2, %v410_v39   ;;  %v421_v41 = vpop.permute.xlu2 %420  }
  0xae   :  { %665 = vst.msk [vmem:[%s1072_s1 + $0x20] sm:$0xff] %vm422_vm3, %v431_v40  }
  0xaf   :  { %423 = vst.msk [vmem:[%s1072_s1] sm:$0xff] %vm422_vm3, %v421_v41  }
  0xb4   :  { %v442_v42 = vpop.permute.xlu1 %441  }
  0xb5   :  { %666 = vst.msk [vmem:[%s1072_s1 + $0x8] sm:$0xff] %vm422_vm3, %v442_v42   ;;  %v464_v43 = vpop.permute.xlu0 %463   ;;  %v453_v44 = vpop.permute.xlu2 %452  }
  0xb6   :  { %668 = vst.msk [vmem:[%s1072_s1 + $0x10] sm:$0xff] %vm422_vm3, %v464_v43  }
  0xb7   :  { %667 = vst.msk [vmem:[%s1072_s1 + $0x28] sm:$0xff] %vm422_vm3, %v453_v44  }
  0xbd   :  { %v497_v45 = vpop.permute.xlu0 %496   ;;  %v486_v46 = vpop.permute.xlu2 %485  }
  0xbe   :  { %v475_v47 = vpop.permute.xlu1 %474   ;;  %671 = vst.msk [vmem:[%s1072_s1 + $0x38] sm:$0xff] %vm422_vm3, %v497_v45  }
  0xbf   :  { %670 = vst.msk [vmem:[%s1072_s1 + $0x18] sm:$0xff] %vm422_vm3, %v486_v46  }
  0xc0   :  { %669 = vst.msk [vmem:[%s1072_s1 + $0x30] sm:$0xff] %vm422_vm3, %v475_v47  }
  0xc5   :  { %v529_v48 = vpop.permute.xlu0 %528   ;;  %v518_v49 = vpop.permute.xlu2 %517  }
  0xc6   :  { %v508_v50 = vpop.permute.xlu1 %507   ;;  %673 = vst.msk [vmem:[%s1072_s1 + $0x8] sm:$0xff] %vm509_vm4, %v529_v48  }
  0xc7   :  { %672 = vst.msk [vmem:[%s1072_s1 + $0x20] sm:$0xff] %vm509_vm4, %v518_v49  }
  0xc8   :  { %510 = vst.msk [vmem:[%s1072_s1] sm:$0xff] %vm509_vm4, %v508_v50  }
  0xcd   :  { %v562_v51 = vpop.permute.xlu0 %561   ;;  %v551_v52 = vpop.permute.xlu2 %550  }
  0xce   :  { %v540_v53 = vpop.permute.xlu1 %539   ;;  %676 = vst.msk [vmem:[%s1072_s1 + $0x30] sm:$0xff] %vm509_vm4, %v562_v51  }
  0xcf   :  { %675 = vst.msk [vmem:[%s1072_s1 + $0x10] sm:$0xff] %vm509_vm4, %v551_v52  }
  0xd0   :  { %674 = vst.msk [vmem:[%s1072_s1 + $0x28] sm:$0xff] %vm509_vm4, %v540_v53  }
  0xd5   :  { %v584_v54 = vpop.permute.xlu2 %583  }
  0xd6   :  { %v573_v55 = vpop.permute.xlu1 %572   ;;  %678 = vst.msk [vmem:[%s1072_s1 + $0x38] sm:$0xff] %vm509_vm4, %v584_v54  }
  0xd7   :  { %677 = vst.msk [vmem:[%s1072_s1 + $0x18] sm:$0xff] %vm509_vm4, %v573_v55  }

// kernel: tile.43
= control target key start
LH: loop header
LB: loop body
LE: loop exit
PB: predicated region body
PF: predicated region fallthrough
CT: control target
= control target key end

     0   :  { %s22_s0 = inlined_call_operand.vmem [shape: f32[16], index: 0, kind: input, shape index: {}]   ;;  %s23_s1 = inlined_call_operand.vmem [shape: f32[4,16], index: 1, kind: output, shape index: {}]  }
   0x1   :  { %v4_v0 = vld [vmem:[%s22_s0] ss:$0 sm:$0xff] }
   0x2   :  { %5 = vst [vmem:[%s23_s1] sm:$0xf] %v4_v0 }

// kernel: tile.52
= control target key start
LH: loop header
LB: loop body
LE: loop exit
PB: predicated region body
PF: predicated region fallthrough
CT: control target
= control target key end

     0   :  { %s37_s8 = smov 16   ;;  %s38_s9 = smov 32   ;;  %vm7_vm0 = vcmask 130048   ;;  %vm13_vm1 = vcmask 523648   ;;  %vm19_vm2 = vcmask 392448   ;;  %vm25_vm3 = vcmask 261248   ;;  %s55_s0 = inlined_call_operand.vmem [shape: f32[4,16], index: 0, kind: input, shape index: {}]   ;;  %s56_s1 = inlined_call_operand.vmem [shape: f32[1,64], index: 1, kind: output, shape index: {}]  }
   0x1   :  { %v4_v0 = vld [vmem:[%s55_s0] sm:$0xf]  ;;  %s36_s0 = smov 48  }
   0x2   :  { %5 = vst [vmem:[#allocation1] sm:$0xf] %v4_v0 }
   0x9   :  { %v10_v1 = vld [vmem:[#allocation1 + $0x3] sm:$0x1]   ;;  %v22_v2 = vld [vmem:[#allocation1 + $0x1] sm:$0x1]   ;;  %v16_v3 = vld [vmem:[#allocation1 + $0x2] sm:$0x1]  }
   0xa   :  { %11 = vrot.lane.b32.xlu0 %v10_v1, %s36_s0  ;;  %23 = vrot.lane.b32.xlu1 %v22_v2, %s37_s8  ;;  %v6_v4 = vld [vmem:[#allocation1] sm:$0x1]  }
   0xb   :  { %8 = vst.msk [vmem:[#allocation0] sm:$0x1] %vm7_vm0, %v6_v4  }
  0x12   :  { %17 = vrot.lane.b32.xlu0 %v16_v3, %s38_s9 }
  0x7c   :  { %v12_v5 = vpop.permute.xlu0 %11   ;;  %v24_v6 = vpop.permute.xlu1 %23  }
  0x7d   :  { %14 = vst.msk [vmem:[#allocation0] sm:$0x1] %vm13_vm1, %v12_v5  }
  0x84   :  { %v18_v7 = vpop.permute.xlu0 %17  }
  0x85   :  { %20 = vst.msk [vmem:[#allocation0] sm:$0x1] %vm19_vm2, %v18_v7  }
  0x86   :  { %26 = vst.msk [vmem:[#allocation0] sm:$0x1] %vm25_vm3, %v24_v6  }
  0x8d   :  { %v29_v8 = vld [vmem:[#allocation0] sm:$0x1] }
  0x8e   :  { %32 = vst [vmem:[%s56_s1] sm:$0x1] %v29_v8 }

// kernel: generator_forward.24
= control target key start
LH: loop header
LB: loop body
LE: loop exit
PB: predicated region body
PF: predicated region fallthrough
CT: control target
= control target key end

     0   :  { %vm324_vm0 = vcmask 261120   ;;  %s1469_s1 = inlined_call_operand.vmem [shape: bf16[288,32], index: 1, kind: input, shape index: {}]   ;;  %s1470_s0 = inlined_call_operand.vmem [shape: bf16[128,288], index: 0, kind: input, shape index: {}]   ;;  %s1471_s2 = inlined_call_operand.vmem [shape: f32[1,32], index: 2, kind: input, shape index: {}]   ;;  %s1472_s3 = inlined_call_operand.vmem [shape: f32[1,32], index: 3, kind: input, shape index: {}]   ;;  %s1473_s4 = inlined_call_operand.vmem [shape: f32[1,32], index: 4, kind: input, shape index: {}]   ;;  %s1474_s5 = inlined_call_operand.vmem [shape: f32[128,32], index: 5, kind: input, shape index: {}]   ;;  %s1475_s6 = inlined_call_operand.vmem [shape: f32[128,32], index: 6, kind: output, shape index: {}]  }
   0x1   :  { %v904_v0 = vld [vmem:[%s1469_s1 + $0x38] sm:$0xff]  ;;  %v914_v2 = vld [vmem:[%s1469_s1 + $0x88] sm:$0xff]  ;;  %v903_v3 = vld [vmem:[%s1469_s1 + $0x30] sm:$0xff] }
   0x2   :  { %v912_v1 = vld [vmem:[%s1469_s1 + $0x78] sm:$0xff]  ;;  %349 = vmatpush.bf16.msra.mxu0 %v904_v0  ;;  %915 = vmatpush.bf16.msra.mxu3 %v904_v0  ;;  %v911_v4 = vld [vmem:[%s1469_s1 + $0x70] sm:$0xff]  ;;  %v913_v5 = vld [vmem:[%s1469_s1 + $0x80] sm:$0xff] }
   0x3   :  { %398 = vmatpush.bf16.msra.mxu1 %v912_v1  ;;  %453 = vmatpush.bf16.msra.mxu2 %v914_v2  ;;  %v707_v6 = vld [vmem:[%s1470_s0 + $0x8] sm:$0xf]  ;;  %v875_v7 = vld [vmem:[%s1470_s0 + $0x10] sm:$0xf0]  ;;  %v901_v11 = vld [vmem:[%s1469_s1 + $0x20] sm:$0xff] }
   0x4   :  { %v708_v8 = vor.u32 %v875_v7, %v707_v6  ;;  %v902_v9 = vld [vmem:[%s1469_s1 + $0x28] sm:$0xff]  ;;  %v909_v12 = vld [vmem:[%s1469_s1 + $0x60] sm:$0xff]  ;;  %v900_v13 = vld [vmem:[%s1469_s1 + $0x18] sm:$0xff] }
   0x5   :  { %v910_v10 = vld [vmem:[%s1469_s1 + $0x68] sm:$0xff]  ;;  %v908_v14 = vld [vmem:[%s1469_s1 + $0x58] sm:$0xff]  ;;  %v899_v15 = vld [vmem:[%s1469_s1 + $0x10] sm:$0xff] }
   0x6   :  { %350 = vmatpush.bf16.msra.mxu0 %v903_v3  ;;  %916 = vmatpush.bf16.msra.mxu3 %v903_v3  ;;  %v907_v16 = vld [vmem:[%s1469_s1 + $0x50] sm:$0xff]  ;;  %v719_v17 = vld [vmem:[%s1470_s0 + $0x20] sm:$0xf]  ;;  %v878_v18 = vld [vmem:[%s1470_s0 + $0x28] sm:$0xf0] }
   0x7   :  { %399 = vmatpush.bf16.msra.mxu1 %v911_v4  ;;  %454 = vmatpush.bf16.msra.mxu2 %v913_v5  ;;  %v720_v19 = vor.u32 %v878_v18, %v719_v17  ;;  %v898_v20 = vld [vmem:[%s1469_s1 + $0x8] sm:$0xff]  ;;  %v897_v22 = vld [vmem:[%s1469_s1] sm:$0xff]  ;;  %v771_v26 = vld [vmem:[%s1470_s0 + $0x90] sm:$0xf] }
   0x8   :  { %v906_v21 = vld [vmem:[%s1469_s1 + $0x48] sm:$0xff]  ;;  %v905_v23 = vld [vmem:[%s1469_s1 + $0x40] sm:$0xff]  ;;  %v892_v27 = vld [vmem:[%s1470_s0 + $0x98] sm:$0xf0] }
   0x9   :  { %v699_v24 = vld [vmem:[%s1470_s0] sm:$0xf]  ;;  %v874_v25 = vld [vmem:[%s1470_s0 + $0x8] sm:$0xf0]  ;;  %v873_v28 = vld [vmem:[%s1470_s0 + $0x4] sm:$0xf]  ;;  %v772_v31 = vor.u32 %v892_v27, %v771_v26 }
   0xa   :  { %865 = vmatmul.msk.bf16.vlgmr.msra.gmra.mxu2 %vm324_vm0, %v708_v8  ;;  %351 = vmatpush.bf16.msra.mxu0 %v902_v9  ;;  %v701_v29 = vld [vmem:[%s1470_s0 + $0xc] sm:$0xf0]  ;;  %v700_v30 = vor.u32 %v874_v25, %v699_v24  ;;  %v731_v33 = vld [vmem:[%s1470_s0 + $0x38] sm:$0xf]  ;;  %v881_v34 = vld [vmem:[%s1470_s0 + $0x40] sm:$0xf0] }
   0xb   :  { %917 = vmatpush.bf16.msra.mxu3 %v902_v9  ;;  %400 = vmatpush.bf16.msra.mxu1 %v910_v10  ;;  %v704_v32 = vor.u32 %v873_v28, %v701_v29  ;;  %v732_v35 = vor.u32 %v881_v34, %v731_v33  ;;  %v711_v36 = vld [vmem:[%s1470_s0 + $0x18] sm:$0xf]  ;;  %v877_v37 = vld [vmem:[%s1470_s0 + $0x20] sm:$0xf0]  ;;  %v783_v38 = vld [vmem:[%s1470_s0 + $0xa8] sm:$0xf] }
   0xc   :  { %v895_v39 = vld [vmem:[%s1470_s0 + $0xb0] sm:$0xf0]  ;;  %v876_v40 = vld [vmem:[%s1470_s0 + $0x1c] sm:$0xf]  ;;  %v713_v41 = vld [vmem:[%s1470_s0 + $0x24] sm:$0xf0]  ;;  %v712_v42 = vor.u32 %v877_v37, %v711_v36 }
   0xd   :  { %v784_v43 = vor.u32 %v895_v39, %v783_v38  ;;  %v716_v44 = vor.u32 %v876_v40, %v713_v41  ;;  %v743_v45 = vld [vmem:[%s1470_s0 + $0x50] sm:$0xf]  ;;  %v884_v46 = vld [vmem:[%s1470_s0 + $0x58] sm:$0xf0]  ;;  %v879_v50 = vld [vmem:[%s1470_s0 + $0x34] sm:$0xf] }
   0xe   :  { %352 = vmatpush.bf16.msra.mxu0 %v901_v11  ;;  %v744_v47 = vor.u32 %v884_v46, %v743_v45  ;;  %v723_v48 = vld [vmem:[%s1470_s0 + $0x30] sm:$0xf]  ;;  %v880_v49 = vld [vmem:[%s1470_s0 + $0x38] sm:$0xf0]  ;;  %v725_v51 = vld [vmem:[%s1470_s0 + $0x3c] sm:$0xf0] }
   0xf   :  { %918 = vmatpush.bf16.msra.mxu3 %v901_v11  ;;  %401 = vmatpush.bf16.msra.mxu1 %v909_v12  ;;  %v891_v52 = vld [vmem:[%s1470_s0 + $0x94] sm:$0xf]  ;;  %v773_v53 = vld [vmem:[%s1470_s0 + $0x9c] sm:$0xf0]  ;;  %v724_v54 = vor.u32 %v880_v49, %v723_v48  ;;  %v728_v55 = vor.u32 %v879_v50, %v725_v51  ;;  %v755_v57 = vld [vmem:[%s1470_s0 + $0x68] sm:$0xf] }
  0x10   :  { %v776_v56 = vor.u32 %v891_v52, %v773_v53  ;;  %v887_v58 = vld [vmem:[%s1470_s0 + $0x70] sm:$0xf0]  ;;  %v735_v60 = vld [vmem:[%s1470_s0 + $0x48] sm:$0xf]  ;;  %v882_v62 = vld [vmem:[%s1470_s0 + $0x4c] sm:$0xf] }
  0x11   :  { %v756_v59 = vor.u32 %v887_v58, %v755_v57  ;;  %v883_v61 = vld [vmem:[%s1470_s0 + $0x50] sm:$0xf0]  ;;  %v737_v63 = vld [vmem:[%s1470_s0 + $0x54] sm:$0xf0]  ;;  %v894_v0 = vld [vmem:[%s1470_s0 + $0xac] sm:$0xf] }
  0x12   :  { %353 = vmatpush.bf16.msra.mxu0 %v900_v13  ;;  %v736_v2 = vor.u32 %v883_v61, %v735_v60  ;;  %v740_v3 = vor.u32 %v882_v62, %v737_v63  ;;  %v767_v5 = vld [vmem:[%s1470_s0 + $0x80] sm:$0xf]  ;;  %v890_v6 = vld [vmem:[%s1470_s0 + $0x88] sm:$0xf0]  ;;  %v749_v11 = vld [vmem:[%s1470_s0 + $0x6c] sm:$0xf0] }
  0x13   :  { %919 = vmatpush.bf16.msra.mxu3 %v900_v13  ;;  %402 = vmatpush.bf16.msra.mxu1 %v908_v14  ;;  %v768_v7 = vor.u32 %v890_v6, %v767_v5  ;;  %v747_v8 = vld [vmem:[%s1470_s0 + $0x60] sm:$0xf]  ;;  %v886_v9 = vld [vmem:[%s1470_s0 + $0x68] sm:$0xf0]  ;;  %v759_v17 = vld [vmem:[%s1470_s0 + $0x78] sm:$0xf] }
  0x14   :  { %v889_v18 = vld [vmem:[%s1470_s0 + $0x80] sm:$0xf0]  ;;  %v896_v24 = vld [vmem:[%s1470_s0 + $0xb8] sm:$0xf0]  ;;  %v1178_v28 = vld [vmem:[%s1471_s2] ss:$0 sm:$0xff] }
  0x16   :  { %354 = vmatpush.bf16.msra.mxu0 %v899_v15 }
  0x17   :  { %920 = vmatpush.bf16.msra.mxu3 %v899_v15  ;;  %403 = vmatpush.bf16.msra.mxu1 %v907_v16  ;;  %v893_v15 = vld [vmem:[%s1470_s0 + $0xa0] sm:$0xf0] }
  0x1a   :  { %866 = vmatmul.msk.bf16.gmra.mxu2 %vm324_vm0, %v720_v19  ;;  %355 = vmatpush.bf16.msra.mxu0 %v898_v20  ;;  %v888_v19 = vld [vmem:[%s1470_s0 + $0x7c] sm:$0xf] }
  0x1b   :  { %921 = vmatpush.bf16.msra.mxu3 %v898_v20  ;;  %404 = vmatpush.bf16.msra.mxu1 %v906_v21  ;;  %v761_v20 = vld [vmem:[%s1470_s0 + $0x84] sm:$0xf0] }
  0x1e   :  { %356 = vmatpush.bf16.msra.mxu0 %v897_v22 }
  0x1f   :  { %922 = vmatpush.bf16.msra.mxu3 %v897_v22  ;;  %405 = vmatpush.bf16.msra.mxu1 %v905_v23  ;;  %v764_v22 = vor.u32 %v888_v19, %v761_v20 }
  0x21   :  { %357 = vmatmul.bf16.vlgmr.msra.gmra.mxu0 %v700_v30 }
  0x22   :  { %387 = vmatmul.bf16.vlgmr.msra.gmra.mxu3 %v772_v31  ;;  %406 = vmatmul.bf16.vlgmr.msra.gmra.mxu1 %v704_v32 }
  0x23   :  { %923 = vmatpush.bf16.msrb.mxu3 %v912_v1  ;;  %v785_v1 = vld [vmem:[%s1470_s0 + $0xb4] sm:$0xf0] }
  0x27   :  { %924 = vmatpush.bf16.msrb.mxu3 %v911_v4  ;;  %v788_v4 = vor.u32 %v894_v0, %v785_v1 }
  0x2a   :  { %867 = vmatmul.msk.bf16.gmra.mxu2 %vm324_vm0, %v732_v35 }
  0x2b   :  { %925 = vmatpush.bf16.msrb.mxu3 %v910_v10  ;;  %v885_v10 = vld [vmem:[%s1470_s0 + $0x64] sm:$0xf] }
  0x2c   :  { %v752_v13 = vor.u32 %v885_v10, %v749_v11 }
  0x2f   :  { %926 = vmatpush.bf16.msrb.mxu3 %v909_v12  ;;  %v748_v12 = vor.u32 %v886_v9, %v747_v8 }
  0x31   :  { %362 = vmatmul.bf16.gmra.mxu0 %v712_v42 }
  0x32   :  { %392 = vmatmul.bf16.gmra.mxu3 %v784_v43  ;;  %411 = vmatmul.bf16.gmra.mxu1 %v716_v44 }
  0x33   :  { %927 = vmatpush.bf16.msrb.mxu3 %v908_v14  ;;  %v779_v14 = vld [vmem:[%s1470_s0 + $0x98] sm:$0xf] }
  0x37   :  { %928 = vmatpush.bf16.msrb.mxu3 %v907_v16  ;;  %v780_v16 = vor.u32 %v893_v15, %v779_v14 }
  0x3a   :  { %868 = vmatmul.msk.bf16.gmra.mxu2 %vm324_vm0, %v744_v47 }
  0x3b   :  { %929 = vmatpush.bf16.msrb.mxu3 %v906_v21  ;;  %v760_v21 = vor.u32 %v889_v18, %v759_v17 }
  0x3f   :  { %930 = vmatpush.bf16.msrb.mxu3 %v905_v23  ;;  %v791_v23 = vld [vmem:[%s1470_s0 + $0xb0] sm:$0xf] }
  0x40   :  { %v792_v25 = vor.u32 %v896_v24, %v791_v23 }
  0x41   :  { %367 = vmatmul.bf16.gmra.mxu0 %v724_v54 }
  0x42   :  { %416 = vmatmul.bf16.gmra.mxu1 %v728_v55  ;;  %436 = vmatmul.bf16.vlgmr.msrb.gmra.mxu3 %v776_v56 }
  0x4a   :  { %869 = vmatmul.msk.bf16.gmra.mxu2 %vm324_vm0, %v756_v59 }
  0x51   :  { %372 = vmatmul.bf16.gmra.mxu0 %v736_v2 }
  0x52   :  { %421 = vmatmul.bf16.gmra.mxu1 %v740_v3  ;;  %441 = vmatmul.bf16.gmra.mxu3 %v788_v4 }
  0x5a   :  { %870 = vmatmul.msk.bf16.gmra.mxu2 %vm324_vm0, %v768_v7 }
  0x61   :  { %377 = vmatmul.bf16.gmra.mxu0 %v748_v12 }
  0x62   :  { %426 = vmatmul.bf16.gmra.mxu1 %v752_v13 }
  0x6a   :  { %871 = vmatmul.msk.bf16.gmra.mxu2 %vm324_vm0, %v780_v16 }
  0x71   :  { %382 = vmatmul.bf16.gmra.mxu0 %v760_v21 }
  0x72   :  { %431 = vmatmul.bf16.gmra.mxu1 %v764_v22 }
  0x7a   :  { %872 = vmatmul.msk.bf16.gmra.mxu2 %vm324_vm0, %v792_v25 }
  0x8d   :  { %v456_v26 = vpop.f32.mrf.mxu2 }
  0x95   :  { %v458_v27 = vpop.f32.mrf.mxu2 }
  0x9d   :  { %v461_v29 = vpop.f32.mrf.mxu2 }
  0x9e   :  { %v358_v30 = vpop.f32.mrf.mxu0 }
  0x9f   :  { %v359_v31 = vadd.f32 %v1178_v28, %v358_v30  ;;  %v407_v32 = vpop.f32.mrf.mxu1 }
  0xa1   :  { %v408_v33 = vadd.f32 %v407_v32, %v359_v31 }
  0xa3   :  { %v1181_v34 = vadd.f32 %v456_v26, %v408_v33 }
  0xa5   :  { %v463_v35 = vpop.f32.mrf.mxu2  ;;  %v1183_v44 = vpop.f32.mrf.mxu3  ;;  %v533_v17 = vmul.f32 %v1181_v34, %v1181_v34  ;;  %v496_v25 = vsel %vm324_vm0, %v1181_v34, 0.0 }
  0xa6   :  { %v360_v36 = vpop.f32.mrf.mxu0 }
  0xa7   :  { %v409_v37 = vpop.f32.mrf.mxu1  ;;  %v361_v59 = vadd.f32 %v1178_v28, %v360_v36  ;;  %v549_v33 = vsel %vm324_vm0, %v533_v17, 0.0 }
  0xa9   :  { %v410_v62 = vadd.f32 %v409_v37, %v361_v59 }
  0xab   :  { %v1201_v5 = vadd.f32 %v458_v27, %v410_v62 }
  0xad   :  { %v466_v38 = vpop.f32.mrf.mxu2  ;;  %v1185_v48 = vpop.f32.mrf.mxu3  ;;  %v534_v12 = vmul.f32 %v1201_v5, %v1201_v5  ;;  %v497_v20 = vsel %vm324_vm0, %v1201_v5, 0.0 }
  0xae   :  { %v363_v39 = vpop.f32.mrf.mxu0 }
  0xaf   :  { %v412_v40 = vpop.f32.mrf.mxu1  ;;  %v364_v61 = vadd.f32 %v1178_v28, %v363_v39  ;;  %v550_v26 = vsel %vm324_vm0, %v534_v12, 0.0 }
  0xb1   :  { %v413_v3 = vadd.f32 %v412_v40, %v364_v61 }
  0xb3   :  { %v1204_v9 = vadd.f32 %v461_v29, %v413_v3 }
  0xb5   :  { %v468_v41 = vpop.f32.mrf.mxu2  ;;  %v1189_v54 = vpop.f32.mrf.mxu3  ;;  %v535_v21 = vmul.f32 %v1204_v9, %v1204_v9  ;;  %v499_v29 = vsel %vm324_vm0, %v1204_v9, 0.0 }
  0xb6   :  { %v365_v42 = vpop.f32.mrf.mxu0 }
  0xb7   :  { %v414_v43 = vpop.f32.mrf.mxu1  ;;  %v366_v63 = vadd.f32 %v1178_v28, %v365_v42  ;;  %v552_v37 = vsel %vm324_vm0, %v535_v21, 0.0 }
  0xb9   :  { %v415_v7 = vadd.f32 %v414_v43, %v366_v63 }
  0xbb   :  { %v1211_v14 = vadd.f32 %v463_v35, %v415_v7  ;;  %v498_v35 = vadd.f32 %v497_v20, %v496_v25  ;;  %v391_v25 = vadd.f32 %v1178_v28, %v1185_v48 }
  0xbd   :  { %v471_v45 = vpop.f32.mrf.mxu2  ;;  %v1194_v60 = vpop.f32.mrf.mxu3  ;;  %v536_v30 = vmul.f32 %v1211_v14, %v1211_v14  ;;  %v500_v42 = vadd.f32 %v499_v29, %v498_v35 }
  0xbe   :  { %v368_v46 = vpop.f32.mrf.mxu0 }
  0xbf   :  { %v417_v47 = vpop.f32.mrf.mxu1  ;;  %v369_v1 = vadd.f32 %v1178_v28, %v368_v46  ;;  %v554_v46 = vsel %vm324_vm0, %v536_v30, 0.0 }
  0xc1   :  { %v418_v8 = vadd.f32 %v417_v47, %v369_v1 }
  0xc3   :  { %v1218_v18 = vadd.f32 %v466_v38, %v418_v8  ;;  %v501_v38 = vsel %vm324_vm0, %v1211_v14, 0.0 }
  0xc5   :  { %v473_v49 = vpop.f32.mrf.mxu2  ;;  %v1206_v10 = vpop.f32.mrf.mxu3  ;;  %v537_v36 = vmul.f32 %v1218_v18, %v1218_v18  ;;  %v503_v47 = vsel %vm324_vm0, %v1218_v18, 0.0 }
  0xc6   :  { %v370_v50 = vpop.f32.mrf.mxu0 }
  0xc7   :  { %v419_v51 = vpop.f32.mrf.mxu1  ;;  %v371_v6 = vadd.f32 %v1178_v28, %v370_v50 }
  0xc9   :  { %v420_v13 = vadd.f32 %v419_v51, %v371_v6 }
  0xcb   :  { %v1228_v27 = vadd.f32 %v468_v41, %v420_v13  ;;  %v551_v41 = vadd.f32 %v550_v26, %v549_v33 }
  0xcd   :  { %v1187_v52 = vpop.f32.mrf.mxu2  ;;  %v538_v43 = vmul.f32 %v1228_v27, %v1228_v27  ;;  %v439_v50 = vpop.f32.mrf.mxu3  ;;  %v505_v61 = vsel %vm324_vm0, %v1228_v27, 0.0 }
  0xce   :  { %v373_v53 = vpop.f32.mrf.mxu0 }
  0xcf   :  { %v422_v55 = vpop.f32.mrf.mxu1  ;;  %v374_v11 = vadd.f32 %v1178_v28, %v373_v53 }
  0xd1   :  { %v423_v22 = vadd.f32 %v422_v55, %v374_v11 }
  0xd3   :  { %v1241_v39 = vadd.f32 %v471_v45, %v423_v22  ;;  %v556_v45 = vsel %vm324_vm0, %v537_v36, 0.0 }
  0xd5   :  { %v1191_v56 = vpop.f32.mrf.mxu2  ;;  %v539_v62 = vmul.f32 %v1241_v39, %v1241_v39  ;;  %v507_v6 = vsel %vm324_vm0, %v1241_v39, 0.0 }
  0xd6   :  { %v375_v57 = vpop.f32.mrf.mxu0 }
  0xd7   :  { %v424_v58 = vpop.f32.mrf.mxu1  ;;  %v376_v15 = vadd.f32 %v1178_v28, %v375_v57  ;;  %v553_v57 = vadd.f32 %v552_v37, %v551_v41 }
  0xd9   :  { %v425_v31 = vadd.f32 %v424_v58, %v376_v15  ;;  %v502_v58 = vadd.f32 %v501_v38, %v500_v42  ;;  %v560_v15 = vsel %vm324_vm0, %v539_v62, 0.0 }
  0xdb   :  { %v1248_v51 = vadd.f32 %v473_v49, %v425_v31  ;;  %v504_v3 = vadd.f32 %v503_v47, %v502_v58  ;;  %v442_v31 = vpop.f32.mrf.mxu3 }
  0xdd   :  { %v1198_v0 = vpop.f32.mrf.mxu2  ;;  %v540_v7 = vmul.f32 %v1248_v51, %v1248_v51  ;;  %v506_v13 = vadd.f32 %v505_v61, %v504_v3  ;;  %v509_v17 = vsel %vm324_vm0, %v1248_v51, 0.0 }
  0xde   :  { %v378_v2 = vpop.f32.mrf.mxu0 }
  0xdf   :  { %v427_v4 = vpop.f32.mrf.mxu1  ;;  %v379_v23 = vadd.f32 %v1178_v28, %v378_v2  ;;  %v555_v2 = vadd.f32 %v554_v46, %v553_v57  ;;  %v562_v22 = vsel %vm324_vm0, %v540_v7, 0.0  ;;  %v440_v46 = vadd.f32 %v439_v50, %v391_v25 }
  0xe1   :  { %v428_v40 = vadd.f32 %v427_v4, %v379_v23  ;;  %v558_v4 = vsel %vm324_vm0, %v538_v43, 0.0  ;;  %v557_v12 = vadd.f32 %v556_v45, %v555_v2  ;;  %v394_v43 = vadd.f32 %v1178_v28, %v1189_v54 }
  0xe3   :  { %v1256_v63 = vadd.f32 %v1187_v52, %v428_v40  ;;  %v389_v52 = vadd.f32 %v1178_v28, %v1183_v44  ;;  %v559_v21 = vadd.f32 %v558_v4, %v557_v12  ;;  %v444_v12 = vpop.f32.mrf.mxu3 }
  0xe5   :  { %v1214_v16 = vpop.f32.mrf.mxu2  ;;  %v511_v44 = vsel %vm324_vm0, %v1256_v63, 0.0  ;;  %v438_v26 = vadd.f32 %v1206_v10, %v389_v52  ;;  %v561_v29 = vadd.f32 %v560_v15, %v559_v21 }
  0xe6   :  { %v380_v19 = vpop.f32.mrf.mxu0 }
  0xe7   :  { %v429_v24 = vpop.f32.mrf.mxu1  ;;  %v381_v32 = vadd.f32 %v1178_v28, %v380_v19  ;;  %v541_v19 = vmul.f32 %v1256_v63, %v1256_v63  ;;  %v563_v37 = vadd.f32 %v562_v22, %v561_v29 }
  0xe9   :  { %v430_v53 = vadd.f32 %v429_v24, %v381_v32  ;;  %v564_v32 = vsel %vm324_vm0, %v541_v19, 0.0 }
  0xea   :  { %v565_v47 = vadd.f32 %v564_v32, %v563_v37 }
  0xeb   :  { %v1265_v8 = vadd.f32 %v1191_v56, %v430_v53  ;;  %v508_v56 = vadd.f32 %v507_v6, %v506_v13 }
  0xed   :  { %v486_v55 = vpop.f32.mrf.mxu2  ;;  %v542_v23 = vmul.f32 %v1265_v8, %v1265_v8  ;;  %v510_v30 = vadd.f32 %v509_v17, %v508_v56  ;;  %v513_v33 = vsel %vm324_vm0, %v1265_v8, 0.0 }
  0xee   :  { %v383_v59 = vpop.f32.mrf.mxu0  ;;  %v1292_v10 = vadd.f32 %v486_v55, %v438_v26 }
  0xef   :  { %v384_v1 = vadd.f32 %v1178_v28, %v383_v59  ;;  %v432_v49 = vpop.f32.mrf.mxu1  ;;  %v512_v38 = vadd.f32 %v511_v44, %v510_v30  ;;  %v566_v48 = vsel %vm324_vm0, %v542_v23, 0.0 }
  0xf0   :  { %v567_v45 = vadd.f32 %v566_v48, %v565_v47  ;;  %v545_v55 = vmul.f32 %v1292_v10, %v1292_v10  ;;  %v519_v3 = vsel %vm324_vm0, %v1292_v10, 0.0 }
  0xf1   :  { %v433_v11 = vadd.f32 %v432_v49, %v384_v1  ;;  %v514_v53 = vadd.f32 %v513_v33, %v512_v38  ;;  %v443_v1 = vadd.f32 %v442_v31, %v394_v43 }
  0xf2   :  { %v572_v13 = vsel %vm324_vm0, %v545_v55, 0.0 }
  0xf3   :  { %v1275_v20 = vadd.f32 %v1198_v0, %v433_v11 }
  0xf5   :  { %v488_v24 = vpop.f32.mrf.mxu2  ;;  %v543_v35 = vmul.f32 %v1275_v20, %v1275_v20  ;;  %v515_v41 = vsel %vm324_vm0, %v1275_v20, 0.0 }
  0xf6   :  { %v385_v0 = vpop.f32.mrf.mxu0  ;;  %v516_v59 = vadd.f32 %v515_v41, %v514_v53  ;;  %v1302_v61 = vadd.f32 %v488_v24, %v440_v46 }
  0xf7   :  { %v386_v36 = vadd.f32 %v1178_v28, %v385_v0  ;;  %v434_v40 = vpop.f32.mrf.mxu1  ;;  %v568_v57 = vsel %vm324_vm0, %v543_v35, 0.0 }
  0xf8   :  { %v569_v49 = vadd.f32 %v568_v57, %v567_v45  ;;  %v546_v6 = vmul.f32 %v1302_v61, %v1302_v61  ;;  %v521_v15 = vsel %vm324_vm0, %v1302_v61, 0.0 }
  0xf9   :  { %v435_v42 = vadd.f32 %v434_v40, %v386_v36 }
  0xfa   :  { %v574_v19 = vsel %vm324_vm0, %v546_v6, 0.0 }
  0xfb   :  { %v1300_v58 = vadd.f32 %v1214_v16, %v435_v42  ;;  %v396_v16 = vadd.f32 %v1178_v28, %v1194_v60 }
  0xfd   :  { %v517_v62 = vsel %vm324_vm0, %v1300_v58, 0.0  ;;  %v544_v54 = vmul.f32 %v1300_v58, %v1300_v58  ;;  %v491_v50 = vpop.f32.mrf.mxu2  ;;  %v445_v60 = vadd.f32 %v444_v12, %v396_v16  ;;  %v591_v16 = vld [vmem:[%s1472_s3] sm:$0x1] }
  0xfe   :  { %v518_v2 = vadd.f32 %v517_v62, %v516_v59  ;;  %v1317_v11 = vadd.f32 %v491_v50, %v443_v1 }
  0xff   :  { %v570_v4 = vsel %vm324_vm0, %v544_v54, 0.0 }
 0x100   :  { %v571_v7 = vadd.f32 %v570_v4, %v569_v49  ;;  %v520_v52 = vadd.f32 %v519_v3, %v518_v2  ;;  %v547_v21 = vmul.f32 %v1317_v11, %v1317_v11  ;;  %v523_v44 = vsel %vm324_vm0, %v1317_v11, 0.0 }
 0x102   :  { %v573_v17 = vadd.f32 %v572_v13, %v571_v7  ;;  %v522_v28 = vadd.f32 %v521_v15, %v520_v52  ;;  %v576_v25 = vsel %vm324_vm0, %v547_v21, 0.0  ;;  %v604_v7 = vld [vmem:[%s1473_s4] sm:$0x1] }
 0x104   :  { %v575_v56 = vadd.f32 %v574_v19, %v573_v17  ;;  %v524_v24 = vadd.f32 %v523_v44, %v522_v28 }
 0x105   :  { %v493_v22 = vpop.f32.mrf.mxu2 }
 0x106   :  { %v1327_v23 = vadd.f32 %v493_v22, %v445_v60  ;;  %v577_v30 = vadd.f32 %v576_v25, %v575_v56 }
 0x108   :  { %v525_v26 = vsel %vm324_vm0, %v1327_v23, 0.0  ;;  %v548_v29 = vmul.f32 %v1327_v23, %v1327_v23 }
 0x109   :  { %v526_v0 = vadd.f32 %v525_v26, %v524_v24  ;;  %v645_v26 = vld [vmem:[%s1474_s5] sm:$0xff] }
 0x10a   :  { %v578_v31 = vsel %vm324_vm0, %v548_v29, 0.0 }
 0x10b   :  { %v527_v32 = vrot.slane %v526_v0, 4  ;;  %v579_v33 = vadd.f32 %v578_v31, %v577_v30 }
 0x10d   :  { %v528_v35 = vadd.f32 %v527_v32, %v526_v0  ;;  %v580_v36 = vrot.slane %v579_v33, 4  ;;  %v649_v0 = vld [vmem:[%s1474_s5 + $0x20] sm:$0xff]  ;;  %v650_v32 = vld [vmem:[%s1474_s5 + $0x28] sm:$0xff] }
 0x10f   :  { %v529_v37 = vrot.slane %v528_v35, 2  ;;  %v581_v38 = vadd.f32 %v580_v36, %v579_v33 }
 0x111   :  { %v530_v40 = vadd.f32 %v529_v37, %v528_v35  ;;  %v582_v48 = vrot.slane %v581_v38, 2 }
 0x113   :  { %v531_v41 = vrot.slane %v530_v40, 1  ;;  %v583_v42 = vadd.f32 %v582_v48, %v581_v38  ;;  %v652_v48 = vld [vmem:[%s1474_s5 + $0x38] sm:$0xff] }
 0x115   :  { %v532_v43 = vadd.f32 %v531_v41, %v530_v40  ;;  %v584_v46 = vrot.slane %v583_v42, 1 }
 0x117   :  { %v585_v47 = vadd.f32 %v584_v46, %v583_v42  ;;  %v586_v53 = vmul.f32 0.0078125, %v532_v43  ;;  %v653_v43 = vld [vmem:[%s1474_s5 + $0x40] sm:$0xff] }
 0x119   :  { %v587_v57 = vmul.f32 0.0078125, %v585_v47  ;;  %v588_v45 = vmul.f32 %v586_v53, %v586_v53 }
 0x11b   :  { %v589_v59 = vsub.f32 %v587_v57, %v588_v45 }
 0x11d   :  { %v590_v55 = vmax.f32 %v589_v59, 0.0  ;;  %v655_v59 = vld [vmem:[%s1474_s5 + $0x50] sm:$0xff] }
 0x11f   :  { %v592_v62 = vadd.f32 1e-05, %v590_v55 }
 0x121   :  { %932 = vrsqrt.f32 %v592_v62  ;;  %vm599_vm2 = vweird.f32 %v592_v62 }
 0x127   :  { %v933_v54 = vpop.eup %932 }
 0x128   :  { %v594_v50 = vmul.f32 %v933_v54, %v592_v62  ;;  %vm600_vm1 = vweird.f32 %v933_v54 }
 0x129   :  { %vm601_vm3 = vmor %vm599_vm2, %vm600_vm1 }
 0x12a   :  { %v595_v1 = vmul.f32 %v933_v54, %v594_v50 }
 0x12c   :  { %v596_v49 = vmul.f32 0.5, %v595_v1 }
 0x12e   :  { %v597_v2 = vsub.f32 1.5, %v596_v49  ;;  %v657_v49 = vld [vmem:[%s1474_s5 + $0x60] sm:$0xff] }
 0x130   :  { %v598_v3 = vmul.f32 %v933_v54, %v597_v2 }
 0x132   :  { %v602_v4 = vsel %vm601_vm3, %v933_v54, %v598_v3  ;;  %v656_v54 = vld [vmem:[%s1474_s5 + $0x58] sm:$0xff] }
 0x133   :  { %v603_v6 = vmul.f32 %v602_v4, %v591_v16  ;;  %v658_v16 = vld [vmem:[%s1474_s5 + $0x68] sm:$0xff]  ;;  %v659_v4 = vld [vmem:[%s1474_s5 + $0x70] sm:$0xff] }
 0x135   :  { %v605_v52 = vmul.f32 %v603_v6, %v586_v53  ;;  %v608_v13 = vperm.slane %v603_v6, 0  ;;  %v654_v53 = vld [vmem:[%s1474_s5 + $0x48] sm:$0xff] }
 0x137   :  { %v606_v12 = vsub.f32 %v604_v7, %v605_v52  ;;  %v610_v15 = vmul.f32 %v608_v13, %v1181_v34  ;;  %v611_v17 = vmul.f32 %v608_v13, %v1201_v5  ;;  %v612_v28 = vmul.f32 %v608_v13, %v1204_v9  ;;  %v646_v34 = vld [vmem:[%s1474_s5 + $0x8] sm:$0xff]  ;;  %v647_v5 = vld [vmem:[%s1474_s5 + $0x10] sm:$0xff]  ;;  %v660_v7 = vld [vmem:[%s1474_s5 + $0x78] sm:$0xff] }
 0x138   :  { %v613_v19 = vmul.f32 %v608_v13, %v1211_v14  ;;  %v614_v21 = vmul.f32 %v608_v13, %v1218_v18  ;;  %v615_v24 = vmul.f32 %v608_v13, %v1228_v27  ;;  %v616_v9 = vmul.f32 %v608_v13, %v1241_v39  ;;  %v648_v18 = vld [vmem:[%s1474_s5 + $0x18] sm:$0xff] }
 0x139   :  { %v627_v60 = vperm.slane %v606_v12, 0  ;;  %v617_v27 = vmul.f32 %v608_v13, %v1248_v51  ;;  %v618_v29 = vmul.f32 %v608_v13, %v1256_v63  ;;  %v619_v36 = vmul.f32 %v608_v13, %v1265_v8  ;;  %v651_v51 = vld [vmem:[%s1474_s5 + $0x30] sm:$0xff] }
 0x13a   :  { %v620_v38 = vmul.f32 %v608_v13, %v1275_v20  ;;  %v621_v8 = vmul.f32 %v608_v13, %v1300_v58  ;;  %v622_v20 = vmul.f32 %v608_v13, %v1292_v10  ;;  %v623_v58 = vmul.f32 %v608_v13, %v1302_v61 }
 0x13b   :  { %v629_v56 = vadd.f32 %v627_v60, %v610_v15  ;;  %v630_v22 = vadd.f32 %v627_v60, %v611_v17  ;;  %v631_v44 = vadd.f32 %v627_v60, %v612_v28  ;;  %v632_v25 = vadd.f32 %v627_v60, %v613_v19 }
 0x13c   :  { %v633_v14 = vadd.f32 %v627_v60, %v614_v21  ;;  %v634_v30 = vadd.f32 %v627_v60, %v615_v24  ;;  %v635_v31 = vadd.f32 %v627_v60, %v616_v9  ;;  %v636_v37 = vadd.f32 %v627_v60, %v617_v27 }
 0x13d   :  { %v661_v39 = vadd.f32 %v645_v26, %v629_v56  ;;  %v662_v33 = vadd.f32 %v646_v34, %v630_v22  ;;  %v663_v35 = vadd.f32 %v647_v5, %v631_v44  ;;  %v664_v63 = vadd.f32 %v648_v18, %v632_v25 }
 0x13e   :  { %v637_v40 = vadd.f32 %v627_v60, %v618_v29  ;;  %v665_v41 = vadd.f32 %v649_v0, %v633_v14  ;;  %v638_v42 = vadd.f32 %v627_v60, %v619_v36  ;;  %v666_v46 = vadd.f32 %v650_v32, %v634_v30 }
 0x13f   :  { %677 = vst.msk [vmem:[%s1475_s6] sm:$0xff] %vm324_vm0, %v661_v39  ;;  %v639_v47 = vadd.f32 %v627_v60, %v620_v38  ;;  %v667_v57 = vadd.f32 %v651_v51, %v635_v31  ;;  %v640_v45 = vadd.f32 %v627_v60, %v621_v8  ;;  %v668_v55 = vadd.f32 %v652_v48, %v636_v37 }
 0x140   :  { %678 = vst.msk [vmem:[%s1475_s6 + $0x8] sm:$0xff] %vm324_vm0, %v662_v33  ;;  %v624_v10 = vmul.f32 %v608_v13, %v1317_v11  ;;  %v641_v62 = vadd.f32 %v627_v60, %v622_v20  ;;  %v669_v50 = vadd.f32 %v653_v43, %v637_v40  ;;  %v625_v61 = vmul.f32 %v608_v13, %v1327_v23 }
 0x141   :  { %679 = vst.msk [vmem:[%s1475_s6 + $0x10] sm:$0xff] %vm324_vm0, %v663_v35  ;;  %v642_v1 = vadd.f32 %v627_v60, %v623_v58  ;;  %v670_v2 = vadd.f32 %v654_v53, %v638_v42  ;;  %v671_v3 = vadd.f32 %v655_v59, %v639_v47  ;;  %v672_v6 = vadd.f32 %v656_v54, %v640_v45 }
 0x142   :  { %680 = vst.msk [vmem:[%s1475_s6 + $0x18] sm:$0xff] %vm324_vm0, %v664_v63  ;;  %v643_v11 = vadd.f32 %v627_v60, %v624_v10  ;;  %v644_v23 = vadd.f32 %v627_v60, %v625_v61  ;;  %v673_v52 = vadd.f32 %v657_v49, %v641_v62 }
 0x143   :  { %681 = vst.msk [vmem:[%s1475_s6 + $0x20] sm:$0xff] %vm324_vm0, %v665_v41  ;;  %v674_v12 = vadd.f32 %v658_v16, %v642_v1 }
 0x144   :  { %682 = vst.msk [vmem:[%s1475_s6 + $0x28] sm:$0xff] %vm324_vm0, %v666_v46  ;;  %v675_v13 = vadd.f32 %v659_v4, %v643_v11  ;;  %v676_v15 = vadd.f32 %v660_v7, %v644_v23 }
 0x145   :  { %683 = vst.msk [vmem:[%s1475_s6 + $0x30] sm:$0xff] %vm324_vm0, %v667_v57 }
 0x146   :  { %684 = vst.msk [vmem:[%s1475_s6 + $0x38] sm:$0xff] %vm324_vm0, %v668_v55 }
 0x147   :  { %685 = vst.msk [vmem:[%s1475_s6 + $0x40] sm:$0xff] %vm324_vm0, %v669_v50 }
 0x148   :  { %686 = vst.msk [vmem:[%s1475_s6 + $0x48] sm:$0xff] %vm324_vm0, %v670_v2 }
 0x149   :  { %687 = vst.msk [vmem:[%s1475_s6 + $0x50] sm:$0xff] %vm324_vm0, %v671_v3 }
 0x14a   :  { %688 = vst.msk [vmem:[%s1475_s6 + $0x58] sm:$0xff] %vm324_vm0, %v672_v6 }
 0x14b   :  { %689 = vst.msk [vmem:[%s1475_s6 + $0x60] sm:$0xff] %vm324_vm0, %v673_v52 }
 0x14c   :  { %690 = vst.msk [vmem:[%s1475_s6 + $0x68] sm:$0xff] %vm324_vm0, %v674_v12 }
 0x14d   :  { %691 = vst.msk [vmem:[%s1475_s6 + $0x70] sm:$0xff] %vm324_vm0, %v675_v13 }
 0x14e   :  { %692 = vst.msk [vmem:[%s1475_s6 + $0x78] sm:$0xff] %vm324_vm0, %v676_v15 }

// kernel: generator_forward.27
= control target key start
LH: loop header
LB: loop body
LE: loop exit
PB: predicated region body
PF: predicated region fallthrough
CT: control target
= control target key end

     0   :  { %vm204_vm0 = vcmask 523264   ;;  %s893_s1 = inlined_call_operand.vmem [shape: bf16[128,64], index: 1, kind: input, shape index: {}]   ;;  %s894_s2 = inlined_call_operand.vmem [shape: f32[1,64], index: 2, kind: input, shape index: {}]   ;;  %s895_s0 = inlined_call_operand.vmem [shape: bf16[128,128], index: 0, kind: input, shape index: {}]   ;;  %s896_s5 = inlined_call_operand.vmem [shape: f32[64,64], index: 5, kind: input, shape index: {}]   ;;  %s897_s3 = inlined_call_operand.vmem [shape: f32[1,64], index: 3, kind: input, shape index: {}]   ;;  %s898_s4 = inlined_call_operand.vmem [shape: f32[1,64], index: 4, kind: input, shape index: {}]   ;;  %s899_s6 = inlined_call_operand.vmem [shape: f32[128,64], index: 6, kind: output, shape index: {}]  }
   0x1   :  { %v525_v0 = vld [vmem:[%s893_s1 + $0x38] sm:$0xff]  ;;  %v524_v1 = vld [vmem:[%s893_s1 + $0x30] sm:$0xff]  ;;  %v523_v2 = vld [vmem:[%s893_s1 + $0x28] sm:$0xff] }
   0x2   :  { %155 = vmatpush.bf16.msra.mxu0 %v525_v0  ;;  %526 = vmatpush.bf16.msra.mxu1 %v525_v0  ;;  %v522_v3 = vld [vmem:[%s893_s1 + $0x20] sm:$0xff]  ;;  %v521_v4 = vld [vmem:[%s893_s1 + $0x18] sm:$0xff]  ;;  %v520_v5 = vld [vmem:[%s893_s1 + $0x10] sm:$0xff] }
   0x3   :  { %527 = vmatpush.bf16.msra.mxu2 %v525_v0  ;;  %528 = vmatpush.bf16.msra.mxu3 %v525_v0  ;;  %v519_v6 = vld [vmem:[%s893_s1 + $0x8] sm:$0xff]  ;;  %v518_v7 = vld [vmem:[%s893_s1] sm:$0xff]  ;;  %v512_v9 = vld [vmem:[%s895_s0 + $0x10] sm:$0xff] }
   0x4   :  { %v510_v8 = vld [vmem:[%s895_s0] sm:$0xff]  ;;  %v516_v11 = vld [vmem:[%s895_s0 + $0x30] sm:$0xff]  ;;  %v511_v12 = vld [vmem:[%s895_s0 + $0x8] sm:$0xff] }
   0x5   :  { %v514_v10 = vld [vmem:[%s895_s0 + $0x20] sm:$0xff]  ;;  %v513_v13 = vld [vmem:[%s895_s0 + $0x18] sm:$0xff]  ;;  %v515_v14 = vld [vmem:[%s895_s0 + $0x28] sm:$0xff] }
   0x6   :  { %156 = vmatpush.bf16.msra.mxu0 %v524_v1  ;;  %529 = vmatpush.bf16.msra.mxu1 %v524_v1  ;;  %v517_v15 = vld [vmem:[%s895_s0 + $0x38] sm:$0xff]  ;;  %v643_v22 = vld [vmem:[%s894_s2] ss:$0 sm:$0xff]  ;;  %v301_v31 = vld [vmem:[%s896_s5 + $0x30] sm:$0xff] }
   0x7   :  { %530 = vmatpush.bf16.msra.mxu2 %v524_v1  ;;  %531 = vmatpush.bf16.msra.mxu3 %v524_v1  ;;  %v302_v29 = vld [vmem:[%s896_s5 + $0x38] sm:$0xff]  ;;  %v300_v36 = vld [vmem:[%s896_s5 + $0x28] sm:$0xff]  ;;  %v299_v44 = vld [vmem:[%s896_s5 + $0x20] sm:$0xff] }
   0x8   :  { %v298_v52 = vld [vmem:[%s896_s5 + $0x18] sm:$0xff]  ;;  %v297_v53 = vld [vmem:[%s896_s5 + $0x10] sm:$0xff]  ;;  %v296_v60 = vld [vmem:[%s896_s5 + $0x8] sm:$0xff] }
   0xa   :  { %157 = vmatpush.bf16.msra.mxu0 %v523_v2  ;;  %532 = vmatpush.bf16.msra.mxu1 %v523_v2 }
   0xb   :  { %533 = vmatpush.bf16.msra.mxu2 %v523_v2  ;;  %534 = vmatpush.bf16.msra.mxu3 %v523_v2 }
   0xe   :  { %158 = vmatpush.bf16.msra.mxu0 %v522_v3  ;;  %535 = vmatpush.bf16.msra.mxu1 %v522_v3 }
   0xf   :  { %536 = vmatpush.bf16.msra.mxu2 %v522_v3  ;;  %537 = vmatpush.bf16.msra.mxu3 %v522_v3  ;;  %v295_v3 = vld [vmem:[%s896_s5] sm:$0xff] }
  0x12   :  { %159 = vmatpush.bf16.msra.mxu0 %v521_v4  ;;  %538 = vmatpush.bf16.msra.mxu1 %v521_v4 }
  0x13   :  { %539 = vmatpush.bf16.msra.mxu2 %v521_v4  ;;  %540 = vmatpush.bf16.msra.mxu3 %v521_v4 }
  0x16   :  { %160 = vmatpush.bf16.msra.mxu0 %v520_v5  ;;  %541 = vmatpush.bf16.msra.mxu1 %v520_v5 }
  0x17   :  { %542 = vmatpush.bf16.msra.mxu2 %v520_v5  ;;  %543 = vmatpush.bf16.msra.mxu3 %v520_v5 }
  0x1a   :  { %161 = vmatpush.bf16.msra.mxu0 %v519_v6  ;;  %544 = vmatpush.bf16.msra.mxu1 %v519_v6 }
  0x1b   :  { %545 = vmatpush.bf16.msra.mxu2 %v519_v6  ;;  %546 = vmatpush.bf16.msra.mxu3 %v519_v6 }
  0x1e   :  { %162 = vmatpush.bf16.msra.mxu0 %v518_v7  ;;  %547 = vmatpush.bf16.msra.mxu1 %v518_v7 }
  0x1f   :  { %548 = vmatpush.bf16.msra.mxu2 %v518_v7  ;;  %549 = vmatpush.bf16.msra.mxu3 %v518_v7 }
  0x21   :  { %163 = vmatmul.bf16.vlgmr.msra.gmra.mxu0 %v510_v8  ;;  %173 = vmatmul.bf16.vlgmr.msra.gmra.mxu1 %v512_v9 }
  0x22   :  { %183 = vmatmul.bf16.vlgmr.msra.gmra.mxu2 %v514_v10  ;;  %193 = vmatmul.bf16.vlgmr.msra.gmra.mxu3 %v516_v11 }
  0x23   :  { %337 = vmatpush.msrb.mxu2 %v302_v29  ;;  %314 = vmatpush.msrb.mxu1 %v302_v29 }
  0x25   :  { %338 = vmatpush.msrb.mxu2 %v301_v31  ;;  %315 = vmatpush.msrb.mxu1 %v301_v31 }
  0x27   :  { %339 = vmatpush.msrb.mxu2 %v300_v36  ;;  %316 = vmatpush.msrb.mxu1 %v300_v36 }
  0x29   :  { %340 = vmatpush.msrb.mxu2 %v299_v44  ;;  %317 = vmatpush.msrb.mxu1 %v299_v44 }
  0x2b   :  { %341 = vmatpush.msrb.mxu2 %v298_v52  ;;  %318 = vmatpush.msrb.mxu1 %v298_v52 }
  0x2d   :  { %342 = vmatpush.msrb.mxu2 %v297_v53  ;;  %319 = vmatpush.msrb.mxu1 %v297_v53 }
  0x2f   :  { %343 = vmatpush.msrb.mxu2 %v296_v60  ;;  %320 = vmatpush.msrb.mxu1 %v296_v60 }
  0x31   :  { %168 = vmatmul.bf16.gmra.mxu0 %v511_v12  ;;  %178 = vmatmul.bf16.gmra.mxu1 %v513_v13 }
  0x32   :  { %188 = vmatmul.bf16.gmra.mxu2 %v515_v14  ;;  %198 = vmatmul.bf16.gmra.mxu3 %v517_v15 }
  0x33   :  { %344 = vmatpush.msrb.mxu2 %v295_v3  ;;  %321 = vmatpush.msrb.mxu1 %v295_v3 }
  0x9e   :  { %v164_v16 = vpop.f32.mrf.mxu0  ;;  %v174_v17 = vpop.f32.mrf.mxu1 }
  0x9f   :  { %v651_v27 = vadd.f32 %v643_v22, %v164_v16  ;;  %v678_v38 = vadd.f32 %v643_v22, %v174_v17 }
  0xa1   :  { %v242_v32 = vmul.f32 %v651_v27, %v651_v27  ;;  %v205_v37 = vsel %vm204_vm0, %v651_v27, 0.0  ;;  %v246_v54 = vmul.f32 %v678_v38, %v678_v38  ;;  %v212_v61 = vsel %vm204_vm0, %v678_v38, 0.0 }
  0xa3   :  { %v258_v45 = vsel %vm204_vm0, %v242_v32, 0.0  ;;  %v265_v4 = vsel %vm204_vm0, %v246_v54, 0.0 }
  0xa5   :  { %v636_v18 = vpop.f32.mrf.mxu2  ;;  %v638_v21 = vpop.f32.mrf.mxu3 }
  0xa6   :  { %v166_v19 = vpop.f32.mrf.mxu0  ;;  %v176_v20 = vpop.f32.mrf.mxu1  ;;  %v728_v6 = vadd.f32 %v643_v22, %v636_v18 }
  0xa7   :  { %v646_v23 = vadd.f32 %v643_v22, %v166_v19  ;;  %v688_v46 = vadd.f32 %v643_v22, %v176_v20 }
  0xa8   :  { %v250_v18 = vmul.f32 %v728_v6, %v728_v6  ;;  %v220_v29 = vsel %vm204_vm0, %v728_v6, 0.0 }
  0xa9   :  { %v243_v30 = vmul.f32 %v646_v23, %v646_v23  ;;  %v206_v33 = vsel %vm204_vm0, %v646_v23, 0.0  ;;  %v247_v62 = vmul.f32 %v688_v46, %v688_v46  ;;  %v214_v5 = vsel %vm204_vm0, %v688_v46, 0.0 }
  0xaa   :  { %v207_v41 = vadd.f32 %v206_v33, %v205_v37  ;;  %v273_v36 = vsel %vm204_vm0, %v250_v18, 0.0 }
  0xab   :  { %v259_v39 = vsel %vm204_vm0, %v243_v30, 0.0  ;;  %v267_v11 = vsel %vm204_vm0, %v247_v62, 0.0 }
  0xac   :  { %v260_v49 = vadd.f32 %v259_v39, %v258_v45  ;;  %v762_v39 = vadd.f32 %v643_v22, %v638_v21 }
  0xad   :  { %v648_v24 = vpop.f32.mrf.mxu2  ;;  %v670_v35 = vpop.f32.mrf.mxu3 }
  0xae   :  { %v169_v25 = vpop.f32.mrf.mxu0  ;;  %v179_v26 = vpop.f32.mrf.mxu1  ;;  %v737_v13 = vadd.f32 %v643_v22, %v648_v24  ;;  %v771_v45 = vadd.f32 %v643_v22, %v670_v35 }
  0xaf   :  { %v654_v28 = vadd.f32 %v643_v22, %v169_v25  ;;  %v703_v55 = vadd.f32 %v643_v22, %v179_v26 }
  0xb0   :  { %v251_v30 = vmul.f32 %v737_v13, %v737_v13  ;;  %v222_v37 = vsel %vm204_vm0, %v737_v13, 0.0 }
  0xb1   :  { %v244_v34 = vmul.f32 %v654_v28, %v654_v28  ;;  %v208_v40 = vsel %vm204_vm0, %v654_v28, 0.0  ;;  %v248_v7 = vmul.f32 %v703_v55, %v703_v55  ;;  %v216_v12 = vsel %vm204_vm0, %v703_v55, 0.0 }
  0xb2   :  { %v209_v50 = vadd.f32 %v208_v40, %v207_v41 }
  0xb3   :  { %v261_v47 = vsel %vm204_vm0, %v244_v34, 0.0  ;;  %v269_v19 = vsel %vm204_vm0, %v248_v7, 0.0 }
  0xb4   :  { %v262_v58 = vadd.f32 %v261_v47, %v260_v49 }
  0xb5   :  { %v189_v43 = vpop.f32.mrf.mxu2  ;;  %v199_v10 = vpop.f32.mrf.mxu3 }
  0xb6   :  { %v171_v42 = vpop.f32.mrf.mxu0  ;;  %v181_v51 = vpop.f32.mrf.mxu1  ;;  %v747_v25 = vadd.f32 %v643_v22, %v189_v43  ;;  %v275_v43 = vsel %vm204_vm0, %v251_v30, 0.0  ;;  %v781_v54 = vadd.f32 %v643_v22, %v199_v10 }
  0xb7   :  { %v692_v48 = vadd.f32 %v643_v22, %v171_v42  ;;  %v718_v0 = vadd.f32 %v643_v22, %v181_v51  ;;  %v254_v51 = vmul.f32 %v762_v39, %v762_v39 }
  0xb8   :  { %v252_v40 = vmul.f32 %v747_v25, %v747_v25  ;;  %v224_v44 = vsel %vm204_vm0, %v747_v25, 0.0  ;;  %v232_v7 = vsel %vm204_vm0, %v781_v54, 0.0 }
  0xb9   :  { %v210_v56 = vsel %vm204_vm0, %v692_v48, 0.0  ;;  %v245_v57 = vmul.f32 %v692_v48, %v692_v48  ;;  %v249_v14 = vmul.f32 %v718_v0, %v718_v0  ;;  %v218_v20 = vsel %vm204_vm0, %v718_v0, 0.0 }
  0xba   :  { %v211_v59 = vadd.f32 %v210_v56, %v209_v50  ;;  %v277_v52 = vsel %vm204_vm0, %v252_v40, 0.0 }
  0xbb   :  { %v263_v63 = vsel %vm204_vm0, %v245_v57, 0.0  ;;  %v271_v31 = vsel %vm204_vm0, %v249_v14, 0.0  ;;  %v228_v57 = vsel %vm204_vm0, %v762_v39, 0.0 }
  0xbc   :  { %v213_v1 = vadd.f32 %v212_v61, %v211_v59  ;;  %v264_v2 = vadd.f32 %v263_v63, %v262_v58  ;;  %v255_v58 = vmul.f32 %v771_v45, %v771_v45  ;;  %v281_v63 = vsel %vm204_vm0, %v254_v51, 0.0 }
  0xbd   :  { %v191_v17 = vpop.f32.mrf.mxu2  ;;  %v201_v50 = vpop.f32.mrf.mxu3 }
  0xbe   :  { %v266_v8 = vadd.f32 %v265_v4, %v264_v2  ;;  %v215_v9 = vadd.f32 %v214_v5, %v213_v1  ;;  %v755_v32 = vadd.f32 %v643_v22, %v191_v17  ;;  %v789_v60 = vadd.f32 %v643_v22, %v201_v50 }
  0xbf   :  { %v230_v1 = vsel %vm204_vm0, %v771_v45, 0.0  ;;  %v256_v2 = vmul.f32 %v781_v54, %v781_v54  ;;  %v283_v5 = vsel %vm204_vm0, %v255_v58, 0.0 }
  0xc0   :  { %v217_v15 = vadd.f32 %v216_v12, %v215_v9  ;;  %v268_v16 = vadd.f32 %v267_v11, %v266_v8  ;;  %v253_v47 = vmul.f32 %v755_v32, %v755_v32  ;;  %v226_v53 = vsel %vm204_vm0, %v755_v32, 0.0 }
  0xc1   :  { %v257_v22 = vmul.f32 %v789_v60, %v789_v60  ;;  %v285_v10 = vsel %vm204_vm0, %v256_v2, 0.0  ;;  %v234_v11 = vsel %vm204_vm0, %v789_v60, 0.0 }
  0xc2   :  { %v219_v24 = vadd.f32 %v218_v20, %v217_v15  ;;  %v270_v26 = vadd.f32 %v269_v19, %v268_v16  ;;  %v279_v59 = vsel %vm204_vm0, %v253_v47, 0.0 }
  0xc3   :  { %v287_v15 = vsel %vm204_vm0, %v257_v22, 0.0 }
  0xc4   :  { %v221_v33 = vadd.f32 %v220_v29, %v219_v24  ;;  %v272_v34 = vadd.f32 %v271_v31, %v270_v26 }
  0xc6   :  { %v274_v41 = vadd.f32 %v273_v36, %v272_v34  ;;  %v223_v42 = vadd.f32 %v222_v37, %v221_v33 }
  0xc8   :  { %v225_v49 = vadd.f32 %v224_v44, %v223_v42  ;;  %v276_v21 = vadd.f32 %v275_v43, %v274_v41 }
  0xca   :  { %v278_v56 = vadd.f32 %v277_v52, %v276_v21  ;;  %v227_v35 = vadd.f32 %v226_v53, %v225_v49 }
  0xcc   :  { %v229_v61 = vadd.f32 %v228_v57, %v227_v35  ;;  %v280_v62 = vadd.f32 %v279_v59, %v278_v56  ;;  %v354_v56 = vld [vmem:[%s897_s3] sm:$0x1] }
  0xcd   :  { %v367_v59 = vld [vmem:[%s898_s4] sm:$0x1] }
  0xce   :  { %v282_v3 = vadd.f32 %v281_v63, %v280_v62  ;;  %v231_v4 = vadd.f32 %v230_v1, %v229_v61 }
  0xd0   :  { %v233_v8 = vadd.f32 %v232_v7, %v231_v4  ;;  %v284_v9 = vadd.f32 %v283_v5, %v282_v3 }
  0xd2   :  { %v286_v12 = vadd.f32 %v285_v10, %v284_v9  ;;  %v235_v14 = vadd.f32 %v234_v11, %v233_v8 }
  0xd4   :  { %v236_v16 = vrot.slane %v235_v14, 4  ;;  %v288_v17 = vadd.f32 %v287_v15, %v286_v12 }
  0xd6   :  { %v237_v18 = vadd.f32 %v236_v16, %v235_v14  ;;  %v289_v19 = vrot.slane %v288_v17, 4 }
  0xd8   :  { %v238_v20 = vrot.slane %v237_v18, 2  ;;  %v290_v24 = vadd.f32 %v289_v19, %v288_v17 }
  0xda   :  { %v239_v26 = vadd.f32 %v238_v20, %v237_v18  ;;  %v291_v29 = vrot.slane %v290_v24, 2 }
  0xdc   :  { %v240_v30 = vrot.slane %v239_v26, 1  ;;  %v292_v31 = vadd.f32 %v291_v29, %v290_v24 }
  0xde   :  { %v241_v33 = vadd.f32 %v240_v30, %v239_v26  ;;  %v293_v34 = vrot.slane %v292_v31, 1 }
  0xe0   :  { %508 = vmatmul.msk.f32.vlgmr.msrb.gmra.mxu1 %vm204_vm0, %v241_v33  ;;  %v294_v36 = vadd.f32 %v293_v34, %v292_v31 }
  0xe2   :  { %509 = vmatmul.msk.f32.vlgmr.msrb.gmra.mxu2 %vm204_vm0, %v294_v36 }
 0x15d   :  { %v323_v37 = vpop.f32.mrf.mxu1 }
 0x15e   :  { %v349_v40 = vmul.f32 0.001953125, %v323_v37 }
 0x160   :  { %v351_v42 = vmul.f32 %v349_v40, %v349_v40 }
 0x165   :  { %v346_v41 = vpop.f32.mrf.mxu2 }
 0x166   :  { %v350_v43 = vmul.f32 0.001953125, %v346_v41 }
 0x168   :  { %v352_v44 = vsub.f32 %v350_v43, %v351_v42 }
 0x16a   :  { %v353_v47 = vmax.f32 %v352_v44, 0.0 }
 0x16c   :  { %v355_v49 = vadd.f32 1e-05, %v353_v47 }
 0x16e   :  { %551 = vrsqrt.f32 %v355_v49  ;;  %vm362_vm2 = vweird.f32 %v355_v49 }
 0x174   :  { %v552_v21 = vpop.eup %551 }
 0x175   :  { %v357_v50 = vmul.f32 %v552_v21, %v355_v49  ;;  %vm363_vm1 = vweird.f32 %v552_v21 }
 0x176   :  { %vm364_vm3 = vmor %vm362_vm2, %vm363_vm1 }
 0x177   :  { %v358_v51 = vmul.f32 %v552_v21, %v357_v50 }
 0x179   :  { %v359_v52 = vmul.f32 0.5, %v358_v51 }
 0x17b   :  { %v360_v53 = vsub.f32 1.5, %v359_v52 }
 0x17d   :  { %v361_v35 = vmul.f32 %v552_v21, %v360_v53 }
 0x17f   :  { %v365_v57 = vsel %vm364_vm3, %v552_v21, %v361_v35 }
 0x180   :  { %v366_v58 = vmul.f32 %v365_v57, %v354_v56 }
 0x182   :  { %v368_v61 = vmul.f32 %v366_v58, %v349_v40  ;;  %v371_v63 = vperm.slane %v366_v58, 0 }
 0x184   :  { %v369_v62 = vsub.f32 %v367_v59, %v368_v61  ;;  %v373_v1 = vmul.f32 %v371_v63, %v651_v27  ;;  %v374_v2 = vmul.f32 %v371_v63, %v646_v23  ;;  %v375_v3 = vmul.f32 %v371_v63, %v654_v28 }
 0x185   :  { %v376_v5 = vmul.f32 %v371_v63, %v692_v48  ;;  %v377_v7 = vmul.f32 %v371_v63, %v678_v38  ;;  %v378_v10 = vmul.f32 %v371_v63, %v688_v46  ;;  %v379_v12 = vmul.f32 %v371_v63, %v703_v55 }
 0x186   :  { %v390_v4 = vperm.slane %v369_v62, 0  ;;  %v380_v27 = vmul.f32 %v371_v63, %v718_v0  ;;  %v381_v23 = vmul.f32 %v371_v63, %v728_v6  ;;  %v382_v38 = vmul.f32 %v371_v63, %v737_v13 }
 0x187   :  { %v383_v20 = vmul.f32 %v371_v63, %v747_v25  ;;  %v384_v55 = vmul.f32 %v371_v63, %v755_v32  ;;  %v385_v13 = vmul.f32 %v371_v63, %v762_v39  ;;  %v386_v29 = vmul.f32 %v371_v63, %v771_v45 }
 0x188   :  { %v392_v22 = vadd.f32 %v390_v4, %v373_v1  ;;  %v393_v8 = vadd.f32 %v390_v4, %v374_v2  ;;  %v394_v9 = vadd.f32 %v390_v4, %v375_v3  ;;  %v395_v11 = vadd.f32 %v390_v4, %v376_v5 }
 0x189   :  { %v396_v14 = vadd.f32 %v390_v4, %v377_v7  ;;  %v397_v15 = vadd.f32 %v390_v4, %v378_v10  ;;  %v398_v28 = vadd.f32 %v390_v4, %v379_v12  ;;  %v399_v18 = vadd.f32 %v390_v4, %v380_v27 }
 0x18a   :  { %v408_v16 = vmax.f32 %v392_v22, 0.0  ;;  %v409_v17 = vmax.f32 %v393_v8, 0.0  ;;  %v410_v48 = vmax.f32 %v394_v9, 0.0  ;;  %v411_v19 = vmax.f32 %v395_v11, 0.0 }
 0x18b   :  { %v400_v46 = vadd.f32 %v390_v4, %v381_v23  ;;  %v412_v24 = vmax.f32 %v396_v14, 0.0  ;;  %v401_v0 = vadd.f32 %v390_v4, %v382_v38  ;;  %v413_v6 = vmax.f32 %v397_v15, 0.0 }
 0x18c   :  { %424 = vst.msk [vmem:[%s899_s6] sm:$0xff] %vm204_vm0, %v408_v16  ;;  %v402_v26 = vadd.f32 %v390_v4, %v383_v20  ;;  %v414_v25 = vmax.f32 %v398_v28, 0.0  ;;  %v403_v30 = vadd.f32 %v390_v4, %v384_v55  ;;  %v415_v32 = vmax.f32 %v399_v18, 0.0 }
 0x18d   :  { %425 = vst.msk [vmem:[%s899_s6 + $0x8] sm:$0xff] %vm204_vm0, %v409_v17  ;;  %v387_v31 = vmul.f32 %v371_v63, %v781_v54  ;;  %v404_v33 = vadd.f32 %v390_v4, %v385_v13  ;;  %v416_v39 = vmax.f32 %v400_v46, 0.0  ;;  %v388_v34 = vmul.f32 %v371_v63, %v789_v60 }
 0x18e   :  { %426 = vst.msk [vmem:[%s899_s6 + $0x10] sm:$0xff] %vm204_vm0, %v410_v48  ;;  %v405_v36 = vadd.f32 %v390_v4, %v386_v29  ;;  %v417_v45 = vmax.f32 %v401_v0, 0.0  ;;  %v418_v40 = vmax.f32 %v402_v26, 0.0  ;;  %v419_v41 = vmax.f32 %v403_v30, 0.0 }
 0x18f   :  { %427 = vst.msk [vmem:[%s899_s6 + $0x18] sm:$0xff] %vm204_vm0, %v411_v19  ;;  %v406_v37 = vadd.f32 %v390_v4, %v387_v31  ;;  %v407_v54 = vadd.f32 %v390_v4, %v388_v34  ;;  %v420_v60 = vmax.f32 %v404_v33, 0.0 }
 0x190   :  { %428 = vst.msk [vmem:[%s899_s6 + $0x20] sm:$0xff] %vm204_vm0, %v412_v24  ;;  %v421_v42 = vmax.f32 %v405_v36, 0.0 }
 0x191   :  { %429 = vst.msk [vmem:[%s899_s6 + $0x28] sm:$0xff] %vm204_vm0, %v413_v6  ;;  %v422_v43 = vmax.f32 %v406_v37, 0.0  ;;  %v423_v44 = vmax.f32 %v407_v54, 0.0 }
 0x192   :  { %430 = vst.msk [vmem:[%s899_s6 + $0x30] sm:$0xff] %vm204_vm0, %v414_v25 }
 0x193   :  { %431 = vst.msk [vmem:[%s899_s6 + $0x38] sm:$0xff] %vm204_vm0, %v415_v32 }
 0x194   :  { %432 = vst.msk [vmem:[%s899_s6 + $0x40] sm:$0xff] %vm204_vm0, %v416_v39 }
 0x195   :  { %433 = vst.msk [vmem:[%s899_s6 + $0x48] sm:$0xff] %vm204_vm0, %v417_v45 }
 0x196   :  { %434 = vst.msk [vmem:[%s899_s6 + $0x50] sm:$0xff] %vm204_vm0, %v418_v40 }
 0x197   :  { %435 = vst.msk [vmem:[%s899_s6 + $0x58] sm:$0xff] %vm204_vm0, %v419_v41 }
 0x198   :  { %436 = vst.msk [vmem:[%s899_s6 + $0x60] sm:$0xff] %vm204_vm0, %v420_v60 }
 0x199   :  { %437 = vst.msk [vmem:[%s899_s6 + $0x68] sm:$0xff] %vm204_vm0, %v421_v42 }
 0x19a   :  { %438 = vst.msk [vmem:[%s899_s6 + $0x70] sm:$0xff] %vm204_vm0, %v422_v43 }
 0x19b   :  { %439 = vst.msk [vmem:[%s899_s6 + $0x78] sm:$0xff] %vm204_vm0, %v423_v44 }

// kernel: tile.78
= control target key start
LH: loop header
LB: loop body
LE: loop exit
PB: predicated region body
PF: predicated region fallthrough
CT: control target
= control target key end

     0   :  { %s250_s0 = inlined_call_operand.vmem [shape: f32[8,8], index: 0, kind: input, shape index: {}]   ;;  %s251_s1 = inlined_call_operand.vmem [shape: f32[4,8,4,8], index: 1, kind: output, shape index: {}]  }
   0x1   :  { %v4_v0 = vld [vmem:[%s250_s0] ss:$0 sm:$0xff]  ;;  %v85_v1 = vld [vmem:[%s250_s0 + $0x1] ss:$0 sm:$0xff]  ;;  %v90_v2 = vld [vmem:[%s250_s0 + $0x2] ss:$0 sm:$0xff] }
   0x2   :  { %5 = vst [vmem:[%s251_s1] sm:$0xf] %v4_v0  ;;  %v95_v3 = vld [vmem:[%s250_s0 + $0x3] ss:$0 sm:$0xff]  ;;  %v100_v4 = vld [vmem:[%s250_s0 + $0x4] ss:$0 sm:$0xff] }
   0x3   :  { %82 = vst [vmem:[%s251_s1 + $0x20] sm:$0xf] %v4_v0  ;;  %v105_v5 = vld [vmem:[%s250_s0 + $0x5] ss:$0 sm:$0xff]  ;;  %v110_v6 = vld [vmem:[%s250_s0 + $0x6] ss:$0 sm:$0xff] }
   0x4   :  { %83 = vst [vmem:[%s251_s1 + $0x40] sm:$0xf] %v4_v0  ;;  %v115_v7 = vld [vmem:[%s250_s0 + $0x7] ss:$0 sm:$0xff] }
   0x5   :  { %84 = vst [vmem:[%s251_s1 + $0x60] sm:$0xf] %v4_v0 }
   0x6   :  { %86 = vst [vmem:[%s251_s1 + $0x4] sm:$0xf] %v85_v1 }
   0x7   :  { %87 = vst [vmem:[%s251_s1 + $0x24] sm:$0xf] %v85_v1 }
   0x8   :  { %88 = vst [vmem:[%s251_s1 + $0x44] sm:$0xf] %v85_v1 }
   0x9   :  { %89 = vst [vmem:[%s251_s1 + $0x64] sm:$0xf] %v85_v1 }
   0xa   :  { %91 = vst [vmem:[%s251_s1 + $0x8] sm:$0xf] %v90_v2 }
   0xb   :  { %92 = vst [vmem:[%s251_s1 + $0x28] sm:$0xf] %v90_v2 }
   0xc   :  { %93 = vst [vmem:[%s251_s1 + $0x48] sm:$0xf] %v90_v2 }
   0xd   :  { %94 = vst [vmem:[%s251_s1 + $0x68] sm:$0xf] %v90_v2 }
   0xe   :  { %96 = vst [vmem:[%s251_s1 + $0xc] sm:$0xf] %v95_v3 }
   0xf   :  { %97 = vst [vmem:[%s251_s1 + $0x2c] sm:$0xf] %v95_v3 }
  0x10   :  { %98 = vst [vmem:[%s251_s1 + $0x4c] sm:$0xf] %v95_v3 }
  0x11   :  { %99 = vst [vmem:[%s251_s1 + $0x6c] sm:$0xf] %v95_v3 }
  0x12   :  { %101 = vst [vmem:[%s251_s1 + $0x10] sm:$0xf] %v100_v4 }
  0x13   :  { %102 = vst [vmem:[%s251_s1 + $0x30] sm:$0xf] %v100_v4 }
  0x14   :  { %103 = vst [vmem:[%s251_s1 + $0x50] sm:$0xf] %v100_v4 }
  0x15   :  { %104 = vst [vmem:[%s251_s1 + $0x70] sm:$0xf] %v100_v4 }
  0x16   :  { %106 = vst [vmem:[%s251_s1 + $0x14] sm:$0xf] %v105_v5 }
  0x17   :  { %107 = vst [vmem:[%s251_s1 + $0x34] sm:$0xf] %v105_v5 }
  0x18   :  { %108 = vst [vmem:[%s251_s1 + $0x54] sm:$0xf] %v105_v5 }
  0x19   :  { %109 = vst [vmem:[%s251_s1 + $0x74] sm:$0xf] %v105_v5 }
  0x1a   :  { %111 = vst [vmem:[%s251_s1 + $0x18] sm:$0xf] %v110_v6 }
  0x1b   :  { %112 = vst [vmem:[%s251_s1 + $0x38] sm:$0xf] %v110_v6 }
  0x1c   :  { %113 = vst [vmem:[%s251_s1 + $0x58] sm:$0xf] %v110_v6 }
  0x1d   :  { %114 = vst [vmem:[%s251_s1 + $0x78] sm:$0xf] %v110_v6 }
  0x1e   :  { %116 = vst [vmem:[%s251_s1 + $0x1c] sm:$0xf] %v115_v7 }
  0x1f   :  { %117 = vst [vmem:[%s251_s1 + $0x3c] sm:$0xf] %v115_v7 }
  0x20   :  { %118 = vst [vmem:[%s251_s1 + $0x5c] sm:$0xf] %v115_v7 }
  0x21   :  { %119 = vst [vmem:[%s251_s1 + $0x7c] sm:$0xf] %v115_v7 }

// kernel: tile.79
= control target key start
LH: loop header
LB: loop body
LE: loop exit
PB: predicated region body
PF: predicated region fallthrough
CT: control target
= control target key end

     0   :  { %vm132_vm0 = vcmask 1047556   ;;  %s338_s15 = smov 24   ;;  %s339_s30 = smov 16   ;;  %vm134_vm1 = vcmask 64512   ;;  %vm171_vm2 = vcmask 261312   ;;  %vm214_vm3 = vcmask 195712   ;;  %s535_s0 = inlined_call_operand.vmem [shape: f32[4,8,4,8], index: 0, kind: input, shape index: {}]   ;;  %s536_s1 = inlined_call_operand.vmem [shape: f32[32,32], index: 1, kind: output, shape index: {}]  }
   0x1   :  { %v316_v0 = vld [vmem:[%s535_s0 + $0x1c] sm:$0xf]  ;;  %v317_v1 = vld [vmem:[%s535_s0 + $0x18] sm:$0xf]  ;;  %v318_v2 = vld [vmem:[%s535_s0 + $0x14] sm:$0xf] }
   0x2   :  { %103 = vst [vmem:[#allocation0 + $0x38] sm:$0xf] %v316_v0  ;;  %v319_v3 = vld [vmem:[%s535_s0 + $0x10] sm:$0xf]  ;;  %v320_v4 = vld [vmem:[%s535_s0 + $0xc] sm:$0xf] }
   0x3   :  { %107 = vst [vmem:[#allocation0 + $0x30] sm:$0xf] %v317_v1  ;;  %v321_v5 = vld [vmem:[%s535_s0 + $0x8] sm:$0xf]  ;;  %v322_v6 = vld [vmem:[%s535_s0 + $0x4] sm:$0xf] }
   0x4   :  { %111 = vst [vmem:[#allocation0 + $0x28] sm:$0xf] %v318_v2  ;;  %v128_v7 = vld [vmem:[%s535_s0] sm:$0xf]  ;;  %v300_v8 = vld [vmem:[%s535_s0 + $0x5c] sm:$0xf] }
   0x5   :  { %115 = vst [vmem:[#allocation0 + $0x20] sm:$0xf] %v319_v3  ;;  %v301_v9 = vld [vmem:[%s535_s0 + $0x58] sm:$0xf]  ;;  %v302_v10 = vld [vmem:[%s535_s0 + $0x54] sm:$0xf] }
   0x6   :  { %119 = vst [vmem:[#allocation0 + $0x18] sm:$0xf] %v320_v4  ;;  %v303_v11 = vld [vmem:[%s535_s0 + $0x50] sm:$0xf]  ;;  %v304_v12 = vld [vmem:[%s535_s0 + $0x4c] sm:$0xf] }
   0x7   :  { %123 = vst [vmem:[#allocation0 + $0x10] sm:$0xf] %v321_v5  ;;  %v305_v13 = vld [vmem:[%s535_s0 + $0x48] sm:$0xf]  ;;  %v306_v14 = vld [vmem:[%s535_s0 + $0x44] sm:$0xf] }
   0x8   :  { %127 = vst [vmem:[#allocation0 + $0x8] sm:$0xf] %v322_v6  ;;  %v307_v15 = vld [vmem:[%s535_s0 + $0x40] sm:$0xf]  ;;  %v308_v17 = vld [vmem:[%s535_s0 + $0x3c] sm:$0xf] }
   0x9   :  { %129 = vst [vmem:[#allocation0] sm:$0xf] %v128_v7  ;;  %v309_v18 = vld [vmem:[%s535_s0 + $0x38] sm:$0xf]  ;;  %v310_v21 = vld [vmem:[%s535_s0 + $0x34] sm:$0xf] }
   0xa   :  { %39 = vst [vmem:[#allocation0 + $0xb8] sm:$0xf] %v300_v8  ;;  %v311_v22 = vld [vmem:[%s535_s0 + $0x30] sm:$0xf]  ;;  %v312_v23 = vld [vmem:[%s535_s0 + $0x2c] sm:$0xf] }
   0xb   :  { %43 = vst [vmem:[#allocation0 + $0xb0] sm:$0xf] %v301_v9  ;;  %v313_v24 = vld [vmem:[%s535_s0 + $0x28] sm:$0xf]  ;;  %v314_v25 = vld [vmem:[%s535_s0 + $0x24] sm:$0xf] }
   0xc   :  { %47 = vst [vmem:[#allocation0 + $0xa8] sm:$0xf] %v302_v10  ;;  %v166_v16 = vld [vmem:[#allocation0 + $0x3] ss:$8 sm:$0xf0]   ;;  %vm257_vm4 = vcmask 130112  }
   0xd   :  { %51 = vst [vmem:[#allocation0 + $0xa0] sm:$0xf] %v303_v11  ;;  %v315_v26 = vld [vmem:[%s535_s0 + $0x20] sm:$0xf]  ;;  %v292_v30 = vld [vmem:[%s535_s0 + $0x7c] sm:$0xf] }
   0xe   :  { %55 = vst [vmem:[#allocation0 + $0x98] sm:$0xf] %v304_v12  ;;  %v209_v29 = vld [vmem:[#allocation0 + $0x2] ss:$8 sm:$0xf0]  }
   0xf   :  { %59 = vst [vmem:[#allocation0 + $0x90] sm:$0xf] %v305_v13  ;;  %v293_v31 = vld [vmem:[%s535_s0 + $0x78] sm:$0xf]  ;;  %v294_v35 = vld [vmem:[%s535_s0 + $0x74] sm:$0xf] }
  0x10   :  { %v164_v19 = vld [vmem:[#allocation0 + $0x3] ss:$8 sm:$0xf]   ;;  %63 = vst [vmem:[#allocation0 + $0x88] sm:$0xf] %v306_v14 }
  0x11   :  { %v168_v20 = vsel %vm132_vm0, %v166_v16, %v164_v19  ;;  %67 = vst [vmem:[#allocation0 + $0x80] sm:$0xf] %v307_v15  ;;  %v207_v27 = vld [vmem:[#allocation0 + $0x2] ss:$8 sm:$0xf]  }
  0x12   :  { %169 = vrot.lane.b32.xlu0 %v168_v20, %s338_s15  ;;  %71 = vst [vmem:[#allocation0 + $0x78] sm:$0xf] %v308_v17  ;;  %v211_v32 = vsel %vm132_vm0, %v209_v29, %v207_v27  ;;  %v295_v36 = vld [vmem:[%s535_s0 + $0x70] sm:$0xf]  ;;  %v296_v37 = vld [vmem:[%s535_s0 + $0x6c] sm:$0xf] }
  0x13   :  { %75 = vst [vmem:[#allocation0 + $0x70] sm:$0xf] %v309_v18  ;;  %212 = vrot.lane.b32.xlu2 %v211_v32, %s339_s30  ;;  %v297_v38 = vld [vmem:[%s535_s0 + $0x68] sm:$0xf]  ;;  %v298_v39 = vld [vmem:[%s535_s0 + $0x64] sm:$0xf] }
  0x14   :  { %79 = vst [vmem:[#allocation0 + $0x68] sm:$0xf] %v310_v21  ;;  %v187_v28 = vld [vmem:[#allocation0 + $0x83] ss:$8 sm:$0xf0]  }
  0x15   :  { %83 = vst [vmem:[#allocation0 + $0x60] sm:$0xf] %v311_v22  ;;  %v299_v40 = vld [vmem:[%s535_s0 + $0x60] sm:$0xf]  ;;  %s340_s0 = smov 8  }
  0x16   :  { %87 = vst [vmem:[#allocation0 + $0x58] sm:$0xf] %v312_v23  ;;  %v230_v48 = vld [vmem:[#allocation0 + $0x82] ss:$8 sm:$0xf0]  }
  0x17   :  { %91 = vst [vmem:[#allocation0 + $0x50] sm:$0xf] %v313_v24  ;;  %v250_v49 = vld [vmem:[#allocation0 + $0x1] ss:$8 sm:$0xf]  }
  0x18   :  { %v185_v33 = vld [vmem:[#allocation0 + $0x83] ss:$8 sm:$0xf]   ;;  %95 = vst [vmem:[#allocation0 + $0x48] sm:$0xf] %v314_v25 }
  0x19   :  { %v189_v34 = vsel %vm132_vm0, %v187_v28, %v185_v33  ;;  %99 = vst [vmem:[#allocation0 + $0x40] sm:$0xf] %v315_v26  ;;  %v228_v47 = vld [vmem:[#allocation0 + $0x82] ss:$8 sm:$0xf]  }
  0x1a   :  { %190 = vrot.lane.b32.xlu1 %v189_v34, %s338_s15  ;;  %7 = vst [vmem:[#allocation0 + $0xf8] sm:$0xf] %v292_v30  ;;  %v252_v51 = vld [vmem:[#allocation0 + $0x1] ss:$8 sm:$0xf0]   ;;  %v232_v52 = vsel %vm132_vm0, %v230_v48, %v228_v47 }
  0x1b   :  { %11 = vst [vmem:[#allocation0 + $0xf0] sm:$0xf] %v293_v31  ;;  %v254_v55 = vsel %vm132_vm0, %v252_v51, %v250_v49  ;;  %v271_v1 = vld [vmem:[#allocation0 + $0x81] ss:$8 sm:$0xf]  }
  0x1c   :  { %15 = vst [vmem:[#allocation0 + $0xe8] sm:$0xf] %v294_v35  ;;  %v176_v41 = vld [vmem:[#allocation0 + $0x43] ss:$8 sm:$0xf0]  }
  0x1d   :  { %19 = vst [vmem:[#allocation0 + $0xe0] sm:$0xf] %v295_v36  ;;  %v219_v42 = vld [vmem:[#allocation0 + $0x42] ss:$8 sm:$0xf0]  }
  0x1e   :  { %23 = vst [vmem:[#allocation0 + $0xd8] sm:$0xf] %v296_v37  ;;  %v262_v57 = vld [vmem:[#allocation0 + $0x41] ss:$8 sm:$0xf0]  }
  0x1f   :  { %27 = vst [vmem:[#allocation0 + $0xd0] sm:$0xf] %v297_v38  ;;  %v273_v2 = vld [vmem:[#allocation0 + $0x81] ss:$8 sm:$0xf0]  }
  0x20   :  { %v174_v43 = vld [vmem:[#allocation0 + $0x43] ss:$8 sm:$0xf]   ;;  %31 = vst [vmem:[#allocation0 + $0xc8] sm:$0xf] %v298_v39  ;;  %v275_v3 = vsel %vm132_vm0, %v273_v2, %v271_v1 }
  0x21   :  { %v178_v44 = vsel %vm132_vm0, %v176_v41, %v174_v43  ;;  %35 = vst [vmem:[#allocation0 + $0xc0] sm:$0xf] %v299_v40  ;;  %v217_v45 = vld [vmem:[#allocation0 + $0x42] ss:$8 sm:$0xf]  }
  0x22   :  { %179 = vrot.lane.b32.xlu0 %v178_v44, %s338_s15  ;;  %v221_v46 = vsel %vm132_vm0, %v219_v42, %v217_v45  ;;  %v260_v56 = vld [vmem:[#allocation0 + $0x41] ss:$8 sm:$0xf]   ;;  %v130_v4 = vld [vmem:[#allocation0] ss:$8 sm:$0xf]  }
  0x23   :  { %222 = vrot.lane.b32.xlu2 %v221_v46, %s339_s30  ;;  %v264_v63 = vsel %vm132_vm0, %v262_v57, %v260_v56  ;;  %v131_v5 = vld [vmem:[#allocation0] ss:$8 sm:$0xf0]  }
  0x24   :  { %v198_v50 = vld [vmem:[#allocation0 + $0xc3] ss:$8 sm:$0xf0]   ;;  %v241_v59 = vld [vmem:[#allocation0 + $0xc2] ss:$8 sm:$0xf0]   ;;  %v133_v6 = vsel %vm132_vm0, %v131_v5, %v130_v4 }
  0x25   :  { %v284_v61 = vld [vmem:[#allocation0 + $0xc1] ss:$8 sm:$0xf0]   ;;  %135 = vst.msk [vmem:[%s536_s1] sm:$0xff] %vm134_vm1, %v133_v6  }
  0x26   :  { %v146_v7 = vld [vmem:[#allocation0 + $0x80] ss:$8 sm:$0xf]  }
  0x27   :  { %v148_v8 = vld [vmem:[#allocation0 + $0x80] ss:$8 sm:$0xf0]  }
  0x28   :  { %v196_v53 = vld [vmem:[#allocation0 + $0xc3] ss:$8 sm:$0xf]   ;;  %v239_v58 = vld [vmem:[#allocation0 + $0xc2] ss:$8 sm:$0xf]   ;;  %v150_v9 = vsel %vm132_vm0, %v148_v8, %v146_v7 }
  0x29   :  { %v200_v54 = vsel %vm132_vm0, %v198_v50, %v196_v53  ;;  %v282_v60 = vld [vmem:[#allocation0 + $0xc1] ss:$8 sm:$0xf]   ;;  %v243_v62 = vsel %vm132_vm0, %v241_v59, %v239_v58  ;;  %324 = vst.msk [vmem:[%s536_s1 + $0x10] sm:$0xff] %vm134_vm1, %v150_v9  }
  0x2a   :  { %201 = vrot.lane.b32.xlu1 %v200_v54, %s338_s15  ;;  %233 = vrot.lane.b32.xlu0 %v232_v52, %s339_s30  ;;  %v286_v0 = vsel %vm132_vm0, %v284_v61, %v282_v60  ;;  %v137_v11 = vld [vmem:[#allocation0 + $0x40] ss:$8 sm:$0xf]  }
  0x2b   :  { %255 = vrot.lane.b32.xlu2 %v254_v55, %s340_s0  ;;  %v139_v12 = vld [vmem:[#allocation0 + $0x40] ss:$8 sm:$0xf0]  }
  0x2c   :  { %v141_v13 = vsel %vm132_vm0, %v139_v12, %v137_v11  ;;  %v155_v14 = vld [vmem:[#allocation0 + $0xc0] ss:$8 sm:$0xf]  }
  0x2d   :  { %323 = vst.msk [vmem:[%s536_s1 + $0x8] sm:$0xff] %vm134_vm1, %v141_v13   ;;  %v157_v15 = vld [vmem:[#allocation0 + $0xc0] ss:$8 sm:$0xf0]  }
  0x2e   :  { %v159_v16 = vsel %vm132_vm0, %v157_v15, %v155_v14 }
  0x2f   :  { %325 = vst.msk [vmem:[%s536_s1 + $0x18] sm:$0xff] %vm134_vm1, %v159_v16  }
  0x32   :  { %244 = vrot.lane.b32.xlu1 %v243_v62, %s339_s30  ;;  %265 = vrot.lane.b32.xlu0 %v264_v63, %s340_s0 }
  0x33   :  { %287 = vrot.lane.b32.xlu2 %v286_v0, %s340_s0 }
  0x3a   :  { %276 = vrot.lane.b32.xlu1 %v275_v3, %s340_s0 }
  0x6d   :  { %v213_v10 = vpop.permute.xlu2 %212  }
  0x7d   :  { %v223_v17 = vpop.permute.xlu2 %222  }
  0x84   :  { %v170_v18 = vpop.permute.xlu0 %169  }
  0x85   :  { %172 = vst.msk [vmem:[%s536_s1] sm:$0xff] %vm171_vm2, %v170_v18   ;;  %v256_v19 = vpop.permute.xlu2 %255  }
  0x86   :  { %215 = vst.msk [vmem:[%s536_s1] sm:$0xff] %vm214_vm3, %v213_v10  }
  0x87   :  { %258 = vst.msk [vmem:[%s536_s1] sm:$0xff] %vm257_vm4, %v256_v19  }
  0x8c   :  { %v191_v20 = vpop.permute.xlu1 %190  }
  0x8d   :  { %327 = vst.msk [vmem:[%s536_s1 + $0x10] sm:$0xff] %vm171_vm2, %v191_v20   ;;  %v288_v21 = vpop.permute.xlu2 %287  }
  0x94   :  { %v180_v22 = vpop.permute.xlu0 %179  }
  0x95   :  { %326 = vst.msk [vmem:[%s536_s1 + $0x8] sm:$0xff] %vm171_vm2, %v180_v22  }
  0x96   :  { %329 = vst.msk [vmem:[%s536_s1 + $0x8] sm:$0xff] %vm214_vm3, %v223_v17  }
  0x9c   :  { %v202_v23 = vpop.permute.xlu1 %201   ;;  %v234_v24 = vpop.permute.xlu0 %233  }
  0x9d   :  { %328 = vst.msk [vmem:[%s536_s1 + $0x18] sm:$0xff] %vm171_vm2, %v202_v23  }
  0x9e   :  { %330 = vst.msk [vmem:[%s536_s1 + $0x10] sm:$0xff] %vm214_vm3, %v234_v24  }
  0xa4   :  { %v245_v25 = vpop.permute.xlu1 %244   ;;  %v266_v26 = vpop.permute.xlu0 %265  }
  0xa5   :  { %331 = vst.msk [vmem:[%s536_s1 + $0x18] sm:$0xff] %vm214_vm3, %v245_v25  }
  0xa6   :  { %332 = vst.msk [vmem:[%s536_s1 + $0x8] sm:$0xff] %vm257_vm4, %v266_v26  }
  0xa7   :  { %334 = vst.msk [vmem:[%s536_s1 + $0x18] sm:$0xff] %vm257_vm4, %v288_v21  }
  0xac   :  { %v277_v27 = vpop.permute.xlu1 %276  }
  0xad   :  { %333 = vst.msk [vmem:[%s536_s1 + $0x10] sm:$0xff] %vm257_vm4, %v277_v27  }

// kernel: tile.63
= control target key start
LH: loop header
LB: loop body
LE: loop exit
PB: predicated region body
PF: predicated region fallthrough
CT: control target
= control target key end

     0   :  { %s22_s0 = inlined_call_operand.vmem [shape: f32[8], index: 0, kind: input, shape index: {}]   ;;  %s23_s1 = inlined_call_operand.vmem [shape: f32[4,8], index: 1, kind: output, shape index: {}]  }
   0x1   :  { %v4_v0 = vld [vmem:[%s22_s0] ss:$0 sm:$0xff] }
   0x2   :  { %5 = vst [vmem:[%s23_s1] sm:$0xf] %v4_v0 }

// kernel: tile.72
= control target key start
LH: loop header
LB: loop body
LE: loop exit
PB: predicated region body
PF: predicated region fallthrough
CT: control target
= control target key end

     0   :  { %s37_s8 = smov 8   ;;  %s38_s9 = smov 16   ;;  %vm7_vm0 = vcmask 64512   ;;  %vm13_vm1 = vcmask 261312   ;;  %vm19_vm2 = vcmask 195712   ;;  %vm25_vm3 = vcmask 130112   ;;  %s55_s0 = inlined_call_operand.vmem [shape: f32[4,8], index: 0, kind: input, shape index: {}]   ;;  %s56_s1 = inlined_call_operand.vmem [shape: f32[1,32], index: 1, kind: output, shape index: {}]  }
   0x1   :  { %v4_v0 = vld [vmem:[%s55_s0] sm:$0xf]  ;;  %s36_s0 = smov 24  }
   0x2   :  { %5 = vst [vmem:[#allocation1] sm:$0xf] %v4_v0 }
   0x9   :  { %v10_v1 = vld [vmem:[#allocation1 + $0x3] sm:$0x1]   ;;  %v22_v2 = vld [vmem:[#allocation1 + $0x1] sm:$0x1]   ;;  %v16_v3 = vld [vmem:[#allocation1 + $0x2] sm:$0x1]  }
   0xa   :  { %11 = vrot.lane.b32.xlu0 %v10_v1, %s36_s0  ;;  %23 = vrot.lane.b32.xlu1 %v22_v2, %s37_s8  ;;  %v6_v4 = vld [vmem:[#allocation1] sm:$0x1]  }
   0xb   :  { %8 = vst.msk [vmem:[#allocation0] sm:$0x1] %vm7_vm0, %v6_v4  }
  0x12   :  { %17 = vrot.lane.b32.xlu0 %v16_v3, %s38_s9 }
  0x7c   :  { %v12_v5 = vpop.permute.xlu0 %11   ;;  %v24_v6 = vpop.permute.xlu1 %23  }
  0x7d   :  { %14 = vst.msk [vmem:[#allocation0] sm:$0x1] %vm13_vm1, %v12_v5  }
  0x84   :  { %v18_v7 = vpop.permute.xlu0 %17  }
  0x85   :  { %20 = vst.msk [vmem:[#allocation0] sm:$0x1] %vm19_vm2, %v18_v7  }
  0x86   :  { %26 = vst.msk [vmem:[#allocation0] sm:$0x1] %vm25_vm3, %v24_v6  }
  0x8d   :  { %v29_v8 = vld [vmem:[#allocation0] sm:$0x1] }
  0x8e   :  { %32 = vst [vmem:[%s56_s1] sm:$0x1] %v29_v8 }

// kernel: generator_forward.28
= control target key start
LH: loop header
LB: loop body
LE: loop exit
PB: predicated region body
PF: predicated region fallthrough
CT: control target
= control target key end

     0   :  { %vm284_vm0 = vcmask 523264   ;;  %vm550_vm1 = vcmask 261120   ;;  %s2734_s1 = inlined_call_operand.vmem [shape: bf16[64,32], index: 1, kind: input, shape index: {}]   ;;  %s2735_s2 = inlined_call_operand.vmem [shape: f32[1,32], index: 2, kind: input, shape index: {}]   ;;  %s2736_s0 = inlined_call_operand.vmem [shape: bf16[512,64], index: 0, kind: input, shape index: {}]   ;;  %s2737_s5 = inlined_call_operand.vmem [shape: f32[32,32], index: 5, kind: input, shape index: {}]   ;;  %s2738_s3 = inlined_call_operand.vmem [shape: f32[1,32], index: 3, kind: input, shape index: {}]   ;;  %s2739_s4 = inlined_call_operand.vmem [shape: f32[1,32], index: 4, kind: input, shape index: {}]   ;;  %s2740_s6 = inlined_call_operand.vmem [shape: f32[512,32], index: 6, kind: output, shape index: {}]  }
   0x1   :  { %v1431_v0 = vld [vmem:[%s2734_s1 + $0x18] sm:$0xff]  ;;  %v1430_v1 = vld [vmem:[%s2734_s1 + $0x10] sm:$0xff]  ;;  %v1429_v2 = vld [vmem:[%s2734_s1 + $0x8] sm:$0xff] }
   0x2   :  { %385 = vmatpush.bf16.msra.mxu0 %v1431_v0  ;;  %1432 = vmatpush.bf16.msra.mxu1 %v1431_v0  ;;  %v1428_v3 = vld [vmem:[%s2734_s1] sm:$0xff]  ;;  %v1397_v6 = vld [vmem:[%s2736_s0 + $0x8] sm:$0xff]  ;;  %v1398_v9 = vld [vmem:[%s2736_s0 + $0x10] sm:$0xff] }
   0x3   :  { %1433 = vmatpush.bf16.msra.mxu2 %v1431_v0  ;;  %1434 = vmatpush.bf16.msra.mxu3 %v1431_v0  ;;  %v1396_v4 = vld [vmem:[%s2736_s0] sm:$0xff]  ;;  %v1405_v7 = vld [vmem:[%s2736_s0 + $0x48] sm:$0xff]  ;;  %v1406_v10 = vld [vmem:[%s2736_s0 + $0x50] sm:$0xff] }
   0x4   :  { %v1404_v5 = vld [vmem:[%s2736_s0 + $0x40] sm:$0xff]  ;;  %v1419_v11 = vld [vmem:[%s2736_s0 + $0xb8] sm:$0xff]  ;;  %v1413_v12 = vld [vmem:[%s2736_s0 + $0x88] sm:$0xff] }
   0x5   :  { %v1412_v8 = vld [vmem:[%s2736_s0 + $0x80] sm:$0xff]  ;;  %v1399_v13 = vld [vmem:[%s2736_s0 + $0x18] sm:$0xff]  ;;  %v1414_v16 = vld [vmem:[%s2736_s0 + $0x90] sm:$0xff] }
   0x6   :  { %386 = vmatpush.bf16.msra.mxu0 %v1430_v1  ;;  %1435 = vmatpush.bf16.msra.mxu1 %v1430_v1  ;;  %v1407_v14 = vld [vmem:[%s2736_s0 + $0x58] sm:$0xff]  ;;  %v1420_v15 = vld [vmem:[%s2736_s0 + $0xc0] sm:$0xff]  ;;  %v1421_v19 = vld [vmem:[%s2736_s0 + $0xc8] sm:$0xff] }
   0x7   :  { %1436 = vmatpush.bf16.msra.mxu2 %v1430_v1  ;;  %1437 = vmatpush.bf16.msra.mxu3 %v1430_v1  ;;  %v1400_v17 = vld [vmem:[%s2736_s0 + $0x20] sm:$0xff]  ;;  %v1415_v20 = vld [vmem:[%s2736_s0 + $0x98] sm:$0xff]  ;;  %v1401_v21 = vld [vmem:[%s2736_s0 + $0x28] sm:$0xff] }
   0x8   :  { %v1408_v18 = vld [vmem:[%s2736_s0 + $0x60] sm:$0xff]  ;;  %v1409_v22 = vld [vmem:[%s2736_s0 + $0x68] sm:$0xff]  ;;  %v1422_v23 = vld [vmem:[%s2736_s0 + $0xd0] sm:$0xff] }
   0x9   :  { %v1402_v24 = vld [vmem:[%s2736_s0 + $0x30] sm:$0xff]  ;;  %v1416_v26 = vld [vmem:[%s2736_s0 + $0xa0] sm:$0xff]  ;;  %v1423_v27 = vld [vmem:[%s2736_s0 + $0xd8] sm:$0xff] }
   0xa   :  { %387 = vmatpush.bf16.msra.mxu0 %v1429_v2  ;;  %1438 = vmatpush.bf16.msra.mxu1 %v1429_v2  ;;  %v1410_v25 = vld [vmem:[%s2736_s0 + $0x70] sm:$0xff]  ;;  %v1403_v28 = vld [vmem:[%s2736_s0 + $0x38] sm:$0xff]  ;;  %v1417_v30 = vld [vmem:[%s2736_s0 + $0xa8] sm:$0xff] }
   0xb   :  { %1439 = vmatpush.bf16.msra.mxu2 %v1429_v2  ;;  %1440 = vmatpush.bf16.msra.mxu3 %v1429_v2  ;;  %v1411_v29 = vld [vmem:[%s2736_s0 + $0x78] sm:$0xff]  ;;  %v1424_v31 = vld [vmem:[%s2736_s0 + $0xe0] sm:$0xff]  ;;  %v1418_v32 = vld [vmem:[%s2736_s0 + $0xb0] sm:$0xff] }
   0xc   :  { %v1425_v35 = vld [vmem:[%s2736_s0 + $0xe8] sm:$0xff]  ;;  %v1426_v40 = vld [vmem:[%s2736_s0 + $0xf0] sm:$0xff]  ;;  %v1427_v44 = vld [vmem:[%s2736_s0 + $0xf8] sm:$0xff] }
   0xd   :  { %v1661_v1 = vld [vmem:[%s2735_s2] ss:$0 sm:$0xff] }
   0xe   :  { %388 = vmatpush.bf16.msra.mxu0 %v1428_v3  ;;  %1441 = vmatpush.bf16.msra.mxu1 %v1428_v3 }
   0xf   :  { %1442 = vmatpush.bf16.msra.mxu2 %v1428_v3  ;;  %1443 = vmatpush.bf16.msra.mxu3 %v1428_v3 }
  0x11   :  { %1362 = vmatmul.msk.bf16.vlgmr.msra.gmra.mxu0 %vm284_vm0, %v1396_v4  ;;  %1370 = vmatmul.msk.bf16.vlgmr.msra.gmra.mxu1 %vm284_vm0, %v1404_v5  ;;  %v884_v4 = vld [vmem:[%s2737_s5 + $0x18] sm:$0xff] }
  0x12   :  { %1378 = vmatmul.msk.bf16.vlgmr.msra.gmra.mxu2 %vm284_vm0, %v1412_v8  ;;  %1385 = vmatmul.msk.bf16.vlgmr.msra.gmra.mxu3 %vm284_vm0, %v1419_v11 }
  0x13   :  { %900 = vmatpush.msrb.mxu1 %v884_v4  ;;  %923 = vmatpush.msrb.mxu2 %v884_v4 }
  0x21   :  { %1363 = vmatmul.msk.bf16.gmra.mxu0 %vm284_vm0, %v1397_v6  ;;  %1371 = vmatmul.msk.bf16.gmra.mxu1 %vm284_vm0, %v1405_v7 }
  0x22   :  { %1379 = vmatmul.msk.bf16.gmra.mxu2 %vm284_vm0, %v1413_v12  ;;  %1386 = vmatmul.msk.bf16.gmra.mxu3 %vm284_vm0, %v1420_v15 }
  0x31   :  { %1364 = vmatmul.msk.bf16.gmra.mxu0 %vm284_vm0, %v1398_v9  ;;  %1372 = vmatmul.msk.bf16.gmra.mxu1 %vm284_vm0, %v1406_v10 }
  0x32   :  { %1380 = vmatmul.msk.bf16.gmra.mxu2 %vm284_vm0, %v1414_v16  ;;  %1387 = vmatmul.msk.bf16.gmra.mxu3 %vm284_vm0, %v1421_v19 }
  0x41   :  { %1365 = vmatmul.msk.bf16.gmra.mxu0 %vm284_vm0, %v1399_v13  ;;  %1373 = vmatmul.msk.bf16.gmra.mxu1 %vm284_vm0, %v1407_v14 }
  0x42   :  { %1381 = vmatmul.msk.bf16.gmra.mxu2 %vm284_vm0, %v1415_v20  ;;  %1388 = vmatmul.msk.bf16.gmra.mxu3 %vm284_vm0, %v1422_v23 }
  0x51   :  { %1366 = vmatmul.msk.bf16.gmra.mxu0 %vm284_vm0, %v1400_v17  ;;  %1374 = vmatmul.msk.bf16.gmra.mxu1 %vm284_vm0, %v1408_v18 }
  0x52   :  { %1382 = vmatmul.msk.bf16.gmra.mxu2 %vm284_vm0, %v1416_v26  ;;  %1389 = vmatmul.msk.bf16.gmra.mxu3 %vm284_vm0, %v1423_v27 }
  0x61   :  { %1367 = vmatmul.msk.bf16.gmra.mxu0 %vm284_vm0, %v1401_v21  ;;  %1375 = vmatmul.msk.bf16.gmra.mxu1 %vm284_vm0, %v1409_v22 }
  0x62   :  { %1383 = vmatmul.msk.bf16.gmra.mxu2 %vm284_vm0, %v1417_v30  ;;  %1390 = vmatmul.msk.bf16.gmra.mxu3 %vm284_vm0, %v1424_v31 }
  0x71   :  { %1368 = vmatmul.msk.bf16.gmra.mxu0 %vm284_vm0, %v1402_v24  ;;  %1376 = vmatmul.msk.bf16.gmra.mxu1 %vm284_vm0, %v1410_v25 }
  0x72   :  { %1384 = vmatmul.msk.bf16.gmra.mxu2 %vm284_vm0, %v1418_v32  ;;  %1391 = vmatmul.msk.bf16.gmra.mxu3 %vm284_vm0, %v1425_v35 }
  0x81   :  { %1369 = vmatmul.msk.bf16.gmra.mxu0 %vm284_vm0, %v1403_v28  ;;  %1377 = vmatmul.msk.bf16.gmra.mxu1 %vm284_vm0, %v1411_v29 }
  0x82   :  { %1392 = vmatmul.msk.bf16.gmra.mxu3 %vm284_vm0, %v1426_v40 }
  0x8e   :  { %v390_v33 = vpop.f32.mrf.mxu0  ;;  %v1609_v34 = vpop.f32.mrf.mxu1 }
  0x8f   :  { %v1674_v6 = vadd.f32 %v1661_v1, %v390_v33 }
  0x91   :  { %v684_v12 = vmul.f32 %v1674_v6, %v1674_v6  ;;  %v551_v16 = vsel %vm550_vm1, %v1674_v6, 0.0 }
  0x92   :  { %1393 = vmatmul.msk.bf16.gmra.mxu3 %vm284_vm0, %v1427_v44 }
  0x93   :  { %v748_v22 = vsel %vm550_vm1, %v684_v12, 0.0 }
  0x95   :  { %v1632_v47 = vpop.f32.mrf.mxu3  ;;  %v1634_v48 = vpop.f32.mrf.mxu2 }
  0x96   :  { %v392_v36 = vpop.f32.mrf.mxu0  ;;  %v1616_v37 = vpop.f32.mrf.mxu1 }
  0x97   :  { %v1671_v5 = vadd.f32 %v1661_v1, %v392_v36 }
  0x99   :  { %v685_v10 = vmul.f32 %v1671_v5, %v1671_v5  ;;  %v552_v13 = vsel %vm550_vm1, %v1671_v5, 0.0 }
  0x9a   :  { %v553_v23 = vadd.f32 %v552_v13, %v551_v16 }
  0x9b   :  { %v749_v18 = vsel %vm550_vm1, %v685_v10, 0.0 }
  0x9c   :  { %v750_v30 = vadd.f32 %v749_v18, %v748_v22 }
  0x9d   :  { %v1638_v51 = vpop.f32.mrf.mxu3  ;;  %v1640_v52 = vpop.f32.mrf.mxu2 }
  0x9e   :  { %v395_v38 = vpop.f32.mrf.mxu0  ;;  %v1618_v39 = vpop.f32.mrf.mxu1 }
  0x9f   :  { %v1677_v8 = vadd.f32 %v1661_v1, %v395_v38 }
  0xa1   :  { %v686_v14 = vmul.f32 %v1677_v8, %v1677_v8  ;;  %v554_v19 = vsel %vm550_vm1, %v1677_v8, 0.0 }
  0xa2   :  { %v555_v31 = vadd.f32 %v554_v19, %v553_v23 }
  0xa3   :  { %v751_v26 = vsel %vm550_vm1, %v686_v14, 0.0 }
  0xa4   :  { %v752_v38 = vadd.f32 %v751_v26, %v750_v30 }
  0xa5   :  { %v1644_v55 = vpop.f32.mrf.mxu3  ;;  %v1646_v57 = vpop.f32.mrf.mxu2 }
  0xa6   :  { %v397_v41 = vpop.f32.mrf.mxu0  ;;  %v1624_v42 = vpop.f32.mrf.mxu1 }
  0xa7   :  { %v1684_v11 = vadd.f32 %v1661_v1, %v397_v41 }
  0xa9   :  { %v687_v20 = vmul.f32 %v1684_v11, %v1684_v11  ;;  %v556_v27 = vsel %vm550_vm1, %v1684_v11, 0.0 }
  0xaa   :  { %v557_v40 = vadd.f32 %v556_v27, %v555_v31 }
  0xab   :  { %v753_v32 = vsel %vm550_vm1, %v687_v20, 0.0 }
  0xac   :  { %v754_v4 = vadd.f32 %v753_v32, %v752_v38 }
  0xad   :  { %v1650_v59 = vpop.f32.mrf.mxu3  ;;  %v1652_v61 = vpop.f32.mrf.mxu2 }
  0xae   :  { %v400_v43 = vpop.f32.mrf.mxu0  ;;  %v1629_v45 = vpop.f32.mrf.mxu1 }
  0xaf   :  { %v1693_v15 = vadd.f32 %v1661_v1, %v400_v43 }
  0xb1   :  { %v688_v28 = vmul.f32 %v1693_v15, %v1693_v15  ;;  %v558_v33 = vsel %vm550_vm1, %v1693_v15, 0.0 }
  0xb2   :  { %v559_v10 = vadd.f32 %v558_v33, %v557_v40 }
  0xb3   :  { %v755_v43 = vsel %vm550_vm1, %v688_v28, 0.0 }
  0xb4   :  { %v756_v16 = vadd.f32 %v755_v43, %v754_v4 }
  0xb5   :  { %v1656_v0 = vpop.f32.mrf.mxu3  ;;  %v1663_v2 = vpop.f32.mrf.mxu2 }
  0xb6   :  { %v402_v46 = vpop.f32.mrf.mxu0  ;;  %v1636_v49 = vpop.f32.mrf.mxu1 }
  0xb7   :  { %v1705_v21 = vadd.f32 %v1661_v1, %v402_v46 }
  0xb9   :  { %v689_v35 = vmul.f32 %v1705_v21, %v1705_v21  ;;  %v560_v44 = vsel %vm550_vm1, %v1705_v21, 0.0 }
  0xba   :  { %v561_v18 = vadd.f32 %v560_v44, %v559_v10 }
  0xbd   :  { %v1679_v9 = vpop.f32.mrf.mxu3  ;;  %v1697_v17 = vpop.f32.mrf.mxu2 }
  0xbe   :  { %v405_v50 = vpop.f32.mrf.mxu0  ;;  %v1642_v54 = vpop.f32.mrf.mxu1 }
  0xbf   :  { %v1716_v29 = vadd.f32 %v1661_v1, %v405_v50 }
  0xc1   :  { %v690_v46 = vmul.f32 %v1716_v29, %v1716_v29  ;;  %v562_v12 = vsel %vm550_vm1, %v1716_v29, 0.0 }
  0xc2   :  { %v563_v28 = vadd.f32 %v562_v12, %v561_v18 }
  0xc5   :  { %v1726_v41 = vpop.f32.mrf.mxu3  ;;  %v1744_v20 = vpop.f32.mrf.mxu2 }
  0xc6   :  { %v407_v53 = vpop.f32.mrf.mxu0  ;;  %v1648_v58 = vpop.f32.mrf.mxu1 }
  0xc7   :  { %v1724_v36 = vadd.f32 %v1661_v1, %v407_v53  ;;  %v757_v53 = vsel %vm550_vm1, %v689_v35, 0.0 }
  0xc8   :  { %v758_v27 = vadd.f32 %v757_v53, %v756_v16 }
  0xc9   :  { %v691_v13 = vmul.f32 %v1724_v36, %v1724_v36  ;;  %v564_v22 = vsel %vm550_vm1, %v1724_v36, 0.0 }
  0xca   :  { %v565_v38 = vadd.f32 %v564_v22, %v563_v28 }
  0xcb   :  { %v761_v30 = vsel %vm550_vm1, %v691_v13, 0.0 }
  0xcd   :  { %v1772_v10 = vpop.f32.mrf.mxu3 }
  0xce   :  { %v410_v56 = vpop.f32.mrf.mxu0  ;;  %v1654_v62 = vpop.f32.mrf.mxu1 }
  0xcf   :  { %v1734_v50 = vadd.f32 %v1661_v1, %v410_v56  ;;  %v759_v56 = vsel %vm550_vm1, %v690_v46, 0.0 }
  0xd0   :  { %v760_v35 = vadd.f32 %v759_v56, %v758_v27 }
  0xd1   :  { %v692_v23 = vmul.f32 %v1734_v50, %v1734_v50  ;;  %v566_v31 = vsel %vm550_vm1, %v1734_v50, 0.0 }
  0xd2   :  { %v762_v46 = vadd.f32 %v761_v30, %v760_v35  ;;  %v567_v4 = vadd.f32 %v566_v31, %v565_v38  ;;  %v1790_v31 = vpop.f32.mrf.mxu2 }
  0xd6   :  { %v412_v60 = vpop.f32.mrf.mxu0  ;;  %v1665_v3 = vpop.f32.mrf.mxu1 }
  0xd7   :  { %v1742_v14 = vadd.f32 %v1661_v1, %v412_v60 }
  0xd9   :  { %v693_v32 = vmul.f32 %v1742_v14, %v1742_v14  ;;  %v568_v40 = vsel %vm550_vm1, %v1742_v14, 0.0 }
  0xda   :  { %v569_v18 = vadd.f32 %v568_v40, %v567_v4 }
  0xde   :  { %v415_v63 = vpop.f32.mrf.mxu0  ;;  %v1708_v25 = vpop.f32.mrf.mxu1 }
  0xdf   :  { %v1752_v26 = vadd.f32 %v1661_v1, %v415_v63  ;;  %v763_v63 = vsel %vm550_vm1, %v692_v23, 0.0 }
  0xe0   :  { %v764_v16 = vadd.f32 %v763_v63, %v762_v46 }
  0xe1   :  { %v694_v43 = vmul.f32 %v1752_v26, %v1752_v26  ;;  %v570_v53 = vsel %vm550_vm1, %v1752_v26, 0.0 }
  0xe2   :  { %v571_v30 = vadd.f32 %v570_v53, %v569_v18 }
  0xe6   :  { %v417_v7 = vpop.f32.mrf.mxu0  ;;  %v1754_v60 = vpop.f32.mrf.mxu1 }
  0xe7   :  { %v1762_v33 = vadd.f32 %v1661_v1, %v417_v7  ;;  %v765_v7 = vsel %vm550_vm1, %v693_v32, 0.0 }
  0xe8   :  { %v766_v28 = vadd.f32 %v765_v7, %v764_v16 }
  0xe9   :  { %v695_v12 = vmul.f32 %v1762_v33, %v1762_v33  ;;  %v572_v22 = vsel %vm550_vm1, %v1762_v33, 0.0 }
  0xea   :  { %v573_v63 = vadd.f32 %v572_v22, %v571_v30 }
  0xee   :  { %v420_v24 = vpop.f32.mrf.mxu0  ;;  %v1797_v40 = vpop.f32.mrf.mxu1 }
  0xef   :  { %v1770_v44 = vadd.f32 %v1661_v1, %v420_v24  ;;  %v767_v24 = vsel %vm550_vm1, %v694_v43, 0.0 }
  0xf0   :  { %v768_v38 = vadd.f32 %v767_v24, %v766_v28  ;;  %v1815_v28 = vadd.f32 %v1661_v1, %v1616_v37 }
  0xf1   :  { %v696_v23 = vmul.f32 %v1770_v44, %v1770_v44  ;;  %v574_v32 = vsel %vm550_vm1, %v1770_v44, 0.0 }
  0xf2   :  { %v575_v53 = vadd.f32 %v574_v32, %v573_v63  ;;  %2763 = vst [vmem:[#allocation2_spill] sm:$0xff] %v1815_v28 }
  0xf3   :  { %v771_v43 = vsel %vm550_vm1, %v696_v23, 0.0  ;;  %v1811_v23 = vpop.f32.mrf.mxu3 }
  0xf6   :  { %v422_v19 = vpop.f32.mrf.mxu0 }
  0xf7   :  { %v1780_v13 = vadd.f32 %v1661_v1, %v422_v19  ;;  %v769_v19 = vsel %vm550_vm1, %v695_v12, 0.0  ;;  %v1806_v12 = vadd.f32 %v1661_v1, %v1609_v34 }
  0xf8   :  { %v770_v7 = vadd.f32 %v769_v19, %v768_v38  ;;  %v1825_v38 = vadd.f32 %v1661_v1, %v1618_v39  ;;  %v1839_v39 = vadd.f32 %v1661_v1, %v1624_v42 }
  0xf9   :  { %v697_v35 = vmul.f32 %v1780_v13, %v1780_v13  ;;  %v576_v46 = vsel %vm550_vm1, %v1780_v13, 0.0 }
  0xfa   :  { %v577_v24 = vadd.f32 %v576_v46, %v575_v53  ;;  %v701_v53 = vmul.f32 %v1815_v28, %v1815_v28  ;;  %2764 = vst [vmem:[#allocation3_spill] sm:$0xff] %v1839_v39 }
  0xfb   :  { %v773_v16 = vsel %vm550_vm1, %v697_v35, 0.0  ;;  %v700_v35 = vmul.f32 %v1806_v12, %v1806_v12 }
  0xfe   :  { %v425_v56 = vpop.f32.mrf.mxu0 }
  0xff   :  { %v1788_v27 = vadd.f32 %v1661_v1, %v425_v56  ;;  %v772_v56 = vadd.f32 %v771_v43, %v770_v7  ;;  %v582_v7 = vsel %vm550_vm1, %v1806_v12, 0.0 }
 0x101   :  { %v698_v4 = vmul.f32 %v1788_v27, %v1788_v27  ;;  %v578_v18 = vsel %vm550_vm1, %v1788_v27, 0.0  ;;  %v774_v34 = vadd.f32 %v773_v16, %v772_v56 }
 0x102   :  { %v579_v32 = vadd.f32 %v578_v18, %v577_v24  ;;  %v1842_v24 = vpop.f32.mrf.mxu1 }
 0x103   :  { %v775_v30 = vsel %vm550_vm1, %v698_v4, 0.0  ;;  %v1831_v4 = vpop.f32.mrf.mxu2 }
 0x104   :  { %v776_v43 = vadd.f32 %v775_v30, %v774_v34  ;;  %v584_v30 = vsel %vm550_vm1, %v1815_v28, 0.0  ;;  %v702_v34 = vmul.f32 %v1825_v38, %v1825_v38  ;;  %v1862_v28 = vpop.f32.mrf.mxu3 }
 0x106   :  { %v427_v22 = vpop.f32.mrf.mxu0 }
 0x107   :  { %v1819_v19 = vadd.f32 %v1661_v1, %v427_v22  ;;  %v779_v22 = vsel %vm550_vm1, %v700_v35, 0.0  ;;  %v703_v35 = vmul.f32 %v1839_v39, %v1839_v39 }
 0x109   :  { %v580_v63 = vsel %vm550_vm1, %v1819_v19, 0.0  ;;  %v699_v37 = vmul.f32 %v1819_v19, %v1819_v19 }
 0x10a   :  { %v581_v46 = vadd.f32 %v580_v63, %v579_v32  ;;  %v1851_v32 = vadd.f32 %v1661_v1, %v1629_v45  ;;  %v783_v45 = vsel %vm550_vm1, %v702_v34, 0.0 }
 0x10b   :  { %v777_v16 = vsel %vm550_vm1, %v699_v37, 0.0  ;;  %v781_v37 = vsel %vm550_vm1, %v701_v53, 0.0 }
 0x10c   :  { %v583_v18 = vadd.f32 %v582_v7, %v581_v46  ;;  %v778_v56 = vadd.f32 %v777_v16, %v776_v43  ;;  %v586_v43 = vsel %vm550_vm1, %v1825_v38, 0.0  ;;  %v1860_v46 = vadd.f32 %v1661_v1, %v1636_v49 }
 0x10d   :  { %v704_v53 = vmul.f32 %v1851_v32, %v1851_v32  ;;  %v785_v49 = vsel %vm550_vm1, %v703_v35, 0.0 }
 0x10e   :  { %v585_v42 = vadd.f32 %v584_v30, %v583_v18  ;;  %v780_v63 = vadd.f32 %v779_v22, %v778_v56  ;;  %2765 = vst [vmem:[#allocation4_spill] sm:$0xff] %v1860_v46  ;;  %v588_v18 = vsel %vm550_vm1, %v1839_v39, 0.0  ;;  %v1871_v56 = vadd.f32 %v1661_v1, %v1642_v54  ;;  %v1882_v39 = vpop.f32.mrf.mxu2 }
 0x10f   :  { %v705_v34 = vmul.f32 %v1860_v46, %v1860_v46  ;;  %v787_v54 = vsel %vm550_vm1, %v704_v53, 0.0 }
 0x110   :  { %v587_v7 = vadd.f32 %v586_v43, %v585_v42  ;;  %v782_v16 = vadd.f32 %v781_v37, %v780_v63  ;;  %2766 = vst [vmem:[#allocation5_spill] sm:$0xff] %v1871_v56  ;;  %v590_v42 = vsel %vm550_vm1, %v1851_v32, 0.0  ;;  %v1880_v63 = vadd.f32 %v1661_v1, %v1648_v58  ;;  %v465_v58 = vpop.f32.mrf.mxu1 }
 0x111   :  { %v706_v35 = vmul.f32 %v1871_v56, %v1871_v56  ;;  %v594_v53 = vsel %vm550_vm1, %v1871_v56, 0.0 }
 0x112   :  { %v589_v22 = vadd.f32 %v588_v18, %v587_v7  ;;  %v784_v30 = vadd.f32 %v783_v45, %v782_v16  ;;  %v592_v7 = vsel %vm550_vm1, %v1860_v46, 0.0  ;;  %v1891_v16 = vadd.f32 %v1661_v1, %v1654_v62 }
 0x114   :  { %v591_v37 = vadd.f32 %v590_v42, %v589_v22  ;;  %v786_v43 = vadd.f32 %v785_v49, %v784_v30  ;;  %2767 = vst [vmem:[#allocation6_spill] sm:$0xff] %v1891_v16  ;;  %v883_v22 = vld [vmem:[%s2737_s5 + $0x10] sm:$0xff]  ;;  %v789_v30 = vsel %vm550_vm1, %v705_v34, 0.0  ;;  %v707_v49 = vmul.f32 %v1880_v63, %v1880_v63 }
 0x115   :  { %v1903_v42 = vadd.f32 %v1661_v1, %v1665_v3  ;;  %901 = vmatpush.msrb.mxu1 %v883_v22  ;;  %924 = vmatpush.msrb.mxu2 %v883_v22  ;;  %v708_v34 = vmul.f32 %v1891_v16, %v1891_v16  ;;  %v1914_v3 = vpop.f32.mrf.mxu3 }
 0x116   :  { %v593_v45 = vadd.f32 %v592_v7, %v591_v37  ;;  %v788_v18 = vadd.f32 %v787_v54, %v786_v43  ;;  %v791_v43 = vsel %vm550_vm1, %v706_v35, 0.0  ;;  %v596_v54 = vsel %vm550_vm1, %v1880_v63, 0.0 }
 0x117   :  { %2768 = vst [vmem:[#allocation7_spill] sm:$0xff] %v1903_v42  ;;  %v1912_v7 = vadd.f32 %v1661_v1, %v1708_v25  ;;  %v793_v22 = vsel %vm550_vm1, %v707_v49, 0.0  ;;  %v709_v35 = vmul.f32 %v1903_v42, %v1903_v42  ;;  %v795_v25 = vsel %vm550_vm1, %v708_v34, 0.0 }
 0x118   :  { %v790_v62 = vadd.f32 %v789_v30, %v788_v18  ;;  %v595_v37 = vadd.f32 %v594_v53, %v593_v45  ;;  %v598_v45 = vsel %vm550_vm1, %v1891_v16, 0.0  ;;  %v1923_v18 = vadd.f32 %v1661_v1, %v1754_v60  ;;  %v1934_v16 = vpop.f32.mrf.mxu2 }
 0x119   :  { %2769 = vst [vmem:[#allocation8_spill] sm:$0xff] %v1912_v7  ;;  %v710_v49 = vmul.f32 %v1912_v7, %v1912_v7  ;;  %v797_v60 = vsel %vm550_vm1, %v709_v35, 0.0  ;;  %v1943_v34 = vadd.f32 %v1661_v1, %v1842_v24 }
 0x11a   :  { %v597_v56 = vadd.f32 %v596_v54, %v595_v37  ;;  %v792_v46 = vadd.f32 %v791_v43, %v790_v62  ;;  %v600_v62 = vsel %vm550_vm1, %v1903_v42, 0.0  ;;  %v1932_v37 = vadd.f32 %v1661_v1, %v1797_v40  ;;  %v467_v40 = vpop.f32.mrf.mxu1 }
 0x11b   :  { %2770 = vst [vmem:[#allocation9_spill] sm:$0xff] %v1943_v34 }
 0x11c   :  { %v599_v30 = vadd.f32 %v598_v45, %v597_v56  ;;  %v794_v53 = vadd.f32 %v793_v22, %v792_v46  ;;  %v602_v46 = vsel %vm550_vm1, %v1912_v7, 0.0  ;;  %v711_v56 = vmul.f32 %v1923_v18, %v1923_v18 }
 0x11d   :  { %v712_v35 = vmul.f32 %v1932_v37, %v1932_v37  ;;  %v606_v24 = vsel %vm550_vm1, %v1932_v37, 0.0 }
 0x11e   :  { %v601_v43 = vadd.f32 %v600_v62, %v599_v30  ;;  %v796_v54 = vadd.f32 %v795_v25, %v794_v53  ;;  %v799_v30 = vsel %vm550_vm1, %v710_v49, 0.0  ;;  %v604_v53 = vsel %vm550_vm1, %v1923_v18, 0.0 }
 0x11f   :  { %v1951_v25 = vadd.f32 %v1661_v1, %v465_v58  ;;  %v801_v42 = vsel %vm550_vm1, %v711_v56, 0.0  ;;  %v1959_v49 = vadd.f32 %v1661_v1, %v467_v40  ;;  %v1965_v58 = vadd.f32 %v1661_v1, %v1634_v48 }
 0x120   :  { %v603_v22 = vadd.f32 %v602_v46, %v601_v43  ;;  %v798_v45 = vadd.f32 %v797_v60, %v796_v54  ;;  %v713_v43 = vmul.f32 %v1943_v34, %v1943_v34  ;;  %v1961_v46 = vpop.f32.mrf.mxu3  ;;  %v608_v56 = vsel %vm550_vm1, %v1943_v34, 0.0 }
 0x121   :  { %2771 = vst [vmem:[#allocation10_spill] sm:$0xff] %v1965_v58  ;;  %v1974_v40 = vadd.f32 %v1661_v1, %v1640_v52  ;;  %v610_v48 = vsel %vm550_vm1, %v1951_v25, 0.0  ;;  %v716_v34 = vmul.f32 %v1965_v58, %v1965_v58 }
 0x122   :  { %v605_v62 = vadd.f32 %v604_v53, %v603_v22  ;;  %v800_v7 = vadd.f32 %v799_v30, %v798_v45  ;;  %v803_v22 = vsel %vm550_vm1, %v712_v35, 0.0  ;;  %v714_v45 = vmul.f32 %v1951_v25, %v1951_v25 }
 0x124   :  { %v607_v54 = vadd.f32 %v606_v24, %v605_v62  ;;  %v802_v60 = vadd.f32 %v801_v42, %v800_v7  ;;  %v805_v42 = vsel %vm550_vm1, %v713_v43, 0.0  ;;  %v715_v7 = vmul.f32 %v1959_v49, %v1959_v49  ;;  %v497_v24 = vpop.f32.mrf.mxu2 }
 0x125   :  { %v807_v52 = vsel %vm550_vm1, %v714_v45, 0.0  ;;  %v612_v43 = vsel %vm550_vm1, %v1959_v49, 0.0  ;;  %v811_v45 = vsel %vm550_vm1, %v716_v34, 0.0 }
 0x126   :  { %v804_v30 = vadd.f32 %v803_v22, %v802_v60  ;;  %v609_v53 = vadd.f32 %v608_v56, %v607_v54  ;;  %v1985_v54 = vadd.f32 %v1661_v1, %v1646_v57  ;;  %v614_v56 = vsel %vm550_vm1, %v1965_v58, 0.0 }
 0x127   :  { %v809_v57 = vsel %vm550_vm1, %v715_v7, 0.0 }
 0x128   :  { %v806_v35 = vadd.f32 %v805_v42, %v804_v30  ;;  %v611_v62 = vadd.f32 %v610_v48, %v609_v53  ;;  %2772 = vst [vmem:[#allocation11_spill] sm:$0xff] %v1985_v54  ;;  %v717_v30 = vmul.f32 %v1974_v40, %v1974_v40  ;;  %v1996_v53 = vadd.f32 %v1661_v1, %v1652_v61  ;;  %v2008_v61 = vpop.f32.mrf.mxu3 }
 0x12a   :  { %v808_v60 = vadd.f32 %v807_v52, %v806_v35  ;;  %v613_v22 = vadd.f32 %v612_v43, %v611_v62  ;;  %v616_v35 = vsel %vm550_vm1, %v1974_v40, 0.0  ;;  %v718_v62 = vmul.f32 %v1985_v54, %v1985_v54 }
 0x12b   :  { %v2006_v52 = vadd.f32 %v1661_v1, %v1663_v2  ;;  %v813_v7 = vsel %vm550_vm1, %v717_v30, 0.0  ;;  %v719_v34 = vmul.f32 %v1996_v53, %v1996_v53 }
 0x12c   :  { %v615_v42 = vadd.f32 %v614_v56, %v613_v22  ;;  %v810_v48 = vadd.f32 %v809_v57, %v808_v60  ;;  %v618_v60 = vsel %vm550_vm1, %v1985_v54, 0.0  ;;  %v2017_v22 = vadd.f32 %v1661_v1, %v1697_v17  ;;  %v500_v54 = vpop.f32.mrf.mxu2 }
 0x12d   :  { %2773 = vst [vmem:[#allocation12_spill] sm:$0xff] %v2006_v52  ;;  %v815_v2 = vsel %vm550_vm1, %v718_v62, 0.0  ;;  %v720_v30 = vmul.f32 %v2006_v52, %v2006_v52  ;;  %v817_v17 = vsel %vm550_vm1, %v719_v34, 0.0 }
 0x12e   :  { %v617_v43 = vadd.f32 %v616_v35, %v615_v42  ;;  %v812_v58 = vadd.f32 %v811_v45, %v810_v48  ;;  %v620_v42 = vsel %vm550_vm1, %v1996_v53, 0.0  ;;  %v2026_v48 = vadd.f32 %v1661_v1, %v1744_v20 }
 0x12f   :  { %v721_v62 = vmul.f32 %v2017_v22, %v2017_v22  ;;  %v819_v20 = vsel %vm550_vm1, %v720_v30, 0.0 }
 0x130   :  { %v619_v56 = vadd.f32 %v618_v60, %v617_v43  ;;  %v814_v57 = vadd.f32 %v813_v7, %v812_v58  ;;  %2774 = vst [vmem:[#allocation13_spill] sm:$0xff] %v2026_v48  ;;  %v622_v58 = vsel %vm550_vm1, %v2006_v52, 0.0  ;;  %v2035_v43 = vadd.f32 %v1661_v1, %v1790_v31 }
 0x131   :  { %v722_v34 = vmul.f32 %v2026_v48, %v2026_v48  ;;  %v821_v52 = vsel %vm550_vm1, %v721_v62, 0.0  ;;  %v626_v31 = vsel %vm550_vm1, %v2026_v48, 0.0 }
 0x132   :  { %v621_v45 = vadd.f32 %v620_v42, %v619_v56  ;;  %v816_v35 = vadd.f32 %v815_v2, %v814_v57  ;;  %2775 = vst [vmem:[#allocation14_spill] sm:$0xff] %v2035_v43  ;;  %v624_v56 = vsel %vm550_vm1, %v2017_v22, 0.0  ;;  %v2044_v57 = vadd.f32 %v1661_v1, %v1831_v4 }
 0x133   :  { %v723_v30 = vmul.f32 %v2035_v43, %v2035_v43  ;;  %v823_v4 = vsel %vm550_vm1, %v722_v34, 0.0 }
 0x134   :  { %v623_v7 = vadd.f32 %v622_v58, %v621_v45  ;;  %v818_v60 = vadd.f32 %v817_v17, %v816_v35  ;;  %v2053_v45 = vadd.f32 %v1661_v1, %v1882_v39  ;;  %v2055_v58 = vpop.f32.mrf.mxu3  ;;  %v724_v62 = vmul.f32 %v2044_v57, %v2044_v57 }
 0x135   :  { %v825_v39 = vsel %vm550_vm1, %v723_v30, 0.0 }
 0x136   :  { %v820_v2 = vadd.f32 %v819_v20, %v818_v60  ;;  %v625_v42 = vadd.f32 %v624_v56, %v623_v7  ;;  %v628_v7 = vsel %vm550_vm1, %v2035_v43, 0.0  ;;  %v2064_v60 = vadd.f32 %v1661_v1, %v1934_v16  ;;  %v502_v43 = vpop.f32.mrf.mxu2 }
 0x137   :  { %v725_v34 = vmul.f32 %v2053_v45, %v2053_v45  ;;  %v827_v48 = vsel %vm550_vm1, %v724_v62, 0.0  ;;  %v632_v16 = vsel %vm550_vm1, %v2053_v45, 0.0  ;;  %v2088_v62 = vadd.f32 %v1661_v1, %v502_v43 }
 0x138   :  { %v627_v35 = vadd.f32 %v626_v31, %v625_v42  ;;  %v822_v17 = vadd.f32 %v821_v52, %v820_v2  ;;  %v630_v52 = vsel %vm550_vm1, %v2044_v57, 0.0  ;;  %v2072_v2 = vadd.f32 %v1661_v1, %v497_v24 }
 0x139   :  { %v726_v30 = vmul.f32 %v2064_v60, %v2064_v60  ;;  %v634_v24 = vsel %vm550_vm1, %v2064_v60, 0.0  ;;  %2776 = vst [vmem:[#allocation15_spill] sm:$0xff] %v2088_v62  ;;  %v2103_v43 = vadd.f32 %v1661_v1, %v1638_v51  ;;  %v2117_v51 = vadd.f32 %v1661_v1, %v1644_v55 }
 0x13a   :  { %v629_v20 = vadd.f32 %v628_v7, %v627_v35  ;;  %v824_v56 = vadd.f32 %v823_v4, %v822_v17  ;;  %v2080_v35 = vadd.f32 %v1661_v1, %v500_v54  ;;  %v829_v7 = vsel %vm550_vm1, %v725_v34, 0.0 }
 0x13b   :  { %v831_v54 = vsel %vm550_vm1, %v726_v30, 0.0  ;;  %v729_v30 = vmul.f32 %v2088_v62, %v2088_v62 }
 0x13c   :  { %v631_v42 = vadd.f32 %v630_v52, %v629_v20  ;;  %v826_v31 = vadd.f32 %v825_v39, %v824_v56  ;;  %v727_v20 = vmul.f32 %v2072_v2, %v2072_v2  ;;  %v2092_v52 = vadd.f32 %v1661_v1, %v1632_v47 }
 0x13d   :  { %v728_v34 = vmul.f32 %v2080_v35, %v2080_v35  ;;  %v638_v47 = vsel %vm550_vm1, %v2080_v35, 0.0  ;;  %v837_v55 = vsel %vm550_vm1, %v729_v30, 0.0  ;;  %v646_v30 = vsel %vm550_vm1, %v2117_v51, 0.0 }
 0x13e   :  { %v633_v17 = vadd.f32 %v632_v16, %v631_v42  ;;  %v828_v4 = vadd.f32 %v827_v48, %v826_v31  ;;  %v636_v48 = vsel %vm550_vm1, %v2072_v2, 0.0  ;;  %v2099_v16 = vpop.f32.mrf.mxu3 }
 0x140   :  { %v635_v56 = vadd.f32 %v634_v24, %v633_v17  ;;  %v830_v39 = vadd.f32 %v829_v7, %v828_v4  ;;  %v833_v17 = vsel %vm550_vm1, %v727_v20, 0.0  ;;  %v882_v24 = vld [vmem:[%s2737_s5 + $0x8] sm:$0xff]  ;;  %v835_v20 = vsel %vm550_vm1, %v728_v34, 0.0 }
 0x141   :  { %902 = vmatpush.msrb.mxu1 %v882_v24  ;;  %925 = vmatpush.msrb.mxu2 %v882_v24  ;;  %v2138_v24 = vadd.f32 %v1661_v1, %v1656_v0 }
 0x142   :  { %v832_v42 = vadd.f32 %v831_v54, %v830_v39  ;;  %v637_v31 = vadd.f32 %v636_v48, %v635_v56  ;;  %v730_v56 = vmul.f32 %v2092_v52, %v2092_v52  ;;  %v640_v39 = vsel %vm550_vm1, %v2088_v62, 0.0 }
 0x144   :  { %v834_v4 = vadd.f32 %v833_v17, %v832_v42  ;;  %v639_v7 = vadd.f32 %v638_v47, %v637_v31  ;;  %v642_v42 = vsel %vm550_vm1, %v2092_v52, 0.0  ;;  %v731_v31 = vmul.f32 %v2103_v43, %v2103_v43 }
 0x145   :  { %v2128_v17 = vadd.f32 %v1661_v1, %v1650_v59  ;;  %v839_v62 = vsel %vm550_vm1, %v730_v56, 0.0 }
 0x146   :  { %v836_v54 = vadd.f32 %v835_v20, %v834_v4  ;;  %v641_v48 = vadd.f32 %v640_v39, %v639_v7  ;;  %v644_v4 = vsel %vm550_vm1, %v2103_v43, 0.0  ;;  %v732_v7 = vmul.f32 %v2117_v51, %v2117_v51 }
 0x147   :  { %v841_v59 = vsel %vm550_vm1, %v731_v31, 0.0  ;;  %v733_v56 = vmul.f32 %v2128_v17, %v2128_v17  ;;  %v734_v31 = vmul.f32 %v2138_v24, %v2138_v24 }
 0x148   :  { %v643_v34 = vadd.f32 %v642_v42, %v641_v48  ;;  %v838_v47 = vadd.f32 %v837_v55, %v836_v54  ;;  %v2147_v54 = vadd.f32 %v1661_v1, %v1679_v9  ;;  %v542_v55 = vpop.f32.mrf.mxu3  ;;  %v843_v0 = vsel %vm550_vm1, %v732_v7, 0.0 }
 0x149   :  { %v845_v9 = vsel %vm550_vm1, %v733_v56, 0.0 }
 0x14a   :  { %v645_v20 = vadd.f32 %v644_v4, %v643_v34  ;;  %v840_v39 = vadd.f32 %v839_v62, %v838_v47  ;;  %2777 = vst [vmem:[#allocation16_spill] sm:$0xff] %v2147_v54  ;;  %v648_v62 = vsel %vm550_vm1, %v2128_v17, 0.0  ;;  %v2156_v34 = vadd.f32 %v1661_v1, %v1726_v41  ;;  %v881_v41 = vld [vmem:[%s2737_s5] sm:$0xff] }
 0x14b   :  { %v735_v7 = vmul.f32 %v2147_v54, %v2147_v54  ;;  %v652_v56 = vsel %vm550_vm1, %v2147_v54, 0.0  ;;  %903 = vmatpush.msrb.mxu1 %v881_v41  ;;  %926 = vmatpush.msrb.mxu2 %v881_v41 }
 0x14c   :  { %v647_v48 = vadd.f32 %v646_v30, %v645_v20  ;;  %v842_v42 = vadd.f32 %v841_v59, %v840_v39  ;;  %v650_v20 = vsel %vm550_vm1, %v2138_v24, 0.0  ;;  %v2165_v39 = vadd.f32 %v1661_v1, %v1772_v10 }
 0x14e   :  { %v649_v47 = vadd.f32 %v648_v62, %v647_v48  ;;  %v844_v4 = vadd.f32 %v843_v0, %v842_v42  ;;  %v847_v48 = vsel %vm550_vm1, %v734_v31, 0.0  ;;  %v736_v42 = vmul.f32 %v2156_v34, %v2156_v34 }
 0x14f   :  { %v2177_v0 = vadd.f32 %v1661_v1, %v1811_v23  ;;  %v737_v31 = vmul.f32 %v2165_v39, %v2165_v39 }
 0x150   :  { %v651_v59 = vadd.f32 %v650_v20, %v649_v47  ;;  %v846_v30 = vadd.f32 %v845_v9, %v844_v4  ;;  %v849_v47 = vsel %vm550_vm1, %v735_v7, 0.0  ;;  %v654_v4 = vsel %vm550_vm1, %v2156_v34, 0.0 }
 0x151   :  { %2778 = vst [vmem:[#allocation17_spill] sm:$0xff] %v2177_v0  ;;  %v2186_v9 = vadd.f32 %v1661_v1, %v1862_v28  ;;  %v851_v23 = vsel %vm550_vm1, %v736_v42, 0.0  ;;  %v738_v7 = vmul.f32 %v2177_v0, %v2177_v0  ;;  %v853_v28 = vsel %vm550_vm1, %v737_v31, 0.0 }
 0x152   :  { %v653_v10 = vadd.f32 %v652_v56, %v651_v59  ;;  %v848_v62 = vadd.f32 %v847_v48, %v846_v30  ;;  %v656_v59 = vsel %vm550_vm1, %v2165_v39, 0.0  ;;  %v2195_v30 = vadd.f32 %v1661_v1, %v1914_v3  ;;  %v545_v56 = vpop.f32.mrf.mxu3 }
 0x153   :  { %v739_v42 = vmul.f32 %v2186_v9, %v2186_v9  ;;  %v855_v3 = vsel %vm550_vm1, %v738_v7, 0.0 }
 0x154   :  { %v850_v20 = vadd.f32 %v849_v47, %v848_v62  ;;  %v655_v54 = vadd.f32 %v654_v4, %v653_v10  ;;  %v658_v10 = vsel %vm550_vm1, %v2177_v0, 0.0  ;;  %v2204_v62 = vadd.f32 %v1661_v1, %v1961_v46 }
 0x155   :  { %v740_v31 = vmul.f32 %v2195_v30, %v2195_v30  ;;  %v857_v0 = vsel %vm550_vm1, %v739_v42, 0.0  ;;  %v662_v46 = vsel %vm550_vm1, %v2195_v30, 0.0 }
 0x156   :  { %v657_v41 = vadd.f32 %v656_v59, %v655_v54  ;;  %v852_v48 = vadd.f32 %v851_v23, %v850_v20  ;;  %2779 = vst [vmem:[#allocation18_spill] sm:$0xff] %v2204_v62  ;;  %v660_v54 = vsel %vm550_vm1, %v2186_v9, 0.0  ;;  %v2213_v20 = vadd.f32 %v1661_v1, %v2008_v61 }
 0x157   :  { %v741_v7 = vmul.f32 %v2204_v62, %v2204_v62  ;;  %v664_v61 = vsel %vm550_vm1, %v2204_v62, 0.0 }
 0x158   :  { %v659_v47 = vadd.f32 %v658_v10, %v657_v41  ;;  %v854_v4 = vadd.f32 %v853_v28, %v852_v48  ;;  %2780 = vst [vmem:[#allocation19_spill] sm:$0xff] %v2213_v20  ;;  %v2222_v41 = vadd.f32 %v1661_v1, %v2055_v58  ;;  %v859_v10 = vsel %vm550_vm1, %v740_v31, 0.0 }
 0x159   :  { %v742_v42 = vmul.f32 %v2213_v20, %v2213_v20  ;;  %v666_v58 = vsel %vm550_vm1, %v2213_v20, 0.0  ;;  %v2239_v31 = vadd.f32 %v1661_v1, %v542_v55 }
 0x15a   :  { %v661_v23 = vadd.f32 %v660_v54, %v659_v47  ;;  %v856_v59 = vadd.f32 %v855_v3, %v854_v4  ;;  %2781 = vst [vmem:[#allocation20_spill] sm:$0xff] %v2222_v41  ;;  %v2231_v47 = vadd.f32 %v1661_v1, %v2099_v16  ;;  %v861_v54 = vsel %vm550_vm1, %v741_v7, 0.0 }
 0x15b   :  { %2783 = vst [vmem:[#allocation22_spill] sm:$0xff] %v2239_v31  ;;  %v863_v62 = vsel %vm550_vm1, %v742_v42, 0.0  ;;  %v668_v16 = vsel %vm550_vm1, %v2222_v41, 0.0 }
 0x15c   :  { %v663_v48 = vadd.f32 %v662_v46, %v661_v23  ;;  %v858_v28 = vadd.f32 %v857_v0, %v856_v59  ;;  %2782 = vst [vmem:[#allocation21_spill] sm:$0xff] %v2231_v47  ;;  %v743_v0 = vmul.f32 %v2222_v41, %v2222_v41  ;;  %v547_v46 = vpop.f32.mrf.mxu3  ;;  %v744_v7 = vmul.f32 %v2231_v47, %v2231_v47 }
 0x15d   :  { %v670_v55 = vsel %vm550_vm1, %v2231_v47, 0.0  ;;  %v2255_v42 = vadd.f32 %v1661_v1, %v547_v46 }
 0x15e   :  { %v665_v4 = vadd.f32 %v664_v61, %v663_v48  ;;  %v860_v3 = vadd.f32 %v859_v10, %v858_v28  ;;  %v2247_v48 = vadd.f32 %v1661_v1, %v545_v56  ;;  %v865_v61 = vsel %vm550_vm1, %v743_v0, 0.0 }
 0x15f   :  { %v672_v56 = vsel %vm550_vm1, %v2239_v31, 0.0  ;;  %v747_v1 = vmul.f32 %v2255_v42, %v2255_v42 }
 0x160   :  { %v667_v23 = vadd.f32 %v666_v58, %v665_v4  ;;  %v862_v59 = vadd.f32 %v861_v54, %v860_v3  ;;  %2784 = vst [vmem:[#allocation23_spill] sm:$0xff] %v2247_v48  ;;  %v745_v4 = vmul.f32 %v2239_v31, %v2239_v31  ;;  %v867_v58 = vsel %vm550_vm1, %v744_v7, 0.0 }
 0x162   :  { %v669_v28 = vadd.f32 %v668_v16, %v667_v23  ;;  %v864_v10 = vadd.f32 %v863_v62, %v862_v59  ;;  %v746_v62 = vmul.f32 %v2247_v48, %v2247_v48  ;;  %v869_v59 = vsel %vm550_vm1, %v745_v4, 0.0 }
 0x163   :  { %v674_v16 = vsel %vm550_vm1, %v2247_v48, 0.0 }
 0x164   :  { %v866_v3 = vadd.f32 %v865_v61, %v864_v10  ;;  %v671_v54 = vadd.f32 %v670_v55, %v669_v28  ;;  %v871_v7 = vsel %vm550_vm1, %v746_v62, 0.0  ;;  %v676_v10 = vsel %vm550_vm1, %v2255_v42, 0.0 }
 0x166   :  { %v868_v0 = vadd.f32 %v867_v58, %v866_v3  ;;  %v673_v23 = vadd.f32 %v672_v56, %v671_v54  ;;  %v873_v3 = vsel %vm550_vm1, %v747_v1, 0.0 }
 0x168   :  { %v870_v46 = vadd.f32 %v869_v59, %v868_v0  ;;  %v675_v28 = vadd.f32 %v674_v16, %v673_v23 }
 0x16a   :  { %v872_v61 = vadd.f32 %v871_v7, %v870_v46  ;;  %v677_v55 = vadd.f32 %v676_v10, %v675_v28 }
 0x16c   :  { %v678_v54 = vrot.slane %v677_v55, 4  ;;  %v874_v58 = vadd.f32 %v873_v3, %v872_v61 }
 0x16e   :  { %v679_v4 = vadd.f32 %v678_v54, %v677_v55  ;;  %v875_v56 = vrot.slane %v874_v58, 4 }
 0x170   :  { %v680_v31 = vrot.slane %v679_v4, 2  ;;  %v876_v48 = vadd.f32 %v875_v56, %v874_v58 }
 0x172   :  { %v681_v47 = vadd.f32 %v680_v31, %v679_v4  ;;  %v877_v41 = vrot.slane %v876_v48, 2 }
 0x174   :  { %v682_v20 = vrot.slane %v681_v47, 1  ;;  %v878_v0 = vadd.f32 %v877_v41, %v876_v48  ;;  %v936_v48 = vld [vmem:[%s2738_s3] sm:$0x1] }
 0x176   :  { %v683_v23 = vadd.f32 %v682_v20, %v681_v47  ;;  %v879_v59 = vrot.slane %v878_v0, 1 }
 0x178   :  { %1394 = vmatmul.msk.f32.vlgmr.msrb.gmra.mxu1 %vm550_vm1, %v683_v23  ;;  %v880_v62 = vadd.f32 %v879_v59, %v878_v0  ;;  %v949_v0 = vld [vmem:[%s2739_s4] sm:$0x1] }
 0x17a   :  { %1395 = vmatmul.msk.f32.vlgmr.msrb.gmra.mxu2 %vm550_vm1, %v880_v62 }
 0x1f5   :  { %v905_v16 = vpop.f32.mrf.mxu1 }
 0x1f6   :  { %v931_v46 = vmul.f32 0.00048828125, %v905_v16 }
 0x1f8   :  { %v933_v28 = vmul.f32 %v931_v46, %v931_v46 }
 0x1fd   :  { %v928_v1 = vpop.f32.mrf.mxu2 }
 0x1fe   :  { %v932_v7 = vmul.f32 0.00048828125, %v928_v1 }
 0x200   :  { %v934_v10 = vsub.f32 %v932_v7, %v933_v28 }
 0x202   :  { %v935_v61 = vmax.f32 %v934_v10, 0.0 }
 0x204   :  { %v937_v55 = vadd.f32 1e-05, %v935_v61 }
 0x206   :  { %1445 = vrsqrt.f32 %v937_v55  ;;  %vm944_vm3 = vweird.f32 %v937_v55 }
 0x20c   :  { %v1446_v31 = vpop.eup %1445 }
 0x20d   :  { %v939_v3 = vmul.f32 %v1446_v31, %v937_v55  ;;  %vm945_vm2 = vweird.f32 %v1446_v31 }
 0x20e   :  { %vm946_vm4 = vmor %vm944_vm3, %vm945_vm2 }
 0x20f   :  { %v940_v54 = vmul.f32 %v1446_v31, %v939_v3 }
 0x211   :  { %v941_v41 = vmul.f32 0.5, %v940_v54 }
 0x213   :  { %v942_v20 = vsub.f32 1.5, %v941_v41 }
 0x215   :  { %v943_v47 = vmul.f32 %v1446_v31, %v942_v20 }
 0x217   :  { %v947_v58 = vsel %vm946_vm4, %v1446_v31, %v943_v47 }
 0x218   :  { %v948_v4 = vmul.f32 %v947_v58, %v936_v48 }
 0x21a   :  { %v950_v56 = vmul.f32 %v948_v4, %v931_v46  ;;  %v2279_v59 = vperm.slane %v948_v4, 0 }
 0x21c   :  { %v951_v23 = vsub.f32 %v949_v0, %v950_v56  ;;  %v955_v16 = vmul.f32 %v2279_v59, %v1674_v6  ;;  %v956_v1 = vmul.f32 %v2279_v59, %v1671_v5  ;;  %v957_v28 = vmul.f32 %v2279_v59, %v1677_v8 }
 0x21d   :  { %v958_v46 = vmul.f32 %v2279_v59, %v1684_v11  ;;  %v959_v7 = vmul.f32 %v2279_v59, %v1693_v15  ;;  %v960_v6 = vmul.f32 %v2279_v59, %v1705_v21  ;;  %v1018_v5 = vmul.f32 %v2279_v59, %v2255_v42 }
 0x21e   :  { %v2281_v62 = vperm.slane %v951_v23, 0  ;;  %v961_v11 = vmul.f32 %v2279_v59, %v1716_v29  ;;  %v962_v15 = vmul.f32 %v2279_v59, %v1724_v36  ;;  %v963_v3 = vmul.f32 %v2279_v59, %v1734_v50 }
 0x21f   :  { %v964_v29 = vmul.f32 %v2279_v59, %v1742_v14  ;;  %v965_v36 = vmul.f32 %v2279_v59, %v1752_v26  ;;  %v966_v56 = vmul.f32 %v2279_v59, %v1762_v33  ;;  %v967_v26 = vmul.f32 %v2279_v59, %v1770_v44 }
 0x220   :  { %v1022_v10 = vadd.f32 %v2281_v62, %v955_v16  ;;  %v1023_v61 = vadd.f32 %v2281_v62, %v956_v1  ;;  %v1024_v55 = vadd.f32 %v2281_v62, %v957_v28  ;;  %v1025_v8 = vadd.f32 %v2281_v62, %v958_v46 }
 0x221   :  { %v1026_v31 = vadd.f32 %v2281_v62, %v959_v7  ;;  %v1027_v54 = vadd.f32 %v2281_v62, %v960_v6  ;;  %v2310_v21 = vadd.f32 %v2281_v62, %v1018_v5  ;;  %v1028_v42 = vadd.f32 %v2281_v62, %v961_v11 }
 0x222   :  { %v1086_v41 = vmax.f32 %v1022_v10, 0.0  ;;  %v1087_v20 = vmax.f32 %v1023_v61, 0.0  ;;  %v1088_v47 = vmax.f32 %v1024_v55, 0.0  ;;  %v1029_v48 = vadd.f32 %v2281_v62, %v962_v15 }
 0x223   :  { %v1089_v58 = vmax.f32 %v1025_v8, 0.0  ;;  %v1030_v50 = vadd.f32 %v2281_v62, %v963_v3  ;;  %v1090_v4 = vmax.f32 %v1026_v31, 0.0  ;;  %v1031_v0 = vadd.f32 %v2281_v62, %v964_v29  ;;  %v2786_v3 = vld [vmem:[#allocation3_spill] sm:$0xff]  ;;  %v2787_v29 = vld [vmem:[#allocation4_spill] sm:$0xff] }
 0x224   :  { %1150 = vst.msk [vmem:[%s2740_s6] sm:$0xff] %vm550_vm1, %v1086_v41  ;;  %v1091_v14 = vmax.f32 %v1027_v54, 0.0  ;;  %v1032_v23 = vadd.f32 %v2281_v62, %v965_v36  ;;  %v1092_v16 = vmax.f32 %v1028_v42, 0.0  ;;  %v968_v33 = vmul.f32 %v2279_v59, %v1780_v13 }
 0x225   :  { %1151 = vst.msk [vmem:[%s2740_s6 + $0x8] sm:$0xff] %vm550_vm1, %v1087_v20  ;;  %v1033_v1 = vadd.f32 %v2281_v62, %v966_v56  ;;  %v1093_v28 = vmax.f32 %v1029_v48, 0.0  ;;  %v969_v44 = vmul.f32 %v2279_v59, %v1788_v27  ;;  %v1034_v46 = vadd.f32 %v2281_v62, %v967_v26 }
 0x226   :  { %1152 = vst.msk [vmem:[%s2740_s6 + $0x10] sm:$0xff] %vm550_vm1, %v1088_v47  ;;  %v1094_v7 = vmax.f32 %v1030_v50, 0.0  ;;  %v970_v13 = vmul.f32 %v2279_v59, %v1819_v19  ;;  %v1035_v10 = vadd.f32 %v2281_v62, %v968_v33  ;;  %v1095_v61 = vmax.f32 %v1031_v0, 0.0  ;;  %v2785_v19 = vld [vmem:[#allocation2_spill] sm:$0xff] }
 0x227   :  { %1153 = vst.msk [vmem:[%s2740_s6 + $0x18] sm:$0xff] %vm550_vm1, %v1089_v58  ;;  %v971_v27 = vmul.f32 %v2279_v59, %v1806_v12  ;;  %v1036_v55 = vadd.f32 %v2281_v62, %v969_v44  ;;  %v1096_v6 = vmax.f32 %v1032_v23, 0.0  ;;  %v972_v5 = vmul.f32 %v2279_v59, %v2785_v19  ;;  %v2789_v23 = vld [vmem:[#allocation6_spill] sm:$0xff] }
 0x228   :  { %1154 = vst.msk [vmem:[%s2740_s6 + $0x20] sm:$0xff] %vm550_vm1, %v1090_v4  ;;  %v1037_v8 = vadd.f32 %v2281_v62, %v970_v13  ;;  %v1097_v11 = vmax.f32 %v1033_v1, 0.0  ;;  %v973_v12 = vmul.f32 %v2279_v59, %v1825_v38  ;;  %v1098_v15 = vmax.f32 %v1034_v46, 0.0 }
 0x229   :  { %1155 = vst.msk [vmem:[%s2740_s6 + $0x28] sm:$0xff] %vm550_vm1, %v1091_v14  ;;  %v1038_v31 = vadd.f32 %v2281_v62, %v971_v27  ;;  %v974_v54 = vmul.f32 %v2279_v59, %v2786_v3  ;;  %v1039_v42 = vadd.f32 %v2281_v62, %v972_v5  ;;  %v1099_v41 = vmax.f32 %v1035_v10, 0.0 }
 0x22a   :  { %1156 = vst.msk [vmem:[%s2740_s6 + $0x30] sm:$0xff] %vm550_vm1, %v1092_v16  ;;  %v975_v38 = vmul.f32 %v2279_v59, %v1851_v32  ;;  %v1040_v20 = vadd.f32 %v2281_v62, %v973_v12  ;;  %v1100_v47 = vmax.f32 %v1036_v55, 0.0  ;;  %v976_v48 = vmul.f32 %v2279_v59, %v2787_v29  ;;  %v2788_v32 = vld [vmem:[#allocation5_spill] sm:$0xff] }
 0x22b   :  { %1157 = vst.msk [vmem:[%s2740_s6 + $0x38] sm:$0xff] %vm550_vm1, %v1093_v28  ;;  %v1041_v58 = vadd.f32 %v2281_v62, %v974_v54  ;;  %v1101_v36 = vmax.f32 %v1037_v8, 0.0  ;;  %v977_v50 = vmul.f32 %v2279_v59, %v2788_v32  ;;  %v1102_v56 = vmax.f32 %v1038_v31, 0.0 }
 0x22c   :  { %1158 = vst.msk [vmem:[%s2740_s6 + $0x40] sm:$0xff] %vm550_vm1, %v1094_v7  ;;  %v1042_v4 = vadd.f32 %v2281_v62, %v975_v38  ;;  %v978_v0 = vmul.f32 %v2279_v59, %v1880_v63  ;;  %v1043_v14 = vadd.f32 %v2281_v62, %v976_v48  ;;  %v1103_v26 = vmax.f32 %v1039_v42, 0.0  ;;  %v2790_v63 = vld [vmem:[#allocation7_spill] sm:$0xff]  ;;  %v2791_v7 = vld [vmem:[#allocation8_spill] sm:$0xff] }
 0x22d   :  { %1159 = vst.msk [vmem:[%s2740_s6 + $0x48] sm:$0xff] %vm550_vm1, %v1095_v61  ;;  %v979_v16 = vmul.f32 %v2279_v59, %v2789_v23  ;;  %v1044_v33 = vadd.f32 %v2281_v62, %v977_v50  ;;  %v1104_v1 = vmax.f32 %v1040_v20, 0.0  ;;  %v980_v28 = vmul.f32 %v2279_v59, %v2790_v63 }
 0x22e   :  { %1160 = vst.msk [vmem:[%s2740_s6 + $0x50] sm:$0xff] %vm550_vm1, %v1096_v6  ;;  %v1045_v44 = vadd.f32 %v2281_v62, %v978_v0  ;;  %v1105_v46 = vmax.f32 %v1041_v58, 0.0  ;;  %v981_v13 = vmul.f32 %v2279_v59, %v2791_v7  ;;  %v1106_v61 = vmax.f32 %v1042_v4, 0.0  ;;  %v2794_v58 = vld [vmem:[#allocation11_spill] sm:$0xff]  ;;  %v2795_v0 = vld [vmem:[#allocation12_spill] sm:$0xff] }
 0x22f   :  { %1161 = vst.msk [vmem:[%s2740_s6 + $0x58] sm:$0xff] %vm550_vm1, %v1097_v11  ;;  %v1046_v10 = vadd.f32 %v2281_v62, %v979_v16  ;;  %v982_v27 = vmul.f32 %v2279_v59, %v1923_v18  ;;  %v1047_v55 = vadd.f32 %v2281_v62, %v980_v28  ;;  %v1107_v6 = vmax.f32 %v1043_v14, 0.0  ;;  %v2792_v18 = vld [vmem:[#allocation9_spill] sm:$0xff] }
 0x230   :  { %1162 = vst.msk [vmem:[%s2740_s6 + $0x60] sm:$0xff] %vm550_vm1, %v1098_v15  ;;  %v983_v19 = vmul.f32 %v2279_v59, %v1932_v37  ;;  %v1048_v5 = vadd.f32 %v2281_v62, %v981_v13  ;;  %v1108_v8 = vmax.f32 %v1044_v33, 0.0  ;;  %v984_v11 = vmul.f32 %v2279_v59, %v2792_v18 }
 0x231   :  { %1163 = vst.msk [vmem:[%s2740_s6 + $0x68] sm:$0xff] %vm550_vm1, %v1099_v41  ;;  %v1049_v12 = vadd.f32 %v2281_v62, %v982_v27  ;;  %v1109_v31 = vmax.f32 %v1045_v44, 0.0  ;;  %v985_v37 = vmul.f32 %v2279_v59, %v1951_v25  ;;  %v1110_v3 = vmax.f32 %v1046_v10, 0.0  ;;  %v2793_v25 = vld [vmem:[#allocation10_spill] sm:$0xff] }
 0x232   :  { %1164 = vst.msk [vmem:[%s2740_s6 + $0x70] sm:$0xff] %vm550_vm1, %v1100_v47  ;;  %v1050_v15 = vadd.f32 %v2281_v62, %v983_v19  ;;  %v986_v54 = vmul.f32 %v2279_v59, %v1959_v49  ;;  %v1051_v42 = vadd.f32 %v2281_v62, %v984_v11  ;;  %v1111_v41 = vmax.f32 %v1047_v55, 0.0 }
 0x233   :  { %1165 = vst.msk [vmem:[%s2740_s6 + $0x78] sm:$0xff] %vm550_vm1, %v1101_v36  ;;  %v987_v38 = vmul.f32 %v2279_v59, %v2793_v25  ;;  %v1052_v20 = vadd.f32 %v2281_v62, %v985_v37  ;;  %v1112_v47 = vmax.f32 %v1048_v5, 0.0  ;;  %v988_v49 = vmul.f32 %v2279_v59, %v1974_v40 }
 0x234   :  { %1166 = vst.msk [vmem:[%s2740_s6 + $0x80] sm:$0xff] %vm550_vm1, %v1102_v56  ;;  %v1053_v29 = vadd.f32 %v2281_v62, %v986_v54  ;;  %v1113_v48 = vmax.f32 %v1049_v12, 0.0  ;;  %v989_v36 = vmul.f32 %v2279_v59, %v2794_v58  ;;  %v1114_v50 = vmax.f32 %v1050_v15, 0.0 }
 0x235   :  { %1167 = vst.msk [vmem:[%s2740_s6 + $0x88] sm:$0xff] %vm550_vm1, %v1103_v26  ;;  %v1054_v32 = vadd.f32 %v2281_v62, %v987_v38  ;;  %v990_v40 = vmul.f32 %v2279_v59, %v1996_v53  ;;  %v1055_v4 = vadd.f32 %v2281_v62, %v988_v49  ;;  %v1115_v56 = vmax.f32 %v1051_v42, 0.0 }
 0x236   :  { %1168 = vst.msk [vmem:[%s2740_s6 + $0x90] sm:$0xff] %vm550_vm1, %v1104_v1  ;;  %v991_v14 = vmul.f32 %v2279_v59, %v2795_v0  ;;  %v1056_v26 = vadd.f32 %v2281_v62, %v989_v36  ;;  %v1116_v23 = vmax.f32 %v1052_v20, 0.0  ;;  %v992_v53 = vmul.f32 %v2279_v59, %v2017_v22  ;;  %v2796_v1 = vld [vmem:[#allocation13_spill] sm:$0xff]  ;;  %v2797_v22 = vld [vmem:[#allocation14_spill] sm:$0xff] }
 0x237   :  { %1169 = vst.msk [vmem:[%s2740_s6 + $0x98] sm:$0xff] %vm550_vm1, %v1105_v46  ;;  %v1057_v16 = vadd.f32 %v2281_v62, %v990_v40  ;;  %v1117_v33 = vmax.f32 %v1053_v29, 0.0  ;;  %v993_v63 = vmul.f32 %v2279_v59, %v2796_v1  ;;  %v1118_v44 = vmax.f32 %v1054_v32, 0.0 }
 0x238   :  { %1170 = vst.msk [vmem:[%s2740_s6 + $0xa0] sm:$0xff] %vm550_vm1, %v1106_v61  ;;  %v1058_v28 = vadd.f32 %v2281_v62, %v991_v14  ;;  %v994_v46 = vmul.f32 %v2279_v59, %v2797_v22  ;;  %v1059_v7 = vadd.f32 %v2281_v62, %v992_v53  ;;  %v1119_v13 = vmax.f32 %v1055_v4, 0.0 }
 0x239   :  { %1171 = vst.msk [vmem:[%s2740_s6 + $0xa8] sm:$0xff] %vm550_vm1, %v1107_v6  ;;  %v995_v10 = vmul.f32 %v2279_v59, %v2044_v57  ;;  %v1060_v61 = vadd.f32 %v2281_v62, %v993_v63  ;;  %v1120_v27 = vmax.f32 %v1056_v26, 0.0  ;;  %v996_v55 = vmul.f32 %v2279_v59, %v2053_v45 }
 0x23a   :  { %1172 = vst.msk [vmem:[%s2740_s6 + $0xb0] sm:$0xff] %vm550_vm1, %v1108_v8  ;;  %v1061_v6 = vadd.f32 %v2281_v62, %v994_v46  ;;  %v1121_v19 = vmax.f32 %v1057_v16, 0.0  ;;  %v997_v57 = vmul.f32 %v2279_v59, %v2064_v60  ;;  %v1122_v8 = vmax.f32 %v1058_v28, 0.0 }
 0x23b   :  { %1173 = vst.msk [vmem:[%s2740_s6 + $0xb8] sm:$0xff] %vm550_vm1, %v1109_v31  ;;  %v1062_v5 = vadd.f32 %v2281_v62, %v995_v10  ;;  %v998_v45 = vmul.f32 %v2279_v59, %v2072_v2  ;;  %v1063_v18 = vadd.f32 %v2281_v62, %v996_v55  ;;  %v1123_v11 = vmax.f32 %v1059_v7, 0.0  ;;  %v2798_v2 = vld [vmem:[#allocation15_spill] sm:$0xff] }
 0x23c   :  { %1174 = vst.msk [vmem:[%s2740_s6 + $0xc0] sm:$0xff] %vm550_vm1, %v1110_v3  ;;  %v999_v60 = vmul.f32 %v2279_v59, %v2080_v35  ;;  %v1064_v12 = vadd.f32 %v2281_v62, %v997_v57  ;;  %v1124_v31 = vmax.f32 %v1060_v61, 0.0  ;;  %v1000_v37 = vmul.f32 %v2279_v59, %v2798_v2  ;;  %v2803_v61 = vld [vmem:[#allocation20_spill] sm:$0xff] }
 0x23d   :  { %1175 = vst.msk [vmem:[%s2740_s6 + $0xc8] sm:$0xff] %vm550_vm1, %v1111_v41  ;;  %v1065_v15 = vadd.f32 %v2281_v62, %v998_v45  ;;  %v1125_v3 = vmax.f32 %v1061_v6, 0.0  ;;  %v1001_v35 = vmul.f32 %v2279_v59, %v2092_v52  ;;  %v1126_v42 = vmax.f32 %v1062_v5, 0.0  ;;  %v2805_v45 = vld [vmem:[#allocation22_spill] sm:$0xff] }
 0x23e   :  { %1176 = vst.msk [vmem:[%s2740_s6 + $0xd0] sm:$0xff] %vm550_vm1, %v1112_v47  ;;  %v1066_v54 = vadd.f32 %v2281_v62, %v999_v60  ;;  %v1002_v41 = vmul.f32 %v2279_v59, %v2103_v43  ;;  %v1067_v25 = vadd.f32 %v2281_v62, %v1000_v37  ;;  %v1127_v38 = vmax.f32 %v1063_v18, 0.0 }
 0x23f   :  { %1177 = vst.msk [vmem:[%s2740_s6 + $0xd8] sm:$0xff] %vm550_vm1, %v1113_v48  ;;  %v1003_v52 = vmul.f32 %v2279_v59, %v2117_v51  ;;  %v1068_v20 = vadd.f32 %v2281_v62, %v1001_v35  ;;  %v1128_v47 = vmax.f32 %v1064_v12, 0.0  ;;  %v1004_v43 = vmul.f32 %v2279_v59, %v2128_v17  ;;  %v2799_v17 = vld [vmem:[#allocation16_spill] sm:$0xff]  ;;  %v2806_v12 = vld [vmem:[#allocation23_spill] sm:$0xff] }
 0x240   :  { %1178 = vst.msk [vmem:[%s2740_s6 + $0xe0] sm:$0xff] %vm550_vm1, %v1114_v50  ;;  %v1069_v49 = vadd.f32 %v2281_v62, %v1002_v41  ;;  %v1129_v29 = vmax.f32 %v1065_v15, 0.0  ;;  %v1005_v51 = vmul.f32 %v2279_v59, %v2138_v24  ;;  %v1130_v58 = vmax.f32 %v1066_v54, 0.0 }
 0x241   :  { %1179 = vst.msk [vmem:[%s2740_s6 + $0xe8] sm:$0xff] %vm550_vm1, %v1115_v56  ;;  %v1070_v48 = vadd.f32 %v2281_v62, %v1003_v52  ;;  %v1006_v36 = vmul.f32 %v2279_v59, %v2799_v17  ;;  %v1071_v32 = vadd.f32 %v2281_v62, %v1004_v43  ;;  %v1131_v50 = vmax.f32 %v1067_v25, 0.0 }
 0x242   :  { %1180 = vst.msk [vmem:[%s2740_s6 + $0xf0] sm:$0xff] %vm550_vm1, %v1116_v23  ;;  %v1007_v24 = vmul.f32 %v2279_v59, %v2156_v34  ;;  %v1072_v40 = vadd.f32 %v2281_v62, %v1005_v51  ;;  %v1132_v4 = vmax.f32 %v1068_v20, 0.0  ;;  %v1008_v56 = vmul.f32 %v2279_v59, %v2165_v39  ;;  %v2800_v34 = vld [vmem:[#allocation17_spill] sm:$0xff] }
 0x243   :  { %1181 = vst.msk [vmem:[%s2740_s6 + $0xf8] sm:$0xff] %vm550_vm1, %v1117_v33  ;;  %v1073_v0 = vadd.f32 %v2281_v62, %v1006_v36  ;;  %v1133_v14 = vmax.f32 %v1069_v49, 0.0  ;;  %v1009_v26 = vmul.f32 %v2279_v59, %v2800_v34  ;;  %v1134_v53 = vmax.f32 %v1070_v48, 0.0 }
 0x244   :  { %1182 = vst.msk [vmem:[%s2740_s6 + $0x100] sm:$0xff] %vm550_vm1, %v1118_v44  ;;  %v1074_v23 = vadd.f32 %v2281_v62, %v1007_v24  ;;  %v1010_v39 = vmul.f32 %v2279_v59, %v2186_v9  ;;  %v1075_v16 = vadd.f32 %v2281_v62, %v1008_v56  ;;  %v1135_v33 = vmax.f32 %v1071_v32, 0.0  ;;  %v2801_v9 = vld [vmem:[#allocation18_spill] sm:$0xff] }
 0x245   :  { %1183 = vst.msk [vmem:[%s2740_s6 + $0x108] sm:$0xff] %vm550_vm1, %v1119_v13  ;;  %v1011_v1 = vmul.f32 %v2279_v59, %v2195_v30  ;;  %v1076_v63 = vadd.f32 %v2281_v62, %v1009_v26  ;;  %v1136_v28 = vmax.f32 %v1072_v40, 0.0  ;;  %v1012_v44 = vmul.f32 %v2279_v59, %v2801_v9  ;;  %v2802_v30 = vld [vmem:[#allocation19_spill] sm:$0xff] }
 0x246   :  { %1184 = vst.msk [vmem:[%s2740_s6 + $0x110] sm:$0xff] %vm550_vm1, %v1120_v27  ;;  %v1077_v22 = vadd.f32 %v2281_v62, %v1010_v39  ;;  %v1137_v46 = vmax.f32 %v1073_v0, 0.0  ;;  %v1013_v7 = vmul.f32 %v2279_v59, %v2802_v30  ;;  %v1138_v10 = vmax.f32 %v1074_v23, 0.0 }
 0x247   :  { %1185 = vst.msk [vmem:[%s2740_s6 + $0x118] sm:$0xff] %vm550_vm1, %v1121_v19  ;;  %v1078_v13 = vadd.f32 %v2281_v62, %v1011_v1  ;;  %v1014_v27 = vmul.f32 %v2279_v59, %v2803_v61  ;;  %v1079_v55 = vadd.f32 %v2281_v62, %v1012_v44  ;;  %v1139_v6 = vmax.f32 %v1075_v16, 0.0  ;;  %v2804_v19 = vld [vmem:[#allocation21_spill] sm:$0xff] }
 0x248   :  { %1186 = vst.msk [vmem:[%s2740_s6 + $0x120] sm:$0xff] %vm550_vm1, %v1122_v8  ;;  %v1015_v57 = vmul.f32 %v2279_v59, %v2804_v19  ;;  %v1080_v5 = vadd.f32 %v2281_v62, %v1013_v7  ;;  %v1140_v8 = vmax.f32 %v1076_v63, 0.0  ;;  %v1016_v18 = vmul.f32 %v2279_v59, %v2805_v45 }
 0x249   :  { %1187 = vst.msk [vmem:[%s2740_s6 + $0x128] sm:$0xff] %vm550_vm1, %v1123_v11  ;;  %v1081_v11 = vadd.f32 %v2281_v62, %v1014_v27  ;;  %v1141_v60 = vmax.f32 %v1077_v22, 0.0  ;;  %v1142_v37 = vmax.f32 %v1078_v13, 0.0  ;;  %v1149_v25 = vmax.f32 %v2310_v21, 0.0 }
 0x24a   :  { %1188 = vst.msk [vmem:[%s2740_s6 + $0x130] sm:$0xff] %vm550_vm1, %v1124_v31  ;;  %v1017_v31 = vmul.f32 %v2279_v59, %v2806_v12  ;;  %v1082_v2 = vadd.f32 %v2281_v62, %v1015_v57  ;;  %v1083_v15 = vadd.f32 %v2281_v62, %v1016_v18  ;;  %v1144_v54 = vmax.f32 %v1080_v5, 0.0 }
 0x24b   :  { %1189 = vst.msk [vmem:[%s2740_s6 + $0x138] sm:$0xff] %vm550_vm1, %v1125_v3  ;;  %v1143_v3 = vmax.f32 %v1079_v55, 0.0  ;;  %v1145_v59 = vmax.f32 %v1081_v11, 0.0 }
 0x24c   :  { %1190 = vst.msk [vmem:[%s2740_s6 + $0x140] sm:$0xff] %vm550_vm1, %v1126_v42  ;;  %v1084_v35 = vadd.f32 %v2281_v62, %v1017_v31  ;;  %v1146_v42 = vmax.f32 %v1082_v2, 0.0  ;;  %v1147_v41 = vmax.f32 %v1083_v15, 0.0 }
 0x24d   :  { %1191 = vst.msk [vmem:[%s2740_s6 + $0x148] sm:$0xff] %vm550_vm1, %v1127_v38 }
 0x24e   :  { %1192 = vst.msk [vmem:[%s2740_s6 + $0x150] sm:$0xff] %vm550_vm1, %v1128_v47  ;;  %v1148_v62 = vmax.f32 %v1084_v35, 0.0 }
 0x24f   :  { %1193 = vst.msk [vmem:[%s2740_s6 + $0x158] sm:$0xff] %vm550_vm1, %v1129_v29 }
 0x250   :  { %1194 = vst.msk [vmem:[%s2740_s6 + $0x160] sm:$0xff] %vm550_vm1, %v1130_v58 }
 0x251   :  { %1195 = vst.msk [vmem:[%s2740_s6 + $0x168] sm:$0xff] %vm550_vm1, %v1131_v50 }
 0x252   :  { %1196 = vst.msk [vmem:[%s2740_s6 + $0x170] sm:$0xff] %vm550_vm1, %v1132_v4 }
 0x253   :  { %1197 = vst.msk [vmem:[%s2740_s6 + $0x178] sm:$0xff] %vm550_vm1, %v1133_v14 }
 0x254   :  { %1198 = vst.msk [vmem:[%s2740_s6 + $0x180] sm:$0xff] %vm550_vm1, %v1134_v53 }
 0x255   :  { %1199 = vst.msk [vmem:[%s2740_s6 + $0x188] sm:$0xff] %vm550_vm1, %v1135_v33 }
 0x256   :  { %1200 = vst.msk [vmem:[%s2740_s6 + $0x190] sm:$0xff] %vm550_vm1, %v1136_v28 }
 0x257   :  { %1201 = vst.msk [vmem:[%s2740_s6 + $0x198] sm:$0xff] %vm550_vm1, %v1137_v46 }
 0x258   :  { %1202 = vst.msk [vmem:[%s2740_s6 + $0x1a0] sm:$0xff] %vm550_vm1, %v1138_v10 }
 0x259   :  { %1203 = vst.msk [vmem:[%s2740_s6 + $0x1a8] sm:$0xff] %vm550_vm1, %v1139_v6 }
 0x25a   :  { %1204 = vst.msk [vmem:[%s2740_s6 + $0x1b0] sm:$0xff] %vm550_vm1, %v1140_v8 }
 0x25b   :  { %1205 = vst.msk [vmem:[%s2740_s6 + $0x1b8] sm:$0xff] %vm550_vm1, %v1141_v60 }
 0x25c   :  { %1206 = vst.msk [vmem:[%s2740_s6 + $0x1c0] sm:$0xff] %vm550_vm1, %v1142_v37 }
 0x25d   :  { %1207 = vst.msk [vmem:[%s2740_s6 + $0x1c8] sm:$0xff] %vm550_vm1, %v1143_v3 }
 0x25e   :  { %1208 = vst.msk [vmem:[%s2740_s6 + $0x1d0] sm:$0xff] %vm550_vm1, %v1144_v54 }
 0x25f   :  { %1209 = vst.msk [vmem:[%s2740_s6 + $0x1d8] sm:$0xff] %vm550_vm1, %v1145_v59 }
 0x260   :  { %1210 = vst.msk [vmem:[%s2740_s6 + $0x1e0] sm:$0xff] %vm550_vm1, %v1146_v42 }
 0x261   :  { %1211 = vst.msk [vmem:[%s2740_s6 + $0x1e8] sm:$0xff] %vm550_vm1, %v1147_v41 }
 0x262   :  { %1212 = vst.msk [vmem:[%s2740_s6 + $0x1f0] sm:$0xff] %vm550_vm1, %v1148_v62 }
 0x263   :  { %1213 = vst.msk [vmem:[%s2740_s6 + $0x1f8] sm:$0xff] %vm550_vm1, %v1149_v25 }

// kernel: generator_forward.29
= control target key start
LH: loop header
LB: loop body
LE: loop exit
PB: predicated region body
PF: predicated region fallthrough
CT: control target
= control target key end

     0   :  { %s3048_s12 = smov 0   ;;  %s3637_s0 = inlined_call_operand.vmem [shape: bf16[2048,392], index: 0, kind: input, shape index: {}]   ;;  %s3638_s1 = inlined_call_operand.vmem [shape: bf16[392,3], index: 1, kind: input, shape index: {}]   ;;  %s3639_s2 = inlined_call_operand.vmem [shape: f32[1,3], index: 2, kind: input, shape index: {}]   ;;  %s3640_s3 = inlined_call_operand.vmem [shape: f32[2048,3], index: 3, kind: output, shape index: {}]  }
   0x1 LB: > { %s2076_s13 = sadd.s32 4294967295, %s3026_s12   ;;  %p2080_p0 = scmp.ge.s32.totalorder %s3026_s12, 1  ;;  %s3026_s12 = sphi %s3048_s12, %s13_s12  }
   0x2   : > { %p139_p1 = scmp.lt.s32.totalorder %s3026_s12, 5 }
   0x4   : > { %p140_p2 = pnand %p2080_p0, %p139_p1 }
   0x5   : > { %s2081_s20 = sshll.u32 (!%p140_p2), %s2076_s13, 6 }
   0x6   : > { %143 = sbr.rel (%p140_p2) target bundleno = 693 (0x2b5), region = 32  ;;  %p165_p3 = scmp.lt.s32.totalorder (!%p140_p2), %s2081_s20, 255 }
   0xb   : > { %v2864_v0 = vld [vmem:[%s3638_s1 + $0x38] sm:$0xff]  ;;  %v2863_v3 = vld [vmem:[%s3638_s1 + $0x30] sm:$0xff]  ;;  %s3642_s20 = smov (!%p165_p3, %s2081_s20), 255  ;;  %v2862_v6 = vld [vmem:[%s3638_s1 + $0x28] sm:$0xff]  ;;  %vm1211_vm0 = vcmask 1043456   ;;  %vm1114_vm1 = vcmask 64512  }
   0xc   : > { %v2872_v1 = vld [vmem:[%s3638_s1 + $0x78] sm:$0xff]  ;;  %1215 = vmatpush.bf16.msra.mxu0 %v2864_v0  ;;  %v2871_v4 = vld [vmem:[%s3638_s1 + $0x70] sm:$0xff]  ;;  %s2728_s27 = sshll.u32 %s3642_s20, 4  ;;  %v2870_v7 = vld [vmem:[%s3638_s1 + $0x68] sm:$0xff]  ;;  %s2085_s22 = sshll.u32 %s3642_s20, 3  ;;  %vm1955_vm2 = vcmask 23552  }
   0xd   : > { %v2880_v2 = vld [vmem:[%s3638_s1 + $0xb8] sm:$0xff]  ;;  %1384 = vmatpush.bf16.msra.mxu1 %v2872_v1  ;;  %v2879_v5 = vld [vmem:[%s3638_s1 + $0xb0] sm:$0xff]  ;;  %v354_v8 = vld [vmem:[%s3638_s1 + $0xc0] sm:$0xf]  ;;  %s3089_s9 = scalar_lea.vmem %s3637_s0, %s2728_s27  ;;  %s3242_s25 = scalar_lea.vmem %s3640_s3, %s2085_s22 }
   0xe   : > { %1553 = vmatpush.bf16.msra.mxu2 %v2880_v2  ;;  %v2878_v9 = vld [vmem:[%s3638_s1 + $0xa8] sm:$0xff]  ;;  %v1064_v10 = vunpack.c.l.b16 %v354_v8  ;;  %v2098_v12 = vld [vmem:[%s3089_s9 + $0x18] sm:$0xf0]  ;;  %v2861_v14 = vld [vmem:[%s3638_s1 + $0x20] sm:$0xff] }
   0xf   : > { %v2730_v11 = vld [vmem:[%s3089_s9 + $0xc] sm:$0xf]  ;;  %v2869_v15 = vld [vmem:[%s3638_s1 + $0x60] sm:$0xff]  ;;  %v2860_v19 = vld [vmem:[%s3638_s1 + $0x18] sm:$0xff] }
  0x10   : > { %1216 = vmatpush.bf16.msra.mxu0 %v2863_v3  ;;  %v1089_v13 = vpack.c.b16 %v1064_v10, %v1064_v10  ;;  %v2877_v16 = vld [vmem:[%s3638_s1 + $0xa0] sm:$0xff]  ;;  %v2101_v18 = vor.u32 %v2730_v11, %v2098_v12  ;;  %v2868_v20 = vld [vmem:[%s3638_s1 + $0x58] sm:$0xff]  ;;  %v2859_v22 = vld [vmem:[%s3638_s1 + $0x10] sm:$0xff] }
  0x11   : > { %1385 = vmatpush.bf16.msra.mxu1 %v2871_v4  ;;  %v2876_v21 = vld [vmem:[%s3638_s1 + $0x98] sm:$0xff]  ;;  %v2867_v23 = vld [vmem:[%s3638_s1 + $0x50] sm:$0xff]  ;;  %v2858_v25 = vld [vmem:[%s3638_s1 + $0x8] sm:$0xff] }
  0x12   : > { %1554 = vmatpush.bf16.msra.mxu2 %v2879_v5  ;;  %v1213_v17 = vsel %vm1211_vm0, %v1089_v13, 0  ;;  %v2875_v24 = vld [vmem:[%s3638_s1 + $0x90] sm:$0xff]  ;;  %v2866_v26 = vld [vmem:[%s3638_s1 + $0x48] sm:$0xff]  ;;  %v2114_v29 = vld [vmem:[%s3089_s9 + $0x38] sm:$0xf0] }
  0x13   : > { %1729 = vmatpush.bf16.msra.mxu3 %v1213_v17  ;;  %v2874_v27 = vld [vmem:[%s3638_s1 + $0x88] sm:$0xff]  ;;  %v2857_v30 = vld [vmem:[%s3638_s1] sm:$0xff]  ;;  %v2731_v33 = vld [vmem:[%s3089_s9 + $0xc] sm:$0xf0] }
  0x14   : > { %1217 = vmatpush.bf16.msra.mxu0 %v2862_v6  ;;  %v2734_v28 = vld [vmem:[%s3089_s9 + $0x2c] sm:$0xf]  ;;  %v2865_v31 = vld [vmem:[%s3638_s1 + $0x40] sm:$0xff]  ;;  %v2090_v35 = vld [vmem:[%s3089_s9 + $0x10] sm:$0xf0] }
  0x15   : > { %1386 = vmatpush.bf16.msra.mxu1 %v2870_v7  ;;  %v2088_v32 = vld [vmem:[%s3089_s9] sm:$0xf]  ;;  %v2729_v34 = vld [vmem:[%s3089_s9 + $0x4] sm:$0xf]  ;;  %v2096_v37 = vld [vmem:[%s3089_s9 + $0x8] sm:$0xf]  ;;  %v2117_v39 = vor.u32 %v2734_v28, %v2114_v29 }
  0x16   : > { %1555 = vmatpush.bf16.msra.mxu2 %v2878_v9  ;;  %2694 = vmatmul.msk.bf16.vlgmr.msra.gmra.mxu3 %vm1114_vm1, %v2101_v18  ;;  %v2873_v36 = vld [vmem:[%s3638_s1 + $0x80] sm:$0xff]  ;;  %v2732_v38 = vld [vmem:[%s3089_s9 + $0x14] sm:$0xf0]  ;;  %v2089_v40 = vor.u32 %v2731_v33, %v2088_v32  ;;  %v2093_v41 = vor.u32 %v2729_v34, %v2090_v35  ;;  %v2738_v43 = vld [vmem:[%s3089_s9 + $0x4c] sm:$0xf] }
  0x17   : > { %v2097_v42 = vor.u32 %v2732_v38, %v2096_v37  ;;  %v2130_v44 = vld [vmem:[%s3089_s9 + $0x58] sm:$0xf0]  ;;  %v2104_v45 = vld [vmem:[%s3089_s9 + $0x20] sm:$0xf]  ;;  %v2735_v46 = vld [vmem:[%s3089_s9 + $0x2c] sm:$0xf0] }
  0x18   : > { %1218 = vmatpush.bf16.msra.mxu0 %v2861_v14  ;;  %v2733_v47 = vld [vmem:[%s3089_s9 + $0x24] sm:$0xf]  ;;  %v2106_v48 = vld [vmem:[%s3089_s9 + $0x30] sm:$0xf0]  ;;  %v2112_v49 = vld [vmem:[%s3089_s9 + $0x28] sm:$0xf]  ;;  %v2133_v51 = vor.u32 %v2738_v43, %v2130_v44  ;;  %v2105_v52 = vor.u32 %v2735_v46, %v2104_v45 }
  0x19   : > { %1387 = vmatpush.bf16.msra.mxu1 %v2869_v15  ;;  %v2736_v50 = vld [vmem:[%s3089_s9 + $0x34] sm:$0xf0]  ;;  %v2109_v53 = vor.u32 %v2733_v47, %v2106_v48  ;;  %v2742_v55 = vld [vmem:[%s3089_s9 + $0x6c] sm:$0xf]  ;;  %v2146_v56 = vld [vmem:[%s3089_s9 + $0x78] sm:$0xf0] }
  0x1a   : > { %1556 = vmatpush.bf16.msra.mxu2 %v2877_v16  ;;  %v2113_v54 = vor.u32 %v2736_v50, %v2112_v49  ;;  %v2120_v57 = vld [vmem:[%s3089_s9 + $0x40] sm:$0xf]  ;;  %v2739_v58 = vld [vmem:[%s3089_s9 + $0x4c] sm:$0xf0]  ;;  %v2737_v59 = vld [vmem:[%s3089_s9 + $0x44] sm:$0xf]  ;;  %v2149_v63 = vor.u32 %v2742_v55, %v2146_v56 }
  0x1b   : > { %v2122_v60 = vld [vmem:[%s3089_s9 + $0x50] sm:$0xf0]  ;;  %v2128_v61 = vld [vmem:[%s3089_s9 + $0x48] sm:$0xf]  ;;  %v2740_v62 = vld [vmem:[%s3089_s9 + $0x54] sm:$0xf0]  ;;  %v2121_v0 = vor.u32 %v2739_v58, %v2120_v57 }
  0x1c   : > { %1219 = vmatpush.bf16.msra.mxu0 %v2860_v19  ;;  %v2125_v1 = vor.u32 %v2737_v59, %v2122_v60  ;;  %v2129_v2 = vor.u32 %v2740_v62, %v2128_v61  ;;  %v2746_v3 = vld [vmem:[%s3089_s9 + $0x8c] sm:$0xf]  ;;  %v2162_v4 = vld [vmem:[%s3089_s9 + $0x98] sm:$0xf0]  ;;  %v2136_v5 = vld [vmem:[%s3089_s9 + $0x60] sm:$0xf] }
  0x1d   : > { %1388 = vmatpush.bf16.msra.mxu1 %v2868_v20  ;;  %v2743_v6 = vld [vmem:[%s3089_s9 + $0x6c] sm:$0xf0]  ;;  %v2741_v7 = vld [vmem:[%s3089_s9 + $0x64] sm:$0xf]  ;;  %v2138_v8 = vld [vmem:[%s3089_s9 + $0x70] sm:$0xf0]  ;;  %v2165_v11 = vor.u32 %v2746_v3, %v2162_v4 }
  0x1e   : > { %1557 = vmatpush.bf16.msra.mxu2 %v2876_v21  ;;  %v2144_v9 = vld [vmem:[%s3089_s9 + $0x68] sm:$0xf]  ;;  %v2744_v10 = vld [vmem:[%s3089_s9 + $0x74] sm:$0xf0]  ;;  %v2137_v12 = vor.u32 %v2743_v6, %v2136_v5  ;;  %v2141_v13 = vor.u32 %v2741_v7, %v2138_v8  ;;  %v2750_v15 = vld [vmem:[%s3089_s9 + $0xac] sm:$0xf] }
  0x1f   : > { %v2145_v14 = vor.u32 %v2744_v10, %v2144_v9  ;;  %v2178_v16 = vld [vmem:[%s3089_s9 + $0xb8] sm:$0xf0]  ;;  %v2152_v17 = vld [vmem:[%s3089_s9 + $0x80] sm:$0xf]  ;;  %v2747_v18 = vld [vmem:[%s3089_s9 + $0x8c] sm:$0xf0] }
  0x20   : > { %1220 = vmatpush.bf16.msra.mxu0 %v2859_v22  ;;  %v2745_v19 = vld [vmem:[%s3089_s9 + $0x84] sm:$0xf]  ;;  %v2154_v20 = vld [vmem:[%s3089_s9 + $0x90] sm:$0xf0]  ;;  %v2160_v21 = vld [vmem:[%s3089_s9 + $0x88] sm:$0xf] }
  0x21   : > { %1389 = vmatpush.bf16.msra.mxu1 %v2867_v23  ;;  %v2748_v22 = vld [vmem:[%s3089_s9 + $0x94] sm:$0xf0]  ;;  %v2181_v23 = vor.u32 %v2750_v15, %v2178_v16  ;;  %v2194_v28 = vld [vmem:[%s3089_s9 + $0xd8] sm:$0xf0]  ;;  %v2168_v29 = vld [vmem:[%s3089_s9 + $0xa0] sm:$0xf] }
  0x22   : > { %1558 = vmatpush.bf16.msra.mxu2 %v2875_v24  ;;  %v2153_v24 = vor.u32 %v2747_v18, %v2152_v17  ;;  %v2170_v32 = vld [vmem:[%s3089_s9 + $0xb0] sm:$0xf0]  ;;  %v2176_v33 = vld [vmem:[%s3089_s9 + $0xa8] sm:$0xf]  ;;  %v2752_v34 = vld [vmem:[%s3089_s9 + $0xb4] sm:$0xf0] }
  0x23   : > { %v2177_v38 = vor.u32 %v2752_v34, %v2176_v33  ;;  %v2753_v43 = vld [vmem:[%s3089_s9 + $0xc4] sm:$0xf]  ;;  %v2186_v44 = vld [vmem:[%s3089_s9 + $0xd0] sm:$0xf0]  ;;  %v2192_v45 = vld [vmem:[%s3089_s9 + $0xc8] sm:$0xf] }
  0x24   : > { %1221 = vmatpush.bf16.msra.mxu0 %v2858_v25  ;;  %v2157_v25 = vor.u32 %v2745_v19, %v2154_v20  ;;  %v2756_v46 = vld [vmem:[%s3089_s9 + $0xd4] sm:$0xf0]  ;;  %v2189_v49 = vor.u32 %v2753_v43, %v2186_v44  ;;  %v2757_v55 = vld [vmem:[%s3089_s9 + $0xe4] sm:$0xf]  ;;  %v2202_v56 = vld [vmem:[%s3089_s9 + $0xf0] sm:$0xf0] }
  0x25   : > { %1390 = vmatpush.bf16.msra.mxu1 %v2866_v26  ;;  %v2161_v26 = vor.u32 %v2748_v22, %v2160_v21  ;;  %v2193_v50 = vor.u32 %v2756_v46, %v2192_v45  ;;  %v2208_v57 = vld [vmem:[%s3089_s9 + $0xe8] sm:$0xf]  ;;  %v2760_v58 = vld [vmem:[%s3089_s9 + $0xf4] sm:$0xf0]  ;;  %v2205_v61 = vor.u32 %v2757_v55, %v2202_v56  ;;  %v2763_v3 = vld [vmem:[%s3089_s9 + $0x10c] sm:$0xf0] }
  0x26   : > { %1559 = vmatpush.bf16.msra.mxu2 %v2874_v27  ;;  %2695 = vmatmul.msk.bf16.gmra.mxu3 %vm1114_vm1, %v2117_v39  ;;  %v2754_v27 = vld [vmem:[%s3089_s9 + $0xcc] sm:$0xf]  ;;  %v2209_v62 = vor.u32 %v2760_v58, %v2208_v57  ;;  %v2761_v4 = vld [vmem:[%s3089_s9 + $0x104] sm:$0xf]  ;;  %v2218_v5 = vld [vmem:[%s3089_s9 + $0x110] sm:$0xf0] }
  0x27   : > { %v2197_v35 = vor.u32 %v2754_v27, %v2194_v28  ;;  %v2758_v39 = vld [vmem:[%s3089_s9 + $0xec] sm:$0xf]  ;;  %v3223_v7 = vld [vmem:[%s3639_s2] ss:$0 sm:$0xff]  ;;  %v2224_v8 = vld [vmem:[%s3089_s9 + $0x108] sm:$0xf] }
  0x28   : > { %1222 = vmatpush.bf16.msra.mxu0 %v2857_v30  ;;  %v2751_v30 = vld [vmem:[%s3089_s9 + $0xac] sm:$0xf0]  ;;  %v2764_v9 = vld [vmem:[%s3089_s9 + $0x114] sm:$0xf0]  ;;  %v2232_v27 = vld [vmem:[%s3089_s9 + $0x120] sm:$0xf] }
  0x29   : > { %1391 = vmatpush.bf16.msra.mxu1 %v2865_v31  ;;  %v2749_v31 = vld [vmem:[%s3089_s9 + $0xa4] sm:$0xf]  ;;  %v2225_v15 = vor.u32 %v2764_v9, %v2224_v8  ;;  %v2767_v28 = vld [vmem:[%s3089_s9 + $0x12c] sm:$0xf0]  ;;  %v2768_v33 = vld [vmem:[%s3089_s9 + $0x134] sm:$0xf0] }
  0x2a   : > { %1560 = vmatpush.bf16.msra.mxu2 %v2873_v36  ;;  %v2169_v36 = vor.u32 %v2751_v30, %v2168_v29  ;;  %v2173_v37 = vor.u32 %v2749_v31, %v2170_v32  ;;  %v2765_v29 = vld [vmem:[%s3089_s9 + $0x124] sm:$0xf]  ;;  %v2234_v30 = vld [vmem:[%s3089_s9 + $0x130] sm:$0xf0]  ;;  %v2240_v32 = vld [vmem:[%s3089_s9 + $0x128] sm:$0xf] }
  0x2b   : > { %1223 = vmatmul.bf16.vlgmr.msra.gmra.mxu0 %v2089_v40  ;;  %v2210_v40 = vld [vmem:[%s3089_s9 + $0xf8] sm:$0xf0]  ;;  %v2774_v55 = vld [vmem:[%s3089_s9 + $0x16c] sm:$0xf]  ;;  %v2248_v57 = vld [vmem:[%s3089_s9 + $0x140] sm:$0xf] }
  0x2c   : > { %1392 = vmatmul.bf16.vlgmr.msra.gmra.mxu1 %v2093_v41  ;;  %v2184_v41 = vld [vmem:[%s3089_s9 + $0xc0] sm:$0xf]  ;;  %v2213_v47 = vor.u32 %v2758_v39, %v2210_v40  ;;  %v2274_v56 = vld [vmem:[%s3089_s9 + $0x178] sm:$0xf0]  ;;  %v2771_v58 = vld [vmem:[%s3089_s9 + $0x14c] sm:$0xf0] }
  0x2d   : > { %1561 = vmatmul.bf16.vlgmr.msra.gmra.mxu2 %v2097_v42  ;;  %v2755_v42 = vld [vmem:[%s3089_s9 + $0xcc] sm:$0xf0] }
  0x2e   : > { %v2185_v48 = vor.u32 %v2755_v42, %v2184_v41  ;;  %v2241_v42 = vor.u32 %v2768_v33, %v2240_v32 }
  0x36   : > { %2696 = vmatmul.msk.bf16.gmra.mxu3 %vm1114_vm1, %v2133_v51  ;;  %v2762_v51 = vld [vmem:[%s3089_s9 + $0x10c] sm:$0xf] }
  0x3b   : > { %1228 = vmatmul.bf16.gmra.mxu0 %v2105_v52  ;;  %v2226_v52 = vld [vmem:[%s3089_s9 + $0x118] sm:$0xf0] }
  0x3c   : > { %1397 = vmatmul.bf16.gmra.mxu1 %v2109_v53  ;;  %v2200_v53 = vld [vmem:[%s3089_s9 + $0xe0] sm:$0xf]  ;;  %v2229_v59 = vor.u32 %v2762_v51, %v2226_v52 }
  0x3d   : > { %1566 = vmatmul.bf16.gmra.mxu2 %v2113_v54  ;;  %v2759_v54 = vld [vmem:[%s3089_s9 + $0xec] sm:$0xf0] }
  0x3e   : > { %v2201_v60 = vor.u32 %v2759_v54, %v2200_v53 }
  0x46   : > { %2697 = vmatmul.msk.bf16.gmra.mxu3 %vm1114_vm1, %v2149_v63 }
  0x4b   : > { %1233 = vmatmul.bf16.gmra.mxu0 %v2121_v0  ;;  %v2766_v0 = vld [vmem:[%s3089_s9 + $0x12c] sm:$0xf] }
  0x4c   : > { %1402 = vmatmul.bf16.gmra.mxu1 %v2125_v1  ;;  %v2242_v1 = vld [vmem:[%s3089_s9 + $0x138] sm:$0xf0] }
  0x4d   : > { %1571 = vmatmul.bf16.gmra.mxu2 %v2129_v2  ;;  %v2216_v2 = vld [vmem:[%s3089_s9 + $0x100] sm:$0xf]  ;;  %v2245_v10 = vor.u32 %v2766_v0, %v2242_v1  ;;  %v2277_v0 = vor.u32 %v2774_v55, %v2274_v56  ;;  %v2779_v55 = vld [vmem:[%s3089_s9 + $0x18c] sm:$0xf0]  ;;  %v2777_v56 = vld [vmem:[%s3089_s9 + $0x184] sm:$0xf] }
  0x56   : > { %2698 = vmatmul.msk.bf16.gmra.mxu3 %vm1114_vm1, %v2165_v11  ;;  %v2217_v11 = vor.u32 %v2763_v3, %v2216_v2  ;;  %v2249_v3 = vor.u32 %v2771_v58, %v2248_v57  ;;  %v2282_v57 = vld [vmem:[%s3089_s9 + $0x190] sm:$0xf0] }
  0x5b   : > { %1238 = vmatmul.bf16.gmra.mxu0 %v2137_v12  ;;  %v2221_v12 = vor.u32 %v2761_v4, %v2218_v5 }
  0x5c   : > { %1407 = vmatmul.bf16.gmra.mxu1 %v2141_v13 }
  0x5d   : > { %1576 = vmatmul.bf16.gmra.mxu2 %v2145_v14 }
  0x66   : > { %2699 = vmatmul.msk.bf16.gmra.mxu3 %vm1114_vm1, %v2181_v23 }
  0x6b   : > { %1243 = vmatmul.bf16.gmra.mxu0 %v2153_v24 }
  0x6c   : > { %1412 = vmatmul.bf16.gmra.mxu1 %v2157_v25  ;;  %v2770_v25 = vld [vmem:[%s3089_s9 + $0x14c] sm:$0xf] }
  0x6d   : > { %1581 = vmatmul.bf16.gmra.mxu2 %v2161_v26  ;;  %v2258_v26 = vld [vmem:[%s3089_s9 + $0x158] sm:$0xf0] }
  0x6e   : > { %v2261_v34 = vor.u32 %v2770_v25, %v2258_v26  ;;  %v2775_v25 = vld [vmem:[%s3089_s9 + $0x16c] sm:$0xf0]  ;;  %v2773_v26 = vld [vmem:[%s3089_s9 + $0x164] sm:$0xf] }
  0x76   : > { %2700 = vmatmul.msk.bf16.gmra.mxu3 %vm1114_vm1, %v2197_v35 }
  0x7b   : > { %1248 = vmatmul.bf16.gmra.mxu0 %v2169_v36 }
  0x7c   : > { %1417 = vmatmul.bf16.gmra.mxu1 %v2173_v37  ;;  %v2233_v37 = vor.u32 %v2767_v28, %v2232_v27  ;;  %v2266_v27 = vld [vmem:[%s3089_s9 + $0x170] sm:$0xf0] }
  0x7d   : > { %1586 = vmatmul.bf16.gmra.mxu2 %v2177_v38  ;;  %v2237_v38 = vor.u32 %v2765_v29, %v2234_v30  ;;  %v2272_v29 = vld [vmem:[%s3089_s9 + $0x168] sm:$0xf]  ;;  %v2776_v30 = vld [vmem:[%s3089_s9 + $0x174] sm:$0xf0] }
  0x86   : > { %2701 = vmatmul.msk.bf16.gmra.mxu3 %vm1114_vm1, %v2213_v47 }
  0x8b   : > { %1253 = vmatmul.bf16.gmra.mxu0 %v2185_v48 }
  0x8c   : > { %1422 = vmatmul.bf16.gmra.mxu1 %v2189_v49 }
  0x8d   : > { %1591 = vmatmul.bf16.gmra.mxu2 %v2193_v50 }
  0x96   : > { %2702 = vmatmul.msk.bf16.gmra.mxu3 %vm1114_vm1, %v2229_v59  ;;  %v2769_v59 = vld [vmem:[%s3089_s9 + $0x144] sm:$0xf] }
  0x99   : > { %v1731_v63 = vpop.f32.mrf.mxu3 }
  0x9b   : > { %1258 = vmatmul.bf16.gmra.mxu0 %v2201_v60  ;;  %v2250_v60 = vld [vmem:[%s3089_s9 + $0x150] sm:$0xf0] }
  0x9c   : > { %1427 = vmatmul.bf16.gmra.mxu1 %v2205_v61  ;;  %v2253_v4 = vor.u32 %v2769_v59, %v2250_v60  ;;  %v2288_v59 = vld [vmem:[%s3089_s9 + $0x188] sm:$0xf]  ;;  %v2780_v60 = vld [vmem:[%s3089_s9 + $0x194] sm:$0xf0] }
  0x9d   : > { %1596 = vmatmul.bf16.gmra.mxu2 %v2209_v62  ;;  %v2256_v62 = vld [vmem:[%s3089_s9 + $0x148] sm:$0xf] }
  0xa1   : > { %v1733_v6 = vpop.f32.mrf.mxu3 }
  0xa6   : > { %2703 = vmatmul.msk.bf16.gmra.mxu3 %vm1114_vm1, %v2245_v10 }
  0xa8   : > { %v1224_v13 = vpop.f32.mrf.mxu0 }
  0xa9   : > { %v1393_v14 = vpop.f32.mrf.mxu1  ;;  %v1225_v16 = vadd.f32 %v3223_v7, %v1224_v13  ;;  %v1736_v18 = vpop.f32.mrf.mxu3 }
  0xab   : > { %1263 = vmatmul.bf16.gmra.mxu0 %v2217_v11  ;;  %v1394_v17 = vadd.f32 %v1393_v14, %v1225_v16 }
  0xac   : > { %1432 = vmatmul.bf16.gmra.mxu1 %v2221_v12 }
  0xad   : > { %1601 = vmatmul.bf16.gmra.mxu2 %v2225_v15 }
  0xb0   : > { %v1562_v19 = vpop.f32.mrf.mxu2  ;;  %v1226_v21 = vpop.f32.mrf.mxu0 }
  0xb1   : > { %v1563_v20 = vadd.f32 %v1562_v19, %v1394_v17  ;;  %v1395_v22 = vpop.f32.mrf.mxu1  ;;  %v1227_v24 = vadd.f32 %v3223_v7, %v1226_v21  ;;  %v1738_v31 = vpop.f32.mrf.mxu3 }
  0xb3   : > { %v1732_v23 = vadd.f32 %v1731_v63, %v1563_v20  ;;  %v1396_v35 = vadd.f32 %v1395_v22, %v1227_v24  ;;  %v2772_v63 = vld [vmem:[%s3089_s9 + $0x154] sm:$0xf0]  ;;  %v2778_v22 = vld [vmem:[%s3089_s9 + $0x18c] sm:$0xf]  ;;  %v2264_v24 = vld [vmem:[%s3089_s9 + $0x160] sm:$0xf] }
  0xb4   : > { %v2257_v9 = vor.u32 %v2772_v63, %v2256_v62 }
  0xb5   : > { %2890 = vtanh.f32 %v1732_v23  ;;  %v2290_v23 = vld [vmem:[%s3089_s9 + $0x198] sm:$0xf0] }
  0xb6   : > { %2704 = vmatmul.msk.bf16.gmra.mxu3 %vm1114_vm1, %v2261_v34  ;;  %v2265_v34 = vor.u32 %v2775_v25, %v2264_v24  ;;  %v2298_v24 = vld [vmem:[%s3089_s9 + $0x1b0] sm:$0xf0] }
  0xb8   : > { %v1564_v36 = vpop.f32.mrf.mxu2  ;;  %v1229_v40 = vpop.f32.mrf.mxu0 }
  0xb9   : > { %v1565_v39 = vadd.f32 %v1564_v36, %v1396_v35  ;;  %v1398_v41 = vpop.f32.mrf.mxu1  ;;  %v1230_v43 = vadd.f32 %v3223_v7, %v1229_v40  ;;  %v1741_v47 = vpop.f32.mrf.mxu3  ;;  %v2269_v35 = vor.u32 %v2773_v26, %v2266_v27  ;;  %v2304_v26 = vld [vmem:[%s3089_s9 + $0x1a8] sm:$0xf]  ;;  %v2784_v27 = vld [vmem:[%s3089_s9 + $0x1b4] sm:$0xf0] }
  0xbb   : > { %v2891_v44 = vpop.eup %2890  ;;  %v1734_v45 = vadd.f32 %v1733_v6, %v1565_v39  ;;  %1268 = vmatmul.bf16.gmra.mxu0 %v2233_v37  ;;  %v1399_v46 = vadd.f32 %v1398_v41, %v1230_v43  ;;  %v2273_v39 = vor.u32 %v2776_v30, %v2272_v29 }
  0xbc   : > { %1956 = vst.msk [vmem:[%s3242_s25] sm:$0xff] %vm1955_vm2, %v2891_v44  ;;  %1437 = vmatmul.bf16.gmra.mxu1 %v2237_v38 }
  0xbd   : > { %2892 = vtanh.f32 %v1734_v45  ;;  %1606 = vmatmul.bf16.gmra.mxu2 %v2241_v42 }
  0xc0   : > { %v1567_v48 = vpop.f32.mrf.mxu2  ;;  %v1231_v50 = vpop.f32.mrf.mxu0 }
  0xc1   : > { %v1568_v49 = vadd.f32 %v1567_v48, %v1399_v46  ;;  %v1400_v51 = vpop.f32.mrf.mxu1  ;;  %v1232_v54 = vadd.f32 %v3223_v7, %v1231_v50  ;;  %v1743_v61 = vpop.f32.mrf.mxu3 }
  0xc3   : > { %v2893_v52 = vpop.eup %2892  ;;  %v1737_v53 = vadd.f32 %v1736_v18, %v1568_v49  ;;  %v1401_v1 = vadd.f32 %v1400_v51, %v1232_v54  ;;  %v2280_v54 = vld [vmem:[%s3089_s9 + $0x180] sm:$0xf] }
  0xc4   : > { %1957 = vst.msk [vmem:[%s3242_s25 + $0x8] sm:$0xff] %vm1955_vm2, %v2893_v52  ;;  %v2782_v52 = vld [vmem:[%s3089_s9 + $0x1ac] sm:$0xf] }
  0xc5   : > { %2894 = vtanh.f32 %v1737_v53  ;;  %v2306_v53 = vld [vmem:[%s3089_s9 + $0x1b8] sm:$0xf0] }
  0xc6   : > { %2705 = vmatmul.msk.bf16.gmra.mxu3 %vm1114_vm1, %v2277_v0  ;;  %v2281_v0 = vor.u32 %v2779_v55, %v2280_v54  ;;  %v2314_v54 = vld [vmem:[%s3089_s9 + $0x1d0] sm:$0xf0] }
  0xc8   : > { %v1569_v2 = vpop.f32.mrf.mxu2  ;;  %v1234_v6 = vpop.f32.mrf.mxu0 }
  0xc9   : > { %v1570_v5 = vadd.f32 %v1569_v2, %v1401_v1  ;;  %v1403_v8 = vpop.f32.mrf.mxu1  ;;  %v1235_v10 = vadd.f32 %v3223_v7, %v1234_v6  ;;  %v1746_v14 = vpop.f32.mrf.mxu3  ;;  %v2285_v1 = vor.u32 %v2777_v56, %v2282_v57  ;;  %v2320_v56 = vld [vmem:[%s3089_s9 + $0x1c8] sm:$0xf]  ;;  %v2788_v57 = vld [vmem:[%s3089_s9 + $0x1d4] sm:$0xf0] }
  0xcb   : > { %v2895_v11 = vpop.eup %2894  ;;  %v1739_v12 = vadd.f32 %v1738_v31, %v1570_v5  ;;  %1273 = vmatmul.bf16.gmra.mxu0 %v2249_v3  ;;  %v1404_v13 = vadd.f32 %v1403_v8, %v1235_v10  ;;  %v2293_v31 = vor.u32 %v2778_v22, %v2290_v23  ;;  %v2289_v5 = vor.u32 %v2780_v60, %v2288_v59  ;;  %v2783_v22 = vld [vmem:[%s3089_s9 + $0x1ac] sm:$0xf0]  ;;  %v2781_v23 = vld [vmem:[%s3089_s9 + $0x1a4] sm:$0xf] }
  0xcc   : > { %1958 = vst.msk [vmem:[%s3242_s25 + $0x10] sm:$0xff] %vm1955_vm2, %v2895_v11  ;;  %1442 = vmatmul.bf16.gmra.mxu1 %v2253_v4 }
  0xcd   : > { %2896 = vtanh.f32 %v1739_v12  ;;  %1611 = vmatmul.bf16.gmra.mxu2 %v2257_v9 }
  0xd0   : > { %v1572_v15 = vpop.f32.mrf.mxu2  ;;  %v1236_v17 = vpop.f32.mrf.mxu0 }
  0xd1   : > { %v1573_v16 = vadd.f32 %v1572_v15, %v1404_v13  ;;  %v1405_v18 = vpop.f32.mrf.mxu1  ;;  %v1237_v21 = vadd.f32 %v3223_v7, %v1236_v17  ;;  %v1748_v28 = vpop.f32.mrf.mxu3 }
  0xd3   : > { %v2897_v19 = vpop.eup %2896  ;;  %v1742_v20 = vadd.f32 %v1741_v47, %v1573_v16  ;;  %v1406_v32 = vadd.f32 %v1405_v18, %v1237_v21  ;;  %v2296_v21 = vld [vmem:[%s3089_s9 + $0x1a0] sm:$0xf] }
  0xd4   : > { %1959 = vst.msk [vmem:[%s3242_s25 + $0x18] sm:$0xff] %vm1955_vm2, %v2897_v19  ;;  %v2786_v19 = vld [vmem:[%s3089_s9 + $0x1cc] sm:$0xf] }
  0xd5   : > { %2898 = vtanh.f32 %v1742_v20  ;;  %v2322_v20 = vld [vmem:[%s3089_s9 + $0x1d8] sm:$0xf0] }
  0xd6   : > { %2706 = vmatmul.msk.bf16.gmra.mxu3 %vm1114_vm1, %v2293_v31  ;;  %v2297_v31 = vor.u32 %v2783_v22, %v2296_v21  ;;  %v2330_v21 = vld [vmem:[%s3089_s9 + $0x1f0] sm:$0xf0] }
  0xd8   : > { %v1574_v33 = vpop.f32.mrf.mxu2  ;;  %v1239_v37 = vpop.f32.mrf.mxu0 }
  0xd9   : > { %v1575_v36 = vadd.f32 %v1574_v33, %v1406_v32  ;;  %v1408_v38 = vpop.f32.mrf.mxu1  ;;  %v1240_v40 = vadd.f32 %v3223_v7, %v1239_v37  ;;  %v1751_v44 = vpop.f32.mrf.mxu3  ;;  %v2301_v32 = vor.u32 %v2781_v23, %v2298_v24  ;;  %v2336_v23 = vld [vmem:[%s3089_s9 + $0x1e8] sm:$0xf]  ;;  %v2792_v24 = vld [vmem:[%s3089_s9 + $0x1f4] sm:$0xf0] }
  0xdb   : > { %v2899_v41 = vpop.eup %2898  ;;  %v1744_v42 = vadd.f32 %v1743_v61, %v1575_v36  ;;  %1278 = vmatmul.bf16.gmra.mxu0 %v2265_v34  ;;  %v1409_v43 = vadd.f32 %v1408_v38, %v1240_v40  ;;  %v2309_v61 = vor.u32 %v2782_v52, %v2306_v53  ;;  %v2305_v36 = vor.u32 %v2784_v27, %v2304_v26  ;;  %v2787_v52 = vld [vmem:[%s3089_s9 + $0x1cc] sm:$0xf0]  ;;  %v2785_v53 = vld [vmem:[%s3089_s9 + $0x1c4] sm:$0xf] }
  0xdc   : > { %1960 = vst.msk [vmem:[%s3242_s25 + $0x20] sm:$0xff] %vm1955_vm2, %v2899_v41  ;;  %1447 = vmatmul.bf16.gmra.mxu1 %v2269_v35 }
  0xdd   : > { %2900 = vtanh.f32 %v1744_v42  ;;  %1616 = vmatmul.bf16.gmra.mxu2 %v2273_v39 }
  0xe0   : > { %v1577_v45 = vpop.f32.mrf.mxu2  ;;  %v1241_v47 = vpop.f32.mrf.mxu0 }
  0xe1   : > { %v1578_v46 = vadd.f32 %v1577_v45, %v1409_v43  ;;  %v1410_v48 = vpop.f32.mrf.mxu1  ;;  %v1242_v51 = vadd.f32 %v3223_v7, %v1241_v47  ;;  %v1753_v58 = vpop.f32.mrf.mxu3 }
  0xe3   : > { %v2901_v49 = vpop.eup %2900  ;;  %v1747_v50 = vadd.f32 %v1746_v14, %v1578_v46  ;;  %v1411_v62 = vadd.f32 %v1410_v48, %v1242_v51  ;;  %v2312_v51 = vld [vmem:[%s3089_s9 + $0x1c0] sm:$0xf] }
  0xe4   : > { %1961 = vst.msk [vmem:[%s3242_s25 + $0x28] sm:$0xff] %vm1955_vm2, %v2901_v49  ;;  %v2790_v49 = vld [vmem:[%s3089_s9 + $0x1ec] sm:$0xf] }
  0xe5   : > { %2902 = vtanh.f32 %v1747_v50  ;;  %v2338_v50 = vld [vmem:[%s3089_s9 + $0x1f8] sm:$0xf0] }
  0xe6   : > { %2707 = vmatmul.msk.bf16.gmra.mxu3 %vm1114_vm1, %v2309_v61  ;;  %v2313_v61 = vor.u32 %v2787_v52, %v2312_v51  ;;  %v2346_v51 = vld [vmem:[%s3089_s9 + $0x210] sm:$0xf0] }
  0xe8   : > { %v1579_v63 = vpop.f32.mrf.mxu2  ;;  %v1244_v3 = vpop.f32.mrf.mxu0 }
  0xe9   : > { %v1580_v2 = vadd.f32 %v1579_v63, %v1411_v62  ;;  %v1413_v4 = vpop.f32.mrf.mxu1  ;;  %v1245_v6 = vadd.f32 %v3223_v7, %v1244_v3  ;;  %v1756_v11 = vpop.f32.mrf.mxu3  ;;  %v2317_v62 = vor.u32 %v2785_v53, %v2314_v54  ;;  %v2352_v53 = vld [vmem:[%s3089_s9 + $0x208] sm:$0xf]  ;;  %v2796_v54 = vld [vmem:[%s3089_s9 + $0x214] sm:$0xf0] }
  0xeb   : > { %v2903_v8 = vpop.eup %2902  ;;  %v1749_v9 = vadd.f32 %v1748_v28, %v1580_v2  ;;  %1283 = vmatmul.bf16.gmra.mxu0 %v2281_v0  ;;  %v1414_v10 = vadd.f32 %v1413_v4, %v1245_v6  ;;  %v2325_v28 = vor.u32 %v2786_v19, %v2322_v20  ;;  %v2321_v2 = vor.u32 %v2788_v57, %v2320_v56  ;;  %v2791_v19 = vld [vmem:[%s3089_s9 + $0x1ec] sm:$0xf0]  ;;  %v2789_v20 = vld [vmem:[%s3089_s9 + $0x1e4] sm:$0xf] }
  0xec   : > { %1962 = vst.msk [vmem:[%s3242_s25 + $0x30] sm:$0xff] %vm1955_vm2, %v2903_v8  ;;  %1452 = vmatmul.bf16.gmra.mxu1 %v2285_v1 }
  0xed   : > { %2904 = vtanh.f32 %v1749_v9  ;;  %1621 = vmatmul.bf16.gmra.mxu2 %v2289_v5 }
  0xf0   : > { %v1582_v12 = vpop.f32.mrf.mxu2  ;;  %v1246_v14 = vpop.f32.mrf.mxu0 }
  0xf1   : > { %v1583_v13 = vadd.f32 %v1582_v12, %v1414_v10  ;;  %v1415_v15 = vpop.f32.mrf.mxu1  ;;  %v1247_v18 = vadd.f32 %v3223_v7, %v1246_v14  ;;  %v1758_v25 = vpop.f32.mrf.mxu3 }
  0xf3   : > { %v2905_v16 = vpop.eup %2904  ;;  %v1752_v17 = vadd.f32 %v1751_v44, %v1583_v13  ;;  %v1416_v29 = vadd.f32 %v1415_v15, %v1247_v18  ;;  %v2328_v18 = vld [vmem:[%s3089_s9 + $0x1e0] sm:$0xf] }
  0xf4   : > { %1963 = vst.msk [vmem:[%s3242_s25 + $0x38] sm:$0xff] %vm1955_vm2, %v2905_v16  ;;  %v2794_v16 = vld [vmem:[%s3089_s9 + $0x20c] sm:$0xf] }
  0xf5   : > { %2906 = vtanh.f32 %v1752_v17  ;;  %v2354_v17 = vld [vmem:[%s3089_s9 + $0x218] sm:$0xf0] }
  0xf6   : > { %2708 = vmatmul.msk.bf16.gmra.mxu3 %vm1114_vm1, %v2325_v28  ;;  %v2329_v28 = vor.u32 %v2791_v19, %v2328_v18  ;;  %v2362_v18 = vld [vmem:[%s3089_s9 + $0x230] sm:$0xf0] }
  0xf8   : > { %v1584_v30 = vpop.f32.mrf.mxu2  ;;  %v1249_v34 = vpop.f32.mrf.mxu0 }
  0xf9   : > { %v1585_v33 = vadd.f32 %v1584_v30, %v1416_v29  ;;  %v1418_v35 = vpop.f32.mrf.mxu1  ;;  %v1250_v37 = vadd.f32 %v3223_v7, %v1249_v34  ;;  %v1761_v41 = vpop.f32.mrf.mxu3  ;;  %v2333_v29 = vor.u32 %v2789_v20, %v2330_v21  ;;  %v2368_v20 = vld [vmem:[%s3089_s9 + $0x228] sm:$0xf]  ;;  %v2800_v21 = vld [vmem:[%s3089_s9 + $0x234] sm:$0xf0] }
  0xfb   : > { %v2907_v38 = vpop.eup %2906  ;;  %v1754_v39 = vadd.f32 %v1753_v58, %v1585_v33  ;;  %1288 = vmatmul.bf16.gmra.mxu0 %v2297_v31  ;;  %v1419_v40 = vadd.f32 %v1418_v35, %v1250_v37  ;;  %v2341_v58 = vor.u32 %v2790_v49, %v2338_v50  ;;  %v2337_v33 = vor.u32 %v2792_v24, %v2336_v23  ;;  %v2795_v49 = vld [vmem:[%s3089_s9 + $0x20c] sm:$0xf0]  ;;  %v2793_v50 = vld [vmem:[%s3089_s9 + $0x204] sm:$0xf] }
  0xfc   : > { %1964 = vst.msk [vmem:[%s3242_s25 + $0x40] sm:$0xff] %vm1955_vm2, %v2907_v38  ;;  %1457 = vmatmul.bf16.gmra.mxu1 %v2301_v32 }
  0xfd   : > { %2908 = vtanh.f32 %v1754_v39  ;;  %1626 = vmatmul.bf16.gmra.mxu2 %v2305_v36 }
 0x100   : > { %v1587_v42 = vpop.f32.mrf.mxu2  ;;  %v1251_v44 = vpop.f32.mrf.mxu0 }
 0x101   : > { %v1588_v43 = vadd.f32 %v1587_v42, %v1419_v40  ;;  %v1420_v45 = vpop.f32.mrf.mxu1  ;;  %v1252_v48 = vadd.f32 %v3223_v7, %v1251_v44  ;;  %v1763_v55 = vpop.f32.mrf.mxu3 }
 0x103   : > { %v2909_v46 = vpop.eup %2908  ;;  %v1757_v47 = vadd.f32 %v1756_v11, %v1588_v43  ;;  %v1421_v59 = vadd.f32 %v1420_v45, %v1252_v48  ;;  %v2344_v48 = vld [vmem:[%s3089_s9 + $0x200] sm:$0xf] }
 0x104   : > { %1965 = vst.msk [vmem:[%s3242_s25 + $0x48] sm:$0xff] %vm1955_vm2, %v2909_v46  ;;  %v2798_v46 = vld [vmem:[%s3089_s9 + $0x22c] sm:$0xf] }
 0x105   : > { %2910 = vtanh.f32 %v1757_v47  ;;  %v2370_v47 = vld [vmem:[%s3089_s9 + $0x238] sm:$0xf0] }
 0x106   : > { %2709 = vmatmul.msk.bf16.gmra.mxu3 %vm1114_vm1, %v2341_v58  ;;  %v2345_v58 = vor.u32 %v2795_v49, %v2344_v48  ;;  %v2378_v48 = vld [vmem:[%s3089_s9 + $0x250] sm:$0xf0] }
 0x108   : > { %v1589_v60 = vpop.f32.mrf.mxu2  ;;  %v1254_v0 = vpop.f32.mrf.mxu0 }
 0x109   : > { %v1590_v63 = vadd.f32 %v1589_v60, %v1421_v59  ;;  %v1423_v1 = vpop.f32.mrf.mxu1  ;;  %v1255_v3 = vadd.f32 %v3223_v7, %v1254_v0  ;;  %v1766_v8 = vpop.f32.mrf.mxu3  ;;  %v2349_v59 = vor.u32 %v2793_v50, %v2346_v51  ;;  %v2384_v50 = vld [vmem:[%s3089_s9 + $0x248] sm:$0xf]  ;;  %v2804_v51 = vld [vmem:[%s3089_s9 + $0x254] sm:$0xf0] }
 0x10b   : > { %v2911_v4 = vpop.eup %2910  ;;  %v1759_v5 = vadd.f32 %v1758_v25, %v1590_v63  ;;  %1293 = vmatmul.bf16.gmra.mxu0 %v2313_v61  ;;  %v1424_v6 = vadd.f32 %v1423_v1, %v1255_v3  ;;  %v2357_v25 = vor.u32 %v2794_v16, %v2354_v17  ;;  %v2353_v63 = vor.u32 %v2796_v54, %v2352_v53  ;;  %v2799_v16 = vld [vmem:[%s3089_s9 + $0x22c] sm:$0xf0]  ;;  %v2797_v17 = vld [vmem:[%s3089_s9 + $0x224] sm:$0xf] }
 0x10c   : > { %1966 = vst.msk [vmem:[%s3242_s25 + $0x50] sm:$0xff] %vm1955_vm2, %v2911_v4  ;;  %1462 = vmatmul.bf16.gmra.mxu1 %v2317_v62 }
 0x10d   : > { %2912 = vtanh.f32 %v1759_v5  ;;  %1631 = vmatmul.bf16.gmra.mxu2 %v2321_v2 }
 0x110   : > { %v1592_v9 = vpop.f32.mrf.mxu2  ;;  %v1256_v11 = vpop.f32.mrf.mxu0 }
 0x111   : > { %v1593_v10 = vadd.f32 %v1592_v9, %v1424_v6  ;;  %v1425_v12 = vpop.f32.mrf.mxu1  ;;  %v1257_v15 = vadd.f32 %v3223_v7, %v1256_v11  ;;  %v1768_v22 = vpop.f32.mrf.mxu3 }
 0x113   : > { %v2913_v13 = vpop.eup %2912  ;;  %v1762_v14 = vadd.f32 %v1761_v41, %v1593_v10  ;;  %v1426_v26 = vadd.f32 %v1425_v12, %v1257_v15  ;;  %v2360_v15 = vld [vmem:[%s3089_s9 + $0x220] sm:$0xf] }
 0x114   : > { %1967 = vst.msk [vmem:[%s3242_s25 + $0x58] sm:$0xff] %vm1955_vm2, %v2913_v13  ;;  %v2802_v13 = vld [vmem:[%s3089_s9 + $0x24c] sm:$0xf] }
 0x115   : > { %2914 = vtanh.f32 %v1762_v14  ;;  %v2386_v14 = vld [vmem:[%s3089_s9 + $0x258] sm:$0xf0] }
 0x116   : > { %2710 = vmatmul.msk.bf16.gmra.mxu3 %vm1114_vm1, %v2357_v25  ;;  %v2361_v25 = vor.u32 %v2799_v16, %v2360_v15  ;;  %v2394_v15 = vld [vmem:[%s3089_s9 + $0x270] sm:$0xf0] }
 0x118   : > { %v1594_v27 = vpop.f32.mrf.mxu2  ;;  %v1259_v31 = vpop.f32.mrf.mxu0 }
 0x119   : > { %v1595_v30 = vadd.f32 %v1594_v27, %v1426_v26  ;;  %v1428_v32 = vpop.f32.mrf.mxu1  ;;  %v1260_v34 = vadd.f32 %v3223_v7, %v1259_v31  ;;  %v1771_v38 = vpop.f32.mrf.mxu3  ;;  %v2365_v26 = vor.u32 %v2797_v17, %v2362_v18  ;;  %v2400_v17 = vld [vmem:[%s3089_s9 + $0x268] sm:$0xf]  ;;  %v2808_v18 = vld [vmem:[%s3089_s9 + $0x274] sm:$0xf0] }
 0x11b   : > { %v2915_v35 = vpop.eup %2914  ;;  %v1764_v36 = vadd.f32 %v1763_v55, %v1595_v30  ;;  %1298 = vmatmul.bf16.gmra.mxu0 %v2329_v28  ;;  %v1429_v37 = vadd.f32 %v1428_v32, %v1260_v34  ;;  %v2373_v55 = vor.u32 %v2798_v46, %v2370_v47  ;;  %v2369_v30 = vor.u32 %v2800_v21, %v2368_v20  ;;  %v2803_v46 = vld [vmem:[%s3089_s9 + $0x24c] sm:$0xf0]  ;;  %v2801_v47 = vld [vmem:[%s3089_s9 + $0x244] sm:$0xf] }
 0x11c   : > { %1968 = vst.msk [vmem:[%s3242_s25 + $0x60] sm:$0xff] %vm1955_vm2, %v2915_v35  ;;  %1467 = vmatmul.bf16.gmra.mxu1 %v2333_v29 }
 0x11d   : > { %2916 = vtanh.f32 %v1764_v36  ;;  %1636 = vmatmul.bf16.gmra.mxu2 %v2337_v33 }
 0x120   : > { %v1597_v39 = vpop.f32.mrf.mxu2  ;;  %v1261_v41 = vpop.f32.mrf.mxu0 }
 0x121   : > { %v1598_v40 = vadd.f32 %v1597_v39, %v1429_v37  ;;  %v1430_v42 = vpop.f32.mrf.mxu1  ;;  %v1262_v45 = vadd.f32 %v3223_v7, %v1261_v41  ;;  %v1773_v52 = vpop.f32.mrf.mxu3 }
 0x123   : > { %v2917_v43 = vpop.eup %2916  ;;  %v1767_v44 = vadd.f32 %v1766_v8, %v1598_v40  ;;  %v1431_v56 = vadd.f32 %v1430_v42, %v1262_v45  ;;  %v2376_v45 = vld [vmem:[%s3089_s9 + $0x240] sm:$0xf] }
 0x124   : > { %1969 = vst.msk [vmem:[%s3242_s25 + $0x68] sm:$0xff] %vm1955_vm2, %v2917_v43  ;;  %v2806_v43 = vld [vmem:[%s3089_s9 + $0x26c] sm:$0xf] }
 0x125   : > { %2918 = vtanh.f32 %v1767_v44  ;;  %v2402_v44 = vld [vmem:[%s3089_s9 + $0x278] sm:$0xf0] }
 0x126   : > { %2711 = vmatmul.msk.bf16.gmra.mxu3 %vm1114_vm1, %v2373_v55  ;;  %v2377_v55 = vor.u32 %v2803_v46, %v2376_v45  ;;  %v2410_v45 = vld [vmem:[%s3089_s9 + $0x290] sm:$0xf0] }
 0x128   : > { %v1599_v57 = vpop.f32.mrf.mxu2  ;;  %v1264_v61 = vpop.f32.mrf.mxu0 }
 0x129   : > { %v1600_v60 = vadd.f32 %v1599_v57, %v1431_v56  ;;  %v1433_v62 = vpop.f32.mrf.mxu1  ;;  %v1265_v0 = vadd.f32 %v3223_v7, %v1264_v61  ;;  %v1776_v4 = vpop.f32.mrf.mxu3  ;;  %v2381_v56 = vor.u32 %v2801_v47, %v2378_v48  ;;  %v2416_v47 = vld [vmem:[%s3089_s9 + $0x288] sm:$0xf]  ;;  %v2812_v48 = vld [vmem:[%s3089_s9 + $0x294] sm:$0xf0] }
 0x12b   : > { %v2919_v1 = vpop.eup %2918  ;;  %v1769_v2 = vadd.f32 %v1768_v22, %v1600_v60  ;;  %1303 = vmatmul.bf16.gmra.mxu0 %v2345_v58  ;;  %v1434_v3 = vadd.f32 %v1433_v62, %v1265_v0  ;;  %v2389_v22 = vor.u32 %v2802_v13, %v2386_v14  ;;  %v2385_v60 = vor.u32 %v2804_v51, %v2384_v50  ;;  %v2807_v13 = vld [vmem:[%s3089_s9 + $0x26c] sm:$0xf0]  ;;  %v2805_v14 = vld [vmem:[%s3089_s9 + $0x264] sm:$0xf] }
 0x12c   : > { %1970 = vst.msk [vmem:[%s3242_s25 + $0x70] sm:$0xff] %vm1955_vm2, %v2919_v1  ;;  %1472 = vmatmul.bf16.gmra.mxu1 %v2349_v59 }
 0x12d   : > { %2920 = vtanh.f32 %v1769_v2  ;;  %1641 = vmatmul.bf16.gmra.mxu2 %v2353_v63 }
 0x130   : > { %v1602_v5 = vpop.f32.mrf.mxu2  ;;  %v1266_v8 = vpop.f32.mrf.mxu0 }
 0x131   : > { %v1603_v6 = vadd.f32 %v1602_v5, %v1434_v3  ;;  %v1435_v9 = vpop.f32.mrf.mxu1  ;;  %v1267_v12 = vadd.f32 %v3223_v7, %v1266_v8  ;;  %v1778_v19 = vpop.f32.mrf.mxu3 }
 0x133   : > { %v2921_v10 = vpop.eup %2920  ;;  %v1772_v11 = vadd.f32 %v1771_v38, %v1603_v6  ;;  %v1436_v23 = vadd.f32 %v1435_v9, %v1267_v12  ;;  %v2392_v12 = vld [vmem:[%s3089_s9 + $0x260] sm:$0xf] }
 0x134   : > { %1971 = vst.msk [vmem:[%s3242_s25 + $0x78] sm:$0xff] %vm1955_vm2, %v2921_v10  ;;  %v2810_v10 = vld [vmem:[%s3089_s9 + $0x28c] sm:$0xf] }
 0x135   : > { %2922 = vtanh.f32 %v1772_v11  ;;  %v2418_v11 = vld [vmem:[%s3089_s9 + $0x298] sm:$0xf0] }
 0x136   : > { %2712 = vmatmul.msk.bf16.gmra.mxu3 %vm1114_vm1, %v2389_v22  ;;  %v2393_v22 = vor.u32 %v2807_v13, %v2392_v12  ;;  %v2426_v12 = vld [vmem:[%s3089_s9 + $0x2b0] sm:$0xf0] }
 0x138   : > { %v1604_v24 = vpop.f32.mrf.mxu2  ;;  %v1269_v28 = vpop.f32.mrf.mxu0 }
 0x139   : > { %v1605_v27 = vadd.f32 %v1604_v24, %v1436_v23  ;;  %v1438_v29 = vpop.f32.mrf.mxu1  ;;  %v1270_v31 = vadd.f32 %v3223_v7, %v1269_v28  ;;  %v1781_v35 = vpop.f32.mrf.mxu3  ;;  %v2397_v23 = vor.u32 %v2805_v14, %v2394_v15  ;;  %v2432_v14 = vld [vmem:[%s3089_s9 + $0x2a8] sm:$0xf]  ;;  %v2816_v15 = vld [vmem:[%s3089_s9 + $0x2b4] sm:$0xf0] }
 0x13b   : > { %v2923_v32 = vpop.eup %2922  ;;  %v1774_v33 = vadd.f32 %v1773_v52, %v1605_v27  ;;  %1308 = vmatmul.bf16.gmra.mxu0 %v2361_v25  ;;  %v1439_v34 = vadd.f32 %v1438_v29, %v1270_v31  ;;  %v2405_v52 = vor.u32 %v2806_v43, %v2402_v44  ;;  %v2401_v27 = vor.u32 %v2808_v18, %v2400_v17  ;;  %v2811_v43 = vld [vmem:[%s3089_s9 + $0x28c] sm:$0xf0]  ;;  %v2809_v44 = vld [vmem:[%s3089_s9 + $0x284] sm:$0xf] }
 0x13c   : > { %1972 = vst.msk [vmem:[%s3242_s25 + $0x80] sm:$0xff] %vm1955_vm2, %v2923_v32  ;;  %1477 = vmatmul.bf16.gmra.mxu1 %v2365_v26 }
 0x13d   : > { %2924 = vtanh.f32 %v1774_v33  ;;  %1646 = vmatmul.bf16.gmra.mxu2 %v2369_v30 }
 0x140   : > { %v1607_v36 = vpop.f32.mrf.mxu2  ;;  %v1271_v38 = vpop.f32.mrf.mxu0 }
 0x141   : > { %v1608_v37 = vadd.f32 %v1607_v36, %v1439_v34  ;;  %v1440_v39 = vpop.f32.mrf.mxu1  ;;  %v1272_v42 = vadd.f32 %v3223_v7, %v1271_v38  ;;  %v1783_v49 = vpop.f32.mrf.mxu3 }
 0x143   : > { %v2925_v40 = vpop.eup %2924  ;;  %v1777_v41 = vadd.f32 %v1776_v4, %v1608_v37  ;;  %v1441_v53 = vadd.f32 %v1440_v39, %v1272_v42  ;;  %v2408_v42 = vld [vmem:[%s3089_s9 + $0x280] sm:$0xf] }
 0x144   : > { %1973 = vst.msk [vmem:[%s3242_s25 + $0x88] sm:$0xff] %vm1955_vm2, %v2925_v40  ;;  %v2814_v40 = vld [vmem:[%s3089_s9 + $0x2ac] sm:$0xf] }
 0x145   : > { %2926 = vtanh.f32 %v1777_v41  ;;  %v2434_v41 = vld [vmem:[%s3089_s9 + $0x2b8] sm:$0xf0] }
 0x146   : > { %2713 = vmatmul.msk.bf16.gmra.mxu3 %vm1114_vm1, %v2405_v52  ;;  %v2409_v52 = vor.u32 %v2811_v43, %v2408_v42  ;;  %v2442_v42 = vld [vmem:[%s3089_s9 + $0x2d0] sm:$0xf0] }
 0x148   : > { %v1609_v54 = vpop.f32.mrf.mxu2  ;;  %v1274_v58 = vpop.f32.mrf.mxu0 }
 0x149   : > { %v1610_v57 = vadd.f32 %v1609_v54, %v1441_v53  ;;  %v1443_v59 = vpop.f32.mrf.mxu1  ;;  %v1275_v61 = vadd.f32 %v3223_v7, %v1274_v58  ;;  %v1786_v1 = vpop.f32.mrf.mxu3  ;;  %v2413_v53 = vor.u32 %v2809_v44, %v2410_v45  ;;  %v2448_v44 = vld [vmem:[%s3089_s9 + $0x2c8] sm:$0xf]  ;;  %v2820_v45 = vld [vmem:[%s3089_s9 + $0x2d4] sm:$0xf0] }
 0x14b   : > { %v2927_v62 = vpop.eup %2926  ;;  %v1779_v63 = vadd.f32 %v1778_v19, %v1610_v57  ;;  %1313 = vmatmul.bf16.gmra.mxu0 %v2377_v55  ;;  %v1444_v0 = vadd.f32 %v1443_v59, %v1275_v61  ;;  %v2421_v19 = vor.u32 %v2810_v10, %v2418_v11  ;;  %v2417_v57 = vor.u32 %v2812_v48, %v2416_v47  ;;  %v2815_v10 = vld [vmem:[%s3089_s9 + $0x2ac] sm:$0xf0]  ;;  %v2813_v11 = vld [vmem:[%s3089_s9 + $0x2a4] sm:$0xf] }
 0x14c   : > { %1974 = vst.msk [vmem:[%s3242_s25 + $0x90] sm:$0xff] %vm1955_vm2, %v2927_v62  ;;  %1482 = vmatmul.bf16.gmra.mxu1 %v2381_v56 }
 0x14d   : > { %2928 = vtanh.f32 %v1779_v63  ;;  %1651 = vmatmul.bf16.gmra.mxu2 %v2385_v60 }
 0x150   : > { %v1612_v2 = vpop.f32.mrf.mxu2  ;;  %v1276_v4 = vpop.f32.mrf.mxu0 }
 0x151   : > { %v1613_v3 = vadd.f32 %v1612_v2, %v1444_v0  ;;  %v1445_v5 = vpop.f32.mrf.mxu1  ;;  %v1277_v9 = vadd.f32 %v3223_v7, %v1276_v4  ;;  %v1788_v16 = vpop.f32.mrf.mxu3 }
 0x153   : > { %v2929_v6 = vpop.eup %2928  ;;  %v1782_v8 = vadd.f32 %v1781_v35, %v1613_v3  ;;  %v1446_v20 = vadd.f32 %v1445_v5, %v1277_v9  ;;  %v2424_v9 = vld [vmem:[%s3089_s9 + $0x2a0] sm:$0xf] }
 0x154   : > { %1975 = vst.msk [vmem:[%s3242_s25 + $0x98] sm:$0xff] %vm1955_vm2, %v2929_v6  ;;  %v2818_v6 = vld [vmem:[%s3089_s9 + $0x2cc] sm:$0xf] }
 0x155   : > { %2930 = vtanh.f32 %v1782_v8  ;;  %v2450_v8 = vld [vmem:[%s3089_s9 + $0x2d8] sm:$0xf0] }
 0x156   : > { %2714 = vmatmul.msk.bf16.gmra.mxu3 %vm1114_vm1, %v2421_v19  ;;  %v2425_v19 = vor.u32 %v2815_v10, %v2424_v9  ;;  %v2458_v9 = vld [vmem:[%s3089_s9 + $0x2f0] sm:$0xf0] }
 0x158   : > { %v1614_v21 = vpop.f32.mrf.mxu2  ;;  %v1279_v25 = vpop.f32.mrf.mxu0 }
 0x159   : > { %v1615_v24 = vadd.f32 %v1614_v21, %v1446_v20  ;;  %v1448_v26 = vpop.f32.mrf.mxu1  ;;  %v1280_v28 = vadd.f32 %v3223_v7, %v1279_v25  ;;  %v1791_v32 = vpop.f32.mrf.mxu3  ;;  %v2429_v20 = vor.u32 %v2813_v11, %v2426_v12  ;;  %v2464_v11 = vld [vmem:[%s3089_s9 + $0x2e8] sm:$0xf]  ;;  %v2824_v12 = vld [vmem:[%s3089_s9 + $0x2f4] sm:$0xf0] }
 0x15b   : > { %v2931_v29 = vpop.eup %2930  ;;  %v1784_v30 = vadd.f32 %v1783_v49, %v1615_v24  ;;  %1318 = vmatmul.bf16.gmra.mxu0 %v2393_v22  ;;  %v1449_v31 = vadd.f32 %v1448_v26, %v1280_v28  ;;  %v2437_v49 = vor.u32 %v2814_v40, %v2434_v41  ;;  %v2433_v24 = vor.u32 %v2816_v15, %v2432_v14  ;;  %v2819_v40 = vld [vmem:[%s3089_s9 + $0x2cc] sm:$0xf0]  ;;  %v2817_v41 = vld [vmem:[%s3089_s9 + $0x2c4] sm:$0xf] }
 0x15c   : > { %1976 = vst.msk [vmem:[%s3242_s25 + $0xa0] sm:$0xff] %vm1955_vm2, %v2931_v29  ;;  %1487 = vmatmul.bf16.gmra.mxu1 %v2397_v23 }
 0x15d   : > { %2932 = vtanh.f32 %v1784_v30  ;;  %1656 = vmatmul.bf16.gmra.mxu2 %v2401_v27 }
 0x160   : > { %v1617_v33 = vpop.f32.mrf.mxu2  ;;  %v1281_v35 = vpop.f32.mrf.mxu0 }
 0x161   : > { %v1618_v34 = vadd.f32 %v1617_v33, %v1449_v31  ;;  %v1450_v36 = vpop.f32.mrf.mxu1  ;;  %v1282_v39 = vadd.f32 %v3223_v7, %v1281_v35  ;;  %v1793_v46 = vpop.f32.mrf.mxu3  ;;  %v3431_v35 = vld [vmem:[%s3639_s2] ss:$0 sm:$0xff] }
 0x163   : > { %v2933_v37 = vpop.eup %2932  ;;  %v1787_v38 = vadd.f32 %v1786_v1, %v1618_v34  ;;  %v1451_v50 = vadd.f32 %v1450_v36, %v1282_v39  ;;  %v2440_v39 = vld [vmem:[%s3089_s9 + $0x2c0] sm:$0xf] }
 0x164   : > { %1977 = vst.msk [vmem:[%s3242_s25 + $0xa8] sm:$0xff] %vm1955_vm2, %v2933_v37  ;;  %v2822_v37 = vld [vmem:[%s3089_s9 + $0x2ec] sm:$0xf] }
 0x165   : > { %2934 = vtanh.f32 %v1787_v38  ;;  %v2466_v38 = vld [vmem:[%s3089_s9 + $0x2f8] sm:$0xf0] }
 0x166   : > { %2715 = vmatmul.msk.bf16.gmra.mxu3 %vm1114_vm1, %v2437_v49  ;;  %v2441_v49 = vor.u32 %v2819_v40, %v2440_v39  ;;  %v2474_v39 = vld [vmem:[%s3089_s9 + $0x310] sm:$0xf0] }
 0x168   : > { %v1619_v51 = vpop.f32.mrf.mxu2  ;;  %v1284_v55 = vpop.f32.mrf.mxu0 }
 0x169   : > { %v1620_v54 = vadd.f32 %v1619_v51, %v1451_v50  ;;  %v1453_v56 = vpop.f32.mrf.mxu1  ;;  %v1285_v58 = vadd.f32 %v3223_v7, %v1284_v55  ;;  %v1796_v62 = vpop.f32.mrf.mxu3  ;;  %v2445_v50 = vor.u32 %v2817_v41, %v2442_v42  ;;  %v2480_v41 = vld [vmem:[%s3089_s9 + $0x308] sm:$0xf]  ;;  %v2828_v42 = vld [vmem:[%s3089_s9 + $0x314] sm:$0xf0] }
 0x16b   : > { %v2935_v59 = vpop.eup %2934  ;;  %v1789_v60 = vadd.f32 %v1788_v16, %v1620_v54  ;;  %1323 = vmatmul.bf16.gmra.mxu0 %v2409_v52  ;;  %v1454_v61 = vadd.f32 %v1453_v56, %v1285_v58  ;;  %v2453_v16 = vor.u32 %v2818_v6, %v2450_v8  ;;  %v2449_v54 = vor.u32 %v2820_v45, %v2448_v44  ;;  %v2823_v6 = vld [vmem:[%s3089_s9 + $0x2ec] sm:$0xf0]  ;;  %v2821_v8 = vld [vmem:[%s3089_s9 + $0x2e4] sm:$0xf] }
 0x16c   : > { %1978 = vst.msk [vmem:[%s3242_s25 + $0xb0] sm:$0xff] %vm1955_vm2, %v2935_v59  ;;  %1492 = vmatmul.bf16.gmra.mxu1 %v2413_v53 }
 0x16d   : > { %2936 = vtanh.f32 %v1789_v60  ;;  %1661 = vmatmul.bf16.gmra.mxu2 %v2417_v57 }
 0x170   : > { %v1622_v63 = vpop.f32.mrf.mxu2  ;;  %v1286_v1 = vpop.f32.mrf.mxu0 }
 0x171   : > { %v1623_v0 = vadd.f32 %v1622_v63, %v1454_v61  ;;  %v1455_v2 = vpop.f32.mrf.mxu1  ;;  %v1287_v5 = vadd.f32 %v3223_v7, %v1286_v1  ;;  %v1798_v13 = vpop.f32.mrf.mxu3 }
 0x173   : > { %v2937_v3 = vpop.eup %2936  ;;  %v1792_v4 = vadd.f32 %v1791_v32, %v1623_v0  ;;  %v1456_v17 = vadd.f32 %v1455_v2, %v1287_v5  ;;  %v2456_v5 = vld [vmem:[%s3089_s9 + $0x2e0] sm:$0xf] }
 0x174   : > { %1979 = vst.msk [vmem:[%s3242_s25 + $0xb8] sm:$0xff] %vm1955_vm2, %v2937_v3  ;;  %v2826_v3 = vld [vmem:[%s3089_s9 + $0x30c] sm:$0xf] }
 0x175   : > { %2938 = vtanh.f32 %v1792_v4  ;;  %v2482_v4 = vld [vmem:[%s3089_s9 + $0x318] sm:$0xf0] }
 0x176   : > { %2716 = vmatmul.msk.bf16.gmra.mxu3 %vm1114_vm1, %v2453_v16  ;;  %v2457_v16 = vor.u32 %v2823_v6, %v2456_v5  ;;  %v2490_v5 = vld [vmem:[%s3089_s9 + $0x330] sm:$0xf0] }
 0x178   : > { %v1624_v18 = vpop.f32.mrf.mxu2  ;;  %v1289_v22 = vpop.f32.mrf.mxu0 }
 0x179   : > { %v1625_v21 = vadd.f32 %v1624_v18, %v1456_v17  ;;  %v1458_v23 = vpop.f32.mrf.mxu1  ;;  %v1290_v25 = vadd.f32 %v3223_v7, %v1289_v22  ;;  %v1801_v29 = vpop.f32.mrf.mxu3  ;;  %v2461_v17 = vor.u32 %v2821_v8, %v2458_v9  ;;  %v2496_v8 = vld [vmem:[%s3089_s9 + $0x328] sm:$0xf]  ;;  %v2832_v9 = vld [vmem:[%s3089_s9 + $0x334] sm:$0xf0] }
 0x17b   : > { %v2939_v26 = vpop.eup %2938  ;;  %v1794_v27 = vadd.f32 %v1793_v46, %v1625_v21  ;;  %1328 = vmatmul.bf16.gmra.mxu0 %v2425_v19  ;;  %v1459_v28 = vadd.f32 %v1458_v23, %v1290_v25  ;;  %v2469_v46 = vor.u32 %v2822_v37, %v2466_v38  ;;  %v2465_v21 = vor.u32 %v2824_v12, %v2464_v11  ;;  %v2827_v37 = vld [vmem:[%s3089_s9 + $0x30c] sm:$0xf0]  ;;  %v2825_v38 = vld [vmem:[%s3089_s9 + $0x304] sm:$0xf] }
 0x17c   : > { %1980 = vst.msk [vmem:[%s3242_s25 + $0xc0] sm:$0xff] %vm1955_vm2, %v2939_v26  ;;  %1497 = vmatmul.bf16.gmra.mxu1 %v2429_v20 }
 0x17d   : > { %2940 = vtanh.f32 %v1794_v27  ;;  %1666 = vmatmul.bf16.gmra.mxu2 %v2433_v24 }
 0x180   : > { %v1627_v7 = vpop.f32.mrf.mxu2  ;;  %v1291_v31 = vpop.f32.mrf.mxu0 }
 0x181   : > { %v1628_v30 = vadd.f32 %v1627_v7, %v1459_v28  ;;  %v1460_v32 = vpop.f32.mrf.mxu1  ;;  %v1292_v36 = vadd.f32 %v3431_v35, %v1291_v31  ;;  %v1803_v43 = vpop.f32.mrf.mxu3 }
 0x183   : > { %v2941_v33 = vpop.eup %2940  ;;  %v1797_v34 = vadd.f32 %v1796_v62, %v1628_v30  ;;  %v1461_v47 = vadd.f32 %v1460_v32, %v1292_v36  ;;  %v2472_v36 = vld [vmem:[%s3089_s9 + $0x300] sm:$0xf] }
 0x184   : > { %1981 = vst.msk [vmem:[%s3242_s25 + $0xc8] sm:$0xff] %vm1955_vm2, %v2941_v33  ;;  %v2830_v33 = vld [vmem:[%s3089_s9 + $0x32c] sm:$0xf] }
 0x185   : > { %2942 = vtanh.f32 %v1797_v34  ;;  %v2498_v34 = vld [vmem:[%s3089_s9 + $0x338] sm:$0xf0] }
 0x186   : > { %2717 = vmatmul.msk.bf16.gmra.mxu3 %vm1114_vm1, %v2469_v46  ;;  %v2473_v46 = vor.u32 %v2827_v37, %v2472_v36  ;;  %v2506_v36 = vld [vmem:[%s3089_s9 + $0x350] sm:$0xf0] }
 0x188   : > { %v1629_v48 = vpop.f32.mrf.mxu2  ;;  %v1294_v52 = vpop.f32.mrf.mxu0 }
 0x189   : > { %v1630_v51 = vadd.f32 %v1629_v48, %v1461_v47  ;;  %v1463_v53 = vpop.f32.mrf.mxu1  ;;  %v1295_v55 = vadd.f32 %v3431_v35, %v1294_v52  ;;  %v1806_v59 = vpop.f32.mrf.mxu3  ;;  %v2477_v47 = vor.u32 %v2825_v38, %v2474_v39  ;;  %v2512_v38 = vld [vmem:[%s3089_s9 + $0x348] sm:$0xf]  ;;  %v2836_v39 = vld [vmem:[%s3089_s9 + $0x354] sm:$0xf0] }
 0x18b   : > { %v2943_v56 = vpop.eup %2942  ;;  %v1799_v57 = vadd.f32 %v1798_v13, %v1630_v51  ;;  %1333 = vmatmul.bf16.gmra.mxu0 %v2441_v49  ;;  %v1464_v58 = vadd.f32 %v1463_v53, %v1295_v55  ;;  %v2485_v13 = vor.u32 %v2826_v3, %v2482_v4  ;;  %v2481_v51 = vor.u32 %v2828_v42, %v2480_v41  ;;  %v2831_v3 = vld [vmem:[%s3089_s9 + $0x32c] sm:$0xf0]  ;;  %v2829_v4 = vld [vmem:[%s3089_s9 + $0x324] sm:$0xf] }
 0x18c   : > { %1982 = vst.msk [vmem:[%s3242_s25 + $0xd0] sm:$0xff] %vm1955_vm2, %v2943_v56  ;;  %1502 = vmatmul.bf16.gmra.mxu1 %v2445_v50 }
 0x18d   : > { %2944 = vtanh.f32 %v1799_v57  ;;  %1671 = vmatmul.bf16.gmra.mxu2 %v2449_v54 }
 0x190   : > { %v1632_v60 = vpop.f32.mrf.mxu2  ;;  %v1296_v62 = vpop.f32.mrf.mxu0 }
 0x191   : > { %v1633_v61 = vadd.f32 %v1632_v60, %v1464_v58  ;;  %v1465_v63 = vpop.f32.mrf.mxu1  ;;  %v1297_v2 = vadd.f32 %v3431_v35, %v1296_v62  ;;  %v1808_v10 = vpop.f32.mrf.mxu3 }
 0x193   : > { %v2945_v0 = vpop.eup %2944  ;;  %v1802_v1 = vadd.f32 %v1801_v29, %v1633_v61  ;;  %v1466_v14 = vadd.f32 %v1465_v63, %v1297_v2  ;;  %v2488_v2 = vld [vmem:[%s3089_s9 + $0x320] sm:$0xf] }
 0x194   : > { %1983 = vst.msk [vmem:[%s3242_s25 + $0xd8] sm:$0xff] %vm1955_vm2, %v2945_v0  ;;  %v2834_v0 = vld [vmem:[%s3089_s9 + $0x34c] sm:$0xf] }
 0x195   : > { %2946 = vtanh.f32 %v1802_v1  ;;  %v2514_v1 = vld [vmem:[%s3089_s9 + $0x358] sm:$0xf0] }
 0x196   : > { %2718 = vmatmul.msk.bf16.gmra.mxu3 %vm1114_vm1, %v2485_v13  ;;  %v2489_v13 = vor.u32 %v2831_v3, %v2488_v2  ;;  %v2522_v2 = vld [vmem:[%s3089_s9 + $0x370] sm:$0xf0] }
 0x198   : > { %v1634_v15 = vpop.f32.mrf.mxu2  ;;  %v1299_v19 = vpop.f32.mrf.mxu0 }
 0x199   : > { %v1635_v18 = vadd.f32 %v1634_v15, %v1466_v14  ;;  %v1468_v20 = vpop.f32.mrf.mxu1  ;;  %v1300_v22 = vadd.f32 %v3431_v35, %v1299_v19  ;;  %v1811_v26 = vpop.f32.mrf.mxu3  ;;  %v2493_v14 = vor.u32 %v2829_v4, %v2490_v5  ;;  %v2528_v4 = vld [vmem:[%s3089_s9 + $0x368] sm:$0xf]  ;;  %v2840_v5 = vld [vmem:[%s3089_s9 + $0x374] sm:$0xf0] }
 0x19b   : > { %v2947_v23 = vpop.eup %2946  ;;  %v1804_v24 = vadd.f32 %v1803_v43, %v1635_v18  ;;  %1338 = vmatmul.bf16.gmra.mxu0 %v2457_v16  ;;  %v1469_v25 = vadd.f32 %v1468_v20, %v1300_v22  ;;  %v2501_v43 = vor.u32 %v2830_v33, %v2498_v34  ;;  %v2497_v18 = vor.u32 %v2832_v9, %v2496_v8  ;;  %v2835_v33 = vld [vmem:[%s3089_s9 + $0x34c] sm:$0xf0]  ;;  %v2833_v34 = vld [vmem:[%s3089_s9 + $0x344] sm:$0xf] }
 0x19c   : > { %1984 = vst.msk [vmem:[%s3242_s25 + $0xe0] sm:$0xff] %vm1955_vm2, %v2947_v23  ;;  %1507 = vmatmul.bf16.gmra.mxu1 %v2461_v17 }
 0x19d   : > { %2948 = vtanh.f32 %v1804_v24  ;;  %1676 = vmatmul.bf16.gmra.mxu2 %v2465_v21 }
 0x1a0   : > { %v1637_v27 = vpop.f32.mrf.mxu2  ;;  %v1301_v29 = vpop.f32.mrf.mxu0 }
 0x1a1   : > { %v1638_v28 = vadd.f32 %v1637_v27, %v1469_v25  ;;  %v1470_v7 = vpop.f32.mrf.mxu1  ;;  %v1302_v32 = vadd.f32 %v3431_v35, %v1301_v29  ;;  %v1813_v40 = vpop.f32.mrf.mxu3 }
 0x1a3   : > { %v2949_v30 = vpop.eup %2948  ;;  %v1807_v31 = vadd.f32 %v1806_v59, %v1638_v28  ;;  %v1471_v44 = vadd.f32 %v1470_v7, %v1302_v32  ;;  %v2504_v32 = vld [vmem:[%s3089_s9 + $0x340] sm:$0xf] }
 0x1a4   : > { %1985 = vst.msk [vmem:[%s3242_s25 + $0xe8] sm:$0xff] %vm1955_vm2, %v2949_v30  ;;  %v2838_v30 = vld [vmem:[%s3089_s9 + $0x36c] sm:$0xf] }
 0x1a5   : > { %2950 = vtanh.f32 %v1807_v31  ;;  %v2530_v31 = vld [vmem:[%s3089_s9 + $0x378] sm:$0xf0] }
 0x1a6   : > { %2719 = vmatmul.msk.bf16.gmra.mxu3 %vm1114_vm1, %v2501_v43  ;;  %v2505_v43 = vor.u32 %v2835_v33, %v2504_v32  ;;  %v2538_v32 = vld [vmem:[%s3089_s9 + $0x390] sm:$0xf0] }
 0x1a8   : > { %v1639_v45 = vpop.f32.mrf.mxu2  ;;  %v1304_v49 = vpop.f32.mrf.mxu0 }
 0x1a9   : > { %v1640_v48 = vadd.f32 %v1639_v45, %v1471_v44  ;;  %v1473_v50 = vpop.f32.mrf.mxu1  ;;  %v1305_v52 = vadd.f32 %v3431_v35, %v1304_v49  ;;  %v1816_v56 = vpop.f32.mrf.mxu3  ;;  %v2509_v44 = vor.u32 %v2833_v34, %v2506_v36  ;;  %v2544_v34 = vld [vmem:[%s3089_s9 + $0x388] sm:$0xf]  ;;  %v2844_v36 = vld [vmem:[%s3089_s9 + $0x394] sm:$0xf0] }
 0x1ab   : > { %v2951_v53 = vpop.eup %2950  ;;  %v1809_v54 = vadd.f32 %v1808_v10, %v1640_v48  ;;  %1343 = vmatmul.bf16.gmra.mxu0 %v2473_v46  ;;  %v1474_v55 = vadd.f32 %v1473_v50, %v1305_v52  ;;  %v2517_v10 = vor.u32 %v2834_v0, %v2514_v1  ;;  %v2513_v48 = vor.u32 %v2836_v39, %v2512_v38  ;;  %v2839_v0 = vld [vmem:[%s3089_s9 + $0x36c] sm:$0xf0]  ;;  %v2837_v1 = vld [vmem:[%s3089_s9 + $0x364] sm:$0xf] }
 0x1ac   : > { %1986 = vst.msk [vmem:[%s3242_s25 + $0xf0] sm:$0xff] %vm1955_vm2, %v2951_v53  ;;  %1512 = vmatmul.bf16.gmra.mxu1 %v2477_v47 }
 0x1ad   : > { %2952 = vtanh.f32 %v1809_v54  ;;  %1681 = vmatmul.bf16.gmra.mxu2 %v2481_v51 }
 0x1b0   : > { %v1642_v57 = vpop.f32.mrf.mxu2  ;;  %v1306_v59 = vpop.f32.mrf.mxu0 }
 0x1b1   : > { %v1643_v58 = vadd.f32 %v1642_v57, %v1474_v55  ;;  %v1475_v60 = vpop.f32.mrf.mxu1  ;;  %v1307_v63 = vadd.f32 %v3431_v35, %v1306_v59  ;;  %v1818_v6 = vpop.f32.mrf.mxu3 }
 0x1b3   : > { %v2953_v61 = vpop.eup %2952  ;;  %v1812_v62 = vadd.f32 %v1811_v26, %v1643_v58  ;;  %v1476_v11 = vadd.f32 %v1475_v60, %v1307_v63  ;;  %v2520_v63 = vld [vmem:[%s3089_s9 + $0x360] sm:$0xf] }
 0x1b4   : > { %1987 = vst.msk [vmem:[%s3242_s25 + $0xf8] sm:$0xff] %vm1955_vm2, %v2953_v61  ;;  %v2842_v61 = vld [vmem:[%s3089_s9 + $0x38c] sm:$0xf] }
 0x1b5   : > { %2954 = vtanh.f32 %v1812_v62  ;;  %v2546_v62 = vld [vmem:[%s3089_s9 + $0x398] sm:$0xf0] }
 0x1b6   : > { %2720 = vmatmul.msk.bf16.gmra.mxu3 %vm1114_vm1, %v2517_v10  ;;  %v2521_v10 = vor.u32 %v2839_v0, %v2520_v63  ;;  %v2554_v63 = vld [vmem:[%s3089_s9 + $0x3b0] sm:$0xf0] }
 0x1b8   : > { %v1644_v12 = vpop.f32.mrf.mxu2  ;;  %v1309_v16 = vpop.f32.mrf.mxu0 }
 0x1b9   : > { %v1645_v15 = vadd.f32 %v1644_v12, %v1476_v11  ;;  %v1478_v17 = vpop.f32.mrf.mxu1  ;;  %v1310_v19 = vadd.f32 %v3431_v35, %v1309_v16  ;;  %v1821_v23 = vpop.f32.mrf.mxu3  ;;  %v2525_v11 = vor.u32 %v2837_v1, %v2522_v2  ;;  %v2560_v1 = vld [vmem:[%s3089_s9 + $0x3a8] sm:$0xf]  ;;  %v2848_v2 = vld [vmem:[%s3089_s9 + $0x3b4] sm:$0xf0] }
 0x1bb   : > { %v2955_v20 = vpop.eup %2954  ;;  %v1814_v21 = vadd.f32 %v1813_v40, %v1645_v15  ;;  %1348 = vmatmul.bf16.gmra.mxu0 %v2489_v13  ;;  %v1479_v22 = vadd.f32 %v1478_v17, %v1310_v19  ;;  %v2533_v40 = vor.u32 %v2838_v30, %v2530_v31  ;;  %v2529_v15 = vor.u32 %v2840_v5, %v2528_v4  ;;  %v2843_v30 = vld [vmem:[%s3089_s9 + $0x38c] sm:$0xf0]  ;;  %v2841_v31 = vld [vmem:[%s3089_s9 + $0x384] sm:$0xf] }
 0x1bc   : > { %1988 = vst.msk [vmem:[%s3242_s25 + $0x100] sm:$0xff] %vm1955_vm2, %v2955_v20  ;;  %1517 = vmatmul.bf16.gmra.mxu1 %v2493_v14 }
 0x1bd   : > { %2956 = vtanh.f32 %v1814_v21  ;;  %1686 = vmatmul.bf16.gmra.mxu2 %v2497_v18 }
 0x1c0   : > { %v1647_v24 = vpop.f32.mrf.mxu2  ;;  %v1311_v26 = vpop.f32.mrf.mxu0 }
 0x1c1   : > { %v1648_v25 = vadd.f32 %v1647_v24, %v1479_v22  ;;  %v1480_v27 = vpop.f32.mrf.mxu1  ;;  %v1312_v7 = vadd.f32 %v3431_v35, %v1311_v26  ;;  %v1823_v37 = vpop.f32.mrf.mxu3 }
 0x1c3   : > { %v2957_v28 = vpop.eup %2956  ;;  %v1817_v29 = vadd.f32 %v1816_v56, %v1648_v25  ;;  %v1481_v41 = vadd.f32 %v1480_v27, %v1312_v7  ;;  %v2536_v7 = vld [vmem:[%s3089_s9 + $0x380] sm:$0xf] }
 0x1c4   : > { %1989 = vst.msk [vmem:[%s3242_s25 + $0x108] sm:$0xff] %vm1955_vm2, %v2957_v28  ;;  %v2846_v28 = vld [vmem:[%s3089_s9 + $0x3ac] sm:$0xf] }
 0x1c5   : > { %2958 = vtanh.f32 %v1817_v29  ;;  %v2562_v29 = vld [vmem:[%s3089_s9 + $0x3b8] sm:$0xf0] }
 0x1c6   : > { %2721 = vmatmul.msk.bf16.gmra.mxu3 %vm1114_vm1, %v2533_v40  ;;  %v2537_v40 = vor.u32 %v2843_v30, %v2536_v7  ;;  %v2570_v7 = vld [vmem:[%s3089_s9 + $0x3d0] sm:$0xf0] }
 0x1c8   : > { %v1649_v42 = vpop.f32.mrf.mxu2  ;;  %v1314_v46 = vpop.f32.mrf.mxu0 }
 0x1c9   : > { %v1650_v45 = vadd.f32 %v1649_v42, %v1481_v41  ;;  %v1483_v47 = vpop.f32.mrf.mxu1  ;;  %v1315_v49 = vadd.f32 %v3431_v35, %v1314_v46  ;;  %v1826_v53 = vpop.f32.mrf.mxu3  ;;  %v2541_v41 = vor.u32 %v2841_v31, %v2538_v32  ;;  %v2576_v31 = vld [vmem:[%s3089_s9 + $0x3c8] sm:$0xf]  ;;  %v2852_v32 = vld [vmem:[%s3089_s9 + $0x3d4] sm:$0xf0] }
 0x1cb   : > { %v2959_v50 = vpop.eup %2958  ;;  %v1819_v51 = vadd.f32 %v1818_v6, %v1650_v45  ;;  %1353 = vmatmul.bf16.gmra.mxu0 %v2505_v43  ;;  %v1484_v52 = vadd.f32 %v1483_v47, %v1315_v49  ;;  %v2549_v6 = vor.u32 %v2842_v61, %v2546_v62  ;;  %v2545_v45 = vor.u32 %v2844_v36, %v2544_v34  ;;  %v2847_v61 = vld [vmem:[%s3089_s9 + $0x3ac] sm:$0xf0]  ;;  %v2845_v62 = vld [vmem:[%s3089_s9 + $0x3a4] sm:$0xf] }
 0x1cc   : > { %1990 = vst.msk [vmem:[%s3242_s25 + $0x110] sm:$0xff] %vm1955_vm2, %v2959_v50  ;;  %1522 = vmatmul.bf16.gmra.mxu1 %v2509_v44 }
 0x1cd   : > { %2960 = vtanh.f32 %v1819_v51  ;;  %1691 = vmatmul.bf16.gmra.mxu2 %v2513_v48 }
 0x1d0   : > { %v1652_v54 = vpop.f32.mrf.mxu2  ;;  %v1316_v56 = vpop.f32.mrf.mxu0 }
 0x1d1   : > { %v1653_v55 = vadd.f32 %v1652_v54, %v1484_v52  ;;  %v1485_v57 = vpop.f32.mrf.mxu1  ;;  %v1317_v60 = vadd.f32 %v3431_v35, %v1316_v56  ;;  %v1828_v3 = vpop.f32.mrf.mxu3 }
 0x1d3   : > { %v2961_v58 = vpop.eup %2960  ;;  %v1822_v59 = vadd.f32 %v1821_v23, %v1653_v55  ;;  %v1486_v8 = vadd.f32 %v1485_v57, %v1317_v60  ;;  %v2552_v60 = vld [vmem:[%s3089_s9 + $0x3a0] sm:$0xf] }
 0x1d4   : > { %1991 = vst.msk [vmem:[%s3242_s25 + $0x118] sm:$0xff] %vm1955_vm2, %v2961_v58  ;;  %v2850_v58 = vld [vmem:[%s3089_s9 + $0x3cc] sm:$0xf] }
 0x1d5   : > { %2962 = vtanh.f32 %v1822_v59  ;;  %v2578_v59 = vld [vmem:[%s3089_s9 + $0x3d8] sm:$0xf0] }
 0x1d6   : > { %2722 = vmatmul.msk.bf16.gmra.mxu3 %vm1114_vm1, %v2549_v6  ;;  %v2553_v6 = vor.u32 %v2847_v61, %v2552_v60  ;;  %v2592_v60 = vld [vmem:[%s3089_s9 + $0x3e8] sm:$0xf]  ;;  %v2856_v61 = vld [vmem:[%s3089_s9 + $0x3f4] sm:$0xf0] }
 0x1d8   : > { %v1654_v9 = vpop.f32.mrf.mxu2  ;;  %v1319_v13 = vpop.f32.mrf.mxu0 }
 0x1d9   : > { %v1655_v12 = vadd.f32 %v1654_v9, %v1486_v8  ;;  %v1488_v14 = vpop.f32.mrf.mxu1  ;;  %v1320_v16 = vadd.f32 %v3431_v35, %v1319_v13  ;;  %v1831_v20 = vpop.f32.mrf.mxu3  ;;  %v2557_v8 = vor.u32 %v2845_v62, %v2554_v63 }
 0x1db   : > { %v2963_v17 = vpop.eup %2962  ;;  %v1824_v18 = vadd.f32 %v1823_v37, %v1655_v12  ;;  %1358 = vmatmul.bf16.gmra.mxu0 %v2521_v10  ;;  %v1489_v19 = vadd.f32 %v1488_v14, %v1320_v16  ;;  %v2565_v37 = vor.u32 %v2846_v28, %v2562_v29  ;;  %v2561_v12 = vor.u32 %v2848_v2, %v2560_v1  ;;  %v2851_v28 = vld [vmem:[%s3089_s9 + $0x3cc] sm:$0xf0]  ;;  %v2849_v29 = vld [vmem:[%s3089_s9 + $0x3c4] sm:$0xf] }
 0x1dc   : > { %1992 = vst.msk [vmem:[%s3242_s25 + $0x120] sm:$0xff] %vm1955_vm2, %v2963_v17  ;;  %1527 = vmatmul.bf16.gmra.mxu1 %v2525_v11 }
 0x1dd   : > { %2964 = vtanh.f32 %v1824_v18  ;;  %1696 = vmatmul.bf16.gmra.mxu2 %v2529_v15 }
 0x1e0   : > { %v1657_v21 = vpop.f32.mrf.mxu2  ;;  %v1321_v23 = vpop.f32.mrf.mxu0 }
 0x1e1   : > { %v1658_v22 = vadd.f32 %v1657_v21, %v1489_v19  ;;  %v1490_v24 = vpop.f32.mrf.mxu1  ;;  %v1322_v27 = vadd.f32 %v3431_v35, %v1321_v23  ;;  %v1833_v33 = vpop.f32.mrf.mxu3 }
 0x1e3   : > { %v2965_v25 = vpop.eup %2964  ;;  %v1827_v26 = vadd.f32 %v1826_v53, %v1658_v22  ;;  %v1491_v38 = vadd.f32 %v1490_v24, %v1322_v27  ;;  %v2568_v27 = vld [vmem:[%s3089_s9 + $0x3c0] sm:$0xf] }
 0x1e4   : > { %1993 = vst.msk [vmem:[%s3242_s25 + $0x128] sm:$0xff] %vm1955_vm2, %v2965_v25  ;;  %v2854_v25 = vld [vmem:[%s3089_s9 + $0x3ec] sm:$0xf] }
 0x1e5   : > { %2966 = vtanh.f32 %v1827_v26  ;;  %v2594_v26 = vld [vmem:[%s3089_s9 + $0x3f8] sm:$0xf0] }
 0x1e6   : > { %2723 = vmatmul.msk.bf16.gmra.mxu3 %vm1114_vm1, %v2565_v37  ;;  %v2569_v37 = vor.u32 %v2851_v28, %v2568_v27 }
 0x1e8   : > { %v1659_v39 = vpop.f32.mrf.mxu2  ;;  %v1324_v43 = vpop.f32.mrf.mxu0 }
 0x1e9   : > { %v1660_v42 = vadd.f32 %v1659_v39, %v1491_v38  ;;  %v1493_v44 = vpop.f32.mrf.mxu1  ;;  %v1325_v46 = vadd.f32 %v3431_v35, %v1324_v43  ;;  %v1836_v50 = vpop.f32.mrf.mxu3  ;;  %v2573_v38 = vor.u32 %v2849_v29, %v2570_v7 }
 0x1eb   : > { %v2967_v47 = vpop.eup %2966  ;;  %v1829_v48 = vadd.f32 %v1828_v3, %v1660_v42  ;;  %1363 = vmatmul.bf16.gmra.mxu0 %v2537_v40  ;;  %v1494_v49 = vadd.f32 %v1493_v44, %v1325_v46  ;;  %v2581_v3 = vor.u32 %v2850_v58, %v2578_v59  ;;  %v2577_v42 = vor.u32 %v2852_v32, %v2576_v31  ;;  %v2586_v58 = vld [vmem:[%s3089_s9 + $0x3f0] sm:$0xf0] }
 0x1ec   : > { %1994 = vst.msk [vmem:[%s3242_s25 + $0x130] sm:$0xff] %vm1955_vm2, %v2967_v47  ;;  %1532 = vmatmul.bf16.gmra.mxu1 %v2541_v41 }
 0x1ed   : > { %2968 = vtanh.f32 %v1829_v48  ;;  %1701 = vmatmul.bf16.gmra.mxu2 %v2545_v45 }
 0x1f0   : > { %v1662_v51 = vpop.f32.mrf.mxu2  ;;  %v1326_v53 = vpop.f32.mrf.mxu0 }
 0x1f1   : > { %v1663_v52 = vadd.f32 %v1662_v51, %v1494_v49  ;;  %v1495_v54 = vpop.f32.mrf.mxu1  ;;  %v1327_v57 = vadd.f32 %v3431_v35, %v1326_v53  ;;  %v1838_v0 = vpop.f32.mrf.mxu3 }
 0x1f3   : > { %v2969_v55 = vpop.eup %2968  ;;  %v1832_v56 = vadd.f32 %v1831_v20, %v1663_v52  ;;  %v1496_v4 = vadd.f32 %v1495_v54, %v1327_v57  ;;  %v2853_v57 = vld [vmem:[%s3089_s9 + $0x3e4] sm:$0xf] }
 0x1f4   : > { %1995 = vst.msk [vmem:[%s3242_s25 + $0x138] sm:$0xff] %vm1955_vm2, %v2969_v55  ;;  %v2584_v55 = vld [vmem:[%s3089_s9 + $0x3e0] sm:$0xf]  ;;  %v2589_v1 = vor.u32 %v2853_v57, %v2586_v58 }
 0x1f5   : > { %2970 = vtanh.f32 %v1832_v56  ;;  %v2855_v56 = vld [vmem:[%s3089_s9 + $0x3ec] sm:$0xf0] }
 0x1f6   : > { %2724 = vmatmul.msk.bf16.gmra.mxu3 %vm1114_vm1, %v2581_v3 }
 0x1f8   : > { %v1664_v5 = vpop.f32.mrf.mxu2  ;;  %v1329_v10 = vpop.f32.mrf.mxu0 }
 0x1f9   : > { %v1665_v9 = vadd.f32 %v1664_v5, %v1496_v4  ;;  %v1498_v11 = vpop.f32.mrf.mxu1  ;;  %v1330_v13 = vadd.f32 %v3431_v35, %v1329_v10  ;;  %v1841_v17 = vpop.f32.mrf.mxu3  ;;  %v2593_v5 = vor.u32 %v2856_v61, %v2592_v60 }
 0x1fb   : > { %v2971_v14 = vpop.eup %2970  ;;  %v1834_v15 = vadd.f32 %v1833_v33, %v1665_v9  ;;  %1368 = vmatmul.bf16.gmra.mxu0 %v2553_v6  ;;  %v1499_v16 = vadd.f32 %v1498_v11, %v1330_v13  ;;  %v2597_v33 = vor.u32 %v2854_v25, %v2594_v26 }
 0x1fc   : > { %1996 = vst.msk [vmem:[%s3242_s25 + $0x140] sm:$0xff] %vm1955_vm2, %v2971_v14  ;;  %1537 = vmatmul.bf16.gmra.mxu1 %v2557_v8 }
 0x1fd   : > { %2972 = vtanh.f32 %v1834_v15  ;;  %1706 = vmatmul.bf16.gmra.mxu2 %v2561_v12 }
 0x200   : > { %v1667_v18 = vpop.f32.mrf.mxu2  ;;  %v1331_v20 = vpop.f32.mrf.mxu0 }
 0x201   : > { %v1668_v19 = vadd.f32 %v1667_v18, %v1499_v16  ;;  %v1500_v21 = vpop.f32.mrf.mxu1  ;;  %v1332_v24 = vadd.f32 %v3431_v35, %v1331_v20  ;;  %v1843_v30 = vpop.f32.mrf.mxu3 }
 0x203   : > { %v2973_v22 = vpop.eup %2972  ;;  %v1837_v23 = vadd.f32 %v1836_v50, %v1668_v19  ;;  %v1501_v34 = vadd.f32 %v1500_v21, %v1332_v24 }
 0x204   : > { %1997 = vst.msk [vmem:[%s3242_s25 + $0x148] sm:$0xff] %vm1955_vm2, %v2973_v22 }
 0x205   : > { %2974 = vtanh.f32 %v1837_v23 }
 0x206   : > { %2725 = vmatmul.msk.bf16.gmra.mxu3 %vm1114_vm1, %v2597_v33 }
 0x208   : > { %v1669_v36 = vpop.f32.mrf.mxu2  ;;  %v1334_v40 = vpop.f32.mrf.mxu0 }
 0x209   : > { %v1670_v39 = vadd.f32 %v1669_v36, %v1501_v34  ;;  %v1503_v41 = vpop.f32.mrf.mxu1  ;;  %v1335_v43 = vadd.f32 %v3431_v35, %v1334_v40  ;;  %v1846_v47 = vpop.f32.mrf.mxu3 }
 0x20b   : > { %v2975_v44 = vpop.eup %2974  ;;  %v1839_v45 = vadd.f32 %v1838_v0, %v1670_v39  ;;  %1373 = vmatmul.bf16.gmra.mxu0 %v2569_v37  ;;  %v1504_v46 = vadd.f32 %v1503_v41, %v1335_v43  ;;  %v2585_v0 = vor.u32 %v2855_v56, %v2584_v55 }
 0x20c   : > { %1998 = vst.msk [vmem:[%s3242_s25 + $0x150] sm:$0xff] %vm1955_vm2, %v2975_v44  ;;  %1542 = vmatmul.bf16.gmra.mxu1 %v2573_v38 }
 0x20d   : > { %2976 = vtanh.f32 %v1839_v45  ;;  %1711 = vmatmul.bf16.gmra.mxu2 %v2577_v42 }
 0x210   : > { %v1672_v48 = vpop.f32.mrf.mxu2  ;;  %v1336_v50 = vpop.f32.mrf.mxu0 }
 0x211   : > { %v1673_v49 = vadd.f32 %v1672_v48, %v1504_v46  ;;  %v1505_v51 = vpop.f32.mrf.mxu1  ;;  %v1337_v54 = vadd.f32 %v3431_v35, %v1336_v50  ;;  %v1848_v59 = vpop.f32.mrf.mxu3 }
 0x213   : > { %v2977_v52 = vpop.eup %2976  ;;  %v1842_v53 = vadd.f32 %v1841_v17, %v1673_v49  ;;  %v1506_v62 = vadd.f32 %v1505_v51, %v1337_v54 }
 0x214   : > { %1999 = vst.msk [vmem:[%s3242_s25 + $0x158] sm:$0xff] %vm1955_vm2, %v2977_v52 }
 0x215   : > { %2978 = vtanh.f32 %v1842_v53 }
 0x218   : > { %v1674_v63 = vpop.f32.mrf.mxu2  ;;  %v1339_v3 = vpop.f32.mrf.mxu0 }
 0x219   : > { %v1675_v2 = vadd.f32 %v1674_v63, %v1506_v62  ;;  %v1508_v4 = vpop.f32.mrf.mxu1  ;;  %v1340_v6 = vadd.f32 %v3431_v35, %v1339_v3  ;;  %v1851_v11 = vpop.f32.mrf.mxu3 }
 0x21b   : > { %v2979_v8 = vpop.eup %2978  ;;  %v1844_v9 = vadd.f32 %v1843_v30, %v1675_v2  ;;  %1378 = vmatmul.bf16.gmra.mxu0 %v2585_v0  ;;  %v1509_v10 = vadd.f32 %v1508_v4, %v1340_v6 }
 0x21c   : > { %2000 = vst.msk [vmem:[%s3242_s25 + $0x160] sm:$0xff] %vm1955_vm2, %v2979_v8  ;;  %1547 = vmatmul.bf16.gmra.mxu1 %v2589_v1 }
 0x21d   : > { %2980 = vtanh.f32 %v1844_v9  ;;  %1716 = vmatmul.bf16.gmra.mxu2 %v2593_v5 }
 0x220   : > { %v1677_v12 = vpop.f32.mrf.mxu2  ;;  %v1341_v14 = vpop.f32.mrf.mxu0 }
 0x221   : > { %v1678_v13 = vadd.f32 %v1677_v12, %v1509_v10  ;;  %v1510_v15 = vpop.f32.mrf.mxu1  ;;  %v1342_v18 = vadd.f32 %v3431_v35, %v1341_v14  ;;  %v1853_v19 = vpop.f32.mrf.mxu3 }
 0x223   : > { %v2981_v16 = vpop.eup %2980  ;;  %v1847_v17 = vadd.f32 %v1846_v47, %v1678_v13  ;;  %v1511_v20 = vadd.f32 %v1510_v15, %v1342_v18 }
 0x224   : > { %2001 = vst.msk [vmem:[%s3242_s25 + $0x168] sm:$0xff] %vm1955_vm2, %v2981_v16 }
 0x225   : > { %2982 = vtanh.f32 %v1847_v17 }
 0x228   : > { %v1679_v21 = vpop.f32.mrf.mxu2  ;;  %v1344_v23 = vpop.f32.mrf.mxu0 }
 0x229   : > { %v1680_v22 = vadd.f32 %v1679_v21, %v1511_v20  ;;  %v1513_v24 = vpop.f32.mrf.mxu1  ;;  %v1345_v25 = vadd.f32 %v3431_v35, %v1344_v23  ;;  %v1856_v29 = vpop.f32.mrf.mxu3 }
 0x22b   : > { %v2983_v26 = vpop.eup %2982  ;;  %v1849_v27 = vadd.f32 %v1848_v59, %v1680_v22  ;;  %v1514_v28 = vadd.f32 %v1513_v24, %v1345_v25 }
 0x22c   : > { %2002 = vst.msk [vmem:[%s3242_s25 + $0x170] sm:$0xff] %vm1955_vm2, %v2983_v26 }
 0x22d   : > { %2984 = vtanh.f32 %v1849_v27 }
 0x230   : > { %v1682_v7 = vpop.f32.mrf.mxu2  ;;  %v1346_v31 = vpop.f32.mrf.mxu0 }
 0x231   : > { %v1683_v30 = vadd.f32 %v1682_v7, %v1514_v28  ;;  %v1515_v32 = vpop.f32.mrf.mxu1  ;;  %v1347_v36 = vadd.f32 %v3431_v35, %v1346_v31  ;;  %v1858_v37 = vpop.f32.mrf.mxu3 }
 0x233   : > { %v2985_v33 = vpop.eup %2984  ;;  %v1852_v34 = vadd.f32 %v1851_v11, %v1683_v30  ;;  %v1516_v38 = vadd.f32 %v1515_v32, %v1347_v36 }
 0x234   : > { %2003 = vst.msk [vmem:[%s3242_s25 + $0x178] sm:$0xff] %vm1955_vm2, %v2985_v33 }
 0x235   : > { %2986 = vtanh.f32 %v1852_v34 }
 0x238   : > { %v1684_v39 = vpop.f32.mrf.mxu2  ;;  %v1349_v41 = vpop.f32.mrf.mxu0 }
 0x239   : > { %v1685_v40 = vadd.f32 %v1684_v39, %v1516_v38  ;;  %v1518_v42 = vpop.f32.mrf.mxu1  ;;  %v1350_v43 = vadd.f32 %v3431_v35, %v1349_v41  ;;  %v1861_v47 = vpop.f32.mrf.mxu3 }
 0x23b   : > { %v2987_v44 = vpop.eup %2986  ;;  %v1854_v45 = vadd.f32 %v1853_v19, %v1685_v40  ;;  %v1519_v46 = vadd.f32 %v1518_v42, %v1350_v43 }
 0x23c   : > { %2004 = vst.msk [vmem:[%s3242_s25 + $0x180] sm:$0xff] %vm1955_vm2, %v2987_v44 }
 0x23d   : > { %2988 = vtanh.f32 %v1854_v45 }
 0x240   : > { %v1687_v48 = vpop.f32.mrf.mxu2  ;;  %v1351_v50 = vpop.f32.mrf.mxu0 }
 0x241   : > { %v1688_v49 = vadd.f32 %v1687_v48, %v1519_v46  ;;  %v1520_v51 = vpop.f32.mrf.mxu1  ;;  %v1352_v54 = vadd.f32 %v3431_v35, %v1351_v50  ;;  %v1863_v55 = vpop.f32.mrf.mxu3 }
 0x243   : > { %v2989_v52 = vpop.eup %2988  ;;  %v1857_v53 = vadd.f32 %v1856_v29, %v1688_v49  ;;  %v1521_v56 = vadd.f32 %v1520_v51, %v1352_v54 }
 0x244   : > { %2005 = vst.msk [vmem:[%s3242_s25 + $0x188] sm:$0xff] %vm1955_vm2, %v2989_v52 }
 0x245   : > { %2990 = vtanh.f32 %v1857_v53 }
 0x248   : > { %v1689_v57 = vpop.f32.mrf.mxu2  ;;  %v1354_v59 = vpop.f32.mrf.mxu0 }
 0x249   : > { %v1690_v58 = vadd.f32 %v1689_v57, %v1521_v56  ;;  %v1523_v60 = vpop.f32.mrf.mxu1  ;;  %v1355_v61 = vadd.f32 %v3431_v35, %v1354_v59  ;;  %v1866_v2 = vpop.f32.mrf.mxu3 }
 0x24b   : > { %v2991_v62 = vpop.eup %2990  ;;  %v1859_v63 = vadd.f32 %v1858_v37, %v1690_v58  ;;  %v1524_v0 = vadd.f32 %v1523_v60, %v1355_v61 }
 0x24c   : > { %2006 = vst.msk [vmem:[%s3242_s25 + $0x190] sm:$0xff] %vm1955_vm2, %v2991_v62 }
 0x24d   : > { %2992 = vtanh.f32 %v1859_v63 }
 0x250   : > { %v1692_v1 = vpop.f32.mrf.mxu2  ;;  %v1356_v4 = vpop.f32.mrf.mxu0 }
 0x251   : > { %v1693_v3 = vadd.f32 %v1692_v1, %v1524_v0  ;;  %v1525_v5 = vpop.f32.mrf.mxu1  ;;  %v1357_v9 = vadd.f32 %v3431_v35, %v1356_v4  ;;  %v1868_v16 = vpop.f32.mrf.mxu3  ;;  %v3019_v4 = vld [vmem:[%s3639_s2] ss:$0 sm:$0xff] }
 0x253   : > { %v2993_v6 = vpop.eup %2992  ;;  %v1862_v8 = vadd.f32 %v1861_v47, %v1693_v3  ;;  %v1526_v10 = vadd.f32 %v1525_v5, %v1357_v9 }
 0x254   : > { %2007 = vst.msk [vmem:[%s3242_s25 + $0x198] sm:$0xff] %vm1955_vm2, %v2993_v6 }
 0x255   : > { %2994 = vtanh.f32 %v1862_v8 }
 0x258   : > { %v1694_v11 = vpop.f32.mrf.mxu2  ;;  %v1359_v13 = vpop.f32.mrf.mxu0 }
 0x259   : > { %v1695_v12 = vadd.f32 %v1694_v11, %v1526_v10  ;;  %v1528_v14 = vpop.f32.mrf.mxu1  ;;  %v1360_v15 = vadd.f32 %v3431_v35, %v1359_v13  ;;  %v1871_v27 = vpop.f32.mrf.mxu3 }
 0x25b   : > { %v2995_v17 = vpop.eup %2994  ;;  %v1864_v18 = vadd.f32 %v1863_v55, %v1695_v12  ;;  %v1529_v19 = vadd.f32 %v1528_v14, %v1360_v15 }
 0x25c   : > { %2008 = vst.msk [vmem:[%s3242_s25 + $0x1a0] sm:$0xff] %vm1955_vm2, %v2995_v17 }
 0x25d   : > { %2996 = vtanh.f32 %v1864_v18 }
 0x260   : > { %v1697_v20 = vpop.f32.mrf.mxu2  ;;  %v1361_v22 = vpop.f32.mrf.mxu0 }
 0x261   : > { %v1698_v21 = vadd.f32 %v1697_v20, %v1529_v19  ;;  %v1530_v23 = vpop.f32.mrf.mxu1  ;;  %v1362_v26 = vadd.f32 %v3431_v35, %v1361_v22  ;;  %v1873_v37 = vpop.f32.mrf.mxu3 }
 0x263   : > { %v2997_v24 = vpop.eup %2996  ;;  %v1867_v25 = vadd.f32 %v1866_v2, %v1698_v21  ;;  %v1531_v28 = vadd.f32 %v1530_v23, %v1362_v26 }
 0x264   : > { %2009 = vst.msk [vmem:[%s3242_s25 + $0x1a8] sm:$0xff] %vm1955_vm2, %v2997_v24 }
 0x265   : > { %2998 = vtanh.f32 %v1867_v25 }
 0x268   : > { %v1699_v29 = vpop.f32.mrf.mxu2  ;;  %v1364_v30 = vpop.f32.mrf.mxu0 }
 0x269   : > { %v1700_v7 = vadd.f32 %v1699_v29, %v1531_v28  ;;  %v1533_v31 = vpop.f32.mrf.mxu1  ;;  %v1365_v32 = vadd.f32 %v3431_v35, %v1364_v30  ;;  %v1876_v47 = vpop.f32.mrf.mxu3 }
 0x26b   : > { %v2999_v33 = vpop.eup %2998  ;;  %v1869_v34 = vadd.f32 %v1868_v16, %v1700_v7  ;;  %v1534_v36 = vadd.f32 %v1533_v31, %v1365_v32 }
 0x26c   : > { %2010 = vst.msk [vmem:[%s3242_s25 + $0x1b0] sm:$0xff] %vm1955_vm2, %v2999_v33 }
 0x26d   : > { %3000 = vtanh.f32 %v1869_v34 }
 0x270   : > { %v1702_v38 = vpop.f32.mrf.mxu2  ;;  %v1366_v40 = vpop.f32.mrf.mxu0 }
 0x271   : > { %v1703_v39 = vadd.f32 %v1702_v38, %v1534_v36  ;;  %v1535_v41 = vpop.f32.mrf.mxu1  ;;  %v1367_v44 = vadd.f32 %v3431_v35, %v1366_v40  ;;  %v1878_v59 = vpop.f32.mrf.mxu3 }
 0x273   : > { %v3001_v42 = vpop.eup %3000  ;;  %v1872_v43 = vadd.f32 %v1871_v27, %v1703_v39  ;;  %v1536_v45 = vadd.f32 %v1535_v41, %v1367_v44 }
 0x274   : > { %2011 = vst.msk [vmem:[%s3242_s25 + $0x1b8] sm:$0xff] %vm1955_vm2, %v3001_v42 }
 0x275   : > { %3002 = vtanh.f32 %v1872_v43 }
 0x278   : > { %v1704_v46 = vpop.f32.mrf.mxu2  ;;  %v1369_v49 = vpop.f32.mrf.mxu0 }
 0x279   : > { %v1705_v48 = vadd.f32 %v1704_v46, %v1536_v45  ;;  %v1538_v50 = vpop.f32.mrf.mxu1  ;;  %v1370_v51 = vadd.f32 %v3431_v35, %v1369_v49  ;;  %v1881_v9 = vpop.f32.mrf.mxu3 }
 0x27b   : > { %v3003_v52 = vpop.eup %3002  ;;  %v1874_v53 = vadd.f32 %v1873_v37, %v1705_v48  ;;  %v1539_v54 = vadd.f32 %v1538_v50, %v1370_v51 }
 0x27c   : > { %2012 = vst.msk [vmem:[%s3242_s25 + $0x1c0] sm:$0xff] %vm1955_vm2, %v3003_v52 }
 0x27d   : > { %3004 = vtanh.f32 %v1874_v53 }
 0x280   : > { %v1707_v55 = vpop.f32.mrf.mxu2  ;;  %v1371_v57 = vpop.f32.mrf.mxu0 }
 0x281   : > { %v1708_v56 = vadd.f32 %v1707_v55, %v1539_v54  ;;  %v1540_v58 = vpop.f32.mrf.mxu1  ;;  %v1372_v62 = vadd.f32 %v3431_v35, %v1371_v57  ;;  %v1883_v17 = vpop.f32.mrf.mxu3 }
 0x283   : > { %v3005_v60 = vpop.eup %3004  ;;  %v1877_v61 = vadd.f32 %v1876_v47, %v1708_v56  ;;  %v1541_v63 = vadd.f32 %v1540_v58, %v1372_v62 }
 0x284   : > { %2013 = vst.msk [vmem:[%s3242_s25 + $0x1c8] sm:$0xff] %vm1955_vm2, %v3005_v60 }
 0x285   : > { %3006 = vtanh.f32 %v1877_v61 }
 0x288   : > { %v1709_v0 = vpop.f32.mrf.mxu2  ;;  %v1374_v2 = vpop.f32.mrf.mxu0 }
 0x289   : > { %v1710_v1 = vadd.f32 %v1709_v0, %v1541_v63  ;;  %v1543_v3 = vpop.f32.mrf.mxu1  ;;  %v1375_v5 = vadd.f32 %v3019_v4, %v1374_v2  ;;  %v1886_v27 = vpop.f32.mrf.mxu3 }
 0x28b   : > { %v3007_v6 = vpop.eup %3006  ;;  %v1879_v8 = vadd.f32 %v1878_v59, %v1710_v1  ;;  %v1544_v35 = vadd.f32 %v1543_v3, %v1375_v5 }
 0x28c   : > { %2014 = vst.msk [vmem:[%s3242_s25 + $0x1d0] sm:$0xff] %vm1955_vm2, %v3007_v6 }
 0x28d   : > { %3008 = vtanh.f32 %v1879_v8 }
 0x290   : > { %v1712_v10 = vpop.f32.mrf.mxu2  ;;  %v1376_v12 = vpop.f32.mrf.mxu0 }
 0x291   : > { %v1713_v11 = vadd.f32 %v1712_v10, %v1544_v35  ;;  %v1545_v13 = vpop.f32.mrf.mxu1  ;;  %v1377_v16 = vadd.f32 %v3019_v4, %v1376_v12  ;;  %v1888_v38 = vpop.f32.mrf.mxu3 }
 0x293   : > { %v3009_v14 = vpop.eup %3008  ;;  %v1882_v15 = vadd.f32 %v1881_v9, %v1713_v11  ;;  %v1546_v18 = vadd.f32 %v1545_v13, %v1377_v16 }
 0x294   : > { %2015 = vst.msk [vmem:[%s3242_s25 + $0x1d8] sm:$0xff] %vm1955_vm2, %v3009_v14 }
 0x295   : > { %3010 = vtanh.f32 %v1882_v15 }
 0x298   : > { %v1714_v19 = vpop.f32.mrf.mxu2  ;;  %v1379_v21 = vpop.f32.mrf.mxu0 }
 0x299   : > { %v1715_v20 = vadd.f32 %v1714_v19, %v1546_v18  ;;  %v1380_v22 = vadd.f32 %v3019_v4, %v1379_v21  ;;  %v1548_v25 = vpop.f32.mrf.mxu1 }
 0x29b   : > { %v3011_v23 = vpop.eup %3010  ;;  %v1884_v24 = vadd.f32 %v1883_v17, %v1715_v20  ;;  %v1549_v26 = vadd.f32 %v1548_v25, %v1380_v22 }
 0x29c   : > { %2016 = vst.msk [vmem:[%s3242_s25 + $0x1e0] sm:$0xff] %vm1955_vm2, %v3011_v23 }
 0x29d   : > { %3012 = vtanh.f32 %v1884_v24 }
 0x2a0   : > { %v1717_v28 = vpop.f32.mrf.mxu2  ;;  %v1381_v7 = vpop.f32.mrf.mxu0 }
 0x2a1   : > { %v1718_v29 = vadd.f32 %v1717_v28, %v1549_v26  ;;  %v1382_v32 = vadd.f32 %v3019_v4, %v1381_v7  ;;  %v1550_v33 = vpop.f32.mrf.mxu1 }
 0x2a3   : > { %v3013_v30 = vpop.eup %3012  ;;  %v1887_v31 = vadd.f32 %v1886_v27, %v1718_v29  ;;  %v1551_v34 = vadd.f32 %v1550_v33, %v1382_v32 }
 0x2a4   : > { %2017 = vst.msk [vmem:[%s3242_s25 + $0x1e8] sm:$0xff] %vm1955_vm2, %v3013_v30 }
 0x2a5   : > { %3014 = vtanh.f32 %v1887_v31 }
 0x2a8   : > { %v1719_v36 = vpop.f32.mrf.mxu2 }
 0x2a9   : > { %v1720_v37 = vadd.f32 %v1719_v36, %v1551_v34 }
 0x2ab   : > { %v3015_v39 = vpop.eup %3014  ;;  %v1889_v40 = vadd.f32 %v1888_v38, %v1720_v37 }
 0x2ac   : > { %2018 = vst.msk [vmem:[%s3242_s25 + $0x1f0] sm:$0xff] %vm1955_vm2, %v3015_v39 }
 0x2ad   : > { %3016 = vtanh.f32 %v1889_v40 }
 0x2b3   : > { %v3017_v41 = vpop.eup %3016 }
 0x2b4   : > { %2019 = vst.msk [vmem:[%s3242_s25 + $0x1f8] sm:$0xff] %vm1955_vm2, %v3017_v41 }
 0x2b5 PF: > { %s13_s12 = sadd.s32 1, %s3026_s12  }
 0x2b6   : > { %p10_p4 = scmp.ge.s32.totalorder %s13_s12, 6  }
 0x2b8   :  { %12 = sbr.rel (!%p10_p4) target bundleno = 1 (0x1), region = 62 }

</bundles_post_ra>
